<compile_context>
chip_gen: v5e
topology: v5e:2x2
jax: 0.10.0
libtpu: 0.0.40
codegen_flags: <defaults>
</compile_context>

<pallas_src>
import functools
import math

import jax
import jax.numpy as jnp
from jax import lax
from jax.experimental import pallas as pl
from jax.experimental.pallas import tpu as pltpu

NEG_INF = -1e9   # stand-in for -inf in additive masks (keeps softmax NaN-free)
LN_EPS = 1e-5


# ------------------------------------------------------------------ BlockSpec helpers

def _layer_block(a):
    """Stacked-per-layer array [L, ...]: one layer slab per grid step (indexed by l)."""
    nd = a.ndim
    return pl.BlockSpec((1,) + a.shape[1:],
                        lambda b, l, _n=nd: (l,) + (0,) * (_n - 1))


def _batch_block(a):
    """Per-batch array [B, ...]: one batch slab per grid step (indexed by b)."""
    nd = a.ndim
    return pl.BlockSpec((1,) + a.shape[1:],
                        lambda b, l, _n=nd: (b,) + (0,) * (_n - 1))


def _const_block(a):
    """Array identical for every grid step (resident block)."""
    nd = a.ndim
    return pl.BlockSpec(a.shape, lambda b, l, _n=nd: (0,) * _n)


# ------------------------------------------------------------- in-kernel trace helpers

def _layer_norm(y, g, b):
    mu = jnp.mean(y, axis=-1, keepdims=True)
    var = jnp.mean(jnp.square(y - mu), axis=-1, keepdims=True)
    return (y - mu) * lax.rsqrt(var + LN_EPS) * g + b


def _mha(x_q, x_kv, wqkv_ref, bqkv_ref, wo_ref, bo_ref, bias, nhead, scale):
    """Multi-head attention for one batch element, heads batched along a major axis.

    x_q:[Tq,D]  x_kv:[Tk,D]
    wqkv_ref block [1,3,H,Dh,D] (head-major, pre-transposed), bqkv [1,3,H,1,Dh]
    wo_ref block [1,H,Dh,D], bo [1,1,D].  bias: [Tq,Tk] additive or None.
    Returns [Tq, D].
    """
    def project(j, xin):
        heads = [jnp.einsum("td,fd->tf", xin, wqkv_ref[0, j, h],
                            preferred_element_type=jnp.float32)
                 for h in range(nhead)]
        return jnp.stack(heads, axis=0) + bqkv_ref[0, j]           # [H, T, Dh]

    q = project(0, x_q)                                            # [H, Tq, Dh]
    k = project(1, x_kv)                                           # [H, Tk, Dh]
    v = project(2, x_kv)                                           # [H, Tk, Dh]

    s = jnp.einsum("hqd,hkd->hqk", q, k,
                   preferred_element_type=jnp.float32) * scale     # [H, Tq, Tk]
    if bias is not None:
        s = s + bias[None, :, :]
    # one softmax over the whole head-batched slab
    s = s - jnp.max(s, axis=-1, keepdims=True)
    p = jnp.exp(s)
    p = p * pl.reciprocal(jnp.sum(p, axis=-1, keepdims=True), approx=True)

    o = jnp.einsum("hqk,hkd->hqd", p, v,
                   preferred_element_type=jnp.float32)             # [H, Tq, Dh]
    proj = jnp.einsum("hqd,hdm->hqm", o, wo_ref[0],
                      preferred_element_type=jnp.float32)          # [H, Tq, D]
    return jnp.sum(proj, axis=0) + bo_ref[0]                       # [Tq, D]


def _ffn(y, w1_ref, b1_ref, w2t_ref, b2_ref):
    """relu(y @ w1 + b1) @ w2 + b2   (w2 stored transposed as [D, F], lane-dense)."""
    h = jnp.dot(y, w1_ref[0], preferred_element_type=jnp.float32) + b1_ref[0]
    h = jnp.maximum(h, 0.0)
    return jnp.einsum("tf,df->td", h, w2t_ref[0],
                      preferred_element_type=jnp.float32) + b2_ref[0]


# -------------------------------------------------------------------- encoder stack

def encoder_stack(x, bias, p, fin_g, fin_b, nhead):
    """All encoder layers + final encoder LayerNorm in one pallas_call.
    x:[B,T,D], bias:[B,T,T] or None.  Returns memory [B,T,D]."""
    B, T, D = x.shape
    L = p["wqkv"].shape[0]
    scale = 1.0 / math.sqrt(D // nhead)
    has_bias = bias is not None

    weight_names = ("wqkv", "bqkv", "wo", "bo", "w1", "b1", "w2t", "b2", "ln_g", "ln_b")
    weights = [p[n] for n in weight_names]

    inputs = [x] + ([bias] if has_bias else []) + weights + [fin_g, fin_b]
    in_specs = ([_batch_block(x)] + ([_batch_block(bias)] if has_bias else [])
                + [_layer_block(w) for w in weights]
                + [_const_block(fin_g), _const_block(fin_b)])

    def kernel(*refs):
        n_lead = 2 if has_bias else 1
        x_ref = refs[0]
        bias_ref = refs[1] if has_bias else None
        (wqkv_ref, bqkv_ref, wo_ref, bo_ref, w1_ref, b1_ref, w2t_ref, b2_ref,
         lng_ref, lnb_ref, fg_ref, fb_ref, o_ref, state_ref) = refs[n_lead:]

        b = pl.program_id(0)
        l = pl.program_id(1)

        @pl.when(l == 0)
        def _():
            state_ref[b] = x_ref[0]

        xb = state_ref[b]                                        # [T, D]
        bias_b = bias_ref[0] if has_bias else None

        attn = _mha(xb, xb, wqkv_ref, bqkv_ref, wo_ref, bo_ref, bias_b, nhead, scale)
        y = _layer_norm(xb + attn, lng_ref[0, 0], lnb_ref[0, 0])
        z = _layer_norm(y + _ffn(y, w1_ref, b1_ref, w2t_ref, b2_ref),
                        lng_ref[0, 1], lnb_ref[0, 1])
        state_ref[b] = z

        @pl.when(l == pl.num_programs(1) - 1)
        def _():
            o_ref[0] = _layer_norm(z, fg_ref[...], fb_ref[...])   # final encoder norm

    return pl.pallas_call(
        kernel,
        out_shape=jax.ShapeDtypeStruct((B, T, D), jnp.float32),
        grid=(B, L),
        in_specs=in_specs,
        out_specs=pl.BlockSpec((1, T, D), lambda b, l: (b, 0, 0)),
        scratch_shapes=[pltpu.VMEM((B, T, D), jnp.float32)],
        compiler_params=pltpu.CompilerParams(
            dimension_semantics=("parallel", "arbitrary")),
    )(*inputs)


# -------------------------------------------------------------------- decoder stack

def decoder_stack(y, memory, bias, p, fin_g, fin_b, head_w, head_b, nhead):
    """All decoder layers + final decoder LayerNorm + output projection in one
    pallas_call.  y:[B,T,D], memory:[B,S,D], bias:[B,T,T] or None,
    head_w:[D,NP] (lane-padded), head_b:[1,NP].  Returns padded logits [B,T,NP]."""
    B, T, D = y.shape
    NP = head_w.shape[1]
    L = p["s_wqkv"].shape[0]
    scale = 1.0 / math.sqrt(D // nhead)
    has_bias = bias is not None

    weight_names = ("s_wqkv", "s_bqkv", "s_wo", "s_bo",
                    "c_wqkv", "c_bqkv", "c_wo", "c_bo",
                    "w1", "b1", "w2t", "b2", "ln_g", "ln_b")
    weights = [p[n] for n in weight_names]

    inputs = ([y, memory] + ([bias] if has_bias else []) + weights
              + [fin_g, fin_b, head_w, head_b])
    in_specs = ([_batch_block(y), _batch_block(memory)]
                + ([_batch_block(bias)] if has_bias else [])
                + [_layer_block(w) for w in weights]
                + [_const_block(fin_g), _const_block(fin_b),
                   _const_block(head_w), _const_block(head_b)])

    def kernel(*refs):
        y_ref, mem_ref = refs[0], refs[1]
        idx = 2
        bias_ref = None
        if has_bias:
            bias_ref = refs[2]
            idx = 3
        (swqkv, sbqkv, swo, sbo, cwqkv, cbqkv, cwo, cbo,
         w1_ref, b1_ref, w2t_ref, b2_ref, lng_ref, lnb_ref,
         fg_ref, fb_ref, hw_ref, hb_ref, o_ref, state_ref) = refs[idx:]

        b = pl.program_id(0)
        l = pl.program_id(1)

        @pl.when(l == 0)
        def _():
            state_ref[b] = y_ref[0]

        yb = state_ref[b]                                        # [T, D]
        mem = mem_ref[0]                                         # [S, D]
        bias_b = bias_ref[0] if has_bias else None

        sa = _mha(yb, yb, swqkv, sbqkv, swo, sbo, bias_b, nhead, scale)
        y1 = _layer_norm(yb + sa, lng_ref[0, 0], lnb_ref[0, 0])
        ca = _mha(y1, mem, cwqkv, cbqkv, cwo, cbo, None, nhead, scale)  # no memory mask
        y2 = _layer_norm(y1 + ca, lng_ref[0, 1], lnb_ref[0, 1])
        y3 = _layer_norm(y2 + _ffn(y2, w1_ref, b1_ref, w2t_ref, b2_ref),
                         lng_ref[0, 2], lnb_ref[0, 2])
        state_ref[b] = y3

        @pl.when(l == pl.num_programs(1) - 1)
        def _():
            fin = _layer_norm(y3, fg_ref[...], fb_ref[...])       # final decoder norm
            o_ref[0] = (jnp.dot(fin, hw_ref[...],
                                preferred_element_type=jnp.float32) + hb_ref[...])

    return pl.pallas_call(
        kernel,
        out_shape=jax.ShapeDtypeStruct((B, T, NP), jnp.float32),
        grid=(B, L),
        in_specs=in_specs,
        out_specs=pl.BlockSpec((1, T, NP), lambda b, l: (b, 0, 0)),
        scratch_shapes=[pltpu.VMEM((B, T, D), jnp.float32)],
        compiler_params=pltpu.CompilerParams(
            dimension_semantics=("parallel", "arbitrary")),
    )(*inputs)


# ----------------------------------------------------------------- transformer glue

def make_bias(attn_mask, key_padding_mask, B, Tq, Tk):
    """Per-batch additive bias [B, Tq, Tk]; None when there is no mask at all."""
    if attn_mask is None and key_padding_mask is None:
        return None
    bias = jnp.zeros((B, Tq, Tk), jnp.float32)
    if attn_mask is not None:
        bias = bias + attn_mask.astype(jnp.float32)[None, :, :]
    if key_padding_mask is not None:
        bias = bias + jnp.where(key_padding_mask, NEG_INF, 0.0)[:, None, :]
    return bias


@functools.partial(jax.jit, static_argnames=("nhead",))
def baseline_forward(params, src, tgt, src_mask, tgt_mask, src_pad_mask, tgt_pad_mask,
                     nhead):
    # embeddings (gather in plain JAX; no clean Pallas gather for tiny tables)
    pos = params["pos_emb"][None, :, :]                         # [1, L, D]
    src_in = pos + jnp.take(params["src_emb"], src, axis=0)     # [B, S, D]
    tgt_in = pos + jnp.take(params["tgt_emb"], tgt, axis=0)     # [B, T, D]
    B, S, _ = src_in.shape
    T = tgt_in.shape[1]

    enc_bias = make_bias(src_mask, src_pad_mask, B, S, S)
    dec_bias = make_bias(tgt_mask, tgt_pad_mask, B, T, T)
    # memory_mask / memory_key_padding_mask are None in this module -> no cross bias.

    memory = encoder_stack(src_in, enc_bias, params["enc"],
                           params["enc_norm_g"], params["enc_norm_b"], nhead)

    # pad the output head to a 128-lane multiple for unmasked stores; slice after.
    V = params["head_w"].shape[1]
    NP = ((V + 127) // 128) * 128
    head_w = jnp.pad(params["head_w"], ((0, 0), (0, NP - V)))
    head_b = jnp.pad(params["head_b"], (0, NP - V)).reshape(1, NP)

    logits_padded = decoder_stack(tgt_in, memory, dec_bias, params["dec"],
                                  params["dec_norm_g"], params["dec_norm_b"],
                                  head_w, head_b, nhead)
    return logits_padded[:, :, :V]


# ----------------------------------------------------------------------- param init

def init_params(key, num_tokens, max_len, dim, nhead, num_enc, num_dec, d_ff):
    H = nhead
    Dh = dim // nhead
    keys = iter(jax.random.split(key, 64))

    def nrm(shape, scale=0.02):
        return scale * jax.random.normal(next(keys), shape, jnp.float32)

    zeros = lambda s: jnp.zeros(s, jnp.float32)
    ones = lambda s: jnp.ones(s, jnp.float32)

    # Attention projection weights are stored head-major & pre-transposed:
    #   wqkv[l, j, h] is the [Dh, D] matrix for projection j (0=Q,1=K,2=V), head h.
    # FFN second matmul is stored transposed ([D, F]) so its minor dim is lane-dense.
    def enc_stack_params(L):
        return dict(
            wqkv=nrm((L, 3, H, Dh, dim)), bqkv=zeros((L, 3, H, 1, Dh)),
            wo=nrm((L, H, Dh, dim)), bo=zeros((L, 1, dim)),
            w1=nrm((L, dim, d_ff)), b1=zeros((L, 1, d_ff)),
            w2t=nrm((L, dim, d_ff)), b2=zeros((L, 1, dim)),
            ln_g=ones((L, 2, 1, dim)), ln_b=zeros((L, 2, 1, dim)))

    def dec_stack_params(L):
        return dict(
            s_wqkv=nrm((L, 3, H, Dh, dim)), s_bqkv=zeros((L, 3, H, 1, Dh)),
            s_wo=nrm((L, H, Dh, dim)), s_bo=zeros((L, 1, dim)),
            c_wqkv=nrm((L, 3, H, Dh, dim)), c_bqkv=zeros((L, 3, H, 1, Dh)),
            c_wo=nrm((L, H, Dh, dim)), c_bo=zeros((L, 1, dim)),
            w1=nrm((L, dim, d_ff)), b1=zeros((L, 1, d_ff)),
            w2t=nrm((L, dim, d_ff)), b2=zeros((L, 1, dim)),
            ln_g=ones((L, 3, 1, dim)), ln_b=zeros((L, 3, 1, dim)))

    return dict(
        src_emb=nrm((num_tokens, dim), 1.0),
        tgt_emb=nrm((num_tokens, dim), 1.0),
        pos_emb=nrm((max_len, dim), 1.0),
        enc=enc_stack_params(num_enc),
        dec=dec_stack_params(num_dec),
        enc_norm_g=ones((1, dim)), enc_norm_b=zeros((1, dim)),
        dec_norm_g=ones((1, dim)), dec_norm_b=zeros((1, dim)),
        head_w=nrm((dim, num_tokens)), head_b=zeros((num_tokens,)),
    )


# ------------------------------------------------------------------------------ main

if __name__ == "__main__":
    B = 2
    max_len = 8          # src/tgt sequence length == max_len (pos_emb broadcast)
    num_tokens = 32
    dim = 64
    nhead = 8
    num_enc = 2
    num_dec = 2
    d_ff = 1024          # dim_feedforward (module default)

    key = jax.random.PRNGKey(0)
    pkey, skey, tkey = jax.random.split(key, 3)
    params = init_params(pkey, num_tokens, max_len, dim, nhead, num_enc, num_dec, d_ff)

    src = jax.random.randint(skey, (B, max_len), 0, num_tokens, dtype=jnp.int32)
    tgt = jax.random.randint(tkey, (B, max_len), 0, num_tokens, dtype=jnp.int32)

    # attention masks (additive float), padding masks (bool, True = pad)
    src_mask = jnp.zeros((max_len, max_len), jnp.float32)
    tgt_mask = jnp.triu(jnp.full((max_len, max_len), NEG_INF, jnp.float32), k=1)
    src_pad_mask = jnp.zeros((B, max_len), bool).at[:, -1].set(True)
    tgt_pad_mask = jnp.zeros((B, max_len), bool)

    logits = baseline_forward(params, src, tgt, src_mask, tgt_mask,
                              src_pad_mask, tgt_pad_mask, nhead=nhead)
    logits = jax.block_until_ready(logits)
    assert logits.shape == (B, max_len, num_tokens)
    assert bool(jnp.all(jnp.isfinite(logits)))
    print("KERNEL_OK")
</pallas_src>

<mosaic_0001>
module attributes {stable_mosaic.version = 11 : i64} {
  func.func @kernel(%arg0: i32, %arg1: i32, %arg2: memref<1x8x64xf32, #tpu.memory_space<vmem>>, %arg3: memref<1x8x8xf32, #tpu.memory_space<vmem>>, %arg4: memref<1x3x8x8x64xf32, #tpu.memory_space<vmem>>, %arg5: memref<1x3x8x1x8xf32, #tpu.memory_space<vmem>>, %arg6: memref<1x8x8x64xf32, #tpu.memory_space<vmem>>, %arg7: memref<1x1x64xf32, #tpu.memory_space<vmem>>, %arg8: memref<1x64x1024xf32, #tpu.memory_space<vmem>>, %arg9: memref<1x1x1024xf32, #tpu.memory_space<vmem>>, %arg10: memref<1x64x1024xf32, #tpu.memory_space<vmem>>, %arg11: memref<1x1x64xf32, #tpu.memory_space<vmem>>, %arg12: memref<1x2x1x64xf32, #tpu.memory_space<vmem>>, %arg13: memref<1x2x1x64xf32, #tpu.memory_space<vmem>>, %arg14: memref<1x64xf32, #tpu.memory_space<vmem>>, %arg15: memref<1x64xf32, #tpu.memory_space<vmem>>, %arg16: memref<1x8x64xf32, #tpu.memory_space<vmem>>, %arg17: memref<2x8x64xf32, #tpu.memory_space<vmem>>) attributes {dimension_semantics = [#tpu.dimension_semantics<parallel>, #tpu.dimension_semantics<arbitrary>], iteration_bounds = array<i64: 2, 2>, scalar_prefetch = 0 : i64, scratch_operands = 1 : i64, tpu.core_type = #tpu.core_type<tc>, window_params = [{transform_indices = @transform_0, window_bounds = array<i64: 1, 8, 64>}, {transform_indices = @transform_1, window_bounds = array<i64: 1, 8, 8>}, {transform_indices = @transform_2, window_bounds = array<i64: 1, 3, 8, 8, 64>}, {transform_indices = @transform_3, window_bounds = array<i64: 1, 3, 8, 1, 8>}, {transform_indices = @transform_4, window_bounds = array<i64: 1, 8, 8, 64>}, {transform_indices = @transform_5, window_bounds = array<i64: 1, 1, 64>}, {transform_indices = @transform_6, window_bounds = array<i64: 1, 64, 1024>}, {transform_indices = @transform_7, window_bounds = array<i64: 1, 1, 1024>}, {transform_indices = @transform_8, window_bounds = array<i64: 1, 64, 1024>}, {transform_indices = @transform_9, window_bounds = array<i64: 1, 1, 64>}, {transform_indices = @transform_10, window_bounds = array<i64: 1, 2, 1, 64>}, {transform_indices = @transform_11, window_bounds = array<i64: 1, 2, 1, 64>}, {pipeline_mode = #tpu.pipeline_mode<synchronous>, transform_indices = @transform_12, window_bounds = array<i64: 1, 64>}, {pipeline_mode = #tpu.pipeline_mode<synchronous>, transform_indices = @transform_13, window_bounds = array<i64: 1, 64>}, {transform_indices = @transform_14, window_bounds = array<i64: 1, 8, 64>}]} {
    %c0_i32 = arith.constant 0 : i32
    %0 = arith.cmpi eq, %arg1, %c0_i32 : i32
    %1 = arith.extui %0 : i1 to i32
    %c0_i32_0 = arith.constant 0 : i32
    %2 = arith.cmpi ne, %1, %c0_i32_0 : i32
    scf.if %2 {
      %c0_214 = arith.constant 0 : index
      %c0_215 = arith.constant 0 : index
      %c0_216 = arith.constant 0 : index
      %221 = vector.load %arg2[%c0_214, %c0_215, %c0_216] : memref<1x8x64xf32, #tpu.memory_space<vmem>>, vector<1x8x64xf32>
      %222 = vector.shape_cast %221 : vector<1x8x64xf32> to vector<8x64xf32>
      %223 = arith.index_cast %arg0 : i32 to index
      %c0_217 = arith.constant 0 : index
      %c0_218 = arith.constant 0 : index
      %224 = vector.load %arg17[%223, %c0_217, %c0_218] : memref<2x8x64xf32, #tpu.memory_space<vmem>>, vector<1x8x64xf32>
      %225 = vector.shape_cast %224 : vector<1x8x64xf32> to vector<8x64xf32>
      %226 = vector.shape_cast %222 : vector<8x64xf32> to vector<1x8x64xf32>
      tpu.vector_store %arg17[%223, %c0_217, %c0_218], %226 {strides = array<i32>} : memref<2x8x64xf32, #tpu.memory_space<vmem>>, vector<1x8x64xf32>,
    } else {
    }
    %3 = arith.index_cast %arg0 : i32 to index
    %c0 = arith.constant 0 : index
    %c0_1 = arith.constant 0 : index
    %4 = vector.load %arg17[%3, %c0, %c0_1] : memref<2x8x64xf32, #tpu.memory_space<vmem>>, vector<1x8x64xf32>
    %5 = vector.shape_cast %4 : vector<1x8x64xf32> to vector<8x64xf32>
    %c0_2 = arith.constant 0 : index
    %c0_3 = arith.constant 0 : index
    %c0_4 = arith.constant 0 : index
    %6 = vector.load %arg3[%c0_2, %c0_3, %c0_4] : memref<1x8x8xf32, #tpu.memory_space<vmem>>, vector<1x8x8xf32>
    %7 = vector.shape_cast %6 : vector<1x8x8xf32> to vector<8x8xf32>
    %c0_5 = arith.constant 0 : index
    %c0_6 = arith.constant 0 : index
    %c0_7 = arith.constant 0 : index
    %c0_8 = arith.constant 0 : index
    %c0_9 = arith.constant 0 : index
    %8 = vector.load %arg4[%c0_5, %c0_6, %c0_7, %c0_8, %c0_9] : memref<1x3x8x8x64xf32, #tpu.memory_space<vmem>>, vector<1x1x1x8x64xf32>
    %9 = vector.shape_cast %8 : vector<1x1x1x8x64xf32> to vector<8x64xf32>
    "tpu.trace_start"() <{level = 10 : i32, message = "td,fd->tf"}> : () -> ()
    %cst = arith.constant dense<0.000000e+00> : vector<8x8xf32>
    %10 = tpu.matmul %5, %9, %cst {dimension_numbers = #tpu.dot_dimension_numbers<[1], [1], [0], [0], [0, 0, 1, 0], [], []>} : vector<8x64xf32>, vector<8x64xf32>, vector<8x8xf32> -> vector<8x8xf32>
    "tpu.trace_stop"() : () -> ()
    %c0_10 = arith.constant 0 : index
    %c0_11 = arith.constant 0 : index
    %c1 = arith.constant 1 : index
    %c0_12 = arith.constant 0 : index
    %c0_13 = arith.constant 0 : index
    %11 = vector.load %arg4[%c0_10, %c0_11, %c1, %c0_12, %c0_13] : memref<1x3x8x8x64xf32, #tpu.memory_space<vmem>>, vector<1x1x1x8x64xf32>
    %12 = vector.shape_cast %11 : vector<1x1x1x8x64xf32> to vector<8x64xf32>
    "tpu.trace_start"() <{level = 10 : i32, message = "td,fd->tf"}> : () -> ()
    %cst_14 = arith.constant dense<0.000000e+00> : vector<8x8xf32>
    %13 = tpu.matmul %5, %12, %cst_14 {dimension_numbers = #tpu.dot_dimension_numbers<[1], [1], [0], [0], [0, 0, 1, 0], [], []>} : vector<8x64xf32>, vector<8x64xf32>, vector<8x8xf32> -> vector<8x8xf32>
    "tpu.trace_stop"() : () -> ()
    %c0_15 = arith.constant 0 : index
    %c0_16 = arith.constant 0 : index
    %c2 = arith.constant 2 : index
    %c0_17 = arith.constant 0 : index
    %c0_18 = arith.constant 0 : index
    %14 = vector.load %arg4[%c0_15, %c0_16, %c2, %c0_17, %c0_18] : memref<1x3x8x8x64xf32, #tpu.memory_space<vmem>>, vector<1x1x1x8x64xf32>
    %15 = vector.shape_cast %14 : vector<1x1x1x8x64xf32> to vector<8x64xf32>
    "tpu.trace_start"() <{level = 10 : i32, message = "td,fd->tf"}> : () -> ()
    %cst_19 = arith.constant dense<0.000000e+00> : vector<8x8xf32>
    %16 = tpu.matmul %5, %15, %cst_19 {dimension_numbers = #tpu.dot_dimension_numbers<[1], [1], [0], [0], [0, 0, 1, 0], [], []>} : vector<8x64xf32>, vector<8x64xf32>, vector<8x8xf32> -> vector<8x8xf32>
    "tpu.trace_stop"() : () -> ()
    %c0_20 = arith.constant 0 : index
    %c0_21 = arith.constant 0 : index
    %c3 = arith.constant 3 : index
    %c0_22 = arith.constant 0 : index
    %c0_23 = arith.constant 0 : index
    %17 = vector.load %arg4[%c0_20, %c0_21, %c3, %c0_22, %c0_23] : memref<1x3x8x8x64xf32, #tpu.memory_space<vmem>>, vector<1x1x1x8x64xf32>
    %18 = vector.shape_cast %17 : vector<1x1x1x8x64xf32> to vector<8x64xf32>
    "tpu.trace_start"() <{level = 10 : i32, message = "td,fd->tf"}> : () -> ()
    %cst_24 = arith.constant dense<0.000000e+00> : vector<8x8xf32>
    %19 = tpu.matmul %5, %18, %cst_24 {dimension_numbers = #tpu.dot_dimension_numbers<[1], [1], [0], [0], [0, 0, 1, 0], [], []>} : vector<8x64xf32>, vector<8x64xf32>, vector<8x8xf32> -> vector<8x8xf32>
    "tpu.trace_stop"() : () -> ()
    %c0_25 = arith.constant 0 : index
    %c0_26 = arith.constant 0 : index
    %c4 = arith.constant 4 : index
    %c0_27 = arith.constant 0 : index
    %c0_28 = arith.constant 0 : index
    %20 = vector.load %arg4[%c0_25, %c0_26, %c4, %c0_27, %c0_28] : memref<1x3x8x8x64xf32, #tpu.memory_space<vmem>>, vector<1x1x1x8x64xf32>
    %21 = vector.shape_cast %20 : vector<1x1x1x8x64xf32> to vector<8x64xf32>
    "tpu.trace_start"() <{level = 10 : i32, message = "td,fd->tf"}> : () -> ()
    %cst_29 = arith.constant dense<0.000000e+00> : vector<8x8xf32>
    %22 = tpu.matmul %5, %21, %cst_29 {dimension_numbers = #tpu.dot_dimension_numbers<[1], [1], [0], [0], [0, 0, 1, 0], [], []>} : vector<8x64xf32>, vector<8x64xf32>, vector<8x8xf32> -> vector<8x8xf32>
    "tpu.trace_stop"() : () -> ()
    %c0_30 = arith.constant 0 : index
    %c0_31 = arith.constant 0 : index
    %c5 = arith.constant 5 : index
    %c0_32 = arith.constant 0 : index
    %c0_33 = arith.constant 0 : index
    %23 = vector.load %arg4[%c0_30, %c0_31, %c5, %c0_32, %c0_33] : memref<1x3x8x8x64xf32, #tpu.memory_space<vmem>>, vector<1x1x1x8x64xf32>
    %24 = vector.shape_cast %23 : vector<1x1x1x8x64xf32> to vector<8x64xf32>
    "tpu.trace_start"() <{level = 10 : i32, message = "td,fd->tf"}> : () -> ()
    %cst_34 = arith.constant dense<0.000000e+00> : vector<8x8xf32>
    %25 = tpu.matmul %5, %24, %cst_34 {dimension_numbers = #tpu.dot_dimension_numbers<[1], [1], [0], [0], [0, 0, 1, 0], [], []>} : vector<8x64xf32>, vector<8x64xf32>, vector<8x8xf32> -> vector<8x8xf32>
    "tpu.trace_stop"() : () -> ()
    %c0_35 = arith.constant 0 : index
    %c0_36 = arith.constant 0 : index
    %c6 = arith.constant 6 : index
    %c0_37 = arith.constant 0 : index
    %c0_38 = arith.constant 0 : index
    %26 = vector.load %arg4[%c0_35, %c0_36, %c6, %c0_37, %c0_38] : memref<1x3x8x8x64xf32, #tpu.memory_space<vmem>>, vector<1x1x1x8x64xf32>
    %27 = vector.shape_cast %26 : vector<1x1x1x8x64xf32> to vector<8x64xf32>
    "tpu.trace_start"() <{level = 10 : i32, message = "td,fd->tf"}> : () -> ()
    %cst_39 = arith.constant dense<0.000000e+00> : vector<8x8xf32>
    %28 = tpu.matmul %5, %27, %cst_39 {dimension_numbers = #tpu.dot_dimension_numbers<[1], [1], [0], [0], [0, 0, 1, 0], [], []>} : vector<8x64xf32>, vector<8x64xf32>, vector<8x8xf32> -> vector<8x8xf32>
    "tpu.trace_stop"() : () -> ()
    %c0_40 = arith.constant 0 : index
    %c0_41 = arith.constant 0 : index
    %c7 = arith.constant 7 : index
    %c0_42 = arith.constant 0 : index
    %c0_43 = arith.constant 0 : index
    %29 = vector.load %arg4[%c0_40, %c0_41, %c7, %c0_42, %c0_43] : memref<1x3x8x8x64xf32, #tpu.memory_space<vmem>>, vector<1x1x1x8x64xf32>
    %30 = vector.shape_cast %29 : vector<1x1x1x8x64xf32> to vector<8x64xf32>
    "tpu.trace_start"() <{level = 10 : i32, message = "td,fd->tf"}> : () -> ()
    %cst_44 = arith.constant dense<0.000000e+00> : vector<8x8xf32>
    %31 = tpu.matmul %5, %30, %cst_44 {dimension_numbers = #tpu.dot_dimension_numbers<[1], [1], [0], [0], [0, 0, 1, 0], [], []>} : vector<8x64xf32>, vector<8x64xf32>, vector<8x8xf32> -> vector<8x8xf32>
    "tpu.trace_stop"() : () -> ()
    %32 = vector.shape_cast %10 : vector<8x8xf32> to vector<1x8x8xf32>
    %33 = vector.shape_cast %13 : vector<8x8xf32> to vector<1x8x8xf32>
    %34 = vector.shape_cast %16 : vector<8x8xf32> to vector<1x8x8xf32>
    %35 = vector.shape_cast %19 : vector<8x8xf32> to vector<1x8x8xf32>
    %36 = vector.shape_cast %22 : vector<8x8xf32> to vector<1x8x8xf32>
    %37 = vector.shape_cast %25 : vector<8x8xf32> to vector<1x8x8xf32>
    %38 = vector.shape_cast %28 : vector<8x8xf32> to vector<1x8x8xf32>
    %39 = vector.shape_cast %31 : vector<8x8xf32> to vector<1x8x8xf32>
    %40 = tpu.concatenate %32, %33, %34, %35, %36, %37, %38, %39 in 0 : vector<1x8x8xf32>, vector<1x8x8xf32>, vector<1x8x8xf32>, vector<1x8x8xf32>, vector<1x8x8xf32>, vector<1x8x8xf32>, vector<1x8x8xf32>, vector<1x8x8xf32> -> vector<8x8x8xf32>
    %c0_45 = arith.constant 0 : index
    %c0_46 = arith.constant 0 : index
    %c0_47 = arith.constant 0 : index
    %c0_48 = arith.constant 0 : index
    %c0_49 = arith.constant 0 : index
    %41 = vector.load %arg5[%c0_45, %c0_46, %c0_47, %c0_48, %c0_49] : memref<1x3x8x1x8xf32, #tpu.memory_space<vmem>>, vector<1x1x8x1x8xf32>
    %42 = vector.shape_cast %41 : vector<1x1x8x1x8xf32> to vector<8x1x8xf32>
    %43 = vector.broadcast %42 : vector<8x1x8xf32> to vector<8x8x8xf32>
    %44 = arith.addf %40, %43 : vector<8x8x8xf32>
    %c0_50 = arith.constant 0 : index
    %c1_51 = arith.constant 1 : index
    %c0_52 = arith.constant 0 : index
    %c0_53 = arith.constant 0 : index
    %c0_54 = arith.constant 0 : index
    %45 = vector.load %arg4[%c0_50, %c1_51, %c0_52, %c0_53, %c0_54] : memref<1x3x8x8x64xf32, #tpu.memory_space<vmem>>, vector<1x1x1x8x64xf32>
    %46 = vector.shape_cast %45 : vector<1x1x1x8x64xf32> to vector<8x64xf32>
    "tpu.trace_start"() <{level = 10 : i32, message = "td,fd->tf"}> : () -> ()
    %cst_55 = arith.constant dense<0.000000e+00> : vector<8x8xf32>
    %47 = tpu.matmul %5, %46, %cst_55 {dimension_numbers = #tpu.dot_dimension_numbers<[1], [1], [0], [0], [0, 0, 1, 0], [], []>} : vector<8x64xf32>, vector<8x64xf32>, vector<8x8xf32> -> vector<8x8xf32>
    "tpu.trace_stop"() : () -> ()
    %c0_56 = arith.constant 0 : index
    %c1_57 = arith.constant 1 : index
    %c1_58 = arith.constant 1 : index
    %c0_59 = arith.constant 0 : index
    %c0_60 = arith.constant 0 : index
    %48 = vector.load %arg4[%c0_56, %c1_57, %c1_58, %c0_59, %c0_60] : memref<1x3x8x8x64xf32, #tpu.memory_space<vmem>>, vector<1x1x1x8x64xf32>
    %49 = vector.shape_cast %48 : vector<1x1x1x8x64xf32> to vector<8x64xf32>
    "tpu.trace_start"() <{level = 10 : i32, message = "td,fd->tf"}> : () -> ()
    %cst_61 = arith.constant dense<0.000000e+00> : vector<8x8xf32>
    %50 = tpu.matmul %5, %49, %cst_61 {dimension_numbers = #tpu.dot_dimension_numbers<[1], [1], [0], [0], [0, 0, 1, 0], [], []>} : vector<8x64xf32>, vector<8x64xf32>, vector<8x8xf32> -> vector<8x8xf32>
    "tpu.trace_stop"() : () -> ()
    %c0_62 = arith.constant 0 : index
    %c1_63 = arith.constant 1 : index
    %c2_64 = arith.constant 2 : index
    %c0_65 = arith.constant 0 : index
    %c0_66 = arith.constant 0 : index
    %51 = vector.load %arg4[%c0_62, %c1_63, %c2_64, %c0_65, %c0_66] : memref<1x3x8x8x64xf32, #tpu.memory_space<vmem>>, vector<1x1x1x8x64xf32>
    %52 = vector.shape_cast %51 : vector<1x1x1x8x64xf32> to vector<8x64xf32>
    "tpu.trace_start"() <{level = 10 : i32, message = "td,fd->tf"}> : () -> ()
    %cst_67 = arith.constant dense<0.000000e+00> : vector<8x8xf32>
    %53 = tpu.matmul %5, %52, %cst_67 {dimension_numbers = #tpu.dot_dimension_numbers<[1], [1], [0], [0], [0, 0, 1, 0], [], []>} : vector<8x64xf32>, vector<8x64xf32>, vector<8x8xf32> -> vector<8x8xf32>
    "tpu.trace_stop"() : () -> ()
    %c0_68 = arith.constant 0 : index
    %c1_69 = arith.constant 1 : index
    %c3_70 = arith.constant 3 : index
    %c0_71 = arith.constant 0 : index
    %c0_72 = arith.constant 0 : index
    %54 = vector.load %arg4[%c0_68, %c1_69, %c3_70, %c0_71, %c0_72] : memref<1x3x8x8x64xf32, #tpu.memory_space<vmem>>, vector<1x1x1x8x64xf32>
    %55 = vector.shape_cast %54 : vector<1x1x1x8x64xf32> to vector<8x64xf32>
    "tpu.trace_start"() <{level = 10 : i32, message = "td,fd->tf"}> : () -> ()
    %cst_73 = arith.constant dense<0.000000e+00> : vector<8x8xf32>
    %56 = tpu.matmul %5, %55, %cst_73 {dimension_numbers = #tpu.dot_dimension_numbers<[1], [1], [0], [0], [0, 0, 1, 0], [], []>} : vector<8x64xf32>, vector<8x64xf32>, vector<8x8xf32> -> vector<8x8xf32>
    "tpu.trace_stop"() : () -> ()
    %c0_74 = arith.constant 0 : index
    %c1_75 = arith.constant 1 : index
    %c4_76 = arith.constant 4 : index
    %c0_77 = arith.constant 0 : index
    %c0_78 = arith.constant 0 : index
    %57 = vector.load %arg4[%c0_74, %c1_75, %c4_76, %c0_77, %c0_78] : memref<1x3x8x8x64xf32, #tpu.memory_space<vmem>>, vector<1x1x1x8x64xf32>
    %58 = vector.shape_cast %57 : vector<1x1x1x8x64xf32> to vector<8x64xf32>
    "tpu.trace_start"() <{level = 10 : i32, message = "td,fd->tf"}> : () -> ()
    %cst_79 = arith.constant dense<0.000000e+00> : vector<8x8xf32>
    %59 = tpu.matmul %5, %58, %cst_79 {dimension_numbers = #tpu.dot_dimension_numbers<[1], [1], [0], [0], [0, 0, 1, 0], [], []>} : vector<8x64xf32>, vector<8x64xf32>, vector<8x8xf32> -> vector<8x8xf32>
    "tpu.trace_stop"() : () -> ()
    %c0_80 = arith.constant 0 : index
    %c1_81 = arith.constant 1 : index
    %c5_82 = arith.constant 5 : index
    %c0_83 = arith.constant 0 : index
    %c0_84 = arith.constant 0 : index
    %60 = vector.load %arg4[%c0_80, %c1_81, %c5_82, %c0_83, %c0_84] : memref<1x3x8x8x64xf32, #tpu.memory_space<vmem>>, vector<1x1x1x8x64xf32>
    %61 = vector.shape_cast %60 : vector<1x1x1x8x64xf32> to vector<8x64xf32>
    "tpu.trace_start"() <{level = 10 : i32, message = "td,fd->tf"}> : () -> ()
    %cst_85 = arith.constant dense<0.000000e+00> : vector<8x8xf32>
    %62 = tpu.matmul %5, %61, %cst_85 {dimension_numbers = #tpu.dot_dimension_numbers<[1], [1], [0], [0], [0, 0, 1, 0], [], []>} : vector<8x64xf32>, vector<8x64xf32>, vector<8x8xf32> -> vector<8x8xf32>
    "tpu.trace_stop"() : () -> ()
    %c0_86 = arith.constant 0 : index
    %c1_87 = arith.constant 1 : index
    %c6_88 = arith.constant 6 : index
    %c0_89 = arith.constant 0 : index
    %c0_90 = arith.constant 0 : index
    %63 = vector.load %arg4[%c0_86, %c1_87, %c6_88, %c0_89, %c0_90] : memref<1x3x8x8x64xf32, #tpu.memory_space<vmem>>, vector<1x1x1x8x64xf32>
    %64 = vector.shape_cast %63 : vector<1x1x1x8x64xf32> to vector<8x64xf32>
    "tpu.trace_start"() <{level = 10 : i32, message = "td,fd->tf"}> : () -> ()
    %cst_91 = arith.constant dense<0.000000e+00> : vector<8x8xf32>
    %65 = tpu.matmul %5, %64, %cst_91 {dimension_numbers = #tpu.dot_dimension_numbers<[1], [1], [0], [0], [0, 0, 1, 0], [], []>} : vector<8x64xf32>, vector<8x64xf32>, vector<8x8xf32> -> vector<8x8xf32>
    "tpu.trace_stop"() : () -> ()
    %c0_92 = arith.constant 0 : index
    %c1_93 = arith.constant 1 : index
    %c7_94 = arith.constant 7 : index
    %c0_95 = arith.constant 0 : index
    %c0_96 = arith.constant 0 : index
    %66 = vector.load %arg4[%c0_92, %c1_93, %c7_94, %c0_95, %c0_96] : memref<1x3x8x8x64xf32, #tpu.memory_space<vmem>>, vector<1x1x1x8x64xf32>
    %67 = vector.shape_cast %66 : vector<1x1x1x8x64xf32> to vector<8x64xf32>
    "tpu.trace_start"() <{level = 10 : i32, message = "td,fd->tf"}> : () -> ()
    %cst_97 = arith.constant dense<0.000000e+00> : vector<8x8xf32>
    %68 = tpu.matmul %5, %67, %cst_97 {dimension_numbers = #tpu.dot_dimension_numbers<[1], [1], [0], [0], [0, 0, 1, 0], [], []>} : vector<8x64xf32>, vector<8x64xf32>, vector<8x8xf32> -> vector<8x8xf32>
    "tpu.trace_stop"() : () -> ()
    %69 = vector.shape_cast %47 : vector<8x8xf32> to vector<1x8x8xf32>
    %70 = vector.shape_cast %50 : vector<8x8xf32> to vector<1x8x8xf32>
    %71 = vector.shape_cast %53 : vector<8x8xf32> to vector<1x8x8xf32>
    %72 = vector.shape_cast %56 : vector<8x8xf32> to vector<1x8x8xf32>
    %73 = vector.shape_cast %59 : vector<8x8xf32> to vector<1x8x8xf32>
    %74 = vector.shape_cast %62 : vector<8x8xf32> to vector<1x8x8xf32>
    %75 = vector.shape_cast %65 : vector<8x8xf32> to vector<1x8x8xf32>
    %76 = vector.shape_cast %68 : vector<8x8xf32> to vector<1x8x8xf32>
    %77 = tpu.concatenate %69, %70, %71, %72, %73, %74, %75, %76 in 0 : vector<1x8x8xf32>, vector<1x8x8xf32>, vector<1x8x8xf32>, vector<1x8x8xf32>, vector<1x8x8xf32>, vector<1x8x8xf32>, vector<1x8x8xf32>, vector<1x8x8xf32> -> vector<8x8x8xf32>
    %c0_98 = arith.constant 0 : index
    %c1_99 = arith.constant 1 : index
    %c0_100 = arith.constant 0 : index
    %c0_101 = arith.constant 0 : index
    %c0_102 = arith.constant 0 : index
    %78 = vector.load %arg5[%c0_98, %c1_99, %c0_100, %c0_101, %c0_102] : memref<1x3x8x1x8xf32, #tpu.memory_space<vmem>>, vector<1x1x8x1x8xf32>
    %79 = vector.shape_cast %78 : vector<1x1x8x1x8xf32> to vector<8x1x8xf32>
    %80 = vector.broadcast %79 : vector<8x1x8xf32> to vector<8x8x8xf32>
    %81 = arith.addf %77, %80 : vector<8x8x8xf32>
    %c0_103 = arith.constant 0 : index
    %c2_104 = arith.constant 2 : index
    %c0_105 = arith.constant 0 : index
    %c0_106 = arith.constant 0 : index
    %c0_107 = arith.constant 0 : index
    %82 = vector.load %arg4[%c0_103, %c2_104, %c0_105, %c0_106, %c0_107] : memref<1x3x8x8x64xf32, #tpu.memory_space<vmem>>, vector<1x1x1x8x64xf32>
    %83 = vector.shape_cast %82 : vector<1x1x1x8x64xf32> to vector<8x64xf32>
    "tpu.trace_start"() <{level = 10 : i32, message = "td,fd->tf"}> : () -> ()
    %cst_108 = arith.constant dense<0.000000e+00> : vector<8x8xf32>
    %84 = tpu.matmul %5, %83, %cst_108 {dimension_numbers = #tpu.dot_dimension_numbers<[1], [1], [0], [0], [0, 0, 1, 0], [], []>} : vector<8x64xf32>, vector<8x64xf32>, vector<8x8xf32> -> vector<8x8xf32>
    "tpu.trace_stop"() : () -> ()
    %c0_109 = arith.constant 0 : index
    %c2_110 = arith.constant 2 : index
    %c1_111 = arith.constant 1 : index
    %c0_112 = arith.constant 0 : index
    %c0_113 = arith.constant 0 : index
    %85 = vector.load %arg4[%c0_109, %c2_110, %c1_111, %c0_112, %c0_113] : memref<1x3x8x8x64xf32, #tpu.memory_space<vmem>>, vector<1x1x1x8x64xf32>
    %86 = vector.shape_cast %85 : vector<1x1x1x8x64xf32> to vector<8x64xf32>
    "tpu.trace_start"() <{level = 10 : i32, message = "td,fd->tf"}> : () -> ()
    %cst_114 = arith.constant dense<0.000000e+00> : vector<8x8xf32>
    %87 = tpu.matmul %5, %86, %cst_114 {dimension_numbers = #tpu.dot_dimension_numbers<[1], [1], [0], [0], [0, 0, 1, 0], [], []>} : vector<8x64xf32>, vector<8x64xf32>, vector<8x8xf32> -> vector<8x8xf32>
    "tpu.trace_stop"() : () -> ()
    %c0_115 = arith.constant 0 : index
    %c2_116 = arith.constant 2 : index
    %c2_117 = arith.constant 2 : index
    %c0_118 = arith.constant 0 : index
    %c0_119 = arith.constant 0 : index
    %88 = vector.load %arg4[%c0_115, %c2_116, %c2_117, %c0_118, %c0_119] : memref<1x3x8x8x64xf32, #tpu.memory_space<vmem>>, vector<1x1x1x8x64xf32>
    %89 = vector.shape_cast %88 : vector<1x1x1x8x64xf32> to vector<8x64xf32>
    "tpu.trace_start"() <{level = 10 : i32, message = "td,fd->tf"}> : () -> ()
    %cst_120 = arith.constant dense<0.000000e+00> : vector<8x8xf32>
    %90 = tpu.matmul %5, %89, %cst_120 {dimension_numbers = #tpu.dot_dimension_numbers<[1], [1], [0], [0], [0, 0, 1, 0], [], []>} : vector<8x64xf32>, vector<8x64xf32>, vector<8x8xf32> -> vector<8x8xf32>
    "tpu.trace_stop"() : () -> ()
    %c0_121 = arith.constant 0 : index
    %c2_122 = arith.constant 2 : index
    %c3_123 = arith.constant 3 : index
    %c0_124 = arith.constant 0 : index
    %c0_125 = arith.constant 0 : index
    %91 = vector.load %arg4[%c0_121, %c2_122, %c3_123, %c0_124, %c0_125] : memref<1x3x8x8x64xf32, #tpu.memory_space<vmem>>, vector<1x1x1x8x64xf32>
    %92 = vector.shape_cast %91 : vector<1x1x1x8x64xf32> to vector<8x64xf32>
    "tpu.trace_start"() <{level = 10 : i32, message = "td,fd->tf"}> : () -> ()
    %cst_126 = arith.constant dense<0.000000e+00> : vector<8x8xf32>
    %93 = tpu.matmul %5, %92, %cst_126 {dimension_numbers = #tpu.dot_dimension_numbers<[1], [1], [0], [0], [0, 0, 1, 0], [], []>} : vector<8x64xf32>, vector<8x64xf32>, vector<8x8xf32> -> vector<8x8xf32>
    "tpu.trace_stop"() : () -> ()
    %c0_127 = arith.constant 0 : index
    %c2_128 = arith.constant 2 : index
    %c4_129 = arith.constant 4 : index
    %c0_130 = arith.constant 0 : index
    %c0_131 = arith.constant 0 : index
    %94 = vector.load %arg4[%c0_127, %c2_128, %c4_129, %c0_130, %c0_131] : memref<1x3x8x8x64xf32, #tpu.memory_space<vmem>>, vector<1x1x1x8x64xf32>
    %95 = vector.shape_cast %94 : vector<1x1x1x8x64xf32> to vector<8x64xf32>
    "tpu.trace_start"() <{level = 10 : i32, message = "td,fd->tf"}> : () -> ()
    %cst_132 = arith.constant dense<0.000000e+00> : vector<8x8xf32>
    %96 = tpu.matmul %5, %95, %cst_132 {dimension_numbers = #tpu.dot_dimension_numbers<[1], [1], [0], [0], [0, 0, 1, 0], [], []>} : vector<8x64xf32>, vector<8x64xf32>, vector<8x8xf32> -> vector<8x8xf32>
    "tpu.trace_stop"() : () -> ()
    %c0_133 = arith.constant 0 : index
    %c2_134 = arith.constant 2 : index
    %c5_135 = arith.constant 5 : index
    %c0_136 = arith.constant 0 : index
    %c0_137 = arith.constant 0 : index
    %97 = vector.load %arg4[%c0_133, %c2_134, %c5_135, %c0_136, %c0_137] : memref<1x3x8x8x64xf32, #tpu.memory_space<vmem>>, vector<1x1x1x8x64xf32>
    %98 = vector.shape_cast %97 : vector<1x1x1x8x64xf32> to vector<8x64xf32>
    "tpu.trace_start"() <{level = 10 : i32, message = "td,fd->tf"}> : () -> ()
    %cst_138 = arith.constant dense<0.000000e+00> : vector<8x8xf32>
    %99 = tpu.matmul %5, %98, %cst_138 {dimension_numbers = #tpu.dot_dimension_numbers<[1], [1], [0], [0], [0, 0, 1, 0], [], []>} : vector<8x64xf32>, vector<8x64xf32>, vector<8x8xf32> -> vector<8x8xf32>
    "tpu.trace_stop"() : () -> ()
    %c0_139 = arith.constant 0 : index
    %c2_140 = arith.constant 2 : index
    %c6_141 = arith.constant 6 : index
    %c0_142 = arith.constant 0 : index
    %c0_143 = arith.constant 0 : index
    %100 = vector.load %arg4[%c0_139, %c2_140, %c6_141, %c0_142, %c0_143] : memref<1x3x8x8x64xf32, #tpu.memory_space<vmem>>, vector<1x1x1x8x64xf32>
    %101 = vector.shape_cast %100 : vector<1x1x1x8x64xf32> to vector<8x64xf32>
    "tpu.trace_start"() <{level = 10 : i32, message = "td,fd->tf"}> : () -> ()
    %cst_144 = arith.constant dense<0.000000e+00> : vector<8x8xf32>
    %102 = tpu.matmul %5, %101, %cst_144 {dimension_numbers = #tpu.dot_dimension_numbers<[1], [1], [0], [0], [0, 0, 1, 0], [], []>} : vector<8x64xf32>, vector<8x64xf32>, vector<8x8xf32> -> vector<8x8xf32>
    "tpu.trace_stop"() : () -> ()
    %c0_145 = arith.constant 0 : index
    %c2_146 = arith.constant 2 : index
    %c7_147 = arith.constant 7 : index
    %c0_148 = arith.constant 0 : index
    %c0_149 = arith.constant 0 : index
    %103 = vector.load %arg4[%c0_145, %c2_146, %c7_147, %c0_148, %c0_149] : memref<1x3x8x8x64xf32, #tpu.memory_space<vmem>>, vector<1x1x1x8x64xf32>
    %104 = vector.shape_cast %103 : vector<1x1x1x8x64xf32> to vector<8x64xf32>
    "tpu.trace_start"() <{level = 10 : i32, message = "td,fd->tf"}> : () -> ()
    %cst_150 = arith.constant dense<0.000000e+00> : vector<8x8xf32>
    %105 = tpu.matmul %5, %104, %cst_150 {dimension_numbers = #tpu.dot_dimension_numbers<[1], [1], [0], [0], [0, 0, 1, 0], [], []>} : vector<8x64xf32>, vector<8x64xf32>, vector<8x8xf32> -> vector<8x8xf32>
    "tpu.trace_stop"() : () -> ()
    %106 = vector.shape_cast %84 : vector<8x8xf32> to vector<1x8x8xf32>
    %107 = vector.shape_cast %87 : vector<8x8xf32> to vector<1x8x8xf32>
    %108 = vector.shape_cast %90 : vector<8x8xf32> to vector<1x8x8xf32>
    %109 = vector.shape_cast %93 : vector<8x8xf32> to vector<1x8x8xf32>
    %110 = vector.shape_cast %96 : vector<8x8xf32> to vector<1x8x8xf32>
    %111 = vector.shape_cast %99 : vector<8x8xf32> to vector<1x8x8xf32>
    %112 = vector.shape_cast %102 : vector<8x8xf32> to vector<1x8x8xf32>
    %113 = vector.shape_cast %105 : vector<8x8xf32> to vector<1x8x8xf32>
    %114 = tpu.concatenate %106, %107, %108, %109, %110, %111, %112, %113 in 0 : vector<1x8x8xf32>, vector<1x8x8xf32>, vector<1x8x8xf32>, vector<1x8x8xf32>, vector<1x8x8xf32>, vector<1x8x8xf32>, vector<1x8x8xf32>, vector<1x8x8xf32> -> vector<8x8x8xf32>
    %c0_151 = arith.constant 0 : index
    %c2_152 = arith.constant 2 : index
    %c0_153 = arith.constant 0 : index
    %c0_154 = arith.constant 0 : index
    %c0_155 = arith.constant 0 : index
    %115 = vector.load %arg5[%c0_151, %c2_152, %c0_153, %c0_154, %c0_155] : memref<1x3x8x1x8xf32, #tpu.memory_space<vmem>>, vector<1x1x8x1x8xf32>
    %116 = vector.shape_cast %115 : vector<1x1x8x1x8xf32> to vector<8x1x8xf32>
    %117 = vector.broadcast %116 : vector<8x1x8xf32> to vector<8x8x8xf32>
    %118 = arith.addf %114, %117 : vector<8x8x8xf32>
    "tpu.trace_start"() <{level = 10 : i32, message = "hqd,hkd->hqk"}> : () -> ()
    %cst_156 = arith.constant dense<0.000000e+00> : vector<8x8x8xf32>
    %119 = tpu.matmul %44, %81, %cst_156 {dimension_numbers = #tpu.dot_dimension_numbers<[2], [2], [1], [1], [0, 0, 0, 1, 1, 1], [0], [0]>} : vector<8x8x8xf32>, vector<8x8x8xf32>, vector<8x8x8xf32> -> vector<8x8x8xf32>
    "tpu.trace_stop"() : () -> ()
    %cst_157 = arith.constant 0.353553385 : f32
    %120 = vector.broadcast %cst_157 : f32 to vector<8x8x8xf32>
    %121 = arith.mulf %119, %120 : vector<8x8x8xf32>
    %122 = vector.shape_cast %7 : vector<8x8xf32> to vector<1x8x8xf32>
    %123 = vector.broadcast %122 : vector<1x8x8xf32> to vector<8x8x8xf32>
    %124 = arith.addf %121, %123 : vector<8x8x8xf32>
    %cst_158 = arith.constant dense<0xFF800000> : vector<8x8xf32>
    %125 = vector.multi_reduction <maximumf>, %124, %cst_158 [2] : vector<8x8x8xf32> to vector<8x8xf32>
    %126 = vector.shape_cast %125 : vector<8x8xf32> to vector<8x8x1xf32>
    %127 = vector.broadcast %126 : vector<8x8x1xf32> to vector<8x8x8xf32>
    %128 = arith.subf %124, %127 : vector<8x8x8xf32>
    %129 = math.exp %128 : vector<8x8x8xf32>
    %cst_159 = arith.constant dense<0.000000e+00> : vector<8x8xf32>
    %130 = vector.multi_reduction <add>, %129, %cst_159 [2] : vector<8x8x8xf32> to vector<8x8xf32>
    %131 = vector.shape_cast %130 : vector<8x8xf32> to vector<8x8x1xf32>
    %132 = tpu.reciprocal %131 {approx = true} : vector<8x8x1xf32> -> vector<8x8x1xf32>
    %133 = vector.broadcast %132 : vector<8x8x1xf32> to vector<8x8x8xf32>
    %134 = arith.mulf %129, %133 : vector<8x8x8xf32>
    "tpu.trace_start"() <{level = 10 : i32, message = "hqk,hkd->hqd"}> : () -> ()
    %cst_160 = arith.constant dense<0.000000e+00> : vector<8x8x8xf32>
    %135 = tpu.matmul %134, %118, %cst_160 {dimension_numbers = #tpu.dot_dimension_numbers<[2], [1], [1], [2], [0, 0, 0, 1, 1, 2], [0], [0]>} : vector<8x8x8xf32>, vector<8x8x8xf32>, vector<8x8x8xf32> -> vector<8x8x8xf32>
    "tpu.trace_stop"() : () -> ()
    %c0_161 = arith.constant 0 : index
    %c0_162 = arith.constant 0 : index
    %c0_163 = arith.constant 0 : index
    %c0_164 = arith.constant 0 : index
    %136 = vector.load %arg6[%c0_161, %c0_162, %c0_163, %c0_164] : memref<1x8x8x64xf32, #tpu.memory_space<vmem>>, vector<1x8x8x64xf32>
    %137 = vector.shape_cast %136 : vector<1x8x8x64xf32> to vector<8x8x64xf32>
    "tpu.trace_start"() <{level = 10 : i32, message = "hqd,hdm->hqm"}> : () -> ()
    %cst_165 = arith.constant dense<0.000000e+00> : vector<8x8x64xf32>
    %138 = tpu.matmul %135, %137, %cst_165 {dimension_numbers = #tpu.dot_dimension_numbers<[2], [1], [1], [2], [0, 0, 0, 1, 1, 2], [0], [0]>} : vector<8x8x8xf32>, vector<8x8x64xf32>, vector<8x8x64xf32> -> vector<8x8x64xf32>
    "tpu.trace_stop"() : () -> ()
    %cst_166 = arith.constant dense<0.000000e+00> : vector<8x64xf32>
    %139 = vector.multi_reduction <add>, %138, %cst_166 [0] : vector<8x8x64xf32> to vector<8x64xf32>
    %c0_167 = arith.constant 0 : index
    %c0_168 = arith.constant 0 : index
    %c0_169 = arith.constant 0 : index
    %140 = vector.load %arg7[%c0_167, %c0_168, %c0_169] : memref<1x1x64xf32, #tpu.memory_space<vmem>>, vector<1x1x64xf32>
    %141 = vector.shape_cast %140 : vector<1x1x64xf32> to vector<1x64xf32>
    %142 = vector.broadcast %141 : vector<1x64xf32> to vector<8x64xf32>
    %143 = arith.addf %139, %142 : vector<8x64xf32>
    %144 = arith.addf %5, %143 : vector<8x64xf32>
    %c0_170 = arith.constant 0 : index
    %c0_171 = arith.constant 0 : index
    %c0_172 = arith.constant 0 : index
    %c0_173 = arith.constant 0 : index
    %145 = vector.load %arg12[%c0_170, %c0_171, %c0_172, %c0_173] : memref<1x2x1x64xf32, #tpu.memory_space<vmem>>, vector<1x1x1x64xf32>
    %146 = vector.shape_cast %145 : vector<1x1x1x64xf32> to vector<1x64xf32>
    %c0_174 = arith.constant 0 : index
    %c0_175 = arith.constant 0 : index
    %c0_176 = arith.constant 0 : index
    %c0_177 = arith.constant 0 : index
    %147 = vector.load %arg13[%c0_174, %c0_175, %c0_176, %c0_177] : memref<1x2x1x64xf32, #tpu.memory_space<vmem>>, vector<1x1x1x64xf32>
    %148 = vector.shape_cast %147 : vector<1x1x1x64xf32> to vector<1x64xf32>
    %cst_178 = arith.constant dense<0.000000e+00> : vector<8xf32>
    %149 = vector.multi_reduction <add>, %144, %cst_178 [1] : vector<8x64xf32> to vector<8xf32>
    %150 = vector.shape_cast %149 : vector<8xf32> to vector<8x1xf32>
    %cst_179 = arith.constant 6.400000e+01 : f32
    %151 = vector.broadcast %cst_179 : f32 to vector<8x1xf32>
    %152 = arith.divf %150, %151 : vector<8x1xf32>
    %153 = vector.broadcast %152 : vector<8x1xf32> to vector<8x64xf32>
    %154 = arith.subf %144, %153 : vector<8x64xf32>
    %155 = arith.mulf %154, %154 : vector<8x64xf32>
    %cst_180 = arith.constant dense<0.000000e+00> : vector<8xf32>
    %156 = vector.multi_reduction <add>, %155, %cst_180 [1] : vector<8x64xf32> to vector<8xf32>
    %157 = vector.shape_cast %156 : vector<8xf32> to vector<8x1xf32>
    %cst_181 = arith.constant 6.400000e+01 : f32
    %158 = vector.broadcast %cst_181 : f32 to vector<8x1xf32>
    %159 = arith.divf %157, %158 : vector<8x1xf32>
    %160 = vector.broadcast %152 : vector<8x1xf32> to vector<8x64xf32>
    %161 = arith.subf %144, %160 : vector<8x64xf32>
    %cst_182 = arith.constant 9.99999974E-6 : f32
    %162 = vector.broadcast %cst_182 : f32 to vector<8x1xf32>
    %163 = arith.addf %159, %162 : vector<8x1xf32>
    %164 = math.rsqrt %163 : vector<8x1xf32>
    %165 = vector.broadcast %164 : vector<8x1xf32> to vector<8x64xf32>
    %166 = arith.mulf %161, %165 : vector<8x64xf32>
    %167 = vector.broadcast %146 : vector<1x64xf32> to vector<8x64xf32>
    %168 = arith.mulf %166, %167 : vector<8x64xf32>
    %169 = vector.broadcast %148 : vector<1x64xf32> to vector<8x64xf32>
    %170 = arith.addf %168, %169 : vector<8x64xf32>
    %c0_183 = arith.constant 0 : index
    %c0_184 = arith.constant 0 : index
    %c0_185 = arith.constant 0 : index
    %171 = vector.load %arg8[%c0_183, %c0_184, %c0_185] : memref<1x64x1024xf32, #tpu.memory_space<vmem>>, vector<1x64x1024xf32>
    %172 = vector.shape_cast %171 : vector<1x64x1024xf32> to vector<64x1024xf32>
    %cst_186 = arith.constant dense<0.000000e+00> : vector<8x1024xf32>
    %173 = tpu.matmul %170, %172, %cst_186 {dimension_numbers = #tpu.dot_dimension_numbers<[1], [0], [0], [1], [0, 0, 1, 1], [], []>} : vector<8x64xf32>, vector<64x1024xf32>, vector<8x1024xf32> -> vector<8x1024xf32>
    %c0_187 = arith.constant 0 : index
    %c0_188 = arith.constant 0 : index
    %c0_189 = arith.constant 0 : index
    %174 = vector.load %arg9[%c0_187, %c0_188, %c0_189] : memref<1x1x1024xf32, #tpu.memory_space<vmem>>, vector<1x1x1024xf32>
    %175 = vector.shape_cast %174 : vector<1x1x1024xf32> to vector<1x1024xf32>
    %176 = vector.broadcast %175 : vector<1x1024xf32> to vector<8x1024xf32>
    %177 = arith.addf %173, %176 : vector<8x1024xf32>
    %cst_190 = arith.constant 0.000000e+00 : f32
    %178 = vector.broadcast %cst_190 : f32 to vector<8x1024xf32>
    %179 = arith.maximumf %177, %178 : vector<8x1024xf32>
    %c0_191 = arith.constant 0 : index
    %c0_192 = arith.constant 0 : index
    %c0_193 = arith.constant 0 : index
    %180 = vector.load %arg10[%c0_191, %c0_192, %c0_193] : memref<1x64x1024xf32, #tpu.memory_space<vmem>>, vector<1x64x1024xf32>
    %181 = vector.shape_cast %180 : vector<1x64x1024xf32> to vector<64x1024xf32>
    "tpu.trace_start"() <{level = 10 : i32, message = "tf,df->td"}> : () -> ()
    %cst_194 = arith.constant dense<0.000000e+00> : vector<8x64xf32>
    %182 = tpu.matmul %179, %181, %cst_194 {dimension_numbers = #tpu.dot_dimension_numbers<[1], [1], [0], [0], [0, 0, 1, 0], [], []>} : vector<8x1024xf32>, vector<64x1024xf32>, vector<8x64xf32> -> vector<8x64xf32>
    "tpu.trace_stop"() : () -> ()
    %c0_195 = arith.constant 0 : index
    %c0_196 = arith.constant 0 : index
    %c0_197 = arith.constant 0 : index
    %183 = vector.load %arg11[%c0_195, %c0_196, %c0_197] : memref<1x1x64xf32, #tpu.memory_space<vmem>>, vector<1x1x64xf32>
    %184 = vector.shape_cast %183 : vector<1x1x64xf32> to vector<1x64xf32>
    %185 = vector.broadcast %184 : vector<1x64xf32> to vector<8x64xf32>
    %186 = arith.addf %182, %185 : vector<8x64xf32>
    %187 = arith.addf %170, %186 : vector<8x64xf32>
    %c0_198 = arith.constant 0 : index
    %c1_199 = arith.constant 1 : index
    %c0_200 = arith.constant 0 : index
    %c0_201 = arith.constant 0 : index
    %188 = vector.load %arg12[%c0_198, %c1_199, %c0_200, %c0_201] : memref<1x2x1x64xf32, #tpu.memory_space<vmem>>, vector<1x1x1x64xf32>
    %189 = vector.shape_cast %188 : vector<1x1x1x64xf32> to vector<1x64xf32>
    %c0_202 = arith.constant 0 : index
    %c1_203 = arith.constant 1 : index
    %c0_204 = arith.constant 0 : index
    %c0_205 = arith.constant 0 : index
    %190 = vector.load %arg13[%c0_202, %c1_203, %c0_204, %c0_205] : memref<1x2x1x64xf32, #tpu.memory_space<vmem>>, vector<1x1x1x64xf32>
    %191 = vector.shape_cast %190 : vector<1x1x1x64xf32> to vector<1x64xf32>
    %cst_206 = arith.constant dense<0.000000e+00> : vector<8xf32>
    %192 = vector.multi_reduction <add>, %187, %cst_206 [1] : vector<8x64xf32> to vector<8xf32>
    %193 = vector.shape_cast %192 : vector<8xf32> to vector<8x1xf32>
    %cst_207 = arith.constant 6.400000e+01 : f32
    %194 = vector.broadcast %cst_207 : f32 to vector<8x1xf32>
    %195 = arith.divf %193, %194 : vector<8x1xf32>
    %196 = vector.broadcast %195 : vector<8x1xf32> to vector<8x64xf32>
    %197 = arith.subf %187, %196 : vector<8x64xf32>
    %198 = arith.mulf %197, %197 : vector<8x64xf32>
    %cst_208 = arith.constant dense<0.000000e+00> : vector<8xf32>
    %199 = vector.multi_reduction <add>, %198, %cst_208 [1] : vector<8x64xf32> to vector<8xf32>
    %200 = vector.shape_cast %199 : vector<8xf32> to vector<8x1xf32>
    %cst_209 = arith.constant 6.400000e+01 : f32
    %201 = vector.broadcast %cst_209 : f32 to vector<8x1xf32>
    %202 = arith.divf %200, %201 : vector<8x1xf32>
    %203 = vector.broadcast %195 : vector<8x1xf32> to vector<8x64xf32>
    %204 = arith.subf %187, %203 : vector<8x64xf32>
    %cst_210 = arith.constant 9.99999974E-6 : f32
    %205 = vector.broadcast %cst_210 : f32 to vector<8x1xf32>
    %206 = arith.addf %202, %205 : vector<8x1xf32>
    %207 = math.rsqrt %206 : vector<8x1xf32>
    %208 = vector.broadcast %207 : vector<8x1xf32> to vector<8x64xf32>
    %209 = arith.mulf %204, %208 : vector<8x64xf32>
    %210 = vector.broadcast %189 : vector<1x64xf32> to vector<8x64xf32>
    %211 = arith.mulf %209, %210 : vector<8x64xf32>
    %212 = vector.broadcast %191 : vector<1x64xf32> to vector<8x64xf32>
    %213 = arith.addf %211, %212 : vector<8x64xf32>
    %214 = arith.index_cast %arg0 : i32 to index
    %c0_211 = arith.constant 0 : index
    %c0_212 = arith.constant 0 : index
    %215 = vector.load %arg17[%214, %c0_211, %c0_212] : memref<2x8x64xf32, #tpu.memory_space<vmem>>, vector<1x8x64xf32>
    %216 = vector.shape_cast %215 : vector<1x8x64xf32> to vector<8x64xf32>
    %217 = vector.shape_cast %213 : vector<8x64xf32> to vector<1x8x64xf32>
    tpu.vector_store %arg17[%214, %c0_211, %c0_212], %217 {strides = array<i32>} : memref<2x8x64xf32, #tpu.memory_space<vmem>>, vector<1x8x64xf32>,
    %c1_i32 = arith.constant 1 : i32
    %218 = arith.cmpi eq, %arg1, %c1_i32 : i32
    %219 = arith.extui %218 : i1 to i32
    %c0_i32_213 = arith.constant 0 : i32
    %220 = arith.cmpi ne, %219, %c0_i32_213 : i32
    scf.if %220 {
      %c0_214 = arith.constant 0 : index
      %c0_215 = arith.constant 0 : index
      %221 = vector.load %arg14[%c0_214, %c0_215] : memref<1x64xf32, #tpu.memory_space<vmem>>, vector<1x64xf32>
      %c0_216 = arith.constant 0 : index
      %c0_217 = arith.constant 0 : index
      %222 = vector.load %arg15[%c0_216, %c0_217] : memref<1x64xf32, #tpu.memory_space<vmem>>, vector<1x64xf32>
      %cst_218 = arith.constant dense<0.000000e+00> : vector<8xf32>
      %223 = vector.multi_reduction <add>, %213, %cst_218 [1] : vector<8x64xf32> to vector<8xf32>
      %224 = vector.shape_cast %223 : vector<8xf32> to vector<8x1xf32>
      %cst_219 = arith.constant 6.400000e+01 : f32
      %225 = vector.broadcast %cst_219 : f32 to vector<8x1xf32>
      %226 = arith.divf %224, %225 : vector<8x1xf32>
      %227 = vector.broadcast %226 : vector<8x1xf32> to vector<8x64xf32>
      %228 = arith.subf %213, %227 : vector<8x64xf32>
      %229 = arith.mulf %228, %228 : vector<8x64xf32>
      %cst_220 = arith.constant dense<0.000000e+00> : vector<8xf32>
      %230 = vector.multi_reduction <add>, %229, %cst_220 [1] : vector<8x64xf32> to vector<8xf32>
      %231 = vector.shape_cast %230 : vector<8xf32> to vector<8x1xf32>
      %cst_221 = arith.constant 6.400000e+01 : f32
      %232 = vector.broadcast %cst_221 : f32 to vector<8x1xf32>
      %233 = arith.divf %231, %232 : vector<8x1xf32>
      %234 = vector.broadcast %226 : vector<8x1xf32> to vector<8x64xf32>
      %235 = arith.subf %213, %234 : vector<8x64xf32>
      %cst_222 = arith.constant 9.99999974E-6 : f32
      %236 = vector.broadcast %cst_222 : f32 to vector<8x1xf32>
      %237 = arith.addf %233, %236 : vector<8x1xf32>
      %238 = math.rsqrt %237 : vector<8x1xf32>
      %239 = vector.broadcast %238 : vector<8x1xf32> to vector<8x64xf32>
      %240 = arith.mulf %235, %239 : vector<8x64xf32>
      %241 = vector.broadcast %221 : vector<1x64xf32> to vector<8x64xf32>
      %242 = arith.mulf %240, %241 : vector<8x64xf32>
      %243 = vector.broadcast %222 : vector<1x64xf32> to vector<8x64xf32>
      %244 = arith.addf %242, %243 : vector<8x64xf32>
      %c0_223 = arith.constant 0 : index
      %c0_224 = arith.constant 0 : index
      %c0_225 = arith.constant 0 : index
      %245 = vector.load %arg16[%c0_223, %c0_224, %c0_225] : memref<1x8x64xf32, #tpu.memory_space<vmem>>, vector<1x8x64xf32>
      %246 = vector.shape_cast %245 : vector<1x8x64xf32> to vector<8x64xf32>
      %247 = vector.shape_cast %244 : vector<8x64xf32> to vector<1x8x64xf32>
      tpu.vector_store %arg16[%c0_223, %c0_224, %c0_225], %247 {strides = array<i32>} : memref<1x8x64xf32, #tpu.memory_space<vmem>>, vector<1x8x64xf32>,
    } else {
    }
    return
  }
  func.func @transform_0(%arg0: i32, %arg1: i32) -> (i32, i32, i32) {
    %c0_i32 = arith.constant 0 : i32
    %c0_i32_0 = arith.constant 0 : i32
    %c0_i32_1 = arith.constant 0 : i32
    return %arg0, %c0_i32, %c0_i32_0 : i32, i32, i32
  }
  func.func @transform_1(%arg0: i32, %arg1: i32) -> (i32, i32, i32) {
    %c0_i32 = arith.constant 0 : i32
    %c0_i32_0 = arith.constant 0 : i32
    %c0_i32_1 = arith.constant 0 : i32
    return %arg0, %c0_i32, %c0_i32_0 : i32, i32, i32
  }
  func.func @transform_2(%arg0: i32, %arg1: i32) -> (i32, i32, i32, i32, i32) {
    %c0_i32 = arith.constant 0 : i32
    %c0_i32_0 = arith.constant 0 : i32
    %c0_i32_1 = arith.constant 0 : i32
    %c0_i32_2 = arith.constant 0 : i32
    %c0_i32_3 = arith.constant 0 : i32
    return %arg1, %c0_i32, %c0_i32_0, %c0_i32_1, %c0_i32_2 : i32, i32, i32, i32, i32
  }
  func.func @transform_3(%arg0: i32, %arg1: i32) -> (i32, i32, i32, i32, i32) {
    %c0_i32 = arith.constant 0 : i32
    %c0_i32_0 = arith.constant 0 : i32
    %c0_i32_1 = arith.constant 0 : i32
    %c0_i32_2 = arith.constant 0 : i32
    %c0_i32_3 = arith.constant 0 : i32
    return %arg1, %c0_i32, %c0_i32_0, %c0_i32_1, %c0_i32_2 : i32, i32, i32, i32, i32
  }
  func.func @transform_4(%arg0: i32, %arg1: i32) -> (i32, i32, i32, i32) {
    %c0_i32 = arith.constant 0 : i32
    %c0_i32_0 = arith.constant 0 : i32
    %c0_i32_1 = arith.constant 0 : i32
    %c0_i32_2 = arith.constant 0 : i32
    return %arg1, %c0_i32, %c0_i32_0, %c0_i32_1 : i32, i32, i32, i32
  }
  func.func @transform_5(%arg0: i32, %arg1: i32) -> (i32, i32, i32) {
    %c0_i32 = arith.constant 0 : i32
    %c0_i32_0 = arith.constant 0 : i32
    %c0_i32_1 = arith.constant 0 : i32
    return %arg1, %c0_i32, %c0_i32_0 : i32, i32, i32
  }
  func.func @transform_6(%arg0: i32, %arg1: i32) -> (i32, i32, i32) {
    %c0_i32 = arith.constant 0 : i32
    %c0_i32_0 = arith.constant 0 : i32
    %c0_i32_1 = arith.constant 0 : i32
    return %arg1, %c0_i32, %c0_i32_0 : i32, i32, i32
  }
  func.func @transform_7(%arg0: i32, %arg1: i32) -> (i32, i32, i32) {
    %c0_i32 = arith.constant 0 : i32
    %c0_i32_0 = arith.constant 0 : i32
    %c0_i32_1 = arith.constant 0 : i32
    return %arg1, %c0_i32, %c0_i32_0 : i32, i32, i32
  }
  func.func @transform_8(%arg0: i32, %arg1: i32) -> (i32, i32, i32) {
    %c0_i32 = arith.constant 0 : i32
    %c0_i32_0 = arith.constant 0 : i32
    %c0_i32_1 = arith.constant 0 : i32
    return %arg1, %c0_i32, %c0_i32_0 : i32, i32, i32
  }
  func.func @transform_9(%arg0: i32, %arg1: i32) -> (i32, i32, i32) {
    %c0_i32 = arith.constant 0 : i32
    %c0_i32_0 = arith.constant 0 : i32
    %c0_i32_1 = arith.constant 0 : i32
    return %arg1, %c0_i32, %c0_i32_0 : i32, i32, i32
  }
  func.func @transform_10(%arg0: i32, %arg1: i32) -> (i32, i32, i32, i32) {
    %c0_i32 = arith.constant 0 : i32
    %c0_i32_0 = arith.constant 0 : i32
    %c0_i32_1 = arith.constant 0 : i32
    %c0_i32_2 = arith.constant 0 : i32
    return %arg1, %c0_i32, %c0_i32_0, %c0_i32_1 : i32, i32, i32, i32
  }
  func.func @transform_11(%arg0: i32, %arg1: i32) -> (i32, i32, i32, i32) {
    %c0_i32 = arith.constant 0 : i32
    %c0_i32_0 = arith.constant 0 : i32
    %c0_i32_1 = arith.constant 0 : i32
    %c0_i32_2 = arith.constant 0 : i32
    return %arg1, %c0_i32, %c0_i32_0, %c0_i32_1 : i32, i32, i32, i32
  }
  func.func @transform_12(%arg0: i32, %arg1: i32) -> (i32, i32) {
    %c0_i32 = arith.constant 0 : i32
    %c0_i32_0 = arith.constant 0 : i32
    %c0_i32_1 = arith.constant 0 : i32
    return %c0_i32, %c0_i32_0 : i32, i32
  }
  func.func @transform_13(%arg0: i32, %arg1: i32) -> (i32, i32) {
    %c0_i32 = arith.constant 0 : i32
    %c0_i32_0 = arith.constant 0 : i32
    %c0_i32_1 = arith.constant 0 : i32
    return %c0_i32, %c0_i32_0 : i32, i32
  }
  func.func @transform_14(%arg0: i32, %arg1: i32) -> (i32, i32, i32) {
    %c0_i32 = arith.constant 0 : i32
    %c0_i32_0 = arith.constant 0 : i32
    %c0_i32_1 = arith.constant 0 : i32
    return %arg0, %c0_i32, %c0_i32_0 : i32, i32, i32
  }
}

module attributes {stable_mosaic.version = 11 : i64} {
  func.func @kernel(%arg0: i32, %arg1: i32, %arg2: memref<1x8x64xf32, #tpu.memory_space<vmem>>, %arg3: memref<1x8x64xf32, #tpu.memory_space<vmem>>, %arg4: memref<1x8x8xf32, #tpu.memory_space<vmem>>, %arg5: memref<1x3x8x8x64xf32, #tpu.memory_space<vmem>>, %arg6: memref<1x3x8x1x8xf32, #tpu.memory_space<vmem>>, %arg7: memref<1x8x8x64xf32, #tpu.memory_space<vmem>>, %arg8: memref<1x1x64xf32, #tpu.memory_space<vmem>>, %arg9: memref<1x3x8x8x64xf32, #tpu.memory_space<vmem>>, %arg10: memref<1x3x8x1x8xf32, #tpu.memory_space<vmem>>, %arg11: memref<1x8x8x64xf32, #tpu.memory_space<vmem>>, %arg12: memref<1x1x64xf32, #tpu.memory_space<vmem>>, %arg13: memref<1x64x1024xf32, #tpu.memory_space<vmem>>, %arg14: memref<1x1x1024xf32, #tpu.memory_space<vmem>>, %arg15: memref<1x64x1024xf32, #tpu.memory_space<vmem>>, %arg16: memref<1x1x64xf32, #tpu.memory_space<vmem>>, %arg17: memref<1x3x1x64xf32, #tpu.memory_space<vmem>>, %arg18: memref<1x3x1x64xf32, #tpu.memory_space<vmem>>, %arg19: memref<1x64xf32, #tpu.memory_space<vmem>>, %arg20: memref<1x64xf32, #tpu.memory_space<vmem>>, %arg21: memref<64x128xf32, #tpu.memory_space<vmem>>, %arg22: memref<1x128xf32, #tpu.memory_space<vmem>>, %arg23: memref<1x8x128xf32, #tpu.memory_space<vmem>>, %arg24: memref<2x8x64xf32, #tpu.memory_space<vmem>>) attributes {dimension_semantics = [#tpu.dimension_semantics<parallel>, #tpu.dimension_semantics<arbitrary>], iteration_bounds = array<i64: 2, 2>, scalar_prefetch = 0 : i64, scratch_operands = 1 : i64, tpu.core_type = #tpu.core_type<tc>, window_params = [{transform_indices = @transform_0, window_bounds = array<i64: 1, 8, 64>}, {transform_indices = @transform_1, window_bounds = array<i64: 1, 8, 64>}, {transform_indices = @transform_2, window_bounds = array<i64: 1, 8, 8>}, {transform_indices = @transform_3, window_bounds = array<i64: 1, 3, 8, 8, 64>}, {transform_indices = @transform_4, window_bounds = array<i64: 1, 3, 8, 1, 8>}, {transform_indices = @transform_5, window_bounds = array<i64: 1, 8, 8, 64>}, {transform_indices = @transform_6, window_bounds = array<i64: 1, 1, 64>}, {transform_indices = @transform_7, window_bounds = array<i64: 1, 3, 8, 8, 64>}, {transform_indices = @transform_8, window_bounds = array<i64: 1, 3, 8, 1, 8>}, {transform_indices = @transform_9, window_bounds = array<i64: 1, 8, 8, 64>}, {transform_indices = @transform_10, window_bounds = array<i64: 1, 1, 64>}, {transform_indices = @transform_11, window_bounds = array<i64: 1, 64, 1024>}, {transform_indices = @transform_12, window_bounds = array<i64: 1, 1, 1024>}, {transform_indices = @transform_13, window_bounds = array<i64: 1, 64, 1024>}, {transform_indices = @transform_14, window_bounds = array<i64: 1, 1, 64>}, {transform_indices = @transform_15, window_bounds = array<i64: 1, 3, 1, 64>}, {transform_indices = @transform_16, window_bounds = array<i64: 1, 3, 1, 64>}, {pipeline_mode = #tpu.pipeline_mode<synchronous>, transform_indices = @transform_17, window_bounds = array<i64: 1, 64>}, {pipeline_mode = #tpu.pipeline_mode<synchronous>, transform_indices = @transform_18, window_bounds = array<i64: 1, 64>}, {pipeline_mode = #tpu.pipeline_mode<synchronous>, transform_indices = @transform_19, window_bounds = array<i64: 64, 128>}, {pipeline_mode = #tpu.pipeline_mode<synchronous>, transform_indices = @transform_20, window_bounds = array<i64: 1, 128>}, {transform_indices = @transform_21, window_bounds = array<i64: 1, 8, 128>}]} {
    %c0_i32 = arith.constant 0 : i32
    %0 = arith.cmpi eq, %arg1, %c0_i32 : i32
    %1 = arith.extui %0 : i1 to i32
    %c0_i32_0 = arith.constant 0 : i32
    %2 = arith.cmpi ne, %1, %c0_i32_0 : i32
    scf.if %2 {
      %c0_403 = arith.constant 0 : index
      %c0_404 = arith.constant 0 : index
      %c0_405 = arith.constant 0 : index
      %383 = vector.load %arg2[%c0_403, %c0_404, %c0_405] : memref<1x8x64xf32, #tpu.memory_space<vmem>>, vector<1x8x64xf32>
      %384 = vector.shape_cast %383 : vector<1x8x64xf32> to vector<8x64xf32>
      %385 = arith.index_cast %arg0 : i32 to index
      %c0_406 = arith.constant 0 : index
      %c0_407 = arith.constant 0 : index
      %386 = vector.load %arg24[%385, %c0_406, %c0_407] : memref<2x8x64xf32, #tpu.memory_space<vmem>>, vector<1x8x64xf32>
      %387 = vector.shape_cast %386 : vector<1x8x64xf32> to vector<8x64xf32>
      %388 = vector.shape_cast %384 : vector<8x64xf32> to vector<1x8x64xf32>
      tpu.vector_store %arg24[%385, %c0_406, %c0_407], %388 {strides = array<i32>} : memref<2x8x64xf32, #tpu.memory_space<vmem>>, vector<1x8x64xf32>,
    } else {
    }
    %3 = arith.index_cast %arg0 : i32 to index
    %c0 = arith.constant 0 : index
    %c0_1 = arith.constant 0 : index
    %4 = vector.load %arg24[%3, %c0, %c0_1] : memref<2x8x64xf32, #tpu.memory_space<vmem>>, vector<1x8x64xf32>
    %5 = vector.shape_cast %4 : vector<1x8x64xf32> to vector<8x64xf32>
    %c0_2 = arith.constant 0 : index
    %c0_3 = arith.constant 0 : index
    %c0_4 = arith.constant 0 : index
    %6 = vector.load %arg3[%c0_2, %c0_3, %c0_4] : memref<1x8x64xf32, #tpu.memory_space<vmem>>, vector<1x8x64xf32>
    %7 = vector.shape_cast %6 : vector<1x8x64xf32> to vector<8x64xf32>
    %c0_5 = arith.constant 0 : index
    %c0_6 = arith.constant 0 : index
    %c0_7 = arith.constant 0 : index
    %8 = vector.load %arg4[%c0_5, %c0_6, %c0_7] : memref<1x8x8xf32, #tpu.memory_space<vmem>>, vector<1x8x8xf32>
    %9 = vector.shape_cast %8 : vector<1x8x8xf32> to vector<8x8xf32>
    %c0_8 = arith.constant 0 : index
    %c0_9 = arith.constant 0 : index
    %c0_10 = arith.constant 0 : index
    %c0_11 = arith.constant 0 : index
    %c0_12 = arith.constant 0 : index
    %10 = vector.load %arg5[%c0_8, %c0_9, %c0_10, %c0_11, %c0_12] : memref<1x3x8x8x64xf32, #tpu.memory_space<vmem>>, vector<1x1x1x8x64xf32>
    %11 = vector.shape_cast %10 : vector<1x1x1x8x64xf32> to vector<8x64xf32>
    "tpu.trace_start"() <{level = 10 : i32, message = "td,fd->tf"}> : () -> ()
    %cst = arith.constant dense<0.000000e+00> : vector<8x8xf32>
    %12 = tpu.matmul %5, %11, %cst {dimension_numbers = #tpu.dot_dimension_numbers<[1], [1], [0], [0], [0, 0, 1, 0], [], []>} : vector<8x64xf32>, vector<8x64xf32>, vector<8x8xf32> -> vector<8x8xf32>
    "tpu.trace_stop"() : () -> ()
    %c0_13 = arith.constant 0 : index
    %c0_14 = arith.constant 0 : index
    %c1 = arith.constant 1 : index
    %c0_15 = arith.constant 0 : index
    %c0_16 = arith.constant 0 : index
    %13 = vector.load %arg5[%c0_13, %c0_14, %c1, %c0_15, %c0_16] : memref<1x3x8x8x64xf32, #tpu.memory_space<vmem>>, vector<1x1x1x8x64xf32>
    %14 = vector.shape_cast %13 : vector<1x1x1x8x64xf32> to vector<8x64xf32>
    "tpu.trace_start"() <{level = 10 : i32, message = "td,fd->tf"}> : () -> ()
    %cst_17 = arith.constant dense<0.000000e+00> : vector<8x8xf32>
    %15 = tpu.matmul %5, %14, %cst_17 {dimension_numbers = #tpu.dot_dimension_numbers<[1], [1], [0], [0], [0, 0, 1, 0], [], []>} : vector<8x64xf32>, vector<8x64xf32>, vector<8x8xf32> -> vector<8x8xf32>
    "tpu.trace_stop"() : () -> ()
    %c0_18 = arith.constant 0 : index
    %c0_19 = arith.constant 0 : index
    %c2 = arith.constant 2 : index
    %c0_20 = arith.constant 0 : index
    %c0_21 = arith.constant 0 : index
    %16 = vector.load %arg5[%c0_18, %c0_19, %c2, %c0_20, %c0_21] : memref<1x3x8x8x64xf32, #tpu.memory_space<vmem>>, vector<1x1x1x8x64xf32>
    %17 = vector.shape_cast %16 : vector<1x1x1x8x64xf32> to vector<8x64xf32>
    "tpu.trace_start"() <{level = 10 : i32, message = "td,fd->tf"}> : () -> ()
    %cst_22 = arith.constant dense<0.000000e+00> : vector<8x8xf32>
    %18 = tpu.matmul %5, %17, %cst_22 {dimension_numbers = #tpu.dot_dimension_numbers<[1], [1], [0], [0], [0, 0, 1, 0], [], []>} : vector<8x64xf32>, vector<8x64xf32>, vector<8x8xf32> -> vector<8x8xf32>
    "tpu.trace_stop"() : () -> ()
    %c0_23 = arith.constant 0 : index
    %c0_24 = arith.constant 0 : index
    %c3 = arith.constant 3 : index
    %c0_25 = arith.constant 0 : index
    %c0_26 = arith.constant 0 : index
    %19 = vector.load %arg5[%c0_23, %c0_24, %c3, %c0_25, %c0_26] : memref<1x3x8x8x64xf32, #tpu.memory_space<vmem>>, vector<1x1x1x8x64xf32>
    %20 = vector.shape_cast %19 : vector<1x1x1x8x64xf32> to vector<8x64xf32>
    "tpu.trace_start"() <{level = 10 : i32, message = "td,fd->tf"}> : () -> ()
    %cst_27 = arith.constant dense<0.000000e+00> : vector<8x8xf32>
    %21 = tpu.matmul %5, %20, %cst_27 {dimension_numbers = #tpu.dot_dimension_numbers<[1], [1], [0], [0], [0, 0, 1, 0], [], []>} : vector<8x64xf32>, vector<8x64xf32>, vector<8x8xf32> -> vector<8x8xf32>
    "tpu.trace_stop"() : () -> ()
    %c0_28 = arith.constant 0 : index
    %c0_29 = arith.constant 0 : index
    %c4 = arith.constant 4 : index
    %c0_30 = arith.constant 0 : index
    %c0_31 = arith.constant 0 : index
    %22 = vector.load %arg5[%c0_28, %c0_29, %c4, %c0_30, %c0_31] : memref<1x3x8x8x64xf32, #tpu.memory_space<vmem>>, vector<1x1x1x8x64xf32>
    %23 = vector.shape_cast %22 : vector<1x1x1x8x64xf32> to vector<8x64xf32>
    "tpu.trace_start"() <{level = 10 : i32, message = "td,fd->tf"}> : () -> ()
    %cst_32 = arith.constant dense<0.000000e+00> : vector<8x8xf32>
    %24 = tpu.matmul %5, %23, %cst_32 {dimension_numbers = #tpu.dot_dimension_numbers<[1], [1], [0], [0], [0, 0, 1, 0], [], []>} : vector<8x64xf32>, vector<8x64xf32>, vector<8x8xf32> -> vector<8x8xf32>
    "tpu.trace_stop"() : () -> ()
    %c0_33 = arith.constant 0 : index
    %c0_34 = arith.constant 0 : index
    %c5 = arith.constant 5 : index
    %c0_35 = arith.constant 0 : index
    %c0_36 = arith.constant 0 : index
    %25 = vector.load %arg5[%c0_33, %c0_34, %c5, %c0_35, %c0_36] : memref<1x3x8x8x64xf32, #tpu.memory_space<vmem>>, vector<1x1x1x8x64xf32>
    %26 = vector.shape_cast %25 : vector<1x1x1x8x64xf32> to vector<8x64xf32>
    "tpu.trace_start"() <{level = 10 : i32, message = "td,fd->tf"}> : () -> ()
    %cst_37 = arith.constant dense<0.000000e+00> : vector<8x8xf32>
    %27 = tpu.matmul %5, %26, %cst_37 {dimension_numbers = #tpu.dot_dimension_numbers<[1], [1], [0], [0], [0, 0, 1, 0], [], []>} : vector<8x64xf32>, vector<8x64xf32>, vector<8x8xf32> -> vector<8x8xf32>
    "tpu.trace_stop"() : () -> ()
    %c0_38 = arith.constant 0 : index
    %c0_39 = arith.constant 0 : index
    %c6 = arith.constant 6 : index
    %c0_40 = arith.constant 0 : index
    %c0_41 = arith.constant 0 : index
    %28 = vector.load %arg5[%c0_38, %c0_39, %c6, %c0_40, %c0_41] : memref<1x3x8x8x64xf32, #tpu.memory_space<vmem>>, vector<1x1x1x8x64xf32>
    %29 = vector.shape_cast %28 : vector<1x1x1x8x64xf32> to vector<8x64xf32>
    "tpu.trace_start"() <{level = 10 : i32, message = "td,fd->tf"}> : () -> ()
    %cst_42 = arith.constant dense<0.000000e+00> : vector<8x8xf32>
    %30 = tpu.matmul %5, %29, %cst_42 {dimension_numbers = #tpu.dot_dimension_numbers<[1], [1], [0], [0], [0, 0, 1, 0], [], []>} : vector<8x64xf32>, vector<8x64xf32>, vector<8x8xf32> -> vector<8x8xf32>
    "tpu.trace_stop"() : () -> ()
    %c0_43 = arith.constant 0 : index
    %c0_44 = arith.constant 0 : index
    %c7 = arith.constant 7 : index
    %c0_45 = arith.constant 0 : index
    %c0_46 = arith.constant 0 : index
    %31 = vector.load %arg5[%c0_43, %c0_44, %c7, %c0_45, %c0_46] : memref<1x3x8x8x64xf32, #tpu.memory_space<vmem>>, vector<1x1x1x8x64xf32>
    %32 = vector.shape_cast %31 : vector<1x1x1x8x64xf32> to vector<8x64xf32>
    "tpu.trace_start"() <{level = 10 : i32, message = "td,fd->tf"}> : () -> ()
    %cst_47 = arith.constant dense<0.000000e+00> : vector<8x8xf32>
    %33 = tpu.matmul %5, %32, %cst_47 {dimension_numbers = #tpu.dot_dimension_numbers<[1], [1], [0], [0], [0, 0, 1, 0], [], []>} : vector<8x64xf32>, vector<8x64xf32>, vector<8x8xf32> -> vector<8x8xf32>
    "tpu.trace_stop"() : () -> ()
    %34 = vector.shape_cast %12 : vector<8x8xf32> to vector<1x8x8xf32>
    %35 = vector.shape_cast %15 : vector<8x8xf32> to vector<1x8x8xf32>
    %36 = vector.shape_cast %18 : vector<8x8xf32> to vector<1x8x8xf32>
    %37 = vector.shape_cast %21 : vector<8x8xf32> to vector<1x8x8xf32>
    %38 = vector.shape_cast %24 : vector<8x8xf32> to vector<1x8x8xf32>
    %39 = vector.shape_cast %27 : vector<8x8xf32> to vector<1x8x8xf32>
    %40 = vector.shape_cast %30 : vector<8x8xf32> to vector<1x8x8xf32>
    %41 = vector.shape_cast %33 : vector<8x8xf32> to vector<1x8x8xf32>
    %42 = tpu.concatenate %34, %35, %36, %37, %38, %39, %40, %41 in 0 : vector<1x8x8xf32>, vector<1x8x8xf32>, vector<1x8x8xf32>, vector<1x8x8xf32>, vector<1x8x8xf32>, vector<1x8x8xf32>, vector<1x8x8xf32>, vector<1x8x8xf32> -> vector<8x8x8xf32>
    %c0_48 = arith.constant 0 : index
    %c0_49 = arith.constant 0 : index
    %c0_50 = arith.constant 0 : index
    %c0_51 = arith.constant 0 : index
    %c0_52 = arith.constant 0 : index
    %43 = vector.load %arg6[%c0_48, %c0_49, %c0_50, %c0_51, %c0_52] : memref<1x3x8x1x8xf32, #tpu.memory_space<vmem>>, vector<1x1x8x1x8xf32>
    %44 = vector.shape_cast %43 : vector<1x1x8x1x8xf32> to vector<8x1x8xf32>
    %45 = vector.broadcast %44 : vector<8x1x8xf32> to vector<8x8x8xf32>
    %46 = arith.addf %42, %45 : vector<8x8x8xf32>
    %c0_53 = arith.constant 0 : index
    %c1_54 = arith.constant 1 : index
    %c0_55 = arith.constant 0 : index
    %c0_56 = arith.constant 0 : index
    %c0_57 = arith.constant 0 : index
    %47 = vector.load %arg5[%c0_53, %c1_54, %c0_55, %c0_56, %c0_57] : memref<1x3x8x8x64xf32, #tpu.memory_space<vmem>>, vector<1x1x1x8x64xf32>
    %48 = vector.shape_cast %47 : vector<1x1x1x8x64xf32> to vector<8x64xf32>
    "tpu.trace_start"() <{level = 10 : i32, message = "td,fd->tf"}> : () -> ()
    %cst_58 = arith.constant dense<0.000000e+00> : vector<8x8xf32>
    %49 = tpu.matmul %5, %48, %cst_58 {dimension_numbers = #tpu.dot_dimension_numbers<[1], [1], [0], [0], [0, 0, 1, 0], [], []>} : vector<8x64xf32>, vector<8x64xf32>, vector<8x8xf32> -> vector<8x8xf32>
    "tpu.trace_stop"() : () -> ()
    %c0_59 = arith.constant 0 : index
    %c1_60 = arith.constant 1 : index
    %c1_61 = arith.constant 1 : index
    %c0_62 = arith.constant 0 : index
    %c0_63 = arith.constant 0 : index
    %50 = vector.load %arg5[%c0_59, %c1_60, %c1_61, %c0_62, %c0_63] : memref<1x3x8x8x64xf32, #tpu.memory_space<vmem>>, vector<1x1x1x8x64xf32>
    %51 = vector.shape_cast %50 : vector<1x1x1x8x64xf32> to vector<8x64xf32>
    "tpu.trace_start"() <{level = 10 : i32, message = "td,fd->tf"}> : () -> ()
    %cst_64 = arith.constant dense<0.000000e+00> : vector<8x8xf32>
    %52 = tpu.matmul %5, %51, %cst_64 {dimension_numbers = #tpu.dot_dimension_numbers<[1], [1], [0], [0], [0, 0, 1, 0], [], []>} : vector<8x64xf32>, vector<8x64xf32>, vector<8x8xf32> -> vector<8x8xf32>
    "tpu.trace_stop"() : () -> ()
    %c0_65 = arith.constant 0 : index
    %c1_66 = arith.constant 1 : index
    %c2_67 = arith.constant 2 : index
    %c0_68 = arith.constant 0 : index
    %c0_69 = arith.constant 0 : index
    %53 = vector.load %arg5[%c0_65, %c1_66, %c2_67, %c0_68, %c0_69] : memref<1x3x8x8x64xf32, #tpu.memory_space<vmem>>, vector<1x1x1x8x64xf32>
    %54 = vector.shape_cast %53 : vector<1x1x1x8x64xf32> to vector<8x64xf32>
    "tpu.trace_start"() <{level = 10 : i32, message = "td,fd->tf"}> : () -> ()
    %cst_70 = arith.constant dense<0.000000e+00> : vector<8x8xf32>
    %55 = tpu.matmul %5, %54, %cst_70 {dimension_numbers = #tpu.dot_dimension_numbers<[1], [1], [0], [0], [0, 0, 1, 0], [], []>} : vector<8x64xf32>, vector<8x64xf32>, vector<8x8xf32> -> vector<8x8xf32>
    "tpu.trace_stop"() : () -> ()
    %c0_71 = arith.constant 0 : index
    %c1_72 = arith.constant 1 : index
    %c3_73 = arith.constant 3 : index
    %c0_74 = arith.constant 0 : index
    %c0_75 = arith.constant 0 : index
    %56 = vector.load %arg5[%c0_71, %c1_72, %c3_73, %c0_74, %c0_75] : memref<1x3x8x8x64xf32, #tpu.memory_space<vmem>>, vector<1x1x1x8x64xf32>
    %57 = vector.shape_cast %56 : vector<1x1x1x8x64xf32> to vector<8x64xf32>
    "tpu.trace_start"() <{level = 10 : i32, message = "td,fd->tf"}> : () -> ()
    %cst_76 = arith.constant dense<0.000000e+00> : vector<8x8xf32>
    %58 = tpu.matmul %5, %57, %cst_76 {dimension_numbers = #tpu.dot_dimension_numbers<[1], [1], [0], [0], [0, 0, 1, 0], [], []>} : vector<8x64xf32>, vector<8x64xf32>, vector<8x8xf32> -> vector<8x8xf32>
    "tpu.trace_stop"() : () -> ()
    %c0_77 = arith.constant 0 : index
    %c1_78 = arith.constant 1 : index
    %c4_79 = arith.constant 4 : index
    %c0_80 = arith.constant 0 : index
    %c0_81 = arith.constant 0 : index
    %59 = vector.load %arg5[%c0_77, %c1_78, %c4_79, %c0_80, %c0_81] : memref<1x3x8x8x64xf32, #tpu.memory_space<vmem>>, vector<1x1x1x8x64xf32>
    %60 = vector.shape_cast %59 : vector<1x1x1x8x64xf32> to vector<8x64xf32>
    "tpu.trace_start"() <{level = 10 : i32, message = "td,fd->tf"}> : () -> ()
    %cst_82 = arith.constant dense<0.000000e+00> : vector<8x8xf32>
    %61 = tpu.matmul %5, %60, %cst_82 {dimension_numbers = #tpu.dot_dimension_numbers<[1], [1], [0], [0], [0, 0, 1, 0], [], []>} : vector<8x64xf32>, vector<8x64xf32>, vector<8x8xf32> -> vector<8x8xf32>
    "tpu.trace_stop"() : () -> ()
    %c0_83 = arith.constant 0 : index
    %c1_84 = arith.constant 1 : index
    %c5_85 = arith.constant 5 : index
    %c0_86 = arith.constant 0 : index
    %c0_87 = arith.constant 0 : index
    %62 = vector.load %arg5[%c0_83, %c1_84, %c5_85, %c0_86, %c0_87] : memref<1x3x8x8x64xf32, #tpu.memory_space<vmem>>, vector<1x1x1x8x64xf32>
    %63 = vector.shape_cast %62 : vector<1x1x1x8x64xf32> to vector<8x64xf32>
    "tpu.trace_start"() <{level = 10 : i32, message = "td,fd->tf"}> : () -> ()
    %cst_88 = arith.constant dense<0.000000e+00> : vector<8x8xf32>
    %64 = tpu.matmul %5, %63, %cst_88 {dimension_numbers = #tpu.dot_dimension_numbers<[1], [1], [0], [0], [0, 0, 1, 0], [], []>} : vector<8x64xf32>, vector<8x64xf32>, vector<8x8xf32> -> vector<8x8xf32>
    "tpu.trace_stop"() : () -> ()
    %c0_89 = arith.constant 0 : index
    %c1_90 = arith.constant 1 : index
    %c6_91 = arith.constant 6 : index
    %c0_92 = arith.constant 0 : index
    %c0_93 = arith.constant 0 : index
    %65 = vector.load %arg5[%c0_89, %c1_90, %c6_91, %c0_92, %c0_93] : memref<1x3x8x8x64xf32, #tpu.memory_space<vmem>>, vector<1x1x1x8x64xf32>
    %66 = vector.shape_cast %65 : vector<1x1x1x8x64xf32> to vector<8x64xf32>
    "tpu.trace_start"() <{level = 10 : i32, message = "td,fd->tf"}> : () -> ()
    %cst_94 = arith.constant dense<0.000000e+00> : vector<8x8xf32>
    %67 = tpu.matmul %5, %66, %cst_94 {dimension_numbers = #tpu.dot_dimension_numbers<[1], [1], [0], [0], [0, 0, 1, 0], [], []>} : vector<8x64xf32>, vector<8x64xf32>, vector<8x8xf32> -> vector<8x8xf32>
    "tpu.trace_stop"() : () -> ()
    %c0_95 = arith.constant 0 : index
    %c1_96 = arith.constant 1 : index
    %c7_97 = arith.constant 7 : index
    %c0_98 = arith.constant 0 : index
    %c0_99 = arith.constant 0 : index
    %68 = vector.load %arg5[%c0_95, %c1_96, %c7_97, %c0_98, %c0_99] : memref<1x3x8x8x64xf32, #tpu.memory_space<vmem>>, vector<1x1x1x8x64xf32>
    %69 = vector.shape_cast %68 : vector<1x1x1x8x64xf32> to vector<8x64xf32>
    "tpu.trace_start"() <{level = 10 : i32, message = "td,fd->tf"}> : () -> ()
    %cst_100 = arith.constant dense<0.000000e+00> : vector<8x8xf32>
    %70 = tpu.matmul %5, %69, %cst_100 {dimension_numbers = #tpu.dot_dimension_numbers<[1], [1], [0], [0], [0, 0, 1, 0], [], []>} : vector<8x64xf32>, vector<8x64xf32>, vector<8x8xf32> -> vector<8x8xf32>
    "tpu.trace_stop"() : () -> ()
    %71 = vector.shape_cast %49 : vector<8x8xf32> to vector<1x8x8xf32>
    %72 = vector.shape_cast %52 : vector<8x8xf32> to vector<1x8x8xf32>
    %73 = vector.shape_cast %55 : vector<8x8xf32> to vector<1x8x8xf32>
    %74 = vector.shape_cast %58 : vector<8x8xf32> to vector<1x8x8xf32>
    %75 = vector.shape_cast %61 : vector<8x8xf32> to vector<1x8x8xf32>
    %76 = vector.shape_cast %64 : vector<8x8xf32> to vector<1x8x8xf32>
    %77 = vector.shape_cast %67 : vector<8x8xf32> to vector<1x8x8xf32>
    %78 = vector.shape_cast %70 : vector<8x8xf32> to vector<1x8x8xf32>
    %79 = tpu.concatenate %71, %72, %73, %74, %75, %76, %77, %78 in 0 : vector<1x8x8xf32>, vector<1x8x8xf32>, vector<1x8x8xf32>, vector<1x8x8xf32>, vector<1x8x8xf32>, vector<1x8x8xf32>, vector<1x8x8xf32>, vector<1x8x8xf32> -> vector<8x8x8xf32>
    %c0_101 = arith.constant 0 : index
    %c1_102 = arith.constant 1 : index
    %c0_103 = arith.constant 0 : index
    %c0_104 = arith.constant 0 : index
    %c0_105 = arith.constant 0 : index
    %80 = vector.load %arg6[%c0_101, %c1_102, %c0_103, %c0_104, %c0_105] : memref<1x3x8x1x8xf32, #tpu.memory_space<vmem>>, vector<1x1x8x1x8xf32>
    %81 = vector.shape_cast %80 : vector<1x1x8x1x8xf32> to vector<8x1x8xf32>
    %82 = vector.broadcast %81 : vector<8x1x8xf32> to vector<8x8x8xf32>
    %83 = arith.addf %79, %82 : vector<8x8x8xf32>
    %c0_106 = arith.constant 0 : index
    %c2_107 = arith.constant 2 : index
    %c0_108 = arith.constant 0 : index
    %c0_109 = arith.constant 0 : index
    %c0_110 = arith.constant 0 : index
    %84 = vector.load %arg5[%c0_106, %c2_107, %c0_108, %c0_109, %c0_110] : memref<1x3x8x8x64xf32, #tpu.memory_space<vmem>>, vector<1x1x1x8x64xf32>
    %85 = vector.shape_cast %84 : vector<1x1x1x8x64xf32> to vector<8x64xf32>
    "tpu.trace_start"() <{level = 10 : i32, message = "td,fd->tf"}> : () -> ()
    %cst_111 = arith.constant dense<0.000000e+00> : vector<8x8xf32>
    %86 = tpu.matmul %5, %85, %cst_111 {dimension_numbers = #tpu.dot_dimension_numbers<[1], [1], [0], [0], [0, 0, 1, 0], [], []>} : vector<8x64xf32>, vector<8x64xf32>, vector<8x8xf32> -> vector<8x8xf32>
    "tpu.trace_stop"() : () -> ()
    %c0_112 = arith.constant 0 : index
    %c2_113 = arith.constant 2 : index
    %c1_114 = arith.constant 1 : index
    %c0_115 = arith.constant 0 : index
    %c0_116 = arith.constant 0 : index
    %87 = vector.load %arg5[%c0_112, %c2_113, %c1_114, %c0_115, %c0_116] : memref<1x3x8x8x64xf32, #tpu.memory_space<vmem>>, vector<1x1x1x8x64xf32>
    %88 = vector.shape_cast %87 : vector<1x1x1x8x64xf32> to vector<8x64xf32>
    "tpu.trace_start"() <{level = 10 : i32, message = "td,fd->tf"}> : () -> ()
    %cst_117 = arith.constant dense<0.000000e+00> : vector<8x8xf32>
    %89 = tpu.matmul %5, %88, %cst_117 {dimension_numbers = #tpu.dot_dimension_numbers<[1], [1], [0], [0], [0, 0, 1, 0], [], []>} : vector<8x64xf32>, vector<8x64xf32>, vector<8x8xf32> -> vector<8x8xf32>
    "tpu.trace_stop"() : () -> ()
    %c0_118 = arith.constant 0 : index
    %c2_119 = arith.constant 2 : index
    %c2_120 = arith.constant 2 : index
    %c0_121 = arith.constant 0 : index
    %c0_122 = arith.constant 0 : index
    %90 = vector.load %arg5[%c0_118, %c2_119, %c2_120, %c0_121, %c0_122] : memref<1x3x8x8x64xf32, #tpu.memory_space<vmem>>, vector<1x1x1x8x64xf32>
    %91 = vector.shape_cast %90 : vector<1x1x1x8x64xf32> to vector<8x64xf32>
    "tpu.trace_start"() <{level = 10 : i32, message = "td,fd->tf"}> : () -> ()
    %cst_123 = arith.constant dense<0.000000e+00> : vector<8x8xf32>
    %92 = tpu.matmul %5, %91, %cst_123 {dimension_numbers = #tpu.dot_dimension_numbers<[1], [1], [0], [0], [0, 0, 1, 0], [], []>} : vector<8x64xf32>, vector<8x64xf32>, vector<8x8xf32> -> vector<8x8xf32>
    "tpu.trace_stop"() : () -> ()
    %c0_124 = arith.constant 0 : index
    %c2_125 = arith.constant 2 : index
    %c3_126 = arith.constant 3 : index
    %c0_127 = arith.constant 0 : index
    %c0_128 = arith.constant 0 : index
    %93 = vector.load %arg5[%c0_124, %c2_125, %c3_126, %c0_127, %c0_128] : memref<1x3x8x8x64xf32, #tpu.memory_space<vmem>>, vector<1x1x1x8x64xf32>
    %94 = vector.shape_cast %93 : vector<1x1x1x8x64xf32> to vector<8x64xf32>
    "tpu.trace_start"() <{level = 10 : i32, message = "td,fd->tf"}> : () -> ()
    %cst_129 = arith.constant dense<0.000000e+00> : vector<8x8xf32>
    %95 = tpu.matmul %5, %94, %cst_129 {dimension_numbers = #tpu.dot_dimension_numbers<[1], [1], [0], [0], [0, 0, 1, 0], [], []>} : vector<8x64xf32>, vector<8x64xf32>, vector<8x8xf32> -> vector<8x8xf32>
    "tpu.trace_stop"() : () -> ()
    %c0_130 = arith.constant 0 : index
    %c2_131 = arith.constant 2 : index
    %c4_132 = arith.constant 4 : index
    %c0_133 = arith.constant 0 : index
    %c0_134 = arith.constant 0 : index
    %96 = vector.load %arg5[%c0_130, %c2_131, %c4_132, %c0_133, %c0_134] : memref<1x3x8x8x64xf32, #tpu.memory_space<vmem>>, vector<1x1x1x8x64xf32>
    %97 = vector.shape_cast %96 : vector<1x1x1x8x64xf32> to vector<8x64xf32>
    "tpu.trace_start"() <{level = 10 : i32, message = "td,fd->tf"}> : () -> ()
    %cst_135 = arith.constant dense<0.000000e+00> : vector<8x8xf32>
    %98 = tpu.matmul %5, %97, %cst_135 {dimension_numbers = #tpu.dot_dimension_numbers<[1], [1], [0], [0], [0, 0, 1, 0], [], []>} : vector<8x64xf32>, vector<8x64xf32>, vector<8x8xf32> -> vector<8x8xf32>
    "tpu.trace_stop"() : () -> ()
    %c0_136 = arith.constant 0 : index
    %c2_137 = arith.constant 2 : index
    %c5_138 = arith.constant 5 : index
    %c0_139 = arith.constant 0 : index
    %c0_140 = arith.constant 0 : index
    %99 = vector.load %arg5[%c0_136, %c2_137, %c5_138, %c0_139, %c0_140] : memref<1x3x8x8x64xf32, #tpu.memory_space<vmem>>, vector<1x1x1x8x64xf32>
    %100 = vector.shape_cast %99 : vector<1x1x1x8x64xf32> to vector<8x64xf32>
    "tpu.trace_start"() <{level = 10 : i32, message = "td,fd->tf"}> : () -> ()
    %cst_141 = arith.constant dense<0.000000e+00> : vector<8x8xf32>
    %101 = tpu.matmul %5, %100, %cst_141 {dimension_numbers = #tpu.dot_dimension_numbers<[1], [1], [0], [0], [0, 0, 1, 0], [], []>} : vector<8x64xf32>, vector<8x64xf32>, vector<8x8xf32> -> vector<8x8xf32>
    "tpu.trace_stop"() : () -> ()
    %c0_142 = arith.constant 0 : index
    %c2_143 = arith.constant 2 : index
    %c6_144 = arith.constant 6 : index
    %c0_145 = arith.constant 0 : index
    %c0_146 = arith.constant 0 : index
    %102 = vector.load %arg5[%c0_142, %c2_143, %c6_144, %c0_145, %c0_146] : memref<1x3x8x8x64xf32, #tpu.memory_space<vmem>>, vector<1x1x1x8x64xf32>
    %103 = vector.shape_cast %102 : vector<1x1x1x8x64xf32> to vector<8x64xf32>
    "tpu.trace_start"() <{level = 10 : i32, message = "td,fd->tf"}> : () -> ()
    %cst_147 = arith.constant dense<0.000000e+00> : vector<8x8xf32>
    %104 = tpu.matmul %5, %103, %cst_147 {dimension_numbers = #tpu.dot_dimension_numbers<[1], [1], [0], [0], [0, 0, 1, 0], [], []>} : vector<8x64xf32>, vector<8x64xf32>, vector<8x8xf32> -> vector<8x8xf32>
    "tpu.trace_stop"() : () -> ()
    %c0_148 = arith.constant 0 : index
    %c2_149 = arith.constant 2 : index
    %c7_150 = arith.constant 7 : index
    %c0_151 = arith.constant 0 : index
    %c0_152 = arith.constant 0 : index
    %105 = vector.load %arg5[%c0_148, %c2_149, %c7_150, %c0_151, %c0_152] : memref<1x3x8x8x64xf32, #tpu.memory_space<vmem>>, vector<1x1x1x8x64xf32>
    %106 = vector.shape_cast %105 : vector<1x1x1x8x64xf32> to vector<8x64xf32>
    "tpu.trace_start"() <{level = 10 : i32, message = "td,fd->tf"}> : () -> ()
    %cst_153 = arith.constant dense<0.000000e+00> : vector<8x8xf32>
    %107 = tpu.matmul %5, %106, %cst_153 {dimension_numbers = #tpu.dot_dimension_numbers<[1], [1], [0], [0], [0, 0, 1, 0], [], []>} : vector<8x64xf32>, vector<8x64xf32>, vector<8x8xf32> -> vector<8x8xf32>
    "tpu.trace_stop"() : () -> ()
    %108 = vector.shape_cast %86 : vector<8x8xf32> to vector<1x8x8xf32>
    %109 = vector.shape_cast %89 : vector<8x8xf32> to vector<1x8x8xf32>
    %110 = vector.shape_cast %92 : vector<8x8xf32> to vector<1x8x8xf32>
    %111 = vector.shape_cast %95 : vector<8x8xf32> to vector<1x8x8xf32>
    %112 = vector.shape_cast %98 : vector<8x8xf32> to vector<1x8x8xf32>
    %113 = vector.shape_cast %101 : vector<8x8xf32> to vector<1x8x8xf32>
    %114 = vector.shape_cast %104 : vector<8x8xf32> to vector<1x8x8xf32>
    %115 = vector.shape_cast %107 : vector<8x8xf32> to vector<1x8x8xf32>
    %116 = tpu.concatenate %108, %109, %110, %111, %112, %113, %114, %115 in 0 : vector<1x8x8xf32>, vector<1x8x8xf32>, vector<1x8x8xf32>, vector<1x8x8xf32>, vector<1x8x8xf32>, vector<1x8x8xf32>, vector<1x8x8xf32>, vector<1x8x8xf32> -> vector<8x8x8xf32>
    %c0_154 = arith.constant 0 : index
    %c2_155 = arith.constant 2 : index
    %c0_156 = arith.constant 0 : index
    %c0_157 = arith.constant 0 : index
    %c0_158 = arith.constant 0 : index
    %117 = vector.load %arg6[%c0_154, %c2_155, %c0_156, %c0_157, %c0_158] : memref<1x3x8x1x8xf32, #tpu.memory_space<vmem>>, vector<1x1x8x1x8xf32>
    %118 = vector.shape_cast %117 : vector<1x1x8x1x8xf32> to vector<8x1x8xf32>
    %119 = vector.broadcast %118 : vector<8x1x8xf32> to vector<8x8x8xf32>
    %120 = arith.addf %116, %119 : vector<8x8x8xf32>
    "tpu.trace_start"() <{level = 10 : i32, message = "hqd,hkd->hqk"}> : () -> ()
    %cst_159 = arith.constant dense<0.000000e+00> : vector<8x8x8xf32>
    %121 = tpu.matmul %46, %83, %cst_159 {dimension_numbers = #tpu.dot_dimension_numbers<[2], [2], [1], [1], [0, 0, 0, 1, 1, 1], [0], [0]>} : vector<8x8x8xf32>, vector<8x8x8xf32>, vector<8x8x8xf32> -> vector<8x8x8xf32>
    "tpu.trace_stop"() : () -> ()
    %cst_160 = arith.constant 0.353553385 : f32
    %122 = vector.broadcast %cst_160 : f32 to vector<8x8x8xf32>
    %123 = arith.mulf %121, %122 : vector<8x8x8xf32>
    %124 = vector.shape_cast %9 : vector<8x8xf32> to vector<1x8x8xf32>
    %125 = vector.broadcast %124 : vector<1x8x8xf32> to vector<8x8x8xf32>
    %126 = arith.addf %123, %125 : vector<8x8x8xf32>
    %cst_161 = arith.constant dense<0xFF800000> : vector<8x8xf32>
    %127 = vector.multi_reduction <maximumf>, %126, %cst_161 [2] : vector<8x8x8xf32> to vector<8x8xf32>
    %128 = vector.shape_cast %127 : vector<8x8xf32> to vector<8x8x1xf32>
    %129 = vector.broadcast %128 : vector<8x8x1xf32> to vector<8x8x8xf32>
    %130 = arith.subf %126, %129 : vector<8x8x8xf32>
    %131 = math.exp %130 : vector<8x8x8xf32>
    %cst_162 = arith.constant dense<0.000000e+00> : vector<8x8xf32>
    %132 = vector.multi_reduction <add>, %131, %cst_162 [2] : vector<8x8x8xf32> to vector<8x8xf32>
    %133 = vector.shape_cast %132 : vector<8x8xf32> to vector<8x8x1xf32>
    %134 = tpu.reciprocal %133 {approx = true} : vector<8x8x1xf32> -> vector<8x8x1xf32>
    %135 = vector.broadcast %134 : vector<8x8x1xf32> to vector<8x8x8xf32>
    %136 = arith.mulf %131, %135 : vector<8x8x8xf32>
    "tpu.trace_start"() <{level = 10 : i32, message = "hqk,hkd->hqd"}> : () -> ()
    %cst_163 = arith.constant dense<0.000000e+00> : vector<8x8x8xf32>
    %137 = tpu.matmul %136, %120, %cst_163 {dimension_numbers = #tpu.dot_dimension_numbers<[2], [1], [1], [2], [0, 0, 0, 1, 1, 2], [0], [0]>} : vector<8x8x8xf32>, vector<8x8x8xf32>, vector<8x8x8xf32> -> vector<8x8x8xf32>
    "tpu.trace_stop"() : () -> ()
    %c0_164 = arith.constant 0 : index
    %c0_165 = arith.constant 0 : index
    %c0_166 = arith.constant 0 : index
    %c0_167 = arith.constant 0 : index
    %138 = vector.load %arg7[%c0_164, %c0_165, %c0_166, %c0_167] : memref<1x8x8x64xf32, #tpu.memory_space<vmem>>, vector<1x8x8x64xf32>
    %139 = vector.shape_cast %138 : vector<1x8x8x64xf32> to vector<8x8x64xf32>
    "tpu.trace_start"() <{level = 10 : i32, message = "hqd,hdm->hqm"}> : () -> ()
    %cst_168 = arith.constant dense<0.000000e+00> : vector<8x8x64xf32>
    %140 = tpu.matmul %137, %139, %cst_168 {dimension_numbers = #tpu.dot_dimension_numbers<[2], [1], [1], [2], [0, 0, 0, 1, 1, 2], [0], [0]>} : vector<8x8x8xf32>, vector<8x8x64xf32>, vector<8x8x64xf32> -> vector<8x8x64xf32>
    "tpu.trace_stop"() : () -> ()
    %cst_169 = arith.constant dense<0.000000e+00> : vector<8x64xf32>
    %141 = vector.multi_reduction <add>, %140, %cst_169 [0] : vector<8x8x64xf32> to vector<8x64xf32>
    %c0_170 = arith.constant 0 : index
    %c0_171 = arith.constant 0 : index
    %c0_172 = arith.constant 0 : index
    %142 = vector.load %arg8[%c0_170, %c0_171, %c0_172] : memref<1x1x64xf32, #tpu.memory_space<vmem>>, vector<1x1x64xf32>
    %143 = vector.shape_cast %142 : vector<1x1x64xf32> to vector<1x64xf32>
    %144 = vector.broadcast %143 : vector<1x64xf32> to vector<8x64xf32>
    %145 = arith.addf %141, %144 : vector<8x64xf32>
    %146 = arith.addf %5, %145 : vector<8x64xf32>
    %c0_173 = arith.constant 0 : index
    %c0_174 = arith.constant 0 : index
    %c0_175 = arith.constant 0 : index
    %c0_176 = arith.constant 0 : index
    %147 = vector.load %arg17[%c0_173, %c0_174, %c0_175, %c0_176] : memref<1x3x1x64xf32, #tpu.memory_space<vmem>>, vector<1x1x1x64xf32>
    %148 = vector.shape_cast %147 : vector<1x1x1x64xf32> to vector<1x64xf32>
    %c0_177 = arith.constant 0 : index
    %c0_178 = arith.constant 0 : index
    %c0_179 = arith.constant 0 : index
    %c0_180 = arith.constant 0 : index
    %149 = vector.load %arg18[%c0_177, %c0_178, %c0_179, %c0_180] : memref<1x3x1x64xf32, #tpu.memory_space<vmem>>, vector<1x1x1x64xf32>
    %150 = vector.shape_cast %149 : vector<1x1x1x64xf32> to vector<1x64xf32>
    %cst_181 = arith.constant dense<0.000000e+00> : vector<8xf32>
    %151 = vector.multi_reduction <add>, %146, %cst_181 [1] : vector<8x64xf32> to vector<8xf32>
    %152 = vector.shape_cast %151 : vector<8xf32> to vector<8x1xf32>
    %cst_182 = arith.constant 6.400000e+01 : f32
    %153 = vector.broadcast %cst_182 : f32 to vector<8x1xf32>
    %154 = arith.divf %152, %153 : vector<8x1xf32>
    %155 = vector.broadcast %154 : vector<8x1xf32> to vector<8x64xf32>
    %156 = arith.subf %146, %155 : vector<8x64xf32>
    %157 = arith.mulf %156, %156 : vector<8x64xf32>
    %cst_183 = arith.constant dense<0.000000e+00> : vector<8xf32>
    %158 = vector.multi_reduction <add>, %157, %cst_183 [1] : vector<8x64xf32> to vector<8xf32>
    %159 = vector.shape_cast %158 : vector<8xf32> to vector<8x1xf32>
    %cst_184 = arith.constant 6.400000e+01 : f32
    %160 = vector.broadcast %cst_184 : f32 to vector<8x1xf32>
    %161 = arith.divf %159, %160 : vector<8x1xf32>
    %162 = vector.broadcast %154 : vector<8x1xf32> to vector<8x64xf32>
    %163 = arith.subf %146, %162 : vector<8x64xf32>
    %cst_185 = arith.constant 9.99999974E-6 : f32
    %164 = vector.broadcast %cst_185 : f32 to vector<8x1xf32>
    %165 = arith.addf %161, %164 : vector<8x1xf32>
    %166 = math.rsqrt %165 : vector<8x1xf32>
    %167 = vector.broadcast %166 : vector<8x1xf32> to vector<8x64xf32>
    %168 = arith.mulf %163, %167 : vector<8x64xf32>
    %169 = vector.broadcast %148 : vector<1x64xf32> to vector<8x64xf32>
    %170 = arith.mulf %168, %169 : vector<8x64xf32>
    %171 = vector.broadcast %150 : vector<1x64xf32> to vector<8x64xf32>
    %172 = arith.addf %170, %171 : vector<8x64xf32>
    %c0_186 = arith.constant 0 : index
    %c0_187 = arith.constant 0 : index
    %c0_188 = arith.constant 0 : index
    %c0_189 = arith.constant 0 : index
    %c0_190 = arith.constant 0 : index
    %173 = vector.load %arg9[%c0_186, %c0_187, %c0_188, %c0_189, %c0_190] : memref<1x3x8x8x64xf32, #tpu.memory_space<vmem>>, vector<1x1x1x8x64xf32>
    %174 = vector.shape_cast %173 : vector<1x1x1x8x64xf32> to vector<8x64xf32>
    "tpu.trace_start"() <{level = 10 : i32, message = "td,fd->tf"}> : () -> ()
    %cst_191 = arith.constant dense<0.000000e+00> : vector<8x8xf32>
    %175 = tpu.matmul %172, %174, %cst_191 {dimension_numbers = #tpu.dot_dimension_numbers<[1], [1], [0], [0], [0, 0, 1, 0], [], []>} : vector<8x64xf32>, vector<8x64xf32>, vector<8x8xf32> -> vector<8x8xf32>
    "tpu.trace_stop"() : () -> ()
    %c0_192 = arith.constant 0 : index
    %c0_193 = arith.constant 0 : index
    %c1_194 = arith.constant 1 : index
    %c0_195 = arith.constant 0 : index
    %c0_196 = arith.constant 0 : index
    %176 = vector.load %arg9[%c0_192, %c0_193, %c1_194, %c0_195, %c0_196] : memref<1x3x8x8x64xf32, #tpu.memory_space<vmem>>, vector<1x1x1x8x64xf32>
    %177 = vector.shape_cast %176 : vector<1x1x1x8x64xf32> to vector<8x64xf32>
    "tpu.trace_start"() <{level = 10 : i32, message = "td,fd->tf"}> : () -> ()
    %cst_197 = arith.constant dense<0.000000e+00> : vector<8x8xf32>
    %178 = tpu.matmul %172, %177, %cst_197 {dimension_numbers = #tpu.dot_dimension_numbers<[1], [1], [0], [0], [0, 0, 1, 0], [], []>} : vector<8x64xf32>, vector<8x64xf32>, vector<8x8xf32> -> vector<8x8xf32>
    "tpu.trace_stop"() : () -> ()
    %c0_198 = arith.constant 0 : index
    %c0_199 = arith.constant 0 : index
    %c2_200 = arith.constant 2 : index
    %c0_201 = arith.constant 0 : index
    %c0_202 = arith.constant 0 : index
    %179 = vector.load %arg9[%c0_198, %c0_199, %c2_200, %c0_201, %c0_202] : memref<1x3x8x8x64xf32, #tpu.memory_space<vmem>>, vector<1x1x1x8x64xf32>
    %180 = vector.shape_cast %179 : vector<1x1x1x8x64xf32> to vector<8x64xf32>
    "tpu.trace_start"() <{level = 10 : i32, message = "td,fd->tf"}> : () -> ()
    %cst_203 = arith.constant dense<0.000000e+00> : vector<8x8xf32>
    %181 = tpu.matmul %172, %180, %cst_203 {dimension_numbers = #tpu.dot_dimension_numbers<[1], [1], [0], [0], [0, 0, 1, 0], [], []>} : vector<8x64xf32>, vector<8x64xf32>, vector<8x8xf32> -> vector<8x8xf32>
    "tpu.trace_stop"() : () -> ()
    %c0_204 = arith.constant 0 : index
    %c0_205 = arith.constant 0 : index
    %c3_206 = arith.constant 3 : index
    %c0_207 = arith.constant 0 : index
    %c0_208 = arith.constant 0 : index
    %182 = vector.load %arg9[%c0_204, %c0_205, %c3_206, %c0_207, %c0_208] : memref<1x3x8x8x64xf32, #tpu.memory_space<vmem>>, vector<1x1x1x8x64xf32>
    %183 = vector.shape_cast %182 : vector<1x1x1x8x64xf32> to vector<8x64xf32>
    "tpu.trace_start"() <{level = 10 : i32, message = "td,fd->tf"}> : () -> ()
    %cst_209 = arith.constant dense<0.000000e+00> : vector<8x8xf32>
    %184 = tpu.matmul %172, %183, %cst_209 {dimension_numbers = #tpu.dot_dimension_numbers<[1], [1], [0], [0], [0, 0, 1, 0], [], []>} : vector<8x64xf32>, vector<8x64xf32>, vector<8x8xf32> -> vector<8x8xf32>
    "tpu.trace_stop"() : () -> ()
    %c0_210 = arith.constant 0 : index
    %c0_211 = arith.constant 0 : index
    %c4_212 = arith.constant 4 : index
    %c0_213 = arith.constant 0 : index
    %c0_214 = arith.constant 0 : index
    %185 = vector.load %arg9[%c0_210, %c0_211, %c4_212, %c0_213, %c0_214] : memref<1x3x8x8x64xf32, #tpu.memory_space<vmem>>, vector<1x1x1x8x64xf32>
    %186 = vector.shape_cast %185 : vector<1x1x1x8x64xf32> to vector<8x64xf32>
    "tpu.trace_start"() <{level = 10 : i32, message = "td,fd->tf"}> : () -> ()
    %cst_215 = arith.constant dense<0.000000e+00> : vector<8x8xf32>
    %187 = tpu.matmul %172, %186, %cst_215 {dimension_numbers = #tpu.dot_dimension_numbers<[1], [1], [0], [0], [0, 0, 1, 0], [], []>} : vector<8x64xf32>, vector<8x64xf32>, vector<8x8xf32> -> vector<8x8xf32>
    "tpu.trace_stop"() : () -> ()
    %c0_216 = arith.constant 0 : index
    %c0_217 = arith.constant 0 : index
    %c5_218 = arith.constant 5 : index
    %c0_219 = arith.constant 0 : index
    %c0_220 = arith.constant 0 : index
    %188 = vector.load %arg9[%c0_216, %c0_217, %c5_218, %c0_219, %c0_220] : memref<1x3x8x8x64xf32, #tpu.memory_space<vmem>>, vector<1x1x1x8x64xf32>
    %189 = vector.shape_cast %188 : vector<1x1x1x8x64xf32> to vector<8x64xf32>
    "tpu.trace_start"() <{level = 10 : i32, message = "td,fd->tf"}> : () -> ()
    %cst_221 = arith.constant dense<0.000000e+00> : vector<8x8xf32>
    %190 = tpu.matmul %172, %189, %cst_221 {dimension_numbers = #tpu.dot_dimension_numbers<[1], [1], [0], [0], [0, 0, 1, 0], [], []>} : vector<8x64xf32>, vector<8x64xf32>, vector<8x8xf32> -> vector<8x8xf32>
    "tpu.trace_stop"() : () -> ()
    %c0_222 = arith.constant 0 : index
    %c0_223 = arith.constant 0 : index
    %c6_224 = arith.constant 6 : index
    %c0_225 = arith.constant 0 : index
    %c0_226 = arith.constant 0 : index
    %191 = vector.load %arg9[%c0_222, %c0_223, %c6_224, %c0_225, %c0_226] : memref<1x3x8x8x64xf32, #tpu.memory_space<vmem>>, vector<1x1x1x8x64xf32>
    %192 = vector.shape_cast %191 : vector<1x1x1x8x64xf32> to vector<8x64xf32>
    "tpu.trace_start"() <{level = 10 : i32, message = "td,fd->tf"}> : () -> ()
    %cst_227 = arith.constant dense<0.000000e+00> : vector<8x8xf32>
    %193 = tpu.matmul %172, %192, %cst_227 {dimension_numbers = #tpu.dot_dimension_numbers<[1], [1], [0], [0], [0, 0, 1, 0], [], []>} : vector<8x64xf32>, vector<8x64xf32>, vector<8x8xf32> -> vector<8x8xf32>
    "tpu.trace_stop"() : () -> ()
    %c0_228 = arith.constant 0 : index
    %c0_229 = arith.constant 0 : index
    %c7_230 = arith.constant 7 : index
    %c0_231 = arith.constant 0 : index
    %c0_232 = arith.constant 0 : index
    %194 = vector.load %arg9[%c0_228, %c0_229, %c7_230, %c0_231, %c0_232] : memref<1x3x8x8x64xf32, #tpu.memory_space<vmem>>, vector<1x1x1x8x64xf32>
    %195 = vector.shape_cast %194 : vector<1x1x1x8x64xf32> to vector<8x64xf32>
    "tpu.trace_start"() <{level = 10 : i32, message = "td,fd->tf"}> : () -> ()
    %cst_233 = arith.constant dense<0.000000e+00> : vector<8x8xf32>
    %196 = tpu.matmul %172, %195, %cst_233 {dimension_numbers = #tpu.dot_dimension_numbers<[1], [1], [0], [0], [0, 0, 1, 0], [], []>} : vector<8x64xf32>, vector<8x64xf32>, vector<8x8xf32> -> vector<8x8xf32>
    "tpu.trace_stop"() : () -> ()
    %197 = vector.shape_cast %175 : vector<8x8xf32> to vector<1x8x8xf32>
    %198 = vector.shape_cast %178 : vector<8x8xf32> to vector<1x8x8xf32>
    %199 = vector.shape_cast %181 : vector<8x8xf32> to vector<1x8x8xf32>
    %200 = vector.shape_cast %184 : vector<8x8xf32> to vector<1x8x8xf32>
    %201 = vector.shape_cast %187 : vector<8x8xf32> to vector<1x8x8xf32>
    %202 = vector.shape_cast %190 : vector<8x8xf32> to vector<1x8x8xf32>
    %203 = vector.shape_cast %193 : vector<8x8xf32> to vector<1x8x8xf32>
    %204 = vector.shape_cast %196 : vector<8x8xf32> to vector<1x8x8xf32>
    %205 = tpu.concatenate %197, %198, %199, %200, %201, %202, %203, %204 in 0 : vector<1x8x8xf32>, vector<1x8x8xf32>, vector<1x8x8xf32>, vector<1x8x8xf32>, vector<1x8x8xf32>, vector<1x8x8xf32>, vector<1x8x8xf32>, vector<1x8x8xf32> -> vector<8x8x8xf32>
    %c0_234 = arith.constant 0 : index
    %c0_235 = arith.constant 0 : index
    %c0_236 = arith.constant 0 : index
    %c0_237 = arith.constant 0 : index
    %c0_238 = arith.constant 0 : index
    %206 = vector.load %arg10[%c0_234, %c0_235, %c0_236, %c0_237, %c0_238] : memref<1x3x8x1x8xf32, #tpu.memory_space<vmem>>, vector<1x1x8x1x8xf32>
    %207 = vector.shape_cast %206 : vector<1x1x8x1x8xf32> to vector<8x1x8xf32>
    %208 = vector.broadcast %207 : vector<8x1x8xf32> to vector<8x8x8xf32>
    %209 = arith.addf %205, %208 : vector<8x8x8xf32>
    %c0_239 = arith.constant 0 : index
    %c1_240 = arith.constant 1 : index
    %c0_241 = arith.constant 0 : index
    %c0_242 = arith.constant 0 : index
    %c0_243 = arith.constant 0 : index
    %210 = vector.load %arg9[%c0_239, %c1_240, %c0_241, %c0_242, %c0_243] : memref<1x3x8x8x64xf32, #tpu.memory_space<vmem>>, vector<1x1x1x8x64xf32>
    %211 = vector.shape_cast %210 : vector<1x1x1x8x64xf32> to vector<8x64xf32>
    "tpu.trace_start"() <{level = 10 : i32, message = "td,fd->tf"}> : () -> ()
    %cst_244 = arith.constant dense<0.000000e+00> : vector<8x8xf32>
    %212 = tpu.matmul %7, %211, %cst_244 {dimension_numbers = #tpu.dot_dimension_numbers<[1], [1], [0], [0], [0, 0, 1, 0], [], []>} : vector<8x64xf32>, vector<8x64xf32>, vector<8x8xf32> -> vector<8x8xf32>
    "tpu.trace_stop"() : () -> ()
    %c0_245 = arith.constant 0 : index
    %c1_246 = arith.constant 1 : index
    %c1_247 = arith.constant 1 : index
    %c0_248 = arith.constant 0 : index
    %c0_249 = arith.constant 0 : index
    %213 = vector.load %arg9[%c0_245, %c1_246, %c1_247, %c0_248, %c0_249] : memref<1x3x8x8x64xf32, #tpu.memory_space<vmem>>, vector<1x1x1x8x64xf32>
    %214 = vector.shape_cast %213 : vector<1x1x1x8x64xf32> to vector<8x64xf32>
    "tpu.trace_start"() <{level = 10 : i32, message = "td,fd->tf"}> : () -> ()
    %cst_250 = arith.constant dense<0.000000e+00> : vector<8x8xf32>
    %215 = tpu.matmul %7, %214, %cst_250 {dimension_numbers = #tpu.dot_dimension_numbers<[1], [1], [0], [0], [0, 0, 1, 0], [], []>} : vector<8x64xf32>, vector<8x64xf32>, vector<8x8xf32> -> vector<8x8xf32>
    "tpu.trace_stop"() : () -> ()
    %c0_251 = arith.constant 0 : index
    %c1_252 = arith.constant 1 : index
    %c2_253 = arith.constant 2 : index
    %c0_254 = arith.constant 0 : index
    %c0_255 = arith.constant 0 : index
    %216 = vector.load %arg9[%c0_251, %c1_252, %c2_253, %c0_254, %c0_255] : memref<1x3x8x8x64xf32, #tpu.memory_space<vmem>>, vector<1x1x1x8x64xf32>
    %217 = vector.shape_cast %216 : vector<1x1x1x8x64xf32> to vector<8x64xf32>
    "tpu.trace_start"() <{level = 10 : i32, message = "td,fd->tf"}> : () -> ()
    %cst_256 = arith.constant dense<0.000000e+00> : vector<8x8xf32>
    %218 = tpu.matmul %7, %217, %cst_256 {dimension_numbers = #tpu.dot_dimension_numbers<[1], [1], [0], [0], [0, 0, 1, 0], [], []>} : vector<8x64xf32>, vector<8x64xf32>, vector<8x8xf32> -> vector<8x8xf32>
    "tpu.trace_stop"() : () -> ()
    %c0_257 = arith.constant 0 : index
    %c1_258 = arith.constant 1 : index
    %c3_259 = arith.constant 3 : index
    %c0_260 = arith.constant 0 : index
    %c0_261 = arith.constant 0 : index
    %219 = vector.load %arg9[%c0_257, %c1_258, %c3_259, %c0_260, %c0_261] : memref<1x3x8x8x64xf32, #tpu.memory_space<vmem>>, vector<1x1x1x8x64xf32>
    %220 = vector.shape_cast %219 : vector<1x1x1x8x64xf32> to vector<8x64xf32>
    "tpu.trace_start"() <{level = 10 : i32, message = "td,fd->tf"}> : () -> ()
    %cst_262 = arith.constant dense<0.000000e+00> : vector<8x8xf32>
    %221 = tpu.matmul %7, %220, %cst_262 {dimension_numbers = #tpu.dot_dimension_numbers<[1], [1], [0], [0], [0, 0, 1, 0], [], []>} : vector<8x64xf32>, vector<8x64xf32>, vector<8x8xf32> -> vector<8x8xf32>
    "tpu.trace_stop"() : () -> ()
    %c0_263 = arith.constant 0 : index
    %c1_264 = arith.constant 1 : index
    %c4_265 = arith.constant 4 : index
    %c0_266 = arith.constant 0 : index
    %c0_267 = arith.constant 0 : index
    %222 = vector.load %arg9[%c0_263, %c1_264, %c4_265, %c0_266, %c0_267] : memref<1x3x8x8x64xf32, #tpu.memory_space<vmem>>, vector<1x1x1x8x64xf32>
    %223 = vector.shape_cast %222 : vector<1x1x1x8x64xf32> to vector<8x64xf32>
    "tpu.trace_start"() <{level = 10 : i32, message = "td,fd->tf"}> : () -> ()
    %cst_268 = arith.constant dense<0.000000e+00> : vector<8x8xf32>
    %224 = tpu.matmul %7, %223, %cst_268 {dimension_numbers = #tpu.dot_dimension_numbers<[1], [1], [0], [0], [0, 0, 1, 0], [], []>} : vector<8x64xf32>, vector<8x64xf32>, vector<8x8xf32> -> vector<8x8xf32>
    "tpu.trace_stop"() : () -> ()
    %c0_269 = arith.constant 0 : index
    %c1_270 = arith.constant 1 : index
    %c5_271 = arith.constant 5 : index
    %c0_272 = arith.constant 0 : index
    %c0_273 = arith.constant 0 : index
    %225 = vector.load %arg9[%c0_269, %c1_270, %c5_271, %c0_272, %c0_273] : memref<1x3x8x8x64xf32, #tpu.memory_space<vmem>>, vector<1x1x1x8x64xf32>
    %226 = vector.shape_cast %225 : vector<1x1x1x8x64xf32> to vector<8x64xf32>
    "tpu.trace_start"() <{level = 10 : i32, message = "td,fd->tf"}> : () -> ()
    %cst_274 = arith.constant dense<0.000000e+00> : vector<8x8xf32>
    %227 = tpu.matmul %7, %226, %cst_274 {dimension_numbers = #tpu.dot_dimension_numbers<[1], [1], [0], [0], [0, 0, 1, 0], [], []>} : vector<8x64xf32>, vector<8x64xf32>, vector<8x8xf32> -> vector<8x8xf32>
    "tpu.trace_stop"() : () -> ()
    %c0_275 = arith.constant 0 : index
    %c1_276 = arith.constant 1 : index
    %c6_277 = arith.constant 6 : index
    %c0_278 = arith.constant 0 : index
    %c0_279 = arith.constant 0 : index
    %228 = vector.load %arg9[%c0_275, %c1_276, %c6_277, %c0_278, %c0_279] : memref<1x3x8x8x64xf32, #tpu.memory_space<vmem>>, vector<1x1x1x8x64xf32>
    %229 = vector.shape_cast %228 : vector<1x1x1x8x64xf32> to vector<8x64xf32>
    "tpu.trace_start"() <{level = 10 : i32, message = "td,fd->tf"}> : () -> ()
    %cst_280 = arith.constant dense<0.000000e+00> : vector<8x8xf32>
    %230 = tpu.matmul %7, %229, %cst_280 {dimension_numbers = #tpu.dot_dimension_numbers<[1], [1], [0], [0], [0, 0, 1, 0], [], []>} : vector<8x64xf32>, vector<8x64xf32>, vector<8x8xf32> -> vector<8x8xf32>
    "tpu.trace_stop"() : () -> ()
    %c0_281 = arith.constant 0 : index
    %c1_282 = arith.constant 1 : index
    %c7_283 = arith.constant 7 : index
    %c0_284 = arith.constant 0 : index
    %c0_285 = arith.constant 0 : index
    %231 = vector.load %arg9[%c0_281, %c1_282, %c7_283, %c0_284, %c0_285] : memref<1x3x8x8x64xf32, #tpu.memory_space<vmem>>, vector<1x1x1x8x64xf32>
    %232 = vector.shape_cast %231 : vector<1x1x1x8x64xf32> to vector<8x64xf32>
    "tpu.trace_start"() <{level = 10 : i32, message = "td,fd->tf"}> : () -> ()
    %cst_286 = arith.constant dense<0.000000e+00> : vector<8x8xf32>
    %233 = tpu.matmul %7, %232, %cst_286 {dimension_numbers = #tpu.dot_dimension_numbers<[1], [1], [0], [0], [0, 0, 1, 0], [], []>} : vector<8x64xf32>, vector<8x64xf32>, vector<8x8xf32> -> vector<8x8xf32>
    "tpu.trace_stop"() : () -> ()
    %234 = vector.shape_cast %212 : vector<8x8xf32> to vector<1x8x8xf32>
    %235 = vector.shape_cast %215 : vector<8x8xf32> to vector<1x8x8xf32>
    %236 = vector.shape_cast %218 : vector<8x8xf32> to vector<1x8x8xf32>
    %237 = vector.shape_cast %221 : vector<8x8xf32> to vector<1x8x8xf32>
    %238 = vector.shape_cast %224 : vector<8x8xf32> to vector<1x8x8xf32>
    %239 = vector.shape_cast %227 : vector<8x8xf32> to vector<1x8x8xf32>
    %240 = vector.shape_cast %230 : vector<8x8xf32> to vector<1x8x8xf32>
    %241 = vector.shape_cast %233 : vector<8x8xf32> to vector<1x8x8xf32>
    %242 = tpu.concatenate %234, %235, %236, %237, %238, %239, %240, %241 in 0 : vector<1x8x8xf32>, vector<1x8x8xf32>, vector<1x8x8xf32>, vector<1x8x8xf32>, vector<1x8x8xf32>, vector<1x8x8xf32>, vector<1x8x8xf32>, vector<1x8x8xf32> -> vector<8x8x8xf32>
    %c0_287 = arith.constant 0 : index
    %c1_288 = arith.constant 1 : index
    %c0_289 = arith.constant 0 : index
    %c0_290 = arith.constant 0 : index
    %c0_291 = arith.constant 0 : index
    %243 = vector.load %arg10[%c0_287, %c1_288, %c0_289, %c0_290, %c0_291] : memref<1x3x8x1x8xf32, #tpu.memory_space<vmem>>, vector<1x1x8x1x8xf32>
    %244 = vector.shape_cast %243 : vector<1x1x8x1x8xf32> to vector<8x1x8xf32>
    %245 = vector.broadcast %244 : vector<8x1x8xf32> to vector<8x8x8xf32>
    %246 = arith.addf %242, %245 : vector<8x8x8xf32>
    %c0_292 = arith.constant 0 : index
    %c2_293 = arith.constant 2 : index
    %c0_294 = arith.constant 0 : index
    %c0_295 = arith.constant 0 : index
    %c0_296 = arith.constant 0 : index
    %247 = vector.load %arg9[%c0_292, %c2_293, %c0_294, %c0_295, %c0_296] : memref<1x3x8x8x64xf32, #tpu.memory_space<vmem>>, vector<1x1x1x8x64xf32>
    %248 = vector.shape_cast %247 : vector<1x1x1x8x64xf32> to vector<8x64xf32>
    "tpu.trace_start"() <{level = 10 : i32, message = "td,fd->tf"}> : () -> ()
    %cst_297 = arith.constant dense<0.000000e+00> : vector<8x8xf32>
    %249 = tpu.matmul %7, %248, %cst_297 {dimension_numbers = #tpu.dot_dimension_numbers<[1], [1], [0], [0], [0, 0, 1, 0], [], []>} : vector<8x64xf32>, vector<8x64xf32>, vector<8x8xf32> -> vector<8x8xf32>
    "tpu.trace_stop"() : () -> ()
    %c0_298 = arith.constant 0 : index
    %c2_299 = arith.constant 2 : index
    %c1_300 = arith.constant 1 : index
    %c0_301 = arith.constant 0 : index
    %c0_302 = arith.constant 0 : index
    %250 = vector.load %arg9[%c0_298, %c2_299, %c1_300, %c0_301, %c0_302] : memref<1x3x8x8x64xf32, #tpu.memory_space<vmem>>, vector<1x1x1x8x64xf32>
    %251 = vector.shape_cast %250 : vector<1x1x1x8x64xf32> to vector<8x64xf32>
    "tpu.trace_start"() <{level = 10 : i32, message = "td,fd->tf"}> : () -> ()
    %cst_303 = arith.constant dense<0.000000e+00> : vector<8x8xf32>
    %252 = tpu.matmul %7, %251, %cst_303 {dimension_numbers = #tpu.dot_dimension_numbers<[1], [1], [0], [0], [0, 0, 1, 0], [], []>} : vector<8x64xf32>, vector<8x64xf32>, vector<8x8xf32> -> vector<8x8xf32>
    "tpu.trace_stop"() : () -> ()
    %c0_304 = arith.constant 0 : index
    %c2_305 = arith.constant 2 : index
    %c2_306 = arith.constant 2 : index
    %c0_307 = arith.constant 0 : index
    %c0_308 = arith.constant 0 : index
    %253 = vector.load %arg9[%c0_304, %c2_305, %c2_306, %c0_307, %c0_308] : memref<1x3x8x8x64xf32, #tpu.memory_space<vmem>>, vector<1x1x1x8x64xf32>
    %254 = vector.shape_cast %253 : vector<1x1x1x8x64xf32> to vector<8x64xf32>
    "tpu.trace_start"() <{level = 10 : i32, message = "td,fd->tf"}> : () -> ()
    %cst_309 = arith.constant dense<0.000000e+00> : vector<8x8xf32>
    %255 = tpu.matmul %7, %254, %cst_309 {dimension_numbers = #tpu.dot_dimension_numbers<[1], [1], [0], [0], [0, 0, 1, 0], [], []>} : vector<8x64xf32>, vector<8x64xf32>, vector<8x8xf32> -> vector<8x8xf32>
    "tpu.trace_stop"() : () -> ()
    %c0_310 = arith.constant 0 : index
    %c2_311 = arith.constant 2 : index
    %c3_312 = arith.constant 3 : index
    %c0_313 = arith.constant 0 : index
    %c0_314 = arith.constant 0 : index
    %256 = vector.load %arg9[%c0_310, %c2_311, %c3_312, %c0_313, %c0_314] : memref<1x3x8x8x64xf32, #tpu.memory_space<vmem>>, vector<1x1x1x8x64xf32>
    %257 = vector.shape_cast %256 : vector<1x1x1x8x64xf32> to vector<8x64xf32>
    "tpu.trace_start"() <{level = 10 : i32, message = "td,fd->tf"}> : () -> ()
    %cst_315 = arith.constant dense<0.000000e+00> : vector<8x8xf32>
    %258 = tpu.matmul %7, %257, %cst_315 {dimension_numbers = #tpu.dot_dimension_numbers<[1], [1], [0], [0], [0, 0, 1, 0], [], []>} : vector<8x64xf32>, vector<8x64xf32>, vector<8x8xf32> -> vector<8x8xf32>
    "tpu.trace_stop"() : () -> ()
    %c0_316 = arith.constant 0 : index
    %c2_317 = arith.constant 2 : index
    %c4_318 = arith.constant 4 : index
    %c0_319 = arith.constant 0 : index
    %c0_320 = arith.constant 0 : index
    %259 = vector.load %arg9[%c0_316, %c2_317, %c4_318, %c0_319, %c0_320] : memref<1x3x8x8x64xf32, #tpu.memory_space<vmem>>, vector<1x1x1x8x64xf32>
    %260 = vector.shape_cast %259 : vector<1x1x1x8x64xf32> to vector<8x64xf32>
    "tpu.trace_start"() <{level = 10 : i32, message = "td,fd->tf"}> : () -> ()
    %cst_321 = arith.constant dense<0.000000e+00> : vector<8x8xf32>
    %261 = tpu.matmul %7, %260, %cst_321 {dimension_numbers = #tpu.dot_dimension_numbers<[1], [1], [0], [0], [0, 0, 1, 0], [], []>} : vector<8x64xf32>, vector<8x64xf32>, vector<8x8xf32> -> vector<8x8xf32>
    "tpu.trace_stop"() : () -> ()
    %c0_322 = arith.constant 0 : index
    %c2_323 = arith.constant 2 : index
    %c5_324 = arith.constant 5 : index
    %c0_325 = arith.constant 0 : index
    %c0_326 = arith.constant 0 : index
    %262 = vector.load %arg9[%c0_322, %c2_323, %c5_324, %c0_325, %c0_326] : memref<1x3x8x8x64xf32, #tpu.memory_space<vmem>>, vector<1x1x1x8x64xf32>
    %263 = vector.shape_cast %262 : vector<1x1x1x8x64xf32> to vector<8x64xf32>
    "tpu.trace_start"() <{level = 10 : i32, message = "td,fd->tf"}> : () -> ()
    %cst_327 = arith.constant dense<0.000000e+00> : vector<8x8xf32>
    %264 = tpu.matmul %7, %263, %cst_327 {dimension_numbers = #tpu.dot_dimension_numbers<[1], [1], [0], [0], [0, 0, 1, 0], [], []>} : vector<8x64xf32>, vector<8x64xf32>, vector<8x8xf32> -> vector<8x8xf32>
    "tpu.trace_stop"() : () -> ()
    %c0_328 = arith.constant 0 : index
    %c2_329 = arith.constant 2 : index
    %c6_330 = arith.constant 6 : index
    %c0_331 = arith.constant 0 : index
    %c0_332 = arith.constant 0 : index
    %265 = vector.load %arg9[%c0_328, %c2_329, %c6_330, %c0_331, %c0_332] : memref<1x3x8x8x64xf32, #tpu.memory_space<vmem>>, vector<1x1x1x8x64xf32>
    %266 = vector.shape_cast %265 : vector<1x1x1x8x64xf32> to vector<8x64xf32>
    "tpu.trace_start"() <{level = 10 : i32, message = "td,fd->tf"}> : () -> ()
    %cst_333 = arith.constant dense<0.000000e+00> : vector<8x8xf32>
    %267 = tpu.matmul %7, %266, %cst_333 {dimension_numbers = #tpu.dot_dimension_numbers<[1], [1], [0], [0], [0, 0, 1, 0], [], []>} : vector<8x64xf32>, vector<8x64xf32>, vector<8x8xf32> -> vector<8x8xf32>
    "tpu.trace_stop"() : () -> ()
    %c0_334 = arith.constant 0 : index
    %c2_335 = arith.constant 2 : index
    %c7_336 = arith.constant 7 : index
    %c0_337 = arith.constant 0 : index
    %c0_338 = arith.constant 0 : index
    %268 = vector.load %arg9[%c0_334, %c2_335, %c7_336, %c0_337, %c0_338] : memref<1x3x8x8x64xf32, #tpu.memory_space<vmem>>, vector<1x1x1x8x64xf32>
    %269 = vector.shape_cast %268 : vector<1x1x1x8x64xf32> to vector<8x64xf32>
    "tpu.trace_start"() <{level = 10 : i32, message = "td,fd->tf"}> : () -> ()
    %cst_339 = arith.constant dense<0.000000e+00> : vector<8x8xf32>
    %270 = tpu.matmul %7, %269, %cst_339 {dimension_numbers = #tpu.dot_dimension_numbers<[1], [1], [0], [0], [0, 0, 1, 0], [], []>} : vector<8x64xf32>, vector<8x64xf32>, vector<8x8xf32> -> vector<8x8xf32>
    "tpu.trace_stop"() : () -> ()
    %271 = vector.shape_cast %249 : vector<8x8xf32> to vector<1x8x8xf32>
    %272 = vector.shape_cast %252 : vector<8x8xf32> to vector<1x8x8xf32>
    %273 = vector.shape_cast %255 : vector<8x8xf32> to vector<1x8x8xf32>
    %274 = vector.shape_cast %258 : vector<8x8xf32> to vector<1x8x8xf32>
    %275 = vector.shape_cast %261 : vector<8x8xf32> to vector<1x8x8xf32>
    %276 = vector.shape_cast %264 : vector<8x8xf32> to vector<1x8x8xf32>
    %277 = vector.shape_cast %267 : vector<8x8xf32> to vector<1x8x8xf32>
    %278 = vector.shape_cast %270 : vector<8x8xf32> to vector<1x8x8xf32>
    %279 = tpu.concatenate %271, %272, %273, %274, %275, %276, %277, %278 in 0 : vector<1x8x8xf32>, vector<1x8x8xf32>, vector<1x8x8xf32>, vector<1x8x8xf32>, vector<1x8x8xf32>, vector<1x8x8xf32>, vector<1x8x8xf32>, vector<1x8x8xf32> -> vector<8x8x8xf32>
    %c0_340 = arith.constant 0 : index
    %c2_341 = arith.constant 2 : index
    %c0_342 = arith.constant 0 : index
    %c0_343 = arith.constant 0 : index
    %c0_344 = arith.constant 0 : index
    %280 = vector.load %arg10[%c0_340, %c2_341, %c0_342, %c0_343, %c0_344] : memref<1x3x8x1x8xf32, #tpu.memory_space<vmem>>, vector<1x1x8x1x8xf32>
    %281 = vector.shape_cast %280 : vector<1x1x8x1x8xf32> to vector<8x1x8xf32>
    %282 = vector.broadcast %281 : vector<8x1x8xf32> to vector<8x8x8xf32>
    %283 = arith.addf %279, %282 : vector<8x8x8xf32>
    "tpu.trace_start"() <{level = 10 : i32, message = "hqd,hkd->hqk"}> : () -> ()
    %cst_345 = arith.constant dense<0.000000e+00> : vector<8x8x8xf32>
    %284 = tpu.matmul %209, %246, %cst_345 {dimension_numbers = #tpu.dot_dimension_numbers<[2], [2], [1], [1], [0, 0, 0, 1, 1, 1], [0], [0]>} : vector<8x8x8xf32>, vector<8x8x8xf32>, vector<8x8x8xf32> -> vector<8x8x8xf32>
    "tpu.trace_stop"() : () -> ()
    %cst_346 = arith.constant 0.353553385 : f32
    %285 = vector.broadcast %cst_346 : f32 to vector<8x8x8xf32>
    %286 = arith.mulf %284, %285 : vector<8x8x8xf32>
    %cst_347 = arith.constant dense<0xFF800000> : vector<8x8xf32>
    %287 = vector.multi_reduction <maximumf>, %286, %cst_347 [2] : vector<8x8x8xf32> to vector<8x8xf32>
    %288 = vector.shape_cast %287 : vector<8x8xf32> to vector<8x8x1xf32>
    %289 = vector.broadcast %288 : vector<8x8x1xf32> to vector<8x8x8xf32>
    %290 = arith.subf %286, %289 : vector<8x8x8xf32>
    %291 = math.exp %290 : vector<8x8x8xf32>
    %cst_348 = arith.constant dense<0.000000e+00> : vector<8x8xf32>
    %292 = vector.multi_reduction <add>, %291, %cst_348 [2] : vector<8x8x8xf32> to vector<8x8xf32>
    %293 = vector.shape_cast %292 : vector<8x8xf32> to vector<8x8x1xf32>
    %294 = tpu.reciprocal %293 {approx = true} : vector<8x8x1xf32> -> vector<8x8x1xf32>
    %295 = vector.broadcast %294 : vector<8x8x1xf32> to vector<8x8x8xf32>
    %296 = arith.mulf %291, %295 : vector<8x8x8xf32>
    "tpu.trace_start"() <{level = 10 : i32, message = "hqk,hkd->hqd"}> : () -> ()
    %cst_349 = arith.constant dense<0.000000e+00> : vector<8x8x8xf32>
    %297 = tpu.matmul %296, %283, %cst_349 {dimension_numbers = #tpu.dot_dimension_numbers<[2], [1], [1], [2], [0, 0, 0, 1, 1, 2], [0], [0]>} : vector<8x8x8xf32>, vector<8x8x8xf32>, vector<8x8x8xf32> -> vector<8x8x8xf32>
    "tpu.trace_stop"() : () -> ()
    %c0_350 = arith.constant 0 : index
    %c0_351 = arith.constant 0 : index
    %c0_352 = arith.constant 0 : index
    %c0_353 = arith.constant 0 : index
    %298 = vector.load %arg11[%c0_350, %c0_351, %c0_352, %c0_353] : memref<1x8x8x64xf32, #tpu.memory_space<vmem>>, vector<1x8x8x64xf32>
    %299 = vector.shape_cast %298 : vector<1x8x8x64xf32> to vector<8x8x64xf32>
    "tpu.trace_start"() <{level = 10 : i32, message = "hqd,hdm->hqm"}> : () -> ()
    %cst_354 = arith.constant dense<0.000000e+00> : vector<8x8x64xf32>
    %300 = tpu.matmul %297, %299, %cst_354 {dimension_numbers = #tpu.dot_dimension_numbers<[2], [1], [1], [2], [0, 0, 0, 1, 1, 2], [0], [0]>} : vector<8x8x8xf32>, vector<8x8x64xf32>, vector<8x8x64xf32> -> vector<8x8x64xf32>
    "tpu.trace_stop"() : () -> ()
    %cst_355 = arith.constant dense<0.000000e+00> : vector<8x64xf32>
    %301 = vector.multi_reduction <add>, %300, %cst_355 [0] : vector<8x8x64xf32> to vector<8x64xf32>
    %c0_356 = arith.constant 0 : index
    %c0_357 = arith.constant 0 : index
    %c0_358 = arith.constant 0 : index
    %302 = vector.load %arg12[%c0_356, %c0_357, %c0_358] : memref<1x1x64xf32, #tpu.memory_space<vmem>>, vector<1x1x64xf32>
    %303 = vector.shape_cast %302 : vector<1x1x64xf32> to vector<1x64xf32>
    %304 = vector.broadcast %303 : vector<1x64xf32> to vector<8x64xf32>
    %305 = arith.addf %301, %304 : vector<8x64xf32>
    %306 = arith.addf %172, %305 : vector<8x64xf32>
    %c0_359 = arith.constant 0 : index
    %c1_360 = arith.constant 1 : index
    %c0_361 = arith.constant 0 : index
    %c0_362 = arith.constant 0 : index
    %307 = vector.load %arg17[%c0_359, %c1_360, %c0_361, %c0_362] : memref<1x3x1x64xf32, #tpu.memory_space<vmem>>, vector<1x1x1x64xf32>
    %308 = vector.shape_cast %307 : vector<1x1x1x64xf32> to vector<1x64xf32>
    %c0_363 = arith.constant 0 : index
    %c1_364 = arith.constant 1 : index
    %c0_365 = arith.constant 0 : index
    %c0_366 = arith.constant 0 : index
    %309 = vector.load %arg18[%c0_363, %c1_364, %c0_365, %c0_366] : memref<1x3x1x64xf32, #tpu.memory_space<vmem>>, vector<1x1x1x64xf32>
    %310 = vector.shape_cast %309 : vector<1x1x1x64xf32> to vector<1x64xf32>
    %cst_367 = arith.constant dense<0.000000e+00> : vector<8xf32>
    %311 = vector.multi_reduction <add>, %306, %cst_367 [1] : vector<8x64xf32> to vector<8xf32>
    %312 = vector.shape_cast %311 : vector<8xf32> to vector<8x1xf32>
    %cst_368 = arith.constant 6.400000e+01 : f32
    %313 = vector.broadcast %cst_368 : f32 to vector<8x1xf32>
    %314 = arith.divf %312, %313 : vector<8x1xf32>
    %315 = vector.broadcast %314 : vector<8x1xf32> to vector<8x64xf32>
    %316 = arith.subf %306, %315 : vector<8x64xf32>
    %317 = arith.mulf %316, %316 : vector<8x64xf32>
    %cst_369 = arith.constant dense<0.000000e+00> : vector<8xf32>
    %318 = vector.multi_reduction <add>, %317, %cst_369 [1] : vector<8x64xf32> to vector<8xf32>
    %319 = vector.shape_cast %318 : vector<8xf32> to vector<8x1xf32>
    %cst_370 = arith.constant 6.400000e+01 : f32
    %320 = vector.broadcast %cst_370 : f32 to vector<8x1xf32>
    %321 = arith.divf %319, %320 : vector<8x1xf32>
    %322 = vector.broadcast %314 : vector<8x1xf32> to vector<8x64xf32>
    %323 = arith.subf %306, %322 : vector<8x64xf32>
    %cst_371 = arith.constant 9.99999974E-6 : f32
    %324 = vector.broadcast %cst_371 : f32 to vector<8x1xf32>
    %325 = arith.addf %321, %324 : vector<8x1xf32>
    %326 = math.rsqrt %325 : vector<8x1xf32>
    %327 = vector.broadcast %326 : vector<8x1xf32> to vector<8x64xf32>
    %328 = arith.mulf %323, %327 : vector<8x64xf32>
    %329 = vector.broadcast %308 : vector<1x64xf32> to vector<8x64xf32>
    %330 = arith.mulf %328, %329 : vector<8x64xf32>
    %331 = vector.broadcast %310 : vector<1x64xf32> to vector<8x64xf32>
    %332 = arith.addf %330, %331 : vector<8x64xf32>
    %c0_372 = arith.constant 0 : index
    %c0_373 = arith.constant 0 : index
    %c0_374 = arith.constant 0 : index
    %333 = vector.load %arg13[%c0_372, %c0_373, %c0_374] : memref<1x64x1024xf32, #tpu.memory_space<vmem>>, vector<1x64x1024xf32>
    %334 = vector.shape_cast %333 : vector<1x64x1024xf32> to vector<64x1024xf32>
    %cst_375 = arith.constant dense<0.000000e+00> : vector<8x1024xf32>
    %335 = tpu.matmul %332, %334, %cst_375 {dimension_numbers = #tpu.dot_dimension_numbers<[1], [0], [0], [1], [0, 0, 1, 1], [], []>} : vector<8x64xf32>, vector<64x1024xf32>, vector<8x1024xf32> -> vector<8x1024xf32>
    %c0_376 = arith.constant 0 : index
    %c0_377 = arith.constant 0 : index
    %c0_378 = arith.constant 0 : index
    %336 = vector.load %arg14[%c0_376, %c0_377, %c0_378] : memref<1x1x1024xf32, #tpu.memory_space<vmem>>, vector<1x1x1024xf32>
    %337 = vector.shape_cast %336 : vector<1x1x1024xf32> to vector<1x1024xf32>
    %338 = vector.broadcast %337 : vector<1x1024xf32> to vector<8x1024xf32>
    %339 = arith.addf %335, %338 : vector<8x1024xf32>
    %cst_379 = arith.constant 0.000000e+00 : f32
    %340 = vector.broadcast %cst_379 : f32 to vector<8x1024xf32>
    %341 = arith.maximumf %339, %340 : vector<8x1024xf32>
    %c0_380 = arith.constant 0 : index
    %c0_381 = arith.constant 0 : index
    %c0_382 = arith.constant 0 : index
    %342 = vector.load %arg15[%c0_380, %c0_381, %c0_382] : memref<1x64x1024xf32, #tpu.memory_space<vmem>>, vector<1x64x1024xf32>
    %343 = vector.shape_cast %342 : vector<1x64x1024xf32> to vector<64x1024xf32>
    "tpu.trace_start"() <{level = 10 : i32, message = "tf,df->td"}> : () -> ()
    %cst_383 = arith.constant dense<0.000000e+00> : vector<8x64xf32>
    %344 = tpu.matmul %341, %343, %cst_383 {dimension_numbers = #tpu.dot_dimension_numbers<[1], [1], [0], [0], [0, 0, 1, 0], [], []>} : vector<8x1024xf32>, vector<64x1024xf32>, vector<8x64xf32> -> vector<8x64xf32>
    "tpu.trace_stop"() : () -> ()
    %c0_384 = arith.constant 0 : index
    %c0_385 = arith.constant 0 : index
    %c0_386 = arith.constant 0 : index
    %345 = vector.load %arg16[%c0_384, %c0_385, %c0_386] : memref<1x1x64xf32, #tpu.memory_space<vmem>>, vector<1x1x64xf32>
    %346 = vector.shape_cast %345 : vector<1x1x64xf32> to vector<1x64xf32>
    %347 = vector.broadcast %346 : vector<1x64xf32> to vector<8x64xf32>
    %348 = arith.addf %344, %347 : vector<8x64xf32>
    %349 = arith.addf %332, %348 : vector<8x64xf32>
    %c0_387 = arith.constant 0 : index
    %c2_388 = arith.constant 2 : index
    %c0_389 = arith.constant 0 : index
    %c0_390 = arith.constant 0 : index
    %350 = vector.load %arg17[%c0_387, %c2_388, %c0_389, %c0_390] : memref<1x3x1x64xf32, #tpu.memory_space<vmem>>, vector<1x1x1x64xf32>
    %351 = vector.shape_cast %350 : vector<1x1x1x64xf32> to vector<1x64xf32>
    %c0_391 = arith.constant 0 : index
    %c2_392 = arith.constant 2 : index
    %c0_393 = arith.constant 0 : index
    %c0_394 = arith.constant 0 : index
    %352 = vector.load %arg18[%c0_391, %c2_392, %c0_393, %c0_394] : memref<1x3x1x64xf32, #tpu.memory_space<vmem>>, vector<1x1x1x64xf32>
    %353 = vector.shape_cast %352 : vector<1x1x1x64xf32> to vector<1x64xf32>
    %cst_395 = arith.constant dense<0.000000e+00> : vector<8xf32>
    %354 = vector.multi_reduction <add>, %349, %cst_395 [1] : vector<8x64xf32> to vector<8xf32>
    %355 = vector.shape_cast %354 : vector<8xf32> to vector<8x1xf32>
    %cst_396 = arith.constant 6.400000e+01 : f32
    %356 = vector.broadcast %cst_396 : f32 to vector<8x1xf32>
    %357 = arith.divf %355, %356 : vector<8x1xf32>
    %358 = vector.broadcast %357 : vector<8x1xf32> to vector<8x64xf32>
    %359 = arith.subf %349, %358 : vector<8x64xf32>
    %360 = arith.mulf %359, %359 : vector<8x64xf32>
    %cst_397 = arith.constant dense<0.000000e+00> : vector<8xf32>
    %361 = vector.multi_reduction <add>, %360, %cst_397 [1] : vector<8x64xf32> to vector<8xf32>
    %362 = vector.shape_cast %361 : vector<8xf32> to vector<8x1xf32>
    %cst_398 = arith.constant 6.400000e+01 : f32
    %363 = vector.broadcast %cst_398 : f32 to vector<8x1xf32>
    %364 = arith.divf %362, %363 : vector<8x1xf32>
    %365 = vector.broadcast %357 : vector<8x1xf32> to vector<8x64xf32>
    %366 = arith.subf %349, %365 : vector<8x64xf32>
    %cst_399 = arith.constant 9.99999974E-6 : f32
    %367 = vector.broadcast %cst_399 : f32 to vector<8x1xf32>
    %368 = arith.addf %364, %367 : vector<8x1xf32>
    %369 = math.rsqrt %368 : vector<8x1xf32>
    %370 = vector.broadcast %369 : vector<8x1xf32> to vector<8x64xf32>
    %371 = arith.mulf %366, %370 : vector<8x64xf32>
    %372 = vector.broadcast %351 : vector<1x64xf32> to vector<8x64xf32>
    %373 = arith.mulf %371, %372 : vector<8x64xf32>
    %374 = vector.broadcast %353 : vector<1x64xf32> to vector<8x64xf32>
    %375 = arith.addf %373, %374 : vector<8x64xf32>
    %376 = arith.index_cast %arg0 : i32 to index
    %c0_400 = arith.constant 0 : index
    %c0_401 = arith.constant 0 : index
    %377 = vector.load %arg24[%376, %c0_400, %c0_401] : memref<2x8x64xf32, #tpu.memory_space<vmem>>, vector<1x8x64xf32>
    %378 = vector.shape_cast %377 : vector<1x8x64xf32> to vector<8x64xf32>
    %379 = vector.shape_cast %375 : vector<8x64xf32> to vector<1x8x64xf32>
    tpu.vector_store %arg24[%376, %c0_400, %c0_401], %379 {strides = array<i32>} : memref<2x8x64xf32, #tpu.memory_space<vmem>>, vector<1x8x64xf32>,
    %c1_i32 = arith.constant 1 : i32
    %380 = arith.cmpi eq, %arg1, %c1_i32 : i32
    %381 = arith.extui %380 : i1 to i32
    %c0_i32_402 = arith.constant 0 : i32
    %382 = arith.cmpi ne, %381, %c0_i32_402 : i32
    scf.if %382 {
      %c0_403 = arith.constant 0 : index
      %c0_404 = arith.constant 0 : index
      %383 = vector.load %arg19[%c0_403, %c0_404] : memref<1x64xf32, #tpu.memory_space<vmem>>, vector<1x64xf32>
      %c0_405 = arith.constant 0 : index
      %c0_406 = arith.constant 0 : index
      %384 = vector.load %arg20[%c0_405, %c0_406] : memref<1x64xf32, #tpu.memory_space<vmem>>, vector<1x64xf32>
      %cst_407 = arith.constant dense<0.000000e+00> : vector<8xf32>
      %385 = vector.multi_reduction <add>, %375, %cst_407 [1] : vector<8x64xf32> to vector<8xf32>
      %386 = vector.shape_cast %385 : vector<8xf32> to vector<8x1xf32>
      %cst_408 = arith.constant 6.400000e+01 : f32
      %387 = vector.broadcast %cst_408 : f32 to vector<8x1xf32>
      %388 = arith.divf %386, %387 : vector<8x1xf32>
      %389 = vector.broadcast %388 : vector<8x1xf32> to vector<8x64xf32>
      %390 = arith.subf %375, %389 : vector<8x64xf32>
      %391 = arith.mulf %390, %390 : vector<8x64xf32>
      %cst_409 = arith.constant dense<0.000000e+00> : vector<8xf32>
      %392 = vector.multi_reduction <add>, %391, %cst_409 [1] : vector<8x64xf32> to vector<8xf32>
      %393 = vector.shape_cast %392 : vector<8xf32> to vector<8x1xf32>
      %cst_410 = arith.constant 6.400000e+01 : f32
      %394 = vector.broadcast %cst_410 : f32 to vector<8x1xf32>
      %395 = arith.divf %393, %394 : vector<8x1xf32>
      %396 = vector.broadcast %388 : vector<8x1xf32> to vector<8x64xf32>
      %397 = arith.subf %375, %396 : vector<8x64xf32>
      %cst_411 = arith.constant 9.99999974E-6 : f32
      %398 = vector.broadcast %cst_411 : f32 to vector<8x1xf32>
      %399 = arith.addf %395, %398 : vector<8x1xf32>
      %400 = math.rsqrt %399 : vector<8x1xf32>
      %401 = vector.broadcast %400 : vector<8x1xf32> to vector<8x64xf32>
      %402 = arith.mulf %397, %401 : vector<8x64xf32>
      %403 = vector.broadcast %383 : vector<1x64xf32> to vector<8x64xf32>
      %404 = arith.mulf %402, %403 : vector<8x64xf32>
      %405 = vector.broadcast %384 : vector<1x64xf32> to vector<8x64xf32>
      %406 = arith.addf %404, %405 : vector<8x64xf32>
      %c0_412 = arith.constant 0 : index
      %c0_413 = arith.constant 0 : index
      %407 = vector.load %arg21[%c0_412, %c0_413] : memref<64x128xf32, #tpu.memory_space<vmem>>, vector<64x128xf32>
      %cst_414 = arith.constant dense<0.000000e+00> : vector<8x128xf32>
      %408 = tpu.matmul %406, %407, %cst_414 {dimension_numbers = #tpu.dot_dimension_numbers<[1], [0], [0], [1], [0, 0, 1, 1], [], []>} : vector<8x64xf32>, vector<64x128xf32>, vector<8x128xf32> -> vector<8x128xf32>
      %c0_415 = arith.constant 0 : index
      %c0_416 = arith.constant 0 : index
      %409 = vector.load %arg22[%c0_415, %c0_416] : memref<1x128xf32, #tpu.memory_space<vmem>>, vector<1x128xf32>
      %410 = vector.broadcast %409 : vector<1x128xf32> to vector<8x128xf32>
      %411 = arith.addf %408, %410 : vector<8x128xf32>
      %c0_417 = arith.constant 0 : index
      %c0_418 = arith.constant 0 : index
      %c0_419 = arith.constant 0 : index
      %412 = vector.load %arg23[%c0_417, %c0_418, %c0_419] : memref<1x8x128xf32, #tpu.memory_space<vmem>>, vector<1x8x128xf32>
      %413 = vector.shape_cast %412 : vector<1x8x128xf32> to vector<8x128xf32>
      %414 = vector.shape_cast %411 : vector<8x128xf32> to vector<1x8x128xf32>
      tpu.vector_store %arg23[%c0_417, %c0_418, %c0_419], %414 {strides = array<i32>} : memref<1x8x128xf32, #tpu.memory_space<vmem>>, vector<1x8x128xf32>,
    } else {
    }
    return
  }
  func.func @transform_0(%arg0: i32, %arg1: i32) -> (i32, i32, i32) {
    %c0_i32 = arith.constant 0 : i32
    %c0_i32_0 = arith.constant 0 : i32
    %c0_i32_1 = arith.constant 0 : i32
    return %arg0, %c0_i32, %c0_i32_0 : i32, i32, i32
  }
  func.func @transform_1(%arg0: i32, %arg1: i32) -> (i32, i32, i32) {
    %c0_i32 = arith.constant 0 : i32
    %c0_i32_0 = arith.constant 0 : i32
    %c0_i32_1 = arith.constant 0 : i32
    return %arg0, %c0_i32, %c0_i32_0 : i32, i32, i32
  }
  func.func @transform_2(%arg0: i32, %arg1: i32) -> (i32, i32, i32) {
    %c0_i32 = arith.constant 0 : i32
    %c0_i32_0 = arith.constant 0 : i32
    %c0_i32_1 = arith.constant 0 : i32
    return %arg0, %c0_i32, %c0_i32_0 : i32, i32, i32
  }
  func.func @transform_3(%arg0: i32, %arg1: i32) -> (i32, i32, i32, i32, i32) {
    %c0_i32 = arith.constant 0 : i32
    %c0_i32_0 = arith.constant 0 : i32
    %c0_i32_1 = arith.constant 0 : i32
    %c0_i32_2 = arith.constant 0 : i32
    %c0_i32_3 = arith.constant 0 : i32
    return %arg1, %c0_i32, %c0_i32_0, %c0_i32_1, %c0_i32_2 : i32, i32, i32, i32, i32
  }
  func.func @transform_4(%arg0: i32, %arg1: i32) -> (i32, i32, i32, i32, i32) {
    %c0_i32 = arith.constant 0 : i32
    %c0_i32_0 = arith.constant 0 : i32
    %c0_i32_1 = arith.constant 0 : i32
    %c0_i32_2 = arith.constant 0 : i32
    %c0_i32_3 = arith.constant 0 : i32
    return %arg1, %c0_i32, %c0_i32_0, %c0_i32_1, %c0_i32_2 : i32, i32, i32, i32, i32
  }
  func.func @transform_5(%arg0: i32, %arg1: i32) -> (i32, i32, i32, i32) {
    %c0_i32 = arith.constant 0 : i32
    %c0_i32_0 = arith.constant 0 : i32
    %c0_i32_1 = arith.constant 0 : i32
    %c0_i32_2 = arith.constant 0 : i32
    return %arg1, %c0_i32, %c0_i32_0, %c0_i32_1 : i32, i32, i32, i32
  }
  func.func @transform_6(%arg0: i32, %arg1: i32) -> (i32, i32, i32) {
    %c0_i32 = arith.constant 0 : i32
    %c0_i32_0 = arith.constant 0 : i32
    %c0_i32_1 = arith.constant 0 : i32
    return %arg1, %c0_i32, %c0_i32_0 : i32, i32, i32
  }
  func.func @transform_7(%arg0: i32, %arg1: i32) -> (i32, i32, i32, i32, i32) {
    %c0_i32 = arith.constant 0 : i32
    %c0_i32_0 = arith.constant 0 : i32
    %c0_i32_1 = arith.constant 0 : i32
    %c0_i32_2 = arith.constant 0 : i32
    %c0_i32_3 = arith.constant 0 : i32
    return %arg1, %c0_i32, %c0_i32_0, %c0_i32_1, %c0_i32_2 : i32, i32, i32, i32, i32
  }
  func.func @transform_8(%arg0: i32, %arg1: i32) -> (i32, i32, i32, i32, i32) {
    %c0_i32 = arith.constant 0 : i32
    %c0_i32_0 = arith.constant 0 : i32
    %c0_i32_1 = arith.constant 0 : i32
    %c0_i32_2 = arith.constant 0 : i32
    %c0_i32_3 = arith.constant 0 : i32
    return %arg1, %c0_i32, %c0_i32_0, %c0_i32_1, %c0_i32_2 : i32, i32, i32, i32, i32
  }
  func.func @transform_9(%arg0: i32, %arg1: i32) -> (i32, i32, i32, i32) {
    %c0_i32 = arith.constant 0 : i32
    %c0_i32_0 = arith.constant 0 : i32
    %c0_i32_1 = arith.constant 0 : i32
    %c0_i32_2 = arith.constant 0 : i32
    return %arg1, %c0_i32, %c0_i32_0, %c0_i32_1 : i32, i32, i32, i32
  }
  func.func @transform_10(%arg0: i32, %arg1: i32) -> (i32, i32, i32) {
    %c0_i32 = arith.constant 0 : i32
    %c0_i32_0 = arith.constant 0 : i32
    %c0_i32_1 = arith.constant 0 : i32
    return %arg1, %c0_i32, %c0_i32_0 : i32, i32, i32
  }
  func.func @transform_11(%arg0: i32, %arg1: i32) -> (i32, i32, i32) {
    %c0_i32 = arith.constant 0 : i32
    %c0_i32_0 = arith.constant 0 : i32
    %c0_i32_1 = arith.constant 0 : i32
    return %arg1, %c0_i32, %c0_i32_0 : i32, i32, i32
  }
  func.func @transform_12(%arg0: i32, %arg1: i32) -> (i32, i32, i32) {
    %c0_i32 = arith.constant 0 : i32
    %c0_i32_0 = arith.constant 0 : i32
    %c0_i32_1 = arith.constant 0 : i32
    return %arg1, %c0_i32, %c0_i32_0 : i32, i32, i32
  }
  func.func @transform_13(%arg0: i32, %arg1: i32) -> (i32, i32, i32) {
    %c0_i32 = arith.constant 0 : i32
    %c0_i32_0 = arith.constant 0 : i32
    %c0_i32_1 = arith.constant 0 : i32
    return %arg1, %c0_i32, %c0_i32_0 : i32, i32, i32
  }
  func.func @transform_14(%arg0: i32, %arg1: i32) -> (i32, i32, i32) {
    %c0_i32 = arith.constant 0 : i32
    %c0_i32_0 = arith.constant 0 : i32
    %c0_i32_1 = arith.constant 0 : i32
    return %arg1, %c0_i32, %c0_i32_0 : i32, i32, i32
  }
  func.func @transform_15(%arg0: i32, %arg1: i32) -> (i32, i32, i32, i32) {
    %c0_i32 = arith.constant 0 : i32
    %c0_i32_0 = arith.constant 0 : i32
    %c0_i32_1 = arith.constant 0 : i32
    %c0_i32_2 = arith.constant 0 : i32
    return %arg1, %c0_i32, %c0_i32_0, %c0_i32_1 : i32, i32, i32, i32
  }
  func.func @transform_16(%arg0: i32, %arg1: i32) -> (i32, i32, i32, i32) {
    %c0_i32 = arith.constant 0 : i32
    %c0_i32_0 = arith.constant 0 : i32
    %c0_i32_1 = arith.constant 0 : i32
    %c0_i32_2 = arith.constant 0 : i32
    return %arg1, %c0_i32, %c0_i32_0, %c0_i32_1 : i32, i32, i32, i32
  }
  func.func @transform_17(%arg0: i32, %arg1: i32) -> (i32, i32) {
    %c0_i32 = arith.constant 0 : i32
    %c0_i32_0 = arith.constant 0 : i32
    %c0_i32_1 = arith.constant 0 : i32
    return %c0_i32, %c0_i32_0 : i32, i32
  }
  func.func @transform_18(%arg0: i32, %arg1: i32) -> (i32, i32) {
    %c0_i32 = arith.constant 0 : i32
    %c0_i32_0 = arith.constant 0 : i32
    %c0_i32_1 = arith.constant 0 : i32
    return %c0_i32, %c0_i32_0 : i32, i32
  }
  func.func @transform_19(%arg0: i32, %arg1: i32) -> (i32, i32) {
    %c0_i32 = arith.constant 0 : i32
    %c0_i32_0 = arith.constant 0 : i32
    %c0_i32_1 = arith.constant 0 : i32
    return %c0_i32, %c0_i32_0 : i32, i32
  }
  func.func @transform_20(%arg0: i32, %arg1: i32) -> (i32, i32) {
    %c0_i32 = arith.constant 0 : i32
    %c0_i32_0 = arith.constant 0 : i32
    %c0_i32_1 = arith.constant 0 : i32
    return %c0_i32, %c0_i32_0 : i32, i32
  }
  func.func @transform_21(%arg0: i32, %arg1: i32) -> (i32, i32, i32) {
    %c0_i32 = arith.constant 0 : i32
    %c0_i32_0 = arith.constant 0 : i32
    %c0_i32_1 = arith.constant 0 : i32
    return %arg0, %c0_i32, %c0_i32_0 : i32, i32, i32
  }
}

</mosaic_0001>

<bundles_post_ra>
// kernel: baseline_forward.2
= control target key start
LH: loop header
LB: loop body
LE: loop exit
PB: predicated region body
PF: predicated region fallthrough
CT: control target
= control target key end

     0   :  { %s4165_s0 = inlined_call_operand.vmem [shape: f32[2,8,64], index: 0, kind: input, shape index: {}]   ;;  %s4166_s1 = inlined_call_operand.vmem [shape: f32[2,8,8], index: 1, kind: input, shape index: {}]   ;;  %s4167_s2 = inlined_call_operand.hbm [shape: f32[2,3,8,8,64], index: 2, kind: input, shape index: {}]   ;;  %s4168_s3 = inlined_call_operand.vmem [shape: f32[2,3,8,1,8], index: 3, kind: input, shape index: {}]   ;;  %s4169_s4 = inlined_call_operand.vmem [shape: f32[2,8,8,64], index: 4, kind: input, shape index: {}]   ;;  %s4170_s5 = inlined_call_operand.vmem [shape: f32[2,1,64], index: 5, kind: input, shape index: {}]   ;;  %s4171_s6 = inlined_call_operand.hbm [shape: f32[2,64,1024], index: 6, kind: input, shape index: {}]   ;;  %s4172_s7 = inlined_call_operand.vmem [shape: f32[2,1,1024], index: 7, kind: input, shape index: {}]   ;;  %s4173_s8 = inlined_call_operand.hbm [shape: f32[2,64,1024], index: 8, kind: input, shape index: {}]   ;;  %s4174_s9 = inlined_call_operand.vmem [shape: f32[2,1,64], index: 9, kind: input, shape index: {}]   ;;  %s4175_s10 = inlined_call_operand.vmem [shape: f32[2,2,1,64], index: 10, kind: input, shape index: {}]   ;;  %s4176_s11 = inlined_call_operand.vmem [shape: f32[2,2,1,64], index: 11, kind: input, shape index: {}]   ;;  %s4177_s12 = inlined_call_operand.vmem [shape: f32[1,64], index: 12, kind: input, shape index: {}]   ;;  %s4178_s13 = inlined_call_operand.vmem [shape: f32[1,64], index: 13, kind: input, shape index: {}]   ;;  %s4179_s14 = inlined_call_operand.vmem [shape: f32[2,8,64], index: 14, kind: output, shape index: {}]  }
   0x1   :  { %4188 = sst [smem:[#allocation19_spill]] %s4165_s0 }
   0x2   :  { %4189 = sst [smem:[#allocation20_spill]] %s4167_s2 }
   0x3   :  { %4190 = sst [smem:[#allocation21_spill]] %s4168_s3 }
   0x4   :  { %4191 = sst [smem:[#allocation22_spill]] %s4169_s4 }
   0x5   :  { %4192 = sst [smem:[#allocation23_spill]] %s4170_s5 }
   0x6   :  { %4193 = sst [smem:[#allocation24_spill]] %s4171_s6 }
   0x7   :  { %4194 = sst [smem:[#allocation25_spill]] %s4172_s7 }
   0x8   :  { %4195 = sst [smem:[#allocation26_spill]] %s4173_s8 }
   0x9   :  { %4196 = sst [smem:[#allocation27_spill]] %s4174_s9 }
   0xa   :  { %4197 = sst [smem:[#allocation28_spill]] %s4175_s10 }
   0xb   :  { %4198 = sst [smem:[#allocation29_spill]] %s4176_s11 }
   0xc   :  { %4199 = sst [smem:[#allocation30_spill]] %s4177_s12 }
   0xd   :  { %4200 = sst [smem:[#allocation31_spill]] %s4178_s13 }
   0xe   :  { %4201 = sst [smem:[#allocation32_spill]] %s4179_s14 }
   0xf   :  { %19 = vsyncpa [#allocation4], 0 }
  0x10   :  { %21 = vsyncpa [#allocation4 + $0x1], 0 }
  0x11   :  { %22 = vsyncpa [#allocation6], 0 }
  0x12   :  { %24 = vsyncpa [#allocation6 + $0x1], 0  ;;  %s3561_s29 = smov 0   ;;  %s3563_s30 = smov 0  }
  0x13   :  { %s3565_s15 = smov 0   ;;  %s3567_s16 = smov 0  }
  0x14   :  { %s3569_s17 = smov 0   ;;  %s3571_s18 = smov 0  }
  0x15   :  { %s3573_s19 = smov 0   ;;  %s3575_s20 = smov 0  }
  0x16 LB: > { %4202 = sst [smem:[#allocation10_spill]] %s3455_s30  ;;  %s4182_s21 = sadd.s32 4294967295, %s3479_s20   ;;  %s3479_s20 = sphi %s3575_s20, %s30_s20   ;;  %s3475_s19 = sphi %s3573_s19, %s4242_s19   ;;  %s3471_s18 = sphi %s3571_s18, %s4241_s18   ;;  %s3467_s17 = sphi %s3569_s17, %s4240_s17   ;;  %s3463_s16 = sphi %s3567_s16, %s4239_s16   ;;  %s3459_s15 = sphi %s3565_s15, %s4238_s15   ;;  %s3455_s30 = sphi %s3563_s30, %s4237_s30   ;;  %s3451_s29 = sphi %s3561_s29, %s4236_s29  }
  0x17   : > { %4203 = sst [smem:[#allocation11_spill]] %s3459_s15  ;;  %s39_s22 = sadd.s32 1, %s3471_s18 }
  0x18   : > { %4204 = sst [smem:[#allocation12_spill]] %s3471_s18  ;;  %p40_p0 = scmp.ge.s32.totalorder %s39_s22, 2 }
  0x19   : > { %4205 = sst [smem:[#allocation13_spill]] %s3475_s19  ;;  %s42_s23 = sadd.s32 1, %s3475_s19 }
  0x1a   : > { %4206 = sst [smem:[#allocation14_spill]] %s3479_s20  ;;  %s101_s24 = sadd.s32 1, %s3459_s15 }
  0x1b   : > { %p108_p1 = scmp.ne.s32.totalorder %s3459_s15, %s3455_s30  ;;  %s4244_s22 = smov (%p40_p0, %s39_s22), 0 }
  0x1c   : > { %4207 = sst [smem:[#allocation15_spill]] %s4244_s22  ;;  %s4246_s23 = smov (!%p40_p0, %s42_s23), %s3475_s19 }
  0x1d   : > { %s98_s25 = ssub.s32 %s3471_s18, %s4244_s22  ;;  %p109_p2 = scmp.eq.s32.totalorder %s3479_s20, 0 }
  0x1e   : > { %p44_p3 = scmp.ge.s32.totalorder %s4246_s23, 2  ;;  %p99_p4 = scmp.eq.s32.totalorder %s98_s25, 0 }
  0x1f   : > { %p110_p5 = por %p109_p2, %p108_p1  ;;  %p114_p6 = scmp.ne.s32.totalorder %s3455_s30, %s3451_s29 }
  0x20   : > { %s4248_s23 = smov (%p44_p3, %s4246_s23), 0  ;;  %p115_p7 = scmp.eq.s32.totalorder %s4182_s21, 0 }
  0x21   : > { %4208 = sst [smem:[#allocation16_spill]] %s4248_s23  ;;  %p3177_p8 = scmp.lt.s32.totalorder %s3479_s20, 4 }
  0x22   : > { %s3615_s26 = scalar_select %p99_p4, %s3459_s15, %s101_s24  }
  0x23   : > { %s3621_s27 = sand.u32 1, %s3459_s15   ;;  %p3623_p9 = por %p115_p7, %p114_p6 }
  0x24   : > { %4209 = sst [smem:[#allocation17_spill]] %s3615_s26  ;;  %s503_s22 = sand.u32 1, %s3479_s20  }
  0x25   : > { %p3628_p10 = pnand %p3177_p8, %p110_p5  ;;  %s3002_s29 = sshll.u32 %s3621_s27, 9 }
  0x26   : > { %s3154_s25 = sshll.u32 %s3471_s18, 9  ;;  %s4212_s6 = sld [smem:[#allocation24_spill]] }
  0x27   : > { %s507_s26 = scalar_lea.vmem [#allocation5], %s3002_s29  ;;  %s3637_s12 = scalar_lea.sflag [#allocation6], %s503_s22 }
  0x28   : > { %s515_s15 = sshll.u32 %s507_s26, 4  ;;  %s3481_s11 = smov 1024   ;;  %s516_s15 = int_to_ptr.vmem [resolvable:$true] %s515_s15 }
  0x29   : > { %s3482_s10 = smov 64   ;;  %s4213_s8 = sld [smem:[#allocation26_spill]] }
  0x2a   : > { %s536_s24 = scalar_lea.vmem [#allocation7], %s3002_s29  ;;  %p3008_p11 = scmp.ge.s32.totalorder %s3479_s20, 1 }
  0x2b   : > { %p572_p12 = scmp.lt.s32.totalorder %s3479_s20, 5  ;;  %s4215_s2 = sld [smem:[#allocation20_spill]] }
  0x2c   : > { %s512_s21 = scalar_lea.hbm %s4212_s6, %s3154_s25  ;;  %s544_s6 = sshll.u32 %s536_s24, 4  ;;  %s545_s6 = int_to_ptr.vmem [resolvable:$true] %s544_s6 }
  0x2d   : > { %s513_s13 = sshll.u32 %s512_s21, 4  ;;  %p3647_p13 = pnand %p3008_p11, %p572_p12  ;;  %s514_s13 = int_to_ptr.hbm [resolvable:$true] %s513_s13 }
  0x2e   : > { %3173 = dma.hbm_to_vmem [thread:$0]  (!%p3628_p10), %s514_s13, 8192, %s516_s15, %s3637_s12, %s3481_s11, %s3481_s11, %s3482_s10  }
  0x2f   : > { %s541_s23 = scalar_lea.hbm %s4213_s8, %s3154_s25  ;;  %s3157_s13 = smul.u32 192, %s3621_s27 }
  0x30   : > { %s542_s26 = sshll.u32 %s541_s23, 4  ;;  %s3158_s15 = smul.u32 192, %s3471_s18  ;;  %s543_s26 = int_to_ptr.hbm [resolvable:$true] %s542_s26 }
  0x31   : > { %s464_s29 = scalar_lea.vmem [#allocation3], %s3157_s13  ;;  %s461_s24 = scalar_lea.sflag [#allocation4], %s3621_s27 }
  0x32   : > { %s469_s14 = scalar_lea.hbm %s4215_s2, %s3158_s15  ;;  %s472_s25 = sshll.u32 %s464_s29, 4  ;;  %s473_s25 = int_to_ptr.vmem [resolvable:$true] %s472_s25 }
  0x33   : > { %s470_s23 = sshll.u32 %s469_s14, 4  ;;  %s3483_s8 = smov 128   ;;  %s471_s23 = int_to_ptr.hbm [resolvable:$true] %s470_s23 }
  0x34   : > { %s3484_s7 = smov 8   ;;  %576 = sbr.rel (%p3647_p13) target bundleno = 2014 (0x7de), region = 76 }
  0x35   : > { %3170 = dma.hbm_to_vmem [thread:$0]  (!%p3628_p10), %s471_s23, 3072, %s473_s25, %s461_s24, %s3483_s8, %s3483_s8, %s3484_s7  }
  0x36   : > { %3176 = dma.hbm_to_vmem [thread:$0]  (!%p3628_p10), %s543_s26, 8192, %s545_s6, %s3637_s12, %s3481_s11, %s3481_s11, %s3482_s10  }
  0x39   : > { %s3665_s18 = sand.u32 1, %s3455_s30  }
  0x3a   : > { %s3159_s13 = smul.u32 192, %s3665_s18  ;;  %s579_s15 = scalar_lea.sflag [#allocation4], %s3665_s18 }
  0x3c   : > { %s3669_s22 = scalar_lea.vmem [#allocation3], %s3159_s13 }
  0x3d   : > { %3442 = dma.done.wait (%p3623_p9), %s579_s15, 3072  }
  0x3e   : > { %3444 = vsyncadd (%p3623_p9), %s579_s15, 4294964224  ;;  %s4216_s6 = sadd.s32 4294967295, %s3479_s20   ;;  %s3009_s8 = sshll.u32 %s3665_s18, 9 }
  0x3f   : > { %s588_s7 = sand.u32 1, %s4216_s6   ;;  %s3678_s11 = scalar_lea.vmem [#allocation5], %s3009_s8 }
  0x40   : > { %s589_s10 = scalar_lea.sflag [#allocation6], %s588_s7  ;;  %4217 = sst [smem:[#allocation18_spill]] %s3678_s11 }
  0x41   : > { %3446 = dma.done.wait (%p3623_p9), %s589_s10, 16384  }
  0x42   : > { %3448 = vsyncadd (%p3623_p9), %s589_s10, 4294950912  ;;  %p692_p0 = scmp.lt.s32.totalorder %s3467_s17, 1  ;;  %p700_p1 = scmp.lt.s32.totalorder %s3463_s16, 1 }
  0x43   : > { %s4218_s0 = sld [smem:[#allocation19_spill]]  ;;  %p3019_p2 = scmp.ne.s32.totalorder %s3463_s16, 0 }
  0x44   : > { %s693_s12 = scalar_select %p692_p0, %s3467_s17, 1 }
  0x45   : > { %s3688_s19 = scalar_select %p700_p1, %s3463_s16, 1 }
  0x46   : > { %s3690_s18 = sshll.u32 %s693_s12, 3  ;;  %s4219_s4 = sld [smem:[#allocation22_spill]] }
  0x47   : > { %s3160_s29 = smul.u32 24, %s3688_s19  ;;  %s3156_s25 = sshll.u32 %s3688_s19, 6 }
  0x48   : > { %s4221_s3 = sld [smem:[#allocation21_spill]]  ;;  %s3015_s28 = sshll.u32 %s3688_s19, 3 }
  0x49   : > { %s695_s26 = scalar_lea.vmem %s4218_s0, %s3690_s18  ;;  %s4222_s9 = sld [smem:[#allocation25_spill]] }
  0x4a   : > { %s4223_s23 = sld [smem:[#allocation27_spill]]  ;;  %s3016_s24 = sshll.u32 %s3688_s19, 1 }
  0x4b   : > { %s4224_s15 = sld [smem:[#allocation32_spill]]  ;;  %s3020_s2 = sshll.u32 (!%p3019_p2), %s3467_s17, 3 }
  0x4c   : > { %s3705_s13 = scalar_lea.vmem %s4219_s4, %s3156_s25  ;;  %s4225_s10 = sld [smem:[#allocation28_spill]] }
  0x4d   : > { %s4226_s5 = sld [smem:[#allocation29_spill]]  ;;  %s737_s4 = scalar_lea.vmem (!%p3019_p2), [#allocation2], %s3020_s2 }
  0x4e   : > { %s3714_s27 = scalar_lea.vmem %s4221_s3, %s3160_s29 }
  0x4f   : > { %s3720_s14 = scalar_lea.vmem %s4222_s9, %s3015_s28  ;;  %s3741_s28 = scalar_lea.vmem [#allocation7], %s3009_s8 }
  0x50   : > { %s718_s25 = scalar_lea.vmem %s4223_s23, %s3688_s19  ;;  %734 = sbr.rel (%p3019_p2) target bundleno = 87 (0x57), region = 92 }
  0x51   : > { %s730_s6 = scalar_lea.vmem %s4224_s15, %s3690_s18 }
  0x52   : > { %s3734_s29 = scalar_lea.vmem %s4225_s10, %s3016_s24 }
  0x53   : > { %s3739_s0 = scalar_lea.vmem %s4226_s5, %s3016_s24 }
  0x55   : > { %v735_v0 = vld [vmem:[%s695_s26] sm:$0xff]  ;;  %vm738_vm0 = vcmask 523264  }
  0x56   : > { %739 = vst.msk [vmem:[%s737_s4] sm:$0xff] %vm738_vm0, %v735_v0 }
  0x57 PF: > { %v744_v1 = vld [vmem:[%s3669_s22] sm:$0xff]  ;;  %vm745_vm1 = vcmask 523264   ;;  %v3024_v2 = vld [vmem:[%s3669_s22 + $0x8] sm:$0xff]  ;;  %v3027_v3 = vld [vmem:[%s3669_s22 + $0x10] sm:$0xff]  ;;  %s3021_s3 = sshll.u32 %s3467_s17, 3  ;;  %vm1469_vm2 = vcmask 64512   ;;  %s4227_s20 = scalar_lea.vmem %s4166_s1, %s3690_s18 }
  0x58   : > { %3022 = vmatpush.xpose.msk.msra.mxu0 %vm745_vm1, %v744_v1  ;;  %3025 = vmatpush.xpose.msk.msra.mxu1 %vm745_vm1, %v3024_v2  ;;  %v3030_v4 = vld [vmem:[%s3669_s22 + $0x18] sm:$0xff]  ;;  %v3033_v5 = vld [vmem:[%s3669_s22 + $0x20] sm:$0xff]  ;;  %v3036_v6 = vld [vmem:[%s3669_s22 + $0x28] sm:$0xff]  ;;  %s3756_s5 = scalar_lea.vmem [#allocation2], %s3021_s3  ;;  %s4228_s11 = sld [smem:[#allocation23_spill]] }
  0x59   : > { %3028 = vmatpush.xpose.msk.msra.mxu2 %vm745_vm1, %v3027_v3  ;;  %3031 = vmatpush.xpose.msk.msra.mxu3 %vm745_vm1, %v3030_v4  ;;  %v3039_v8 = vld [vmem:[%s3669_s22 + $0x30] sm:$0xff]  ;;  %v3042_v9 = vld [vmem:[%s3669_s22 + $0x38] sm:$0xff]  ;;  %v3045_v10 = vld [vmem:[%s3669_s22 + $0x40] sm:$0xff]  ;;  %p3151_p3 = scmp.ne.s32.totalorder %s3463_s16, 1 }
  0x5a   : > { %v3048_v11 = vld [vmem:[%s3669_s22 + $0x48] sm:$0xff]  ;;  %v3051_v12 = vld [vmem:[%s3669_s22 + $0x50] sm:$0xff]  ;;  %v3054_v13 = vld [vmem:[%s3669_s22 + $0x58] sm:$0xff]  ;;  %s4232_s21 = sld [smem:[#allocation30_spill]] (!%p3151_p3) }
  0x5b   : > { %v3057_v14 = vld [vmem:[%s3669_s22 + $0x60] sm:$0xff]  ;;  %v3063_v15 = vld [vmem:[%s3669_s22 + $0x70] sm:$0xff]  ;;  %v3066_v16 = vld [vmem:[%s3669_s22 + $0x78] sm:$0xff] }
  0x5c   : > { %3034 = vmatpush.xpose.msk.msrb.mxu0 %vm745_vm1, %v3033_v5  ;;  %3037 = vmatpush.xpose.msk.msrb.mxu1 %vm745_vm1, %v3036_v6  ;;  %v3060_v17 = vld [vmem:[%s3669_s22 + $0x68] sm:$0xff]  ;;  %v3077_v18 = vld [vmem:[%s3669_s22 + $0x80] sm:$0xff]  ;;  %v3083_v20 = vld [vmem:[%s3669_s22 + $0x90] sm:$0xff] }
  0x5d   : > { %v3759_v7 = vld [vmem:[%s3756_s5] sm:$0xff]  ;;  %3040 = vmatpush.xpose.msk.msrb.mxu2 %vm745_vm1, %v3039_v8  ;;  %3043 = vmatpush.xpose.msk.msrb.mxu3 %vm745_vm1, %v3042_v9  ;;  %v3080_v19 = vld [vmem:[%s3669_s22 + $0x88] sm:$0xff]  ;;  %v3086_v21 = vld [vmem:[%s3669_s22 + $0x98] sm:$0xff] }
  0x5e   : > { %3023 = vmatmul.msk.f32.vlgmr.msra.gmra.mxu0 %vm745_vm1, %v3759_v7  ;;  %3026 = vmatmul.msk.f32.vlgmr.msra.gmra.mxu1 %vm745_vm1, %v3759_v7  ;;  %v3089_v22 = vld [vmem:[%s3669_s22 + $0xa0] sm:$0xff]  ;;  %v3092_v23 = vld [vmem:[%s3669_s22 + $0xa8] sm:$0xff]  ;;  %v3095_v24 = vld [vmem:[%s3669_s22 + $0xb0] sm:$0xff]  ;;  %s4229_s26 = scalar_lea.vmem %s4228_s11, %s3688_s19 }
  0x5f   : > { %3029 = vmatmul.msk.f32.vlgmr.msra.gmra.mxu2 %vm745_vm1, %v3759_v7  ;;  %3032 = vmatmul.msk.f32.vlgmr.msra.gmra.mxu3 %vm745_vm1, %v3759_v7  ;;  %v3098_v25 = vld [vmem:[%s3669_s22 + $0xb8] sm:$0xff]  ;;  %v3247_v34 = vld [vmem:[%s3714_s27] ss:$0 sm:$0xff]  ;;  %v3248_v35 = vld [vmem:[%s3714_s27 + $0x1] ss:$0 sm:$0xff] }
  0x60   : > { %3046 = vmatpush.xpose.msk.msra.mxu0 %vm745_vm1, %v3045_v10  ;;  %3049 = vmatpush.xpose.msk.msra.mxu1 %vm745_vm1, %v3048_v11  ;;  %v3255_v32 = vld [vmem:[%s3714_s27 + $0x8] ss:$0 sm:$0xff]  ;;  %v3256_v33 = vld [vmem:[%s3714_s27 + $0x9] ss:$0 sm:$0xff]  ;;  %v3257_v44 = vld [vmem:[%s3714_s27 + $0xa] ss:$0 sm:$0xff] }
  0x61   : > { %3052 = vmatpush.xpose.msk.msra.mxu2 %vm745_vm1, %v3051_v12  ;;  %3055 = vmatpush.xpose.msk.msra.mxu3 %vm745_vm1, %v3054_v13  ;;  %v3258_v45 = vld [vmem:[%s3714_s27 + $0xb] ss:$0 sm:$0xff]  ;;  %v3259_v46 = vld [vmem:[%s3714_s27 + $0xc] ss:$0 sm:$0xff]  ;;  %v3260_v47 = vld [vmem:[%s3714_s27 + $0xd] ss:$0 sm:$0xff] }
  0x62   : > { %v3251_v48 = vld [vmem:[%s3714_s27 + $0x4] ss:$0 sm:$0xff]  ;;  %v3252_v49 = vld [vmem:[%s3714_s27 + $0x5] ss:$0 sm:$0xff]  ;;  %v3249_v50 = vld [vmem:[%s3714_s27 + $0x2] ss:$0 sm:$0xff] }
  0x63   : > { %v3250_v51 = vld [vmem:[%s3714_s27 + $0x3] ss:$0 sm:$0xff]  ;;  %v3261_v0 = vld [vmem:[%s3714_s27 + $0xe] ss:$0 sm:$0xff]  ;;  %v3262_v1 = vld [vmem:[%s3714_s27 + $0xf] ss:$0 sm:$0xff] }
  0x64   : > { %v3253_v2 = vld [vmem:[%s3714_s27 + $0x6] ss:$0 sm:$0xff]  ;;  %v3254_v3 = vld [vmem:[%s3714_s27 + $0x7] ss:$0 sm:$0xff]  ;;  %v3263_v11 = vld [vmem:[%s3714_s27 + $0x10] ss:$0 sm:$0xff] }
  0x65   : > { %v3264_v12 = vld [vmem:[%s3714_s27 + $0x11] ss:$0 sm:$0xff] }
  0x66   : > { %3035 = vmatmul.msk.f32.vlgmr.msrb.gmra.mxu0 %vm745_vm1, %v3759_v7  ;;  %3038 = vmatmul.msk.f32.vlgmr.msrb.gmra.mxu1 %vm745_vm1, %v3759_v7 }
  0x67   : > { %3041 = vmatmul.msk.f32.vlgmr.msrb.gmra.mxu2 %vm745_vm1, %v3759_v7  ;;  %3044 = vmatmul.msk.f32.vlgmr.msrb.gmra.mxu3 %vm745_vm1, %v3759_v7 }
  0x68   : > { %3058 = vmatpush.xpose.msk.msrb.mxu0 %vm745_vm1, %v3057_v14  ;;  %3064 = vmatpush.xpose.msk.msrb.mxu2 %vm745_vm1, %v3063_v15 }
  0x69   : > { %3067 = vmatpush.xpose.msk.msrb.mxu3 %vm745_vm1, %v3066_v16  ;;  %3061 = vmatpush.xpose.msk.msrb.mxu1 %vm745_vm1, %v3060_v17  ;;  %v3265_v17 = vld [vmem:[%s3714_s27 + $0x14] ss:$0 sm:$0xff] }
  0x6e   : > { %3047 = vmatmul.msk.f32.vlgmr.msra.gmra.mxu0 %vm745_vm1, %v3759_v7  ;;  %3050 = vmatmul.msk.f32.vlgmr.msra.gmra.mxu1 %vm745_vm1, %v3759_v7 }
  0x6f   : > { %3053 = vmatmul.msk.f32.vlgmr.msra.gmra.mxu2 %vm745_vm1, %v3759_v7  ;;  %3056 = vmatmul.msk.f32.vlgmr.msra.gmra.mxu3 %vm745_vm1, %v3759_v7 }
  0x70   : > { %3078 = vmatpush.xpose.msk.msra.mxu0 %vm745_vm1, %v3077_v18  ;;  %3081 = vmatpush.xpose.msk.msra.mxu1 %vm745_vm1, %v3080_v19  ;;  %v3266_v18 = vld [vmem:[%s3714_s27 + $0x15] ss:$0 sm:$0xff] }
  0x71   : > { %3084 = vmatpush.xpose.msk.msra.mxu2 %vm745_vm1, %v3083_v20  ;;  %3087 = vmatpush.xpose.msk.msra.mxu3 %vm745_vm1, %v3086_v21 }
  0x76   : > { %3059 = vmatmul.msk.f32.vlgmr.msrb.gmra.mxu0 %vm745_vm1, %v3759_v7  ;;  %3062 = vmatmul.msk.f32.vlgmr.msrb.gmra.mxu1 %vm745_vm1, %v3759_v7 }
  0x77   : > { %3065 = vmatmul.msk.f32.vlgmr.msrb.gmra.mxu2 %vm745_vm1, %v3759_v7  ;;  %3068 = vmatmul.msk.f32.vlgmr.msrb.gmra.mxu3 %vm745_vm1, %v3759_v7 }
  0x78   : > { %3090 = vmatpush.xpose.msk.msrb.mxu0 %vm745_vm1, %v3089_v22  ;;  %3093 = vmatpush.xpose.msk.msrb.mxu1 %vm745_vm1, %v3092_v23  ;;  %v3267_v23 = vld [vmem:[%s3714_s27 + $0x12] ss:$0 sm:$0xff] }
  0x79   : > { %3096 = vmatpush.xpose.msk.msrb.mxu2 %vm745_vm1, %v3095_v24  ;;  %3099 = vmatpush.xpose.msk.msrb.mxu3 %vm745_vm1, %v3098_v25  ;;  %v3268_v24 = vld [vmem:[%s3714_s27 + $0x13] ss:$0 sm:$0xff] }
  0x7e   : > { %3079 = vmatmul.msk.f32.vlgmr.msra.gmra.mxu0 %vm745_vm1, %v3759_v7  ;;  %3082 = vmatmul.msk.f32.vlgmr.msra.gmra.mxu1 %vm745_vm1, %v3759_v7 }
  0x7f   : > { %3085 = vmatmul.msk.f32.vlgmr.msra.gmra.mxu2 %vm745_vm1, %v3759_v7  ;;  %3088 = vmatmul.msk.f32.vlgmr.msra.gmra.mxu3 %vm745_vm1, %v3759_v7 }
  0x86   : > { %3091 = vmatmul.msk.f32.vlgmr.msrb.gmra.mxu0 %vm745_vm1, %v3759_v7  ;;  %3094 = vmatmul.msk.f32.vlgmr.msrb.gmra.mxu1 %vm745_vm1, %v3759_v7 }
  0x87   : > { %3097 = vmatmul.msk.f32.vlgmr.msrb.gmra.mxu2 %vm745_vm1, %v3759_v7  ;;  %3100 = vmatmul.msk.f32.vlgmr.msrb.gmra.mxu3 %vm745_vm1, %v3759_v7 }
  0xdb   : > { %v769_v26 = vpop.f32.mrf.mxu0  ;;  %v794_v27 = vpop.f32.mrf.mxu1 }
  0xdc   : > { %v979_v42 = vadd.f32 %v3247_v34, %v769_v26  ;;  %v980_v43 = vadd.f32 %v3248_v35, %v794_v27 }
  0xe2   : > { %v819_v28 = vpop.f32.mrf.mxu2  ;;  %v844_v29 = vpop.f32.mrf.mxu3 }
  0xe3   : > { %v869_v30 = vpop.f32.mrf.mxu0  ;;  %v894_v31 = vpop.f32.mrf.mxu1  ;;  %v981_v62 = vadd.f32 %v3249_v50, %v819_v28  ;;  %v982_v63 = vadd.f32 %v3250_v51, %v844_v29  ;;  %v3269_v29 = vld [vmem:[%s3714_s27 + $0x16] ss:$0 sm:$0xff] }
  0xe4   : > { %v983_v60 = vadd.f32 %v3251_v48, %v869_v30  ;;  %v984_v61 = vadd.f32 %v3252_v49, %v894_v31  ;;  %v3270_v30 = vld [vmem:[%s3714_s27 + $0x17] ss:$0 sm:$0xff] }
  0xea   : > { %v919_v36 = vpop.f32.mrf.mxu2  ;;  %v944_v37 = vpop.f32.mrf.mxu3 }
  0xeb   : > { %v1009_v38 = vpop.f32.mrf.mxu0  ;;  %v1034_v39 = vpop.f32.mrf.mxu1  ;;  %v985_v9 = vadd.f32 %v3253_v2, %v919_v36  ;;  %v986_v10 = vadd.f32 %v3254_v3, %v944_v37  ;;  %v743_v37 = vld [vmem:[%s4227_s20] sm:$0xff] }
  0xec   : > { %v1220_v40 = vadd.f32 %v3255_v32, %v1009_v38  ;;  %v1221_v41 = vadd.f32 %v3256_v33, %v1034_v39 }
  0xee   : > { %3109 = vmatpush.xpose.msk.msra.mxu0 %vm1469_vm2, %v1220_v40  ;;  %3111 = vmatpush.xpose.msk.msra.mxu1 %vm1469_vm2, %v1221_v41 }
  0xf1   : > { %3110 = vmatmul.msk.f32.vlgmr.msra.gmra.mxu0 %vm1469_vm2, %v979_v42  ;;  %3112 = vmatmul.msk.f32.vlgmr.msra.gmra.mxu1 %vm1469_vm2, %v980_v43 }
  0xf2   : > { %v1059_v52 = vpop.f32.mrf.mxu2  ;;  %v1084_v53 = vpop.f32.mrf.mxu3 }
  0xf3   : > { %v1222_v54 = vadd.f32 %v3257_v44, %v1059_v52  ;;  %v1223_v55 = vadd.f32 %v3258_v45, %v1084_v53  ;;  %v1109_v56 = vpop.f32.mrf.mxu0  ;;  %v1134_v57 = vpop.f32.mrf.mxu1 }
  0xf4   : > { %v1224_v58 = vadd.f32 %v3259_v46, %v1109_v56  ;;  %v1225_v59 = vadd.f32 %v3260_v47, %v1134_v57 }
  0xf5   : > { %3113 = vmatpush.xpose.msk.msra.mxu2 %vm1469_vm2, %v1222_v54  ;;  %3115 = vmatpush.xpose.msk.msra.mxu3 %vm1469_vm2, %v1223_v55 }
  0xf6   : > { %3117 = vmatpush.xpose.msk.msrb.mxu0 %vm1469_vm2, %v1224_v58  ;;  %3119 = vmatpush.xpose.msk.msrb.mxu1 %vm1469_vm2, %v1225_v59 }
  0xf8   : > { %3114 = vmatmul.msk.f32.vlgmr.msra.gmra.mxu2 %vm1469_vm2, %v981_v62  ;;  %3116 = vmatmul.msk.f32.vlgmr.msra.gmra.mxu3 %vm1469_vm2, %v982_v63 }
  0xf9   : > { %3118 = vmatmul.msk.f32.vlgmr.msrb.gmra.mxu0 %vm1469_vm2, %v983_v60  ;;  %3120 = vmatmul.msk.f32.vlgmr.msrb.gmra.mxu1 %vm1469_vm2, %v984_v61 }
  0xfa   : > { %v1159_v4 = vpop.f32.mrf.mxu2  ;;  %v1184_v5 = vpop.f32.mrf.mxu3 }
  0xfb   : > { %v1226_v6 = vadd.f32 %v3261_v0, %v1159_v4  ;;  %v1227_v8 = vadd.f32 %v3262_v1, %v1184_v5  ;;  %v1250_v13 = vpop.f32.mrf.mxu0  ;;  %v1275_v14 = vpop.f32.mrf.mxu1 }
  0xfc   : > { %v1461_v15 = vadd.f32 %v3263_v11, %v1250_v13  ;;  %v1462_v16 = vadd.f32 %v3264_v12, %v1275_v14 }
  0xfd   : > { %3121 = vmatpush.xpose.msk.msrb.mxu2 %vm1469_vm2, %v1226_v6  ;;  %3123 = vmatpush.xpose.msk.msrb.mxu3 %vm1469_vm2, %v1227_v8 }
  0xfe   : > { %1800 = vmatpush.msra.mxu0 %v1461_v15  ;;  %1823 = vmatpush.msra.mxu1 %v1462_v16 }
 0x100   : > { %3122 = vmatmul.msk.f32.vlgmr.msrb.gmra.mxu2 %vm1469_vm2, %v985_v9  ;;  %3124 = vmatmul.msk.f32.vlgmr.msrb.gmra.mxu3 %vm1469_vm2, %v986_v10 }
 0x102   : > { %v1300_v25 = vpop.f32.mrf.mxu2  ;;  %v1325_v26 = vpop.f32.mrf.mxu3 }
 0x103   : > { %v1350_v19 = vpop.f32.mrf.mxu0  ;;  %v1375_v20 = vpop.f32.mrf.mxu1  ;;  %v1463_v27 = vadd.f32 %v3267_v23, %v1300_v25  ;;  %v1464_v28 = vadd.f32 %v3268_v24, %v1325_v26 }
 0x104   : > { %v1465_v21 = vadd.f32 %v3265_v17, %v1350_v19  ;;  %v1466_v22 = vadd.f32 %v3266_v18, %v1375_v20 }
 0x105   : > { %1846 = vmatpush.msra.mxu2 %v1463_v27  ;;  %1869 = vmatpush.msra.mxu3 %v1464_v28 }
 0x106   : > { %1892 = vmatpush.msrb.mxu0 %v1465_v21  ;;  %1915 = vmatpush.msrb.mxu1 %v1466_v22 }
 0x10a   : > { %v1400_v31 = vpop.f32.mrf.mxu2  ;;  %v1425_v32 = vpop.f32.mrf.mxu3 }
 0x10b   : > { %v1467_v33 = vadd.f32 %v3269_v29, %v1400_v31  ;;  %v1468_v34 = vadd.f32 %v3270_v30, %v1425_v32 }
 0x10d   : > { %1938 = vmatpush.msrb.mxu2 %v1467_v33  ;;  %1961 = vmatpush.msrb.mxu3 %v1468_v34 }
 0x16e   : > { %v1493_v35 = vpop.f32.mrf.mxu0  ;;  %v1519_v36 = vpop.f32.mrf.mxu1 }
 0x16f   : > { %v1678_v38 = vmul.f32 0.35355338, %v1493_v35  ;;  %v1679_v39 = vmul.f32 0.35355338, %v1519_v36 }
 0x171   : > { %v3892_v40 = vadd.f32 %v1679_v39, %v743_v37  ;;  %v1686_v41 = vadd.f32 %v1678_v38, %v743_v37 }
 0x173   : > { %v1697_v42 = vsel %vm1469_vm2, %v3892_v40, -inf  ;;  %v1694_v43 = vsel %vm1469_vm2, %v1686_v41, -inf }
 0x174   : > { %1698 = vmax.xlane.f32.xlu2 %v1697_v42  ;;  %1695 = vmax.xlane.f32.xlu1 %v1694_v43 }
 0x176   : > { %v1597_v55 = vpop.f32.mrf.mxu0  ;;  %v1623_v56 = vpop.f32.mrf.mxu1 }
 0x177   : > { %v1682_v59 = vmul.f32 0.35355338, %v1597_v55  ;;  %v1683_v63 = vmul.f32 0.35355338, %v1623_v56 }
 0x179   : > { %v1690_v0 = vadd.f32 %v1682_v59, %v743_v37  ;;  %v1691_v1 = vadd.f32 %v1683_v63, %v743_v37 }
 0x17b   : > { %v1545_v44 = vpop.f32.mrf.mxu2  ;;  %v1571_v45 = vpop.f32.mrf.mxu3  ;;  %v1706_v2 = vsel %vm1469_vm2, %v1690_v0, -inf  ;;  %v1709_v3 = vsel %vm1469_vm2, %v1691_v1, -inf }
 0x17c   : > { %v1680_v46 = vmul.f32 0.35355338, %v1545_v44  ;;  %v1681_v48 = vmul.f32 0.35355338, %v1571_v45 }
 0x17e   : > { %v1688_v47 = vadd.f32 %v1680_v46, %v743_v37  ;;  %v1689_v54 = vadd.f32 %v1681_v48, %v743_v37 }
 0x180   : > { %v1700_v49 = vsel %vm1469_vm2, %v1688_v47, -inf  ;;  %v1703_v60 = vsel %vm1469_vm2, %v1689_v54, -inf }
 0x181   : > { %1701 = vmax.xlane.f32.xlu0 %v1700_v49 }
 0x183   : > { %v1649_v50 = vpop.f32.mrf.mxu2  ;;  %v1675_v51 = vpop.f32.mrf.mxu3 }
 0x184   : > { %v1684_v52 = vmul.f32 0.35355338, %v1649_v50  ;;  %v1685_v53 = vmul.f32 0.35355338, %v1675_v51 }
 0x186   : > { %v1693_v57 = vadd.f32 %v1685_v53, %v743_v37  ;;  %v1692_v58 = vadd.f32 %v1684_v52, %v743_v37 }
 0x188   : > { %v1715_v61 = vsel %vm1469_vm2, %v1693_v57, -inf  ;;  %v1712_v62 = vsel %vm1469_vm2, %v1692_v58, -inf }
 0x189   : > { %1704 = vmax.xlane.f32.xlu0 %v1703_v60  ;;  %1716 = vmax.xlane.f32.xlu2 %v1715_v61 }
 0x18a   : > { %1713 = vmax.xlane.f32.xlu1 %v1712_v62 }
 0x191   : > { %1707 = vmax.xlane.f32.xlu0 %v1706_v2 }
 0x192   : > { %1710 = vmax.xlane.f32.xlu1 %v1709_v3 }
 0x1e7   : > { %v1696_v4 = vpop.xlane.xlu1 %1695  ;;  %v1699_v9 = vpop.xlane.xlu2 %1698 }
 0x1e8   : > { %v1718_v5 = vsub.f32 %v1686_v41, %v1696_v4  ;;  %v1719_v21 = vsub.f32 %v3892_v40, %v1699_v9  ;;  %v1972_v9 = vld [vmem:[%s3705_s13 + $0x30] sm:$0xff] }
 0x1ea   : > { %v1726_v6 = vmul.f32 1.442695, %v1718_v5  ;;  %v1728_v26 = vmul.f32 1.442695, %v1719_v21  ;;  %v1966_v5 = vld [vmem:[%s3705_s13] sm:$0xff] }
 0x1ec   : > { %3277 = vpow2.f32 %v1726_v6  ;;  %v1968_v6 = vld [vmem:[%s3705_s13 + $0x10] sm:$0xff] }
 0x1f2   : > { %v3278_v8 = vpop.eup %3277 }
 0x1f3   : > { %v1742_v11 = vsel %vm1469_vm2, %v3278_v8, 0.0 }
 0x1f4   : > { %v1702_v10 = vpop.xlane.xlu0 %1701  ;;  %1743 = vadd.xlane.f32.xlu1 %v1742_v11  ;;  %v1970_v11 = vld [vmem:[%s3705_s13 + $0x20] sm:$0xff] }
 0x1f5   : > { %v1720_v12 = vsub.f32 %v1688_v47, %v1702_v10  ;;  %v1967_v10 = vld [vmem:[%s3705_s13 + $0x8] sm:$0xff] }
 0x1f7   : > { %v1730_v13 = vmul.f32 1.442695, %v1720_v12  ;;  %v1973_v12 = vld [vmem:[%s3705_s13 + $0x38] sm:$0xff] }
 0x1f9   : > { %3279 = vpow2.f32 %v1730_v13 }
 0x1fc   : > { %v1705_v14 = vpop.xlane.xlu0 %1704  ;;  %v1717_v15 = vpop.xlane.xlu2 %1716 }
 0x1fd   : > { %v1721_v16 = vsub.f32 %v1689_v54, %v1705_v14  ;;  %v1725_v17 = vsub.f32 %v1693_v57, %v1717_v15  ;;  %v1714_v18 = vpop.xlane.xlu1 %1713  ;;  %v1971_v14 = vld [vmem:[%s3705_s13 + $0x28] sm:$0xff] }
 0x1fe   : > { %v1724_v19 = vsub.f32 %v1692_v58, %v1714_v18 }
 0x1ff   : > { %v3280_v20 = vpop.eup %3279  ;;  %v1732_v22 = vmul.f32 1.442695, %v1721_v16  ;;  %v1740_v23 = vmul.f32 1.442695, %v1725_v17 }
 0x200   : > { %v1738_v24 = vmul.f32 1.442695, %v1724_v19  ;;  %v1748_v25 = vsel %vm1469_vm2, %v3280_v20, 0.0 }
 0x201   : > { %3281 = vpow2.f32 %v1732_v22  ;;  %1749 = vadd.xlane.f32.xlu2 %v1748_v25 }
 0x202   : > { %3283 = vpow2.f32 %v1740_v23 }
 0x203   : > { %3285 = vpow2.f32 %v1738_v24 }
 0x204   : > { %v1708_v27 = vpop.xlane.xlu0 %1707  ;;  %3287 = vpow2.f32 %v1728_v26 }
 0x205   : > { %v1711_v28 = vpop.xlane.xlu1 %1710  ;;  %v1722_v29 = vsub.f32 %v1690_v0, %v1708_v27 }
 0x206   : > { %v1723_v31 = vsub.f32 %v1691_v1, %v1711_v28 }
 0x207   : > { %v3282_v30 = vpop.eup %3281  ;;  %v1734_v32 = vmul.f32 1.442695, %v1722_v29 }
 0x208   : > { %v3284_v33 = vpop.eup %3283  ;;  %v1751_v34 = vsel %vm1469_vm2, %v3282_v30, 0.0  ;;  %v1736_v38 = vmul.f32 1.442695, %v1723_v31 }
 0x209   : > { %v3286_v35 = vpop.eup %3285  ;;  %3289 = vpow2.f32 %v1734_v32  ;;  %v1763_v36 = vsel %vm1469_vm2, %v3284_v33, 0.0  ;;  %1752 = vadd.xlane.f32.xlu0 %v1751_v34 }
 0x20a   : > { %1764 = vadd.xlane.f32.xlu1 %v1763_v36  ;;  %v1760_v37 = vsel %vm1469_vm2, %v3286_v35, 0.0  ;;  %v3288_v39 = vpop.eup %3287  ;;  %3291 = vpow2.f32 %v1736_v38 }
 0x20b   : > { %1761 = vadd.xlane.f32.xlu2 %v1760_v37  ;;  %v1745_v41 = vsel %vm1469_vm2, %v3288_v39, 0.0 }
 0x20f   : > { %v3290_v40 = vpop.eup %3289 }
 0x210   : > { %v1754_v42 = vsel %vm1469_vm2, %v3290_v40, 0.0  ;;  %v3292_v43 = vpop.eup %3291 }
 0x211   : > { %1746 = vadd.xlane.f32.xlu0 %v1745_v41  ;;  %v1757_v44 = vsel %vm1469_vm2, %v3292_v43, 0.0 }
 0x213   : > { %1755 = vadd.xlane.f32.xlu2 %v1754_v42 }
 0x219   : > { %1758 = vadd.xlane.f32.xlu0 %v1757_v44 }
 0x267   : > { %v1744_v45 = vpop.xlane.xlu1 %1743 }
 0x268   : > { %3293 = vrcp.f32 %v1744_v45 }
 0x26e   : > { %v3294_v46 = vpop.eup %3293 }
 0x26f   : > { %v1774_v47 = vmul.f32 %v3294_v46, %v3278_v8  ;;  %v1969_v8 = vld [vmem:[%s3705_s13 + $0x18] sm:$0xff]  ;;  %s4230_s13 = sld [smem:[#allocation18_spill]] }
 0x271   : > { %3125 = vmatmul.msk.f32.vlgmr.msra.gmra.mxu0 %vm1469_vm2, %v1774_v47 }
 0x272   : > { %1992 = vmatpush.msra.mxu0 %v1966_v5 }
 0x274   : > { %v1750_v48 = vpop.xlane.xlu2 %1749 }
 0x275   : > { %3295 = vrcp.f32 %v1750_v48  ;;  %v2259_v5 = vld [vmem:[%s4230_s13 + $0x148] sm:$0xff] }
 0x27b   : > { %v3296_v49 = vpop.eup %3295 }
 0x27c   : > { %v1776_v50 = vmul.f32 %v3296_v49, %v3280_v20  ;;  %v1753_v51 = vpop.xlane.xlu0 %1752  ;;  %v3485_v49 = vmov 64.0  }
 0x27d   : > { %3297 = vrcp.f32 %v1753_v51  ;;  %v1765_v53 = vpop.xlane.xlu1 %1764 }
 0x27e   : > { %v1762_v52 = vpop.xlane.xlu2 %1761  ;;  %3127 = vmatmul.msk.f32.vlgmr.msra.gmra.mxu2 %vm1469_vm2, %v1776_v50 }
 0x27f   : > { %3299 = vrcp.f32 %v1762_v52  ;;  %2038 = vmatpush.msra.mxu2 %v1968_v6  ;;  %v2260_v6 = vld [vmem:[%s4230_s13 + $0x150] sm:$0xff] }
 0x280   : > { %3301 = vrcp.f32 %v1765_v53 }
 0x283   : > { %v3298_v54 = vpop.eup %3297 }
 0x284   : > { %v1777_v55 = vmul.f32 %v3298_v54, %v3282_v30  ;;  %v1747_v56 = vpop.xlane.xlu0 %1746 }
 0x285   : > { %v3300_v57 = vpop.eup %3299  ;;  %3303 = vrcp.f32 %v1747_v56 }
 0x286   : > { %v1780_v58 = vmul.f32 %v3300_v57, %v3286_v35  ;;  %v1756_v59 = vpop.xlane.xlu2 %1755  ;;  %3128 = vmatmul.msk.f32.vlgmr.msra.gmra.mxu3 %vm1469_vm2, %v1777_v55  ;;  %v3302_v60 = vpop.eup %3301 }
 0x287   : > { %3305 = vrcp.f32 %v1756_v59  ;;  %v1781_v62 = vmul.f32 %v3302_v60, %v3284_v33  ;;  %2061 = vmatpush.msra.mxu3 %v1969_v8  ;;  %v2274_v60 = vld [vmem:[%s4230_s13 + $0x1c0] sm:$0xff]  ;;  %v2261_v8 = vld [vmem:[%s4230_s13 + $0x158] sm:$0xff] }
 0x288   : > { %3131 = vmatmul.msk.f32.vlgmr.msrb.gmra.mxu2 %vm1469_vm2, %v1780_v58 }
 0x289   : > { %2130 = vmatpush.msrb.mxu2 %v1972_v9  ;;  %v2250_v9 = vld [vmem:[%s4230_s13 + $0x100] sm:$0xff] }
 0x28b   : > { %v3304_v61 = vpop.eup %3303 }
 0x28c   : > { %v1775_v63 = vmul.f32 %v3304_v61, %v3288_v39  ;;  %v1759_v0 = vpop.xlane.xlu0 %1758  ;;  %v2275_v61 = vld [vmem:[%s4230_s13 + $0x1c8] sm:$0xff] }
 0x28d   : > { %v3306_v1 = vpop.eup %3305  ;;  %3307 = vrcp.f32 %v1759_v0  ;;  %v2266_v0 = vld [vmem:[%s4230_s13 + $0x180] sm:$0xff] }
 0x28e   : > { %v1778_v2 = vmul.f32 %v3306_v1, %v3290_v40  ;;  %3126 = vmatmul.msk.f32.vlgmr.msra.gmra.mxu1 %vm1469_vm2, %v1775_v63  ;;  %3132 = vmatmul.msk.f32.vlgmr.msrb.gmra.mxu3 %vm1469_vm2, %v1781_v62  ;;  %3309 = vrcp.f32 %v3485_v49  ;;  %v2276_v62 = vld [vmem:[%s4230_s13 + $0x1d0] sm:$0xff]  ;;  %v2277_v63 = vld [vmem:[%s4230_s13 + $0x1d8] sm:$0xff]  ;;  %v2267_v1 = vld [vmem:[%s4230_s13 + $0x188] sm:$0xff] }
 0x28f   : > { %2015 = vmatpush.msra.mxu1 %v1967_v10  ;;  %2153 = vmatpush.msrb.mxu3 %v1973_v12  ;;  %v2251_v10 = vld [vmem:[%s4230_s13 + $0x108] sm:$0xff]  ;;  %v2253_v12 = vld [vmem:[%s4230_s13 + $0x118] sm:$0xff] }
 0x290   : > { %3129 = vmatmul.msk.f32.vlgmr.msrb.gmra.mxu0 %vm1469_vm2, %v1778_v2  ;;  %v2268_v2 = vld [vmem:[%s4230_s13 + $0x190] sm:$0xff] }
 0x291   : > { %2084 = vmatpush.msrb.mxu0 %v1970_v11  ;;  %v2252_v11 = vld [vmem:[%s4230_s13 + $0x110] sm:$0xff] }
 0x293   : > { %v3308_v3 = vpop.eup %3307 }
 0x294   : > { %v1779_v4 = vmul.f32 %v3308_v3, %v3292_v43  ;;  %v3271_v43 = vld [vmem:[%s4229_s26] ss:$0 sm:$0xff]  ;;  %v3310_v50 = vpop.eup %3309  ;;  %v2269_v3 = vld [vmem:[%s4230_s13 + $0x198] sm:$0xff] }
 0x295   : > { %v2185_v51 = vmul.f32 64.0, %v3310_v50  ;;  %vm2189_vm3 = vweird.f32 %v3310_v50 }
 0x296   : > { %3130 = vmatmul.msk.f32.vlgmr.msrb.gmra.mxu1 %vm1469_vm2, %v1779_v4  ;;  %v2258_v4 = vld [vmem:[%s4230_s13 + $0x140] sm:$0xff] }
 0x297   : > { %2107 = vmatpush.msrb.mxu1 %v1971_v14  ;;  %v2186_v52 = vsub.f32 1.0, %v2185_v51  ;;  %v2243_v14 = vld [vmem:[%s4230_s13 + $0xc8] sm:$0xff] }
 0x298   : > { %v2239_v51 = vld [vmem:[%s4230_s13 + $0xa8] sm:$0xff] }
 0x299   : > { %v2187_v53 = vmul.f32 %v3310_v50, %v2186_v52 }
 0x29b   : > { %v2188_v54 = vadd.f32 %v3310_v50, %v2187_v53  ;;  %v2240_v53 = vld [vmem:[%s4230_s13 + $0xb0] sm:$0xff] }
 0x29d   : > { %v3951_v55 = vsel %vm2189_vm3, %v3310_v50, %v2188_v54  ;;  %v2238_v50 = vld [vmem:[%s4230_s13 + $0xa0] sm:$0xff]  ;;  %v2241_v54 = vld [vmem:[%s4230_s13 + $0xb8] sm:$0xff] }
 0x2ee   : > { %v1802_v13 = vpop.f32.mrf.mxu0 }
 0x2ef   : > { %3133 = vmatmul.msk.f32.vlgmr.msra.gmra.mxu0 %vm1469_vm2, %v1802_v13  ;;  %v2242_v13 = vld [vmem:[%s4230_s13 + $0xc0] sm:$0xff] }
 0x2f0   : > { %2311 = vmatpush.msra.mxu0 %v2274_v60  ;;  %v2233_v60 = vld [vmem:[%s4230_s13 + $0x78] sm:$0xff] }
 0x2f2   : > { %2312 = vmatpush.msra.mxu0 %v2266_v0  ;;  %v2225_v0 = vld [vmem:[%s4230_s13 + $0x38] sm:$0xff] }
 0x2f4   : > { %2313 = vmatpush.msra.mxu0 %v2258_v4 }
 0x2f6   : > { %2314 = vmatpush.msra.mxu0 %v2250_v9 }
 0x2f8   : > { %2315 = vmatpush.msra.mxu0 %v2242_v13 }
 0x301   : > { %v1848_v15 = vpop.f32.mrf.mxu2 }
 0x302   : > { %3135 = vmatmul.msk.f32.vlgmr.msra.gmra.mxu2 %vm1469_vm2, %v1848_v15  ;;  %v2244_v15 = vld [vmem:[%s4230_s13 + $0xd0] sm:$0xff] }
 0x303   : > { %2351 = vmatpush.msra.mxu2 %v2276_v62  ;;  %v2223_v62 = vld [vmem:[%s4230_s13 + $0x28] sm:$0xff] }
 0x305   : > { %2352 = vmatpush.msra.mxu2 %v2268_v2 }
 0x307   : > { %2353 = vmatpush.msra.mxu2 %v2260_v6 }
 0x309   : > { %v1871_v16 = vpop.f32.mrf.mxu3  ;;  %2354 = vmatpush.msra.mxu2 %v2252_v11 }
 0x30a   : > { %3136 = vmatmul.msk.f32.vlgmr.msra.gmra.mxu3 %vm1469_vm2, %v1871_v16  ;;  %v2245_v16 = vld [vmem:[%s4230_s13 + $0xd8] sm:$0xff] }
 0x30b   : > { %v1940_v17 = vpop.f32.mrf.mxu2  ;;  %v1825_v18 = vpop.f32.mrf.mxu1  ;;  %2371 = vmatpush.msra.mxu3 %v2277_v63  ;;  %2355 = vmatpush.msra.mxu2 %v2244_v15  ;;  %v2224_v63 = vld [vmem:[%s4230_s13 + $0x30] sm:$0xff]  ;;  %v2528_v15 = vld [vmem:[%s3741_s28 + $0x1c8] sm:$0xff] }
 0x30c   : > { %3139 = vmatmul.msk.f32.vlgmr.msrb.gmra.mxu2 %vm1469_vm2, %v1940_v17  ;;  %3134 = vmatmul.msk.f32.vlgmr.msra.gmra.mxu1 %vm1469_vm2, %v1825_v18  ;;  %v2234_v17 = vld [vmem:[%s4230_s13 + $0x80] sm:$0xff]  ;;  %v2235_v18 = vld [vmem:[%s4230_s13 + $0x88] sm:$0xff] }
 0x30d   : > { %v1894_v19 = vpop.f32.mrf.mxu0  ;;  %2331 = vmatpush.msra.mxu1 %v2275_v61  ;;  %2372 = vmatpush.msra.mxu3 %v2269_v3  ;;  %v2222_v61 = vld [vmem:[%s4230_s13 + $0x20] sm:$0xff] }
 0x30e   : > { %3137 = vmatmul.msk.f32.vlgmr.msrb.gmra.mxu0 %vm1469_vm2, %v1894_v19  ;;  %v2236_v19 = vld [vmem:[%s4230_s13 + $0x90] sm:$0xff] }
 0x30f   : > { %2332 = vmatpush.msra.mxu1 %v2267_v1  ;;  %2373 = vmatpush.msra.mxu3 %v2261_v8  ;;  %v3272_v8 = vld [vmem:[%s3734_s29] ss:$0 sm:$0xff] }
 0x310   : > { %2316 = vmatpush.msra.mxu0 %v2234_v17  ;;  %2356 = vmatpush.msra.mxu2 %v2236_v19  ;;  %v2530_v17 = vld [vmem:[%s3741_s28 + $0x1d8] sm:$0xff]  ;;  %v2521_v19 = vld [vmem:[%s3741_s28 + $0x190] sm:$0xff] }
 0x311   : > { %v1963_v20 = vpop.f32.mrf.mxu3  ;;  %2333 = vmatpush.msra.mxu1 %v2259_v5  ;;  %2374 = vmatpush.msra.mxu3 %v2253_v12 }
 0x312   : > { %3140 = vmatmul.msk.f32.vlgmr.msrb.gmra.mxu3 %vm1469_vm2, %v1963_v20  ;;  %v2237_v20 = vld [vmem:[%s4230_s13 + $0x98] sm:$0xff] }
 0x313   : > { %v1917_v21 = vpop.f32.mrf.mxu1  ;;  %2334 = vmatpush.msra.mxu1 %v2251_v10  ;;  %2375 = vmatpush.msra.mxu3 %v2245_v16  ;;  %v3273_v10 = vld [vmem:[%s3739_s0] ss:$0 sm:$0xff] }
 0x314   : > { %3138 = vmatmul.msk.f32.vlgmr.msrb.gmra.mxu1 %vm1469_vm2, %v1917_v21  ;;  %v2226_v21 = vld [vmem:[%s4230_s13 + $0x40] sm:$0xff] }
 0x315   : > { %2335 = vmatpush.msra.mxu1 %v2243_v14  ;;  %2376 = vmatpush.msra.mxu3 %v2237_v20  ;;  %v2527_v14 = vld [vmem:[%s3741_s28 + $0x1c0] sm:$0xff]  ;;  %v2529_v16 = vld [vmem:[%s3741_s28 + $0x1d0] sm:$0xff]  ;;  %v2522_v20 = vld [vmem:[%s3741_s28 + $0x198] sm:$0xff] }
 0x316   : > { %2317 = vmatpush.msra.mxu0 %v2226_v21  ;;  %v2511_v21 = vld [vmem:[%s3741_s28 + $0x140] sm:$0xff] }
 0x317   : > { %2336 = vmatpush.msra.mxu1 %v2235_v18  ;;  %v2520_v18 = vld [vmem:[%s3741_s28 + $0x188] sm:$0xff] }
 0x36c   : > { %v1994_v22 = vpop.f32.mrf.mxu0 }
 0x36d   : > { %v2158_v25 = vsel %vm745_vm1, %v1994_v22, 0.0  ;;  %v2227_v22 = vld [vmem:[%s4230_s13 + $0x48] sm:$0xff] }
 0x36e   : > { %2337 = vmatpush.msra.mxu1 %v2227_v22  ;;  %v2512_v22 = vld [vmem:[%s3741_s28 + $0x148] sm:$0xff] }
 0x385   : > { %v2040_v23 = vpop.f32.mrf.mxu2 }
 0x386   : > { %v2161_v28 = vsel %vm745_vm1, %v2040_v23, 0.0  ;;  %v2228_v23 = vld [vmem:[%s4230_s13 + $0x50] sm:$0xff] }
 0x387   : > { %2357 = vmatpush.msra.mxu2 %v2228_v23  ;;  %v2513_v23 = vld [vmem:[%s3741_s28 + $0x150] sm:$0xff] }
 0x389   : > { %v2017_v24 = vpop.f32.mrf.mxu1 }
 0x38a   : > { %v2159_v26 = vsel %vm745_vm1, %v2017_v24, 0.0  ;;  %v2229_v24 = vld [vmem:[%s4230_s13 + $0x58] sm:$0xff] }
 0x38b   : > { %v2160_v27 = vadd.f32 %v2159_v26, %v2158_v25  ;;  %v2086_v29 = vpop.f32.mrf.mxu0  ;;  %2377 = vmatpush.msra.mxu3 %v2229_v24  ;;  %v2218_v25 = vld [vmem:[%s4230_s13] sm:$0xff]  ;;  %v2219_v26 = vld [vmem:[%s4230_s13 + $0x8] sm:$0xff] }
 0x38c   : > { %v2165_v34 = vsel %vm745_vm1, %v2086_v29, 0.0  ;;  %2318 = vmatpush.msra.mxu0 %v2218_v25  ;;  %2338 = vmatpush.msra.mxu1 %v2219_v26  ;;  %v2278_v29 = vld [vmem:[%s4230_s13 + $0x1e0] sm:$0xff]  ;;  %v2514_v24 = vld [vmem:[%s3741_s28 + $0x158] sm:$0xff]  ;;  %v2503_v25 = vld [vmem:[%s3741_s28 + $0x100] sm:$0xff] }
 0x38d   : > { %v2063_v30 = vpop.f32.mrf.mxu3  ;;  %v2162_v31 = vadd.f32 %v2161_v28, %v2160_v27  ;;  %v2220_v27 = vld [vmem:[%s4230_s13 + $0x10] sm:$0xff]  ;;  %v2221_v28 = vld [vmem:[%s4230_s13 + $0x18] sm:$0xff] }
 0x38e   : > { %v2163_v32 = vsel %vm745_vm1, %v2063_v30, 0.0  ;;  %v2279_v30 = vld [vmem:[%s4230_s13 + $0x1e8] sm:$0xff]  ;;  %2358 = vmatpush.msra.mxu2 %v2220_v27  ;;  %2378 = vmatpush.msra.mxu3 %v2221_v28  ;;  %v2504_v26 = vld [vmem:[%s3741_s28 + $0x108] sm:$0xff]  ;;  %v2505_v27 = vld [vmem:[%s3741_s28 + $0x110] sm:$0xff] }
 0x38f   : > { %v2164_v33 = vadd.f32 %v2163_v32, %v2162_v31  ;;  %v2132_v35 = vpop.f32.mrf.mxu2  ;;  %v2280_v31 = vld [vmem:[%s4230_s13 + $0x1f0] sm:$0xff]  ;;  %v2281_v32 = vld [vmem:[%s4230_s13 + $0x1f8] sm:$0xff]  ;;  %2391 = vmatpush.msrb.mxu0 %v2278_v29  ;;  %2411 = vmatpush.msrb.mxu1 %v2279_v30  ;;  %v2506_v28 = vld [vmem:[%s3741_s28 + $0x118] sm:$0xff] }
 0x390   : > { %v2169_v40 = vsel %vm745_vm1, %v2132_v35, 0.0  ;;  %v2272_v35 = vld [vmem:[%s4230_s13 + $0x1b0] sm:$0xff]  ;;  %2431 = vmatpush.msrb.mxu2 %v2280_v31  ;;  %2451 = vmatpush.msrb.mxu3 %v2281_v32  ;;  %v2496_v30 = vld [vmem:[%s3741_s28 + $0xc8] sm:$0xff]  ;;  %v2497_v31 = vld [vmem:[%s3741_s28 + $0xd0] sm:$0xff] }
 0x391   : > { %v2109_v36 = vpop.f32.mrf.mxu1  ;;  %v2166_v37 = vadd.f32 %v2165_v34, %v2164_v33  ;;  %v2270_v33 = vld [vmem:[%s4230_s13 + $0x1a0] sm:$0xff]  ;;  %v2271_v34 = vld [vmem:[%s4230_s13 + $0x1a8] sm:$0xff]  ;;  %v2495_v29 = vld [vmem:[%s3741_s28 + $0xc0] sm:$0xff] }
 0x392   : > { %v2167_v38 = vsel %vm745_vm1, %v2109_v36, 0.0  ;;  %v2273_v36 = vld [vmem:[%s4230_s13 + $0x1b8] sm:$0xff]  ;;  %2392 = vmatpush.msrb.mxu0 %v2270_v33  ;;  %2412 = vmatpush.msrb.mxu1 %v2271_v34  ;;  %v2498_v32 = vld [vmem:[%s3741_s28 + $0xd8] sm:$0xff]  ;;  %v2487_v33 = vld [vmem:[%s3741_s28 + $0x80] sm:$0xff] }
 0x393   : > { %v2168_v39 = vadd.f32 %v2167_v38, %v2166_v37  ;;  %v2262_v37 = vld [vmem:[%s4230_s13 + $0x160] sm:$0xff]  ;;  %v2263_v38 = vld [vmem:[%s4230_s13 + $0x168] sm:$0xff]  ;;  %2432 = vmatpush.msrb.mxu2 %v2272_v35  ;;  %2452 = vmatpush.msrb.mxu3 %v2273_v36  ;;  %v2488_v34 = vld [vmem:[%s3741_s28 + $0x88] sm:$0xff] }
 0x394   : > { %2393 = vmatpush.msrb.mxu0 %v2262_v37  ;;  %2413 = vmatpush.msrb.mxu1 %v2263_v38  ;;  %v2489_v35 = vld [vmem:[%s3741_s28 + $0x90] sm:$0xff]  ;;  %v2490_v36 = vld [vmem:[%s3741_s28 + $0x98] sm:$0xff]  ;;  %v2479_v37 = vld [vmem:[%s3741_s28 + $0x40] sm:$0xff] }
 0x395   : > { %v2155_v41 = vpop.f32.mrf.mxu3  ;;  %v2170_v42 = vadd.f32 %v2169_v40, %v2168_v39  ;;  %v2264_v39 = vld [vmem:[%s4230_s13 + $0x170] sm:$0xff]  ;;  %v2265_v40 = vld [vmem:[%s4230_s13 + $0x178] sm:$0xff] }
 0x396   : > { %v2171_v44 = vsel %vm745_vm1, %v2155_v41, 0.0  ;;  %v2254_v41 = vld [vmem:[%s4230_s13 + $0x120] sm:$0xff]  ;;  %2433 = vmatpush.msrb.mxu2 %v2264_v39  ;;  %2453 = vmatpush.msrb.mxu3 %v2265_v40  ;;  %v2480_v38 = vld [vmem:[%s3741_s28 + $0x48] sm:$0xff]  ;;  %v2482_v40 = vld [vmem:[%s3741_s28 + $0x58] sm:$0xff] }
 0x397   : > { %v2172_v45 = vadd.f32 %v2171_v44, %v2170_v42  ;;  %v2255_v42 = vld [vmem:[%s4230_s13 + $0x128] sm:$0xff]  ;;  %v2257_v44 = vld [vmem:[%s4230_s13 + $0x138] sm:$0xff]  ;;  %2394 = vmatpush.msrb.mxu0 %v2254_v41  ;;  %v2481_v39 = vld [vmem:[%s3741_s28 + $0x50] sm:$0xff] }
 0x398   : > { %2414 = vmatpush.msrb.mxu1 %v2255_v42  ;;  %2454 = vmatpush.msrb.mxu3 %v2257_v44  ;;  %v2471_v41 = vld [vmem:[%s3741_s28] sm:$0xff]  ;;  %v2472_v42 = vld [vmem:[%s3741_s28 + $0x8] sm:$0xff] }
 0x399   : > { %v2177_v46 = vadd.f32 %v3271_v43, %v2172_v45  ;;  %v2256_v43 = vld [vmem:[%s4230_s13 + $0x130] sm:$0xff]  ;;  %v2246_v45 = vld [vmem:[%s4230_s13 + $0xe0] sm:$0xff]  ;;  %v2532_v44 = vld [vmem:[%s3741_s28 + $0x1e8] sm:$0xff] }
 0x39a   : > { %2434 = vmatpush.msrb.mxu2 %v2256_v43  ;;  %2395 = vmatpush.msrb.mxu0 %v2246_v45  ;;  %v2531_v43 = vld [vmem:[%s3741_s28 + $0x1e0] sm:$0xff]  ;;  %v2473_v45 = vld [vmem:[%s3741_s28 + $0x10] sm:$0xff] }
 0x39b   : > { %v2178_v47 = vadd.f32 %v2177_v46, %v3759_v7  ;;  %v2247_v46 = vld [vmem:[%s4230_s13 + $0xe8] sm:$0xff] }
 0x39c   : > { %2415 = vmatpush.msrb.mxu1 %v2247_v46  ;;  %2396 = vmatpush.msrb.mxu0 %v2238_v50  ;;  %v2474_v46 = vld [vmem:[%s3741_s28 + $0x18] sm:$0xff]  ;;  %v2524_v50 = vld [vmem:[%s3741_s28 + $0x1a8] sm:$0xff] }
 0x39d   : > { %v2181_v48 = vsel %vm745_vm1, %v2178_v47, 0.0 }
 0x39e   : > { %2182 = vadd.xlane.f32.xlu1 %v2181_v48  ;;  %v2249_v48 = vld [vmem:[%s4230_s13 + $0xf8] sm:$0xff]  ;;  %2416 = vmatpush.msrb.mxu1 %v2239_v51  ;;  %v2525_v51 = vld [vmem:[%s3741_s28 + $0x1b0] sm:$0xff] }
 0x39f   : > { %2455 = vmatpush.msrb.mxu3 %v2249_v48  ;;  %v2534_v48 = vld [vmem:[%s3741_s28 + $0x1f8] sm:$0xff] }
 0x3a1   : > { %2456 = vmatpush.msrb.mxu3 %v2241_v54  ;;  %v2516_v54 = vld [vmem:[%s3741_s28 + $0x168] sm:$0xff] }
 0x3a3   : > { %2457 = vmatpush.msrb.mxu3 %v2233_v60  ;;  %v2499_v60 = vld [vmem:[%s3741_s28 + $0xe0] sm:$0xff] }
 0x3a5   : > { %2458 = vmatpush.msrb.mxu3 %v2225_v0  ;;  %v2491_v0 = vld [vmem:[%s3741_s28 + $0xa0] sm:$0xff] }
 0x411   : > { %v2183_v7 = vpop.xlane.xlu1 %2182 }
 0x412   : > { %v2191_v56 = vmul.f32 %v3951_v55, %v2183_v7  ;;  %v2230_v7 = vld [vmem:[%s4230_s13 + $0x60] sm:$0xff] }
 0x413   : > { %2397 = vmatpush.msrb.mxu0 %v2230_v7  ;;  %v2517_v7 = vld [vmem:[%s3741_s28 + $0x170] sm:$0xff] }
 0x414   : > { %v3954_v57 = vsub.f32 %v2178_v47, %v2191_v56  ;;  %v2248_v47 = vld [vmem:[%s4230_s13 + $0xf0] sm:$0xff]  ;;  %v2231_v56 = vld [vmem:[%s4230_s13 + $0x68] sm:$0xff] }
 0x415   : > { %2435 = vmatpush.msrb.mxu2 %v2248_v47  ;;  %2417 = vmatpush.msrb.mxu1 %v2231_v56  ;;  %v2533_v47 = vld [vmem:[%s3741_s28 + $0x1f0] sm:$0xff]  ;;  %v2518_v56 = vld [vmem:[%s3741_s28 + $0x178] sm:$0xff] }
 0x416   : > { %v2193_v58 = vmul.f32 %v3954_v57, %v3954_v57  ;;  %2398 = vmatpush.msrb.mxu0 %v2222_v61  ;;  %v2500_v61 = vld [vmem:[%s3741_s28 + $0xe8] sm:$0xff] }
 0x417   : > { %2436 = vmatpush.msrb.mxu2 %v2240_v53  ;;  %2418 = vmatpush.msrb.mxu1 %v2223_v62  ;;  %v2515_v53 = vld [vmem:[%s3741_s28 + $0x160] sm:$0xff]  ;;  %v2509_v62 = vld [vmem:[%s3741_s28 + $0x130] sm:$0xff] }
 0x418   : > { %v2194_v59 = vsel %vm745_vm1, %v2193_v58, 0.0 }
 0x419   : > { %2195 = vadd.xlane.f32.xlu2 %v2194_v59  ;;  %v2232_v59 = vld [vmem:[%s4230_s13 + $0x70] sm:$0xff] }
 0x41a   : > { %2437 = vmatpush.msrb.mxu2 %v2232_v59  ;;  %v2508_v59 = vld [vmem:[%s3741_s28 + $0x128] sm:$0xff] }
 0x41c   : > { %2438 = vmatpush.msrb.mxu2 %v2224_v63  ;;  %v2510_v63 = vld [vmem:[%s3741_s28 + $0x138] sm:$0xff] }
 0x48c   : > { %v2196_v49 = vpop.xlane.xlu2 %2195 }
 0x48d   : > { %v2197_v52 = vmul.f32 %v2196_v49, %v3951_v55  ;;  %v2523_v49 = vld [vmem:[%s3741_s28 + $0x1a0] sm:$0xff] }
 0x48f   : > { %v2198_v58 = vadd.f32 1e-05, %v2197_v52  ;;  %v2526_v52 = vld [vmem:[%s3741_s28 + $0x1b8] sm:$0xff] }
 0x491   : > { %3311 = vrsqrt.f32 %v2198_v58  ;;  %vm2205_vm5 = vweird.f32 %v2198_v58 }
 0x497   : > { %v3312_v1 = vpop.eup %3311 }
 0x498   : > { %v2200_v2 = vmul.f32 %v3312_v1, %v2198_v58  ;;  %vm2206_vm4 = vweird.f32 %v3312_v1  ;;  %v2507_v58 = vld [vmem:[%s3741_s28 + $0x120] sm:$0xff] }
 0x499   : > { %vm2207_vm6 = vmor %vm2205_vm5, %vm2206_vm4 }
 0x49a   : > { %v2201_v3 = vmul.f32 %v3312_v1, %v2200_v2  ;;  %v2501_v2 = vld [vmem:[%s3741_s28 + $0xf0] sm:$0xff] }
 0x49c   : > { %v2202_v4 = vmul.f32 0.5, %v2201_v3  ;;  %v2502_v3 = vld [vmem:[%s3741_s28 + $0xf8] sm:$0xff] }
 0x49e   : > { %v2203_v5 = vsub.f32 1.5, %v2202_v4  ;;  %v2483_v4 = vld [vmem:[%s3741_s28 + $0x60] sm:$0xff] }
 0x4a0   : > { %v2204_v6 = vmul.f32 %v3312_v1, %v2203_v5  ;;  %v2484_v5 = vld [vmem:[%s3741_s28 + $0x68] sm:$0xff] }
 0x4a2   : > { %v2208_v9 = vsel %vm2207_vm6, %v3312_v1, %v2204_v6  ;;  %v2492_v1 = vld [vmem:[%s3741_s28 + $0xa8] sm:$0xff]  ;;  %v2493_v6 = vld [vmem:[%s3741_s28 + $0xb0] sm:$0xff] }
 0x4a3   : > { %v2209_v11 = vmul.f32 %v2208_v9, %v3954_v57  ;;  %v2519_v57 = vld [vmem:[%s3741_s28 + $0x180] sm:$0xff] }
 0x4a4   : > { %v2475_v9 = vld [vmem:[%s3741_s28 + $0x20] sm:$0xff] }
 0x4a5   : > { %v2213_v12 = vmul.f32 %v3272_v8, %v2209_v11  ;;  %v2494_v8 = vld [vmem:[%s3741_s28 + $0xb8] sm:$0xff]  ;;  %v2485_v11 = vld [vmem:[%s3741_s28 + $0x70] sm:$0xff] }
 0x4a7   : > { %v4027_v13 = vadd.f32 %v3273_v10, %v2213_v12  ;;  %v2476_v10 = vld [vmem:[%s3741_s28 + $0x28] sm:$0xff]  ;;  %v2486_v12 = vld [vmem:[%s3741_s28 + $0x78] sm:$0xff] }
 0x4a9   : > { %3141 = vmatmul.msk.f32.vlgmr.msra.gmra.mxu0 %vm745_vm1, %v4027_v13  ;;  %3142 = vmatmul.msk.f32.vlgmr.msra.gmra.mxu1 %vm745_vm1, %v4027_v13 }
 0x4aa   : > { %3143 = vmatmul.msk.f32.vlgmr.msra.gmra.mxu2 %vm745_vm1, %v4027_v13  ;;  %3144 = vmatmul.msk.f32.vlgmr.msra.gmra.mxu3 %vm745_vm1, %v4027_v13 }
 0x4ab   : > { %2547 = vmatpush.xpose.msra.mxu0 %v2527_v14  ;;  %2567 = vmatpush.xpose.msra.mxu1 %v2528_v15  ;;  %v2477_v14 = vld [vmem:[%s3741_s28 + $0x30] sm:$0xff]  ;;  %v2478_v15 = vld [vmem:[%s3741_s28 + $0x38] sm:$0xff] }
 0x4ac   : > { %2587 = vmatpush.xpose.msra.mxu2 %v2529_v16  ;;  %2607 = vmatpush.xpose.msra.mxu3 %v2530_v17  ;;  %v2282_v16 = vld [vmem:[%s3720_s14] sm:$0xff] }
 0x4ad   : > { %v2284_v17 = vperm.slane %v2282_v16, 0 }
 0x4af   : > { %2548 = vmatpush.xpose.msra.mxu0 %v2519_v57  ;;  %2568 = vmatpush.xpose.msra.mxu1 %v2520_v18  ;;  %v2285_v57 = vperm.slane %v2282_v16, 1 }
 0x4b0   : > { %2588 = vmatpush.xpose.msra.mxu2 %v2521_v19  ;;  %2608 = vmatpush.xpose.msra.mxu3 %v2522_v20 }
 0x4b1   : > { %3145 = vmatmul.msk.f32.vlgmr.msrb.gmra.mxu0 %vm745_vm1, %v4027_v13  ;;  %3146 = vmatmul.msk.f32.vlgmr.msrb.gmra.mxu1 %vm745_vm1, %v4027_v13 }
 0x4b2   : > { %3147 = vmatmul.msk.f32.vlgmr.msrb.gmra.mxu2 %vm745_vm1, %v4027_v13  ;;  %3148 = vmatmul.msk.f32.vlgmr.msrb.gmra.mxu3 %vm745_vm1, %v4027_v13 }
 0x4b3   : > { %2549 = vmatpush.xpose.msra.mxu0 %v2511_v21  ;;  %2569 = vmatpush.xpose.msra.mxu1 %v2512_v22 }
 0x4b4   : > { %2589 = vmatpush.xpose.msra.mxu2 %v2513_v23  ;;  %2609 = vmatpush.xpose.msra.mxu3 %v2514_v24  ;;  %v2286_v24 = vperm.slane %v2282_v16, 2 }
 0x4b7   : > { %2550 = vmatpush.xpose.msra.mxu0 %v2503_v25  ;;  %2570 = vmatpush.xpose.msra.mxu1 %v2504_v26  ;;  %v2287_v25 = vperm.slane %v2282_v16, 3  ;;  %v2288_v26 = vperm.slane %v2282_v16, 4 }
 0x4b8   : > { %2590 = vmatpush.xpose.msra.mxu2 %v2505_v27  ;;  %2610 = vmatpush.xpose.msra.mxu3 %v2506_v28  ;;  %v2289_v27 = vperm.slane %v2282_v16, 5 }
 0x4bb   : > { %2551 = vmatpush.xpose.msra.mxu0 %v2495_v29  ;;  %2571 = vmatpush.xpose.msra.mxu1 %v2496_v30 }
 0x4bc   : > { %2591 = vmatpush.xpose.msra.mxu2 %v2497_v31  ;;  %2611 = vmatpush.xpose.msra.mxu3 %v2498_v32 }
 0x4bf   : > { %2552 = vmatpush.xpose.msra.mxu0 %v2487_v33  ;;  %2572 = vmatpush.xpose.msra.mxu1 %v2488_v34 }
 0x4c0   : > { %2592 = vmatpush.xpose.msra.mxu2 %v2489_v35  ;;  %2612 = vmatpush.xpose.msra.mxu3 %v2490_v36 }
 0x4c3   : > { %2553 = vmatpush.xpose.msra.mxu0 %v2479_v37  ;;  %2573 = vmatpush.xpose.msra.mxu1 %v2480_v38 }
 0x4c4   : > { %2593 = vmatpush.xpose.msra.mxu2 %v2481_v39  ;;  %2613 = vmatpush.xpose.msra.mxu3 %v2482_v40  ;;  %v2290_v40 = vperm.slane %v2282_v16, 6 }
 0x4c7   : > { %2554 = vmatpush.xpose.msra.mxu0 %v2471_v41  ;;  %2574 = vmatpush.xpose.msra.mxu1 %v2472_v42  ;;  %v2291_v41 = vperm.slane %v2282_v16, 7 }
 0x4c8   : > { %2594 = vmatpush.xpose.msra.mxu2 %v2473_v45  ;;  %2614 = vmatpush.xpose.msra.mxu3 %v2474_v46 }
 0x4cb   : > { %2627 = vmatpush.xpose.msrb.mxu0 %v2531_v43  ;;  %2647 = vmatpush.xpose.msrb.mxu1 %v2532_v44 }
 0x4cc   : > { %2667 = vmatpush.xpose.msrb.mxu2 %v2533_v47  ;;  %2687 = vmatpush.xpose.msrb.mxu3 %v2534_v48  ;;  %v3274_v48 = vld [vmem:[%s718_s25] ss:$0 sm:$0xff]  ;;  %s4233_s25 = sld [smem:[#allocation31_spill]] (!%p3151_p3) }
 0x4cf   : > { %2628 = vmatpush.xpose.msrb.mxu0 %v2523_v49  ;;  %2648 = vmatpush.xpose.msrb.mxu1 %v2524_v50 }
 0x4d0   : > { %2668 = vmatpush.xpose.msrb.mxu2 %v2525_v51  ;;  %2688 = vmatpush.xpose.msrb.mxu3 %v2526_v52 }
 0x4d3   : > { %2629 = vmatpush.xpose.msrb.mxu0 %v2515_v53  ;;  %2649 = vmatpush.xpose.msrb.mxu1 %v2516_v54 }
 0x4d4   : > { %2669 = vmatpush.xpose.msrb.mxu2 %v2517_v7  ;;  %2689 = vmatpush.xpose.msrb.mxu3 %v2518_v56 }
 0x4d7   : > { %2630 = vmatpush.xpose.msrb.mxu0 %v2507_v58  ;;  %2650 = vmatpush.xpose.msrb.mxu1 %v2508_v59 }
 0x4d8   : > { %2670 = vmatpush.xpose.msrb.mxu2 %v2509_v62  ;;  %2690 = vmatpush.xpose.msrb.mxu3 %v2510_v63 }
 0x4db   : > { %2631 = vmatpush.xpose.msrb.mxu0 %v2499_v60  ;;  %2651 = vmatpush.xpose.msrb.mxu1 %v2500_v61 }
 0x4dc   : > { %2671 = vmatpush.xpose.msrb.mxu2 %v2501_v2  ;;  %2691 = vmatpush.xpose.msrb.mxu3 %v2502_v3 }
 0x4df   : > { %2632 = vmatpush.xpose.msrb.mxu0 %v2491_v0  ;;  %2652 = vmatpush.xpose.msrb.mxu1 %v2492_v1 }
 0x4e0   : > { %2672 = vmatpush.xpose.msrb.mxu2 %v2493_v6  ;;  %2692 = vmatpush.xpose.msrb.mxu3 %v2494_v8 }
 0x4e3   : > { %2633 = vmatpush.xpose.msrb.mxu0 %v2483_v4  ;;  %2653 = vmatpush.xpose.msrb.mxu1 %v2484_v5 }
 0x4e4   : > { %2673 = vmatpush.xpose.msrb.mxu2 %v2485_v11  ;;  %2693 = vmatpush.xpose.msrb.mxu3 %v2486_v12 }
 0x4e7   : > { %2634 = vmatpush.xpose.msrb.mxu0 %v2475_v9  ;;  %2654 = vmatpush.xpose.msrb.mxu1 %v2476_v10 }
 0x4e8   : > { %2674 = vmatpush.xpose.msrb.mxu2 %v2477_v14  ;;  %2694 = vmatpush.xpose.msrb.mxu3 %v2478_v15 }
 0x526   : > { %v2320_v18 = vpop.f32.mrf.mxu0  ;;  %v2340_v19 = vpop.f32.mrf.mxu1 }
 0x527   : > { %v2321_v20 = vadd.f32 %v2320_v18, %v2284_v17  ;;  %v2341_v21 = vadd.f32 %v2340_v19, %v2285_v57  ;;  %v3275_v18 = vld [vmem:[%s3734_s29 + $0x1] ss:$0 sm:$0xff] }
 0x529   : > { %v2463_v22 = vmax.f32 %v2321_v20, 0.0  ;;  %v2464_v23 = vmax.f32 %v2341_v21, 0.0  ;;  %v3276_v20 = vld [vmem:[%s3739_s0 + $0x1] ss:$0 sm:$0xff] }
 0x52b   : > { %2555 = vmatmul.f32.vlgmr.msra.gmra.mxu0 %v2463_v22  ;;  %2575 = vmatmul.f32.vlgmr.msra.gmra.mxu1 %v2464_v23 }
 0x52d   : > { %v2360_v28 = vpop.f32.mrf.mxu2  ;;  %v2380_v29 = vpop.f32.mrf.mxu3 }
 0x52e   : > { %v2361_v30 = vadd.f32 %v2360_v28, %v2286_v24  ;;  %v2381_v31 = vadd.f32 %v2380_v29, %v2287_v25  ;;  %v2400_v32 = vpop.f32.mrf.mxu0  ;;  %v2420_v33 = vpop.f32.mrf.mxu1 }
 0x52f   : > { %v2401_v34 = vadd.f32 %v2400_v32, %v2288_v26  ;;  %v2421_v35 = vadd.f32 %v2420_v33, %v2289_v27 }
 0x530   : > { %v2465_v36 = vmax.f32 %v2361_v30, 0.0  ;;  %v2466_v37 = vmax.f32 %v2381_v31, 0.0 }
 0x531   : > { %v2467_v38 = vmax.f32 %v2401_v34, 0.0  ;;  %v2468_v39 = vmax.f32 %v2421_v35, 0.0 }
 0x532   : > { %2595 = vmatmul.f32.vlgmr.msra.gmra.mxu2 %v2465_v36  ;;  %2615 = vmatmul.f32.vlgmr.msra.gmra.mxu3 %v2466_v37 }
 0x533   : > { %2635 = vmatmul.f32.vlgmr.msrb.gmra.mxu0 %v2467_v38  ;;  %2655 = vmatmul.f32.vlgmr.msrb.gmra.mxu1 %v2468_v39 }
 0x535   : > { %v2440_v42 = vpop.f32.mrf.mxu2  ;;  %v2460_v43 = vpop.f32.mrf.mxu3 }
 0x536   : > { %v2441_v44 = vadd.f32 %v2440_v42, %v2290_v40  ;;  %v2461_v45 = vadd.f32 %v2460_v43, %v2291_v41 }
 0x538   : > { %v2469_v46 = vmax.f32 %v2441_v44, 0.0  ;;  %v2470_v47 = vmax.f32 %v2461_v45, 0.0 }
 0x53a   : > { %2675 = vmatmul.f32.vlgmr.msrb.gmra.mxu2 %v2469_v46  ;;  %2695 = vmatmul.f32.vlgmr.msrb.gmra.mxu3 %v2470_v47 }
 0x5a8   : > { %v2556_v49 = vpop.f32.mrf.mxu0  ;;  %v2576_v51 = vpop.f32.mrf.mxu1 }
 0x5a9   : > { %v2557_v50 = vadd.f32 %v3274_v48, %v2556_v49 }
 0x5ab   : > { %v2577_v52 = vadd.f32 %v2576_v51, %v2557_v50 }
 0x5b0   : > { %v2636_v58 = vpop.f32.mrf.mxu0  ;;  %v2656_v60 = vpop.f32.mrf.mxu1 }
 0x5b5   : > { %v2596_v53 = vpop.f32.mrf.mxu2  ;;  %v2616_v54 = vpop.f32.mrf.mxu3 }
 0x5b6   : > { %v2597_v7 = vadd.f32 %v2596_v53, %v2577_v52 }
 0x5b8   : > { %v2617_v56 = vadd.f32 %v2616_v54, %v2597_v7 }
 0x5ba   : > { %v2637_v59 = vadd.f32 %v2636_v58, %v2617_v56 }
 0x5bc   : > { %v2657_v61 = vadd.f32 %v2656_v60, %v2637_v59 }
 0x5bd   : > { %v2676_v62 = vpop.f32.mrf.mxu2  ;;  %v2696_v0 = vpop.f32.mrf.mxu3 }
 0x5be   : > { %v2677_v63 = vadd.f32 %v2676_v62, %v2657_v61 }
 0x5c0   : > { %v2697_v1 = vadd.f32 %v2696_v0, %v2677_v63 }
 0x5c2   : > { %v2699_v2 = vadd.f32 %v2697_v1, %v4027_v13 }
 0x5c4   : > { %v2704_v3 = vsel %vm745_vm1, %v2699_v2, 0.0 }
 0x5c5   : > { %2705 = vadd.xlane.f32.xlu0 %v2704_v3 }
 0x638   : > { %v2706_v4 = vpop.xlane.xlu0 %2705 }
 0x639   : > { %v2707_v5 = vmul.f32 %v2706_v4, %v3951_v55 }
 0x63b   : > { %v2708_v6 = vsub.f32 %v2699_v2, %v2707_v5 }
 0x63d   : > { %v2709_v8 = vmul.f32 %v2708_v6, %v2708_v6 }
 0x63f   : > { %v2710_v9 = vsel %vm745_vm1, %v2709_v8, 0.0 }
 0x640   : > { %2711 = vadd.xlane.f32.xlu1 %v2710_v9 }
 0x6b3   : > { %v2712_v10 = vpop.xlane.xlu1 %2711 }
 0x6b4   : > { %v2713_v11 = vmul.f32 %v2712_v10, %v3951_v55 }
 0x6b6   : > { %v2714_v12 = vadd.f32 1e-05, %v2713_v11 }
 0x6b8   : > { %3313 = vrsqrt.f32 %v2714_v12  ;;  %vm2721_vm8 = vweird.f32 %v2714_v12 }
 0x6be   : > { %v3314_v13 = vpop.eup %3313 }
 0x6bf   : > { %v2716_v14 = vmul.f32 %v3314_v13, %v2714_v12  ;;  %vm2722_vm7 = vweird.f32 %v3314_v13 }
 0x6c0   : > { %vm2723_vm9 = vmor %vm2721_vm8, %vm2722_vm7 }
 0x6c1   : > { %v2717_v15 = vmul.f32 %v3314_v13, %v2716_v14 }
 0x6c3   : > { %v2718_v16 = vmul.f32 0.5, %v2717_v15 }
 0x6c5   : > { %v2719_v17 = vsub.f32 1.5, %v2718_v16 }
 0x6c7   : > { %v2720_v57 = vmul.f32 %v3314_v13, %v2719_v17 }
 0x6c9   : > { %v2724_v19 = vsel %vm2723_vm9, %v3314_v13, %v2720_v57 }
 0x6ca   : > { %v2725_v21 = vmul.f32 %v2724_v19, %v2708_v6 }
 0x6cc   : > { %v2729_v22 = vmul.f32 %v3275_v18, %v2725_v21  ;;  %2738 = sbr.rel (%p3151_p3) target bundleno = 2014 (0x7de), region = 96 }
 0x6ce   : > { %v2733_v23 = vadd.f32 %v3276_v20, %v2729_v22 }
 0x6d0   : > { %2734 = vst.msk [vmem:[%s3756_s5] sm:$0xff] %vm745_vm1, %v2733_v23 }
 0x6d1   : > { %v2741_v24 = vsel %vm745_vm1, %v2733_v23, 0.0  ;;  %v3315_v39 = vld [vmem:[%s4232_s21] ss:$0 sm:$0xff] }
 0x6d2   : > { %2742 = vadd.xlane.f32.xlu0 %v2741_v24 }
 0x745   : > { %v2743_v25 = vpop.xlane.xlu0 %2742 }
 0x746   : > { %v2744_v26 = vmul.f32 %v2743_v25, %v3951_v55 }
 0x748   : > { %v2745_v27 = vsub.f32 %v2733_v23, %v2744_v26 }
 0x74a   : > { %v2746_v28 = vmul.f32 %v2745_v27, %v2745_v27 }
 0x74c   : > { %v2747_v29 = vsel %vm745_vm1, %v2746_v28, 0.0 }
 0x74d   : > { %2748 = vadd.xlane.f32.xlu0 %v2747_v29 }
 0x7c0   : > { %v2749_v30 = vpop.xlane.xlu0 %2748 }
 0x7c1   : > { %v2750_v31 = vmul.f32 %v2749_v30, %v3951_v55  ;;  %v3316_v55 = vld [vmem:[%s4233_s25] ss:$0 sm:$0xff] }
 0x7c3   : > { %v2751_v32 = vadd.f32 1e-05, %v2750_v31 }
 0x7c5   : > { %3317 = vrsqrt.f32 %v2751_v32  ;;  %vm2758_vm11 = vweird.f32 %v2751_v32 }
 0x7cb   : > { %v3318_v33 = vpop.eup %3317 }
 0x7cc   : > { %v2753_v34 = vmul.f32 %v3318_v33, %v2751_v32  ;;  %vm2759_vm10 = vweird.f32 %v3318_v33 }
 0x7cd   : > { %vm2760_vm12 = vmor %vm2758_vm11, %vm2759_vm10 }
 0x7ce   : > { %v2754_v35 = vmul.f32 %v3318_v33, %v2753_v34 }
 0x7d0   : > { %v2755_v36 = vmul.f32 0.5, %v2754_v35 }
 0x7d2   : > { %v2756_v37 = vsub.f32 1.5, %v2755_v36 }
 0x7d4   : > { %v2757_v38 = vmul.f32 %v3318_v33, %v2756_v37 }
 0x7d6   : > { %v2761_v40 = vsel %vm2760_vm12, %v3318_v33, %v2757_v38 }
 0x7d7   : > { %v2762_v41 = vmul.f32 %v2761_v40, %v2745_v27 }
 0x7d9   : > { %v2766_v42 = vmul.f32 %v3315_v39, %v2762_v41 }
 0x7db   : > { %v2770_v43 = vadd.f32 %v3316_v55, %v2766_v42 }
 0x7dd   : > { %2771 = vst.msk [vmem:[%s730_s6] sm:$0xff] %vm745_vm1, %v2770_v43 }
 0x7de PF: > { %s4235_s29 = sld [smem:[#allocation14_spill]] }
 0x7df   : > { %s4237_s30 = sld [smem:[#allocation11_spill]] }
 0x7e0   : > { %s4238_s15 = sld [smem:[#allocation17_spill]] }
 0x7e1   : > { %s4239_s16 = sld [smem:[#allocation12_spill]] }
 0x7e2   : > { %s4240_s17 = sld [smem:[#allocation13_spill]] }
 0x7e3   : > { %s4241_s18 = sld [smem:[#allocation15_spill]] }
 0x7e4   : > { %s30_s20 = sadd.s32 1, %s4235_s29   ;;  %s4236_s29 = sld [smem:[#allocation10_spill]] }
 0x7e5   : > { %p27_p4 = scmp.ge.s32.totalorder %s30_s20, 6   ;;  %s4242_s19 = sld [smem:[#allocation16_spill]] }
 0x7e7   :  { %29 = sbr.rel (!%p27_p4) target bundleno = 22 (0x16), region = 204 }
 0x7ec   :  { %2791 = vsyncpa [#allocation4], 1 }
 0x7ed   :  { %2793 = vsyncpa [#allocation4 + $0x1], 1 }
 0x7ee   :  { %2794 = vsyncpa [#allocation6], 1 }
 0x7ef   :  { %2796 = vsyncpa [#allocation6 + $0x1], 1 }

// kernel: baseline_forward.3
= control target key start
LH: loop header
LB: loop body
LE: loop exit
PB: predicated region body
PF: predicated region fallthrough
CT: control target
= control target key end

     0   :  { %s6713_s0 = inlined_call_operand.vmem [shape: f32[2,8,64], index: 0, kind: input, shape index: {}]   ;;  %s6714_s1 = inlined_call_operand.vmem [shape: f32[2,8,64], index: 1, kind: input, shape index: {}]   ;;  %s6715_s2 = inlined_call_operand.vmem [shape: f32[2,8,8], index: 2, kind: input, shape index: {}]   ;;  %s6716_s3 = inlined_call_operand.hbm [shape: f32[2,3,8,8,64], index: 3, kind: input, shape index: {}]   ;;  %s6717_s4 = inlined_call_operand.vmem [shape: f32[2,3,8,1,8], index: 4, kind: input, shape index: {}]   ;;  %s6718_s5 = inlined_call_operand.vmem [shape: f32[2,8,8,64], index: 5, kind: input, shape index: {}]   ;;  %s6719_s6 = inlined_call_operand.vmem [shape: f32[2,1,64], index: 6, kind: input, shape index: {}]   ;;  %s6720_s7 = inlined_call_operand.hbm [shape: f32[2,3,8,8,64], index: 7, kind: input, shape index: {}]   ;;  %s6721_s8 = inlined_call_operand.vmem [shape: f32[2,3,8,1,8], index: 8, kind: input, shape index: {}]   ;;  %s6722_s9 = inlined_call_operand.vmem [shape: f32[2,8,8,64], index: 9, kind: input, shape index: {}]   ;;  %s6723_s10 = inlined_call_operand.vmem [shape: f32[2,1,64], index: 10, kind: input, shape index: {}]   ;;  %s6724_s11 = inlined_call_operand.hbm [shape: f32[2,64,1024], index: 11, kind: input, shape index: {}]   ;;  %s6725_s12 = inlined_call_operand.vmem [shape: f32[2,1,1024], index: 12, kind: input, shape index: {}]   ;;  %s6726_s13 = inlined_call_operand.hbm [shape: f32[2,64,1024], index: 13, kind: input, shape index: {}]   ;;  %s6727_s14 = inlined_call_operand.vmem [shape: f32[2,1,64], index: 14, kind: input, shape index: {}]   ;;  %s6728_s15 = inlined_call_operand.vmem [shape: f32[2,3,1,64], index: 15, kind: input, shape index: {}]   ;;  %s6729_s16 = inlined_call_operand.vmem [shape: f32[2,3,1,64], index: 16, kind: input, shape index: {}]   ;;  %s6730_s17 = inlined_call_operand.vmem [shape: f32[1,64], index: 17, kind: input, shape index: {}]   ;;  %s6731_s18 = inlined_call_operand.vmem [shape: f32[1,64], index: 18, kind: input, shape index: {}]   ;;  %s6732_s19 = inlined_call_operand.vmem [shape: f32[64,128], index: 19, kind: input, shape index: {}]   ;;  %s6733_s20 = inlined_call_operand.vmem [shape: f32[1,128], index: 20, kind: input, shape index: {}]   ;;  %s6734_s21 = inlined_call_operand.hbm [shape: f32[2,8,128], index: 21, kind: output, shape index: {}]  }
   0x1   :  { %6755 = sst [smem:[#allocation33_spill]] %s6713_s0 }
   0x2   :  { %6756 = sst [smem:[#allocation34_spill]] %s6714_s1 }
   0x3   :  { %6757 = sst [smem:[#allocation35_spill]] %s6715_s2 }
   0x4   :  { %6758 = sst [smem:[#allocation36_spill]] %s6716_s3 }
   0x5   :  { %6759 = sst [smem:[#allocation37_spill]] %s6717_s4 }
   0x6   :  { %6760 = sst [smem:[#allocation38_spill]] %s6718_s5 }
   0x7   :  { %6761 = sst [smem:[#allocation39_spill]] %s6719_s6 }
   0x8   :  { %6762 = sst [smem:[#allocation40_spill]] %s6720_s7 }
   0x9   :  { %6763 = sst [smem:[#allocation41_spill]] %s6721_s8 }
   0xa   :  { %6764 = sst [smem:[#allocation42_spill]] %s6722_s9 }
   0xb   :  { %6765 = sst [smem:[#allocation43_spill]] %s6723_s10 }
   0xc   :  { %6766 = sst [smem:[#allocation44_spill]] %s6724_s11 }
   0xd   :  { %6767 = sst [smem:[#allocation45_spill]] %s6725_s12 }
   0xe   :  { %6768 = sst [smem:[#allocation46_spill]] %s6726_s13 }
   0xf   :  { %6769 = sst [smem:[#allocation47_spill]] %s6727_s14 }
  0x10   :  { %6770 = sst [smem:[#allocation48_spill]] %s6728_s15 }
  0x11   :  { %6771 = sst [smem:[#allocation49_spill]] %s6729_s16 }
  0x12   :  { %6772 = sst [smem:[#allocation50_spill]] %s6730_s17 }
  0x13   :  { %6773 = sst [smem:[#allocation51_spill]] %s6731_s18 }
  0x14   :  { %6774 = sst [smem:[#allocation52_spill]] %s6732_s19 }
  0x15   :  { %6775 = sst [smem:[#allocation53_spill]] %s6733_s20 }
  0x16   :  { %6776 = sst [smem:[#allocation54_spill]] %s6734_s21 }
  0x17   :  { %26 = vsyncpa [#allocation4], 0 }
  0x18   :  { %28 = vsyncpa [#allocation4 + $0x1], 0 }
  0x19   :  { %29 = vsyncpa [#allocation7], 0 }
  0x1a   :  { %31 = vsyncpa [#allocation7 + $0x1], 0 }
  0x1b   :  { %32 = vsyncpa [#allocation10], 0 }
  0x1c   :  { %34 = vsyncpa [#allocation10 + $0x1], 0 }
  0x1d   :  { %35 = vsyncpa [#allocation5], 0 }
  0x1e   :  { %37 = vsyncpa [#allocation5 + $0x1], 0  ;;  %s5800_s2 = smov 0   ;;  %s5802_s25 = smov 0  }
  0x1f   :  { %s5804_s26 = smov 0   ;;  %s5806_s27 = smov 0  }
  0x20   :  { %s5808_s3 = smov 0   ;;  %s5810_s28 = smov 0  }
  0x21   :  { %s5812_s29 = smov 0   ;;  %s5814_s0 = smov 0  }
  0x22   :  { %s5816_s4 = smov 0   ;;  %s5818_s30 = smov 0  }
  0x23   :  { %s5820_s5 = smov 0  }
  0x24 LB: > { %6777 = sst [smem:[#allocation16_spill]] %s5643_s2  ;;  %s5854_s22 = sadd.s32 4294967295, %s5683_s5   ;;  %s5683_s5 = sphi %s5820_s5, %s43_s5   ;;  %s5679_s30 = sphi %s5818_s30, %s6850_s30   ;;  %s5675_s4 = sphi %s5816_s4, %s6849_s4   ;;  %s5671_s0 = sphi %s5814_s0, %s6848_s0   ;;  %s5667_s29 = sphi %s5812_s29, %s6847_s29   ;;  %s5663_s28 = sphi %s5810_s28, %s6846_s28   ;;  %s5659_s3 = sphi %s5808_s3, %s6845_s3   ;;  %s5655_s27 = sphi %s5806_s27, %s6844_s27   ;;  %s5651_s26 = sphi %s5804_s26, %s6843_s26   ;;  %s5647_s25 = sphi %s5802_s25, %s6842_s25   ;;  %s5643_s2 = sphi %s5800_s2, %s6841_s2  }
  0x25   : > { %6778 = sst [smem:[#allocation17_spill]] %s5647_s25  ;;  %s4884_s23 = sadd.s32 4294967294, %s5683_s5  }
  0x26   : > { %6779 = sst [smem:[#allocation18_spill]] %s5651_s26  ;;  %s52_s1 = sadd.s32 1, %s5675_s4 }
  0x27   : > { %6780 = sst [smem:[#allocation19_spill]] %s5659_s3  ;;  %s55_s24 = sadd.s32 1, %s5679_s30 }
  0x28   : > { %6781 = sst [smem:[#allocation20_spill]] %s5663_s28  ;;  %p53_p0 = scmp.ge.s32.totalorder %s52_s1, 2 }
  0x29   : > { %6782 = sst [smem:[#allocation21_spill]] %s5675_s4  ;;  %s140_s21 = sadd.s32 1, %s5663_s28 }
  0x2a   : > { %6783 = sst [smem:[#allocation22_spill]] %s5679_s30  ;;  %p147_p1 = scmp.ne.s32.totalorder %s5663_s28, %s5659_s3 }
  0x2b   : > { %6784 = sst [smem:[#allocation23_spill]] %s5683_s5  ;;  %p148_p2 = scmp.eq.s32.totalorder %s5683_s5, 0 }
  0x2c   : > { %s6852_s1 = smov (%p53_p0, %s52_s1), 0  ;;  %s6854_s24 = smov (!%p53_p0, %s55_s24), %s5679_s30 }
  0x2d   : > { %6785 = sst [smem:[#allocation24_spill]] %s6852_s1  ;;  %s137_s20 = ssub.s32 %s5675_s4, %s6852_s1 }
  0x2e   : > { %p5868_p3 = por %p148_p2, %p147_p1  ;;  %p57_p4 = scmp.ge.s32.totalorder %s6854_s24, 2 }
  0x2f   : > { %p138_p5 = scmp.eq.s32.totalorder %s137_s20, 0  ;;  %p153_p6 = scmp.ne.s32.totalorder %s5659_s3, %s5655_s27 }
  0x30   : > { %p154_p7 = scmp.eq.s32.totalorder %s5854_s22, 0  ;;  %s6856_s24 = smov (%p57_p4, %s6854_s24), 0 }
  0x31   : > { %6787 = sst [smem:[#allocation25_spill]] %s6856_s24  ;;  %s585_s19 = ssub.s32 %s5679_s30, %s6856_s24 }
  0x32   : > { %s5877_s17 = scalar_select %p138_p5, %s5663_s28, %s140_s21  }
  0x33   : > { %p5879_p8 = por %p154_p7, %p153_p6  ;;  %p586_p9 = scmp.eq.s32.totalorder %s585_s19, 0 }
  0x34   : > { %6788 = sst [smem:[#allocation26_spill]] %s5877_s17  ;;  %s588_s16 = sadd.s32 1, %s5651_s26 }
  0x35   : > { %p598_p10 = scmp.ne.s32.totalorder %s5651_s26, %s5647_s25  ;;  %p599_p11 = scmp.eq.s32.totalorder %s5854_s22, 3 }
  0x36   : > { %s5890_s20 = scalar_select %p586_p9, %s5651_s26, %s588_s16  }
  0x37   : > { %p5892_p12 = por %p599_p11, %p598_p10  ;;  %p604_p13 = scmp.ne.s32.totalorder %s5647_s25, %s5643_s2 }
  0x38   : > { %6790 = sst [smem:[#allocation27_spill]] %s5890_s20  ;;  %p605_p0 = scmp.eq.s32.totalorder %s4884_s23, 3 }
  0x39   : > { %s6791_s27 = scalar_select %p5892_p12, 1, 0 }
  0x3a   : > { %p5204_p1 = scmp.lt.s32.totalorder %s5683_s5, 4  ;;  %s5900_s21 = sand.u32 1, %s5663_s28  }
  0x3b   : > { %6792 = sst [smem:[#allocation28_spill]] %s6791_s27  ;;  %p5902_p2 = por %p605_p0, %p604_p13 }
  0x3c   : > { %s5170_s19 = smul.u32 192, %s5900_s21  ;;  %p5910_p4 = pnand %p5204_p1, %p5868_p3 }
  0x3d   : > { %s6793_s17 = scalar_select %p5902_p2, 1, 0 }
  0x3e   : > { %s5171_s24 = smul.u32 192, %s5675_s4  ;;  %s701_s30 = sand.u32 1, %s5683_s5  }
  0x3f   : > { %6794 = sst [smem:[#allocation29_spill]] %s6793_s17  ;;  %s705_s26 = scalar_lea.vmem [#allocation6], %s5170_s19 }
  0x40   : > { %s6796_s7 = sld [smem:[#allocation40_spill]]  ;;  %s713_s2 = sshll.u32 %s705_s26, 4  ;;  %s714_s2 = int_to_ptr.vmem [resolvable:$true] %s713_s2 }
  0x41   : > { %p4895_p5 = scmp.ge.s32.totalorder %s5683_s5, 1  ;;  %s702_s18 = scalar_lea.sflag [#allocation7], %s701_s30 }
  0x42   : > { %s5685_s17 = smov 128   ;;  %s5686_s15 = smov 8  }
  0x43   : > { %p813_p3 = scmp.lt.s32.totalorder %s5683_s5, 5  ;;  %s4889_s30 = sshll.u32 %s5900_s21, 9 }
  0x44   : > { %s659_s9 = scalar_lea.sflag [#allocation4], %s5900_s21  ;;  %s6799_s11 = sld [smem:[#allocation44_spill]] }
  0x45   : > { %p5922_p6 = pnand %p4895_p5, %p813_p3  ;;  %s748_s6 = scalar_lea.vmem [#allocation8], %s4889_s30 }
  0x46   : > { %s710_s28 = scalar_lea.hbm %s6796_s7, %s5171_s24  ;;  %s662_s7 = scalar_lea.vmem [#allocation3], %s5170_s19 }
  0x47   : > { %s711_s27 = sshll.u32 %s710_s28, 4  ;;  %s6798_s28 = sld [smem:[#allocation36_spill]]  ;;  %s712_s27 = int_to_ptr.hbm [resolvable:$true] %s711_s27 }
  0x48   : > { %5193 = dma.hbm_to_vmem [thread:$0]  (!%p5910_p4), %s712_s27, 3072, %s714_s2, %s702_s18, %s5685_s17, %s5685_s17, %s5686_s15  }
  0x49   : > { %s670_s12 = sshll.u32 %s662_s7, 4  ;;  %s5166_s2 = sshll.u32 %s5675_s4, 9  ;;  %s671_s12 = int_to_ptr.vmem [resolvable:$true] %s670_s12 }
  0x4a   : > { %s753_s8 = scalar_lea.hbm %s6799_s11, %s5166_s2  ;;  %s756_s20 = sshll.u32 %s748_s6, 4  ;;  %s757_s20 = int_to_ptr.vmem [resolvable:$true] %s756_s20 }
  0x4b   : > { %s5687_s7 = smov 1024   ;;  %s5688_s19 = smov 64  }
  0x4c   : > { %s6800_s13 = sld [smem:[#allocation46_spill]] }
  0x4d   : > { %s667_s23 = scalar_lea.hbm %s6798_s28, %s5171_s24  ;;  %s754_s24 = sshll.u32 %s753_s8, 4  ;;  %s755_s24 = int_to_ptr.hbm [resolvable:$true] %s754_s24 }
  0x4e   : > { %s668_s10 = sshll.u32 %s667_s23, 4  ;;  %s669_s10 = int_to_ptr.hbm [resolvable:$true] %s668_s10 }
  0x4f   : > { %5190 = dma.hbm_to_vmem [thread:$0]  (!%p5910_p4), %s669_s10, 3072, %s671_s12, %s659_s9, %s5685_s17, %s5685_s17, %s5686_s15  }
  0x50   : > { %5196 = dma.hbm_to_vmem [thread:$0]  (!%p5910_p4), %s755_s24, 8192, %s757_s20, %s702_s18, %s5687_s7, %s5687_s7, %s5688_s19  }
  0x51   : > { %s777_s12 = scalar_lea.vmem [#allocation9], %s4889_s30  ;;  %s774_s17 = scalar_lea.sflag [#allocation10], %s5900_s21 }
  0x52   : > { %s782_s9 = scalar_lea.hbm %s6800_s13, %s5166_s2  ;;  %s785_s15 = sshll.u32 %s777_s12, 4  ;;  %s786_s15 = int_to_ptr.vmem [resolvable:$true] %s785_s15 }
  0x53   : > { %s783_s10 = sshll.u32 %s782_s9, 4  ;;  %817 = sbr.rel (%p5922_p6) target bundleno = 3293 (0xcdd), region = 104  ;;  %s784_s10 = int_to_ptr.hbm [resolvable:$true] %s783_s10 }
  0x54   : > { %5199 = dma.hbm_to_vmem [thread:$0]  (!%p5910_p4), %s784_s10, 8192, %s786_s15, %s774_s17, %s5687_s7, %s5687_s7, %s5688_s19  }
  0x58   : > { %s819_s6 = sand.u32 1, %s5659_s3  }
  0x59   : > { %s5174_s8 = smul.u32 192, %s819_s6  ;;  %s820_s5 = scalar_lea.sflag [#allocation4], %s819_s6 }
  0x5b   : > { %s5948_s18 = scalar_lea.vmem [#allocation3], %s5174_s8 }
  0x5c   : > { %5626 = dma.done.wait (%p5879_p8), %s820_s5, 3072  }
  0x5d   : > { %5628 = vsyncadd (%p5879_p8), %s820_s5, 4294964224  ;;  %s829_s21 = sand.u32 1, %s5854_s22   ;;  %s5955_s23 = scalar_lea.vmem [#allocation6], %s5174_s8 }
  0x5e   : > { %s830_s16 = scalar_lea.sflag [#allocation7], %s829_s21 }
  0x5f   : > { %5630 = dma.done.wait (%p5879_p8), %s830_s16, 11264  }
  0x60   : > { %5632 = vsyncadd (%p5879_p8), %s830_s16, 4294956032  ;;  %s4896_s14 = sshll.u32 %s819_s6, 9  ;;  %s850_s2 = scalar_lea.sflag [#allocation10], %s819_s6 }
  0x61   : > { %s5961_s30 = scalar_lea.vmem [#allocation8], %s4896_s14  ;;  %s5963_s27 = scalar_lea.vmem [#allocation9], %s4896_s14 }
  0x62   : > { %6801 = sst [smem:[#allocation30_spill]] %s5961_s30 }
  0x63   : > { %6802 = sst [smem:[#allocation31_spill]] %s5963_s27 }
  0x64   : > { %5634 = dma.done.wait (%p5879_p8), %s850_s2, 8192  }
  0x65   : > { %5636 = vsyncadd (%p5879_p8), %s850_s2, 4294959104  ;;  %s6748_s22 = sand.u32 1, %s5647_s25   ;;  %p979_p7 = scmp.lt.s32.totalorder %s5671_s0, 1 }
  0x66   : > { %s5973_s20 = sshll.u32 %s6748_s22, 3  ;;  %p991_p9 = scmp.lt.s32.totalorder %s5667_s29, 1 }
  0x67   : > { %s980_s24 = scalar_select %p979_p7, %s5671_s0, 1 }
  0x68   : > { %s5978_s7 = scalar_select %p991_p9, %s5667_s29, 1 }
  0x69   : > { %s5980_s1 = sshll.u32 %s980_s24, 3  ;;  %s6803_s28 = sld [smem:[#allocation33_spill]] }
  0x6a   : > { %s5175_s16 = smul.u32 24, %s5978_s7  ;;  %s5168_s14 = sshll.u32 %s5978_s7, 6 }
  0x6b   : > { %s6807_s26 = sld [smem:[#allocation37_spill]]  ;;  %s5176_s6 = smul.u32 3, %s5978_s7 }
  0x6c   : > { %s6808_s10 = sld [smem:[#allocation38_spill]]  ;;  %p4907_p8 = scmp.ne.s32.totalorder %s5667_s29, 0 }
  0x6d   : > { %s6809_s8 = sld [smem:[#allocation41_spill]]  ;;  %s4908_s11 = sshll.u32 (!%p4907_p8), %s5671_s0, 3 }
  0x6e   : > { %s6811_s25 = sld [smem:[#allocation42_spill]]  ;;  %s1036_s30 = scalar_lea.vmem (!%p4907_p8), [#allocation2], %s4908_s11 }
  0x6f   : > { %s982_s9 = scalar_lea.vmem %s6803_s28, %s5980_s1  ;;  %s6812_s13 = sld [smem:[#allocation43_spill]] }
  0x70   : > { %s6813_s3 = sld [smem:[#allocation45_spill]] }
  0x71   : > { %s6003_s4 = scalar_lea.vmem %s6807_s26, %s5175_s16  ;;  %s4906_s26 = sshll.u32 %s5978_s7, 3 }
  0x72   : > { %s6008_s12 = scalar_lea.vmem %s6808_s10, %s5168_s14  ;;  %s6814_s15 = sld [smem:[#allocation47_spill]] }
  0x73   : > { %s6013_s5 = scalar_lea.vmem %s6809_s8, %s5175_s16  ;;  %s6815_s17 = sld [smem:[#allocation48_spill]] }
  0x74   : > { %6810 = sst [smem:[#allocation32_spill]] %s6013_s5  ;;  %s6018_s2 = scalar_lea.vmem %s6811_s25, %s5168_s14 }
  0x75   : > { %s1014_s19 = scalar_lea.vmem %s6812_s13, %s5978_s7  ;;  %s6816_s22 = sld [smem:[#allocation49_spill]] }
  0x76   : > { %s6028_s28 = scalar_lea.vmem %s6813_s3, %s4906_s26  ;;  %s978_s13 = scalar_lea.vmem [#allocation11], %s5973_s20 }
  0x77   : > { %1033 = sbr.rel (%p4907_p8) target bundleno = 126 (0x7e), region = 124 }
  0x78   : > { %s1021_s16 = scalar_lea.vmem %s6814_s15, %s5978_s7 }
  0x79   : > { %s6038_s25 = scalar_lea.vmem %s6815_s17, %s5176_s6 }
  0x7b   : > { %s6043_s24 = scalar_lea.vmem %s6816_s22, %s5176_s6 }
  0x7c   : > { %v1034_v0 = vld [vmem:[%s982_s9] sm:$0xff]  ;;  %vm1037_vm0 = vcmask 523264  }
  0x7d   : > { %1038 = vst.msk [vmem:[%s1036_s30] sm:$0xff] %vm1037_vm0, %v1034_v0 }
  0x7e PF: > { %v1044_v1 = vld [vmem:[%s5948_s18] sm:$0xff]  ;;  %vm1045_vm1 = vcmask 523264   ;;  %v4912_v2 = vld [vmem:[%s5948_s18 + $0x8] sm:$0xff]  ;;  %v4915_v3 = vld [vmem:[%s5948_s18 + $0x10] sm:$0xff]  ;;  %s4909_s27 = sshll.u32 %s5671_s0, 3  ;;  %vm1769_vm2 = vcmask 64512  }
  0x7f   : > { %4910 = vmatpush.xpose.msk.msra.mxu0 %vm1045_vm1, %v1044_v1  ;;  %4913 = vmatpush.xpose.msk.msra.mxu1 %vm1045_vm1, %v4912_v2  ;;  %v4918_v4 = vld [vmem:[%s5948_s18 + $0x18] sm:$0xff]  ;;  %v4921_v5 = vld [vmem:[%s5948_s18 + $0x20] sm:$0xff]  ;;  %v4924_v6 = vld [vmem:[%s5948_s18 + $0x28] sm:$0xff]  ;;  %s6061_s9 = scalar_lea.vmem [#allocation2], %s4909_s27  ;;  %s6817_s26 = sld [smem:[#allocation35_spill]] }
  0x80   : > { %4916 = vmatpush.xpose.msk.msra.mxu2 %vm1045_vm1, %v4915_v3  ;;  %4919 = vmatpush.xpose.msk.msra.mxu3 %vm1045_vm1, %v4918_v4  ;;  %v4927_v8 = vld [vmem:[%s5948_s18 + $0x30] sm:$0xff]  ;;  %v4930_v9 = vld [vmem:[%s5948_s18 + $0x38] sm:$0xff]  ;;  %v4933_v10 = vld [vmem:[%s5948_s18 + $0x40] sm:$0xff]  ;;  %s6819_s10 = sld [smem:[#allocation39_spill]]  ;;  %p5160_p10 = scmp.ne.s32.totalorder %s5667_s29, 1 }
  0x81   : > { %v4936_v11 = vld [vmem:[%s5948_s18 + $0x48] sm:$0xff]  ;;  %v4939_v12 = vld [vmem:[%s5948_s18 + $0x50] sm:$0xff]  ;;  %v4942_v13 = vld [vmem:[%s5948_s18 + $0x58] sm:$0xff]  ;;  %s6821_s17 = sld [smem:[#allocation34_spill]] }
  0x82   : > { %v4945_v14 = vld [vmem:[%s5948_s18 + $0x60] sm:$0xff]  ;;  %v4951_v15 = vld [vmem:[%s5948_s18 + $0x70] sm:$0xff]  ;;  %v4954_v16 = vld [vmem:[%s5948_s18 + $0x78] sm:$0xff]  ;;  %s6832_s30 = sld [smem:[#allocation53_spill]] (!%p5160_p10) }
  0x83   : > { %4922 = vmatpush.xpose.msk.msrb.mxu0 %vm1045_vm1, %v4921_v5  ;;  %4925 = vmatpush.xpose.msk.msrb.mxu1 %vm1045_vm1, %v4924_v6  ;;  %v4948_v17 = vld [vmem:[%s5948_s18 + $0x68] sm:$0xff]  ;;  %v4965_v18 = vld [vmem:[%s5948_s18 + $0x80] sm:$0xff]  ;;  %v4971_v20 = vld [vmem:[%s5948_s18 + $0x90] sm:$0xff] }
  0x84   : > { %v6064_v7 = vld [vmem:[%s6061_s9] sm:$0xff]  ;;  %4928 = vmatpush.xpose.msk.msrb.mxu2 %vm1045_vm1, %v4927_v8  ;;  %4931 = vmatpush.xpose.msk.msrb.mxu3 %vm1045_vm1, %v4930_v9  ;;  %v4968_v19 = vld [vmem:[%s5948_s18 + $0x88] sm:$0xff]  ;;  %v4974_v21 = vld [vmem:[%s5948_s18 + $0x98] sm:$0xff] }
  0x85   : > { %4911 = vmatmul.msk.f32.vlgmr.msra.gmra.mxu0 %vm1045_vm1, %v6064_v7  ;;  %4914 = vmatmul.msk.f32.vlgmr.msra.gmra.mxu1 %vm1045_vm1, %v6064_v7  ;;  %v4977_v22 = vld [vmem:[%s5948_s18 + $0xa0] sm:$0xff]  ;;  %v4980_v23 = vld [vmem:[%s5948_s18 + $0xa8] sm:$0xff]  ;;  %v4983_v24 = vld [vmem:[%s5948_s18 + $0xb0] sm:$0xff]  ;;  %s6818_s3 = scalar_lea.vmem %s6817_s26, %s5980_s1 }
  0x86   : > { %4917 = vmatmul.msk.f32.vlgmr.msra.gmra.mxu2 %vm1045_vm1, %v6064_v7  ;;  %4920 = vmatmul.msk.f32.vlgmr.msra.gmra.mxu3 %vm1045_vm1, %v6064_v7  ;;  %v4986_v25 = vld [vmem:[%s5948_s18 + $0xb8] sm:$0xff]  ;;  %v5299_v34 = vld [vmem:[%s6003_s4] ss:$0 sm:$0xff]  ;;  %v5300_v35 = vld [vmem:[%s6003_s4 + $0x1] ss:$0 sm:$0xff]  ;;  %s6820_s15 = scalar_lea.vmem %s6819_s10, %s5978_s7 }
  0x87   : > { %4934 = vmatpush.xpose.msk.msra.mxu0 %vm1045_vm1, %v4933_v10  ;;  %4937 = vmatpush.xpose.msk.msra.mxu1 %vm1045_vm1, %v4936_v11  ;;  %v5307_v32 = vld [vmem:[%s6003_s4 + $0x8] ss:$0 sm:$0xff]  ;;  %v5308_v33 = vld [vmem:[%s6003_s4 + $0x9] ss:$0 sm:$0xff]  ;;  %v5309_v44 = vld [vmem:[%s6003_s4 + $0xa] ss:$0 sm:$0xff]  ;;  %s6822_s21 = scalar_lea.vmem %s6821_s17, %s5980_s1 }
  0x88   : > { %4940 = vmatpush.xpose.msk.msra.mxu2 %vm1045_vm1, %v4939_v12  ;;  %4943 = vmatpush.xpose.msk.msra.mxu3 %vm1045_vm1, %v4942_v13  ;;  %v5310_v45 = vld [vmem:[%s6003_s4 + $0xb] ss:$0 sm:$0xff]  ;;  %v5311_v46 = vld [vmem:[%s6003_s4 + $0xc] ss:$0 sm:$0xff]  ;;  %v5312_v47 = vld [vmem:[%s6003_s4 + $0xd] ss:$0 sm:$0xff] }
  0x89   : > { %v5303_v48 = vld [vmem:[%s6003_s4 + $0x4] ss:$0 sm:$0xff]  ;;  %v5304_v49 = vld [vmem:[%s6003_s4 + $0x5] ss:$0 sm:$0xff]  ;;  %v5301_v50 = vld [vmem:[%s6003_s4 + $0x2] ss:$0 sm:$0xff] }
  0x8a   : > { %v5302_v51 = vld [vmem:[%s6003_s4 + $0x3] ss:$0 sm:$0xff]  ;;  %v5313_v0 = vld [vmem:[%s6003_s4 + $0xe] ss:$0 sm:$0xff]  ;;  %v5314_v1 = vld [vmem:[%s6003_s4 + $0xf] ss:$0 sm:$0xff] }
  0x8b   : > { %v5305_v2 = vld [vmem:[%s6003_s4 + $0x6] ss:$0 sm:$0xff]  ;;  %v5306_v3 = vld [vmem:[%s6003_s4 + $0x7] ss:$0 sm:$0xff]  ;;  %v5315_v11 = vld [vmem:[%s6003_s4 + $0x10] ss:$0 sm:$0xff] }
  0x8c   : > { %v5316_v12 = vld [vmem:[%s6003_s4 + $0x11] ss:$0 sm:$0xff]  ;;  %s6823_s1 = sld [smem:[#allocation32_spill]] }
  0x8d   : > { %4923 = vmatmul.msk.f32.vlgmr.msrb.gmra.mxu0 %vm1045_vm1, %v6064_v7  ;;  %4926 = vmatmul.msk.f32.vlgmr.msrb.gmra.mxu1 %vm1045_vm1, %v6064_v7 }
  0x8e   : > { %4929 = vmatmul.msk.f32.vlgmr.msrb.gmra.mxu2 %vm1045_vm1, %v6064_v7  ;;  %4932 = vmatmul.msk.f32.vlgmr.msrb.gmra.mxu3 %vm1045_vm1, %v6064_v7 }
  0x8f   : > { %4946 = vmatpush.xpose.msk.msrb.mxu0 %vm1045_vm1, %v4945_v14  ;;  %4952 = vmatpush.xpose.msk.msrb.mxu2 %vm1045_vm1, %v4951_v15 }
  0x90   : > { %4955 = vmatpush.xpose.msk.msrb.mxu3 %vm1045_vm1, %v4954_v16  ;;  %4949 = vmatpush.xpose.msk.msrb.mxu1 %vm1045_vm1, %v4948_v17  ;;  %v5317_v17 = vld [vmem:[%s6003_s4 + $0x14] ss:$0 sm:$0xff] }
  0x95   : > { %4935 = vmatmul.msk.f32.vlgmr.msra.gmra.mxu0 %vm1045_vm1, %v6064_v7  ;;  %4938 = vmatmul.msk.f32.vlgmr.msra.gmra.mxu1 %vm1045_vm1, %v6064_v7 }
  0x96   : > { %4941 = vmatmul.msk.f32.vlgmr.msra.gmra.mxu2 %vm1045_vm1, %v6064_v7  ;;  %4944 = vmatmul.msk.f32.vlgmr.msra.gmra.mxu3 %vm1045_vm1, %v6064_v7 }
  0x97   : > { %4966 = vmatpush.xpose.msk.msra.mxu0 %vm1045_vm1, %v4965_v18  ;;  %4969 = vmatpush.xpose.msk.msra.mxu1 %vm1045_vm1, %v4968_v19  ;;  %v5318_v18 = vld [vmem:[%s6003_s4 + $0x15] ss:$0 sm:$0xff] }
  0x98   : > { %4972 = vmatpush.xpose.msk.msra.mxu2 %vm1045_vm1, %v4971_v20  ;;  %4975 = vmatpush.xpose.msk.msra.mxu3 %vm1045_vm1, %v4974_v21 }
  0x9d   : > { %4947 = vmatmul.msk.f32.vlgmr.msrb.gmra.mxu0 %vm1045_vm1, %v6064_v7  ;;  %4950 = vmatmul.msk.f32.vlgmr.msrb.gmra.mxu1 %vm1045_vm1, %v6064_v7 }
  0x9e   : > { %4953 = vmatmul.msk.f32.vlgmr.msrb.gmra.mxu2 %vm1045_vm1, %v6064_v7  ;;  %4956 = vmatmul.msk.f32.vlgmr.msrb.gmra.mxu3 %vm1045_vm1, %v6064_v7 }
  0x9f   : > { %4978 = vmatpush.xpose.msk.msrb.mxu0 %vm1045_vm1, %v4977_v22  ;;  %4981 = vmatpush.xpose.msk.msrb.mxu1 %vm1045_vm1, %v4980_v23  ;;  %v5319_v23 = vld [vmem:[%s6003_s4 + $0x12] ss:$0 sm:$0xff] }
  0xa0   : > { %4984 = vmatpush.xpose.msk.msrb.mxu2 %vm1045_vm1, %v4983_v24  ;;  %4987 = vmatpush.xpose.msk.msrb.mxu3 %vm1045_vm1, %v4986_v25  ;;  %v5320_v24 = vld [vmem:[%s6003_s4 + $0x13] ss:$0 sm:$0xff] }
  0xa5   : > { %4967 = vmatmul.msk.f32.vlgmr.msra.gmra.mxu0 %vm1045_vm1, %v6064_v7  ;;  %4970 = vmatmul.msk.f32.vlgmr.msra.gmra.mxu1 %vm1045_vm1, %v6064_v7 }
  0xa6   : > { %4973 = vmatmul.msk.f32.vlgmr.msra.gmra.mxu2 %vm1045_vm1, %v6064_v7  ;;  %4976 = vmatmul.msk.f32.vlgmr.msra.gmra.mxu3 %vm1045_vm1, %v6064_v7 }
  0xad   : > { %4979 = vmatmul.msk.f32.vlgmr.msrb.gmra.mxu0 %vm1045_vm1, %v6064_v7  ;;  %4982 = vmatmul.msk.f32.vlgmr.msrb.gmra.mxu1 %vm1045_vm1, %v6064_v7 }
  0xae   : > { %4985 = vmatmul.msk.f32.vlgmr.msrb.gmra.mxu2 %vm1045_vm1, %v6064_v7  ;;  %4988 = vmatmul.msk.f32.vlgmr.msrb.gmra.mxu3 %vm1045_vm1, %v6064_v7 }
 0x102   : > { %v1069_v26 = vpop.f32.mrf.mxu0  ;;  %v1094_v27 = vpop.f32.mrf.mxu1 }
 0x103   : > { %v1279_v42 = vadd.f32 %v5299_v34, %v1069_v26  ;;  %v1280_v43 = vadd.f32 %v5300_v35, %v1094_v27 }
 0x109   : > { %v1119_v28 = vpop.f32.mrf.mxu2  ;;  %v1144_v29 = vpop.f32.mrf.mxu3 }
 0x10a   : > { %v1169_v30 = vpop.f32.mrf.mxu0  ;;  %v1194_v31 = vpop.f32.mrf.mxu1  ;;  %v1281_v62 = vadd.f32 %v5301_v50, %v1119_v28  ;;  %v1282_v63 = vadd.f32 %v5302_v51, %v1144_v29  ;;  %v5321_v29 = vld [vmem:[%s6003_s4 + $0x16] ss:$0 sm:$0xff] }
 0x10b   : > { %v1283_v60 = vadd.f32 %v5303_v48, %v1169_v30  ;;  %v1284_v61 = vadd.f32 %v5304_v49, %v1194_v31  ;;  %v5322_v30 = vld [vmem:[%s6003_s4 + $0x17] ss:$0 sm:$0xff] }
 0x111   : > { %v1219_v36 = vpop.f32.mrf.mxu2  ;;  %v1244_v37 = vpop.f32.mrf.mxu3 }
 0x112   : > { %v1309_v38 = vpop.f32.mrf.mxu0  ;;  %v1334_v39 = vpop.f32.mrf.mxu1  ;;  %v1285_v9 = vadd.f32 %v5305_v2, %v1219_v36  ;;  %v1286_v10 = vadd.f32 %v5306_v3, %v1244_v37  ;;  %v1043_v37 = vld [vmem:[%s6818_s3] sm:$0xff] }
 0x113   : > { %v1520_v40 = vadd.f32 %v5307_v32, %v1309_v38  ;;  %v1521_v41 = vadd.f32 %v5308_v33, %v1334_v39 }
 0x115   : > { %4997 = vmatpush.xpose.msk.msra.mxu0 %vm1769_vm2, %v1520_v40  ;;  %4999 = vmatpush.xpose.msk.msra.mxu1 %vm1769_vm2, %v1521_v41 }
 0x118   : > { %4998 = vmatmul.msk.f32.vlgmr.msra.gmra.mxu0 %vm1769_vm2, %v1279_v42  ;;  %5000 = vmatmul.msk.f32.vlgmr.msra.gmra.mxu1 %vm1769_vm2, %v1280_v43 }
 0x119   : > { %v1359_v52 = vpop.f32.mrf.mxu2  ;;  %v1384_v53 = vpop.f32.mrf.mxu3 }
 0x11a   : > { %v1522_v54 = vadd.f32 %v5309_v44, %v1359_v52  ;;  %v1523_v55 = vadd.f32 %v5310_v45, %v1384_v53  ;;  %v1409_v56 = vpop.f32.mrf.mxu0  ;;  %v1434_v57 = vpop.f32.mrf.mxu1 }
 0x11b   : > { %v1524_v58 = vadd.f32 %v5311_v46, %v1409_v56  ;;  %v1525_v59 = vadd.f32 %v5312_v47, %v1434_v57 }
 0x11c   : > { %5001 = vmatpush.xpose.msk.msra.mxu2 %vm1769_vm2, %v1522_v54  ;;  %5003 = vmatpush.xpose.msk.msra.mxu3 %vm1769_vm2, %v1523_v55 }
 0x11d   : > { %5005 = vmatpush.xpose.msk.msrb.mxu0 %vm1769_vm2, %v1524_v58  ;;  %5007 = vmatpush.xpose.msk.msrb.mxu1 %vm1769_vm2, %v1525_v59 }
 0x11f   : > { %5002 = vmatmul.msk.f32.vlgmr.msra.gmra.mxu2 %vm1769_vm2, %v1281_v62  ;;  %5004 = vmatmul.msk.f32.vlgmr.msra.gmra.mxu3 %vm1769_vm2, %v1282_v63 }
 0x120   : > { %5006 = vmatmul.msk.f32.vlgmr.msrb.gmra.mxu0 %vm1769_vm2, %v1283_v60  ;;  %5008 = vmatmul.msk.f32.vlgmr.msrb.gmra.mxu1 %vm1769_vm2, %v1284_v61 }
 0x121   : > { %v1459_v4 = vpop.f32.mrf.mxu2  ;;  %v1484_v5 = vpop.f32.mrf.mxu3 }
 0x122   : > { %v1526_v6 = vadd.f32 %v5313_v0, %v1459_v4  ;;  %v1527_v8 = vadd.f32 %v5314_v1, %v1484_v5  ;;  %v1550_v13 = vpop.f32.mrf.mxu0  ;;  %v1575_v14 = vpop.f32.mrf.mxu1 }
 0x123   : > { %v1761_v15 = vadd.f32 %v5315_v11, %v1550_v13  ;;  %v1762_v16 = vadd.f32 %v5316_v12, %v1575_v14 }
 0x124   : > { %5009 = vmatpush.xpose.msk.msrb.mxu2 %vm1769_vm2, %v1526_v6  ;;  %5011 = vmatpush.xpose.msk.msrb.mxu3 %vm1769_vm2, %v1527_v8 }
 0x125   : > { %2100 = vmatpush.msra.mxu0 %v1761_v15  ;;  %2123 = vmatpush.msra.mxu1 %v1762_v16 }
 0x127   : > { %5010 = vmatmul.msk.f32.vlgmr.msrb.gmra.mxu2 %vm1769_vm2, %v1285_v9  ;;  %5012 = vmatmul.msk.f32.vlgmr.msrb.gmra.mxu3 %vm1769_vm2, %v1286_v10 }
 0x129   : > { %v1600_v25 = vpop.f32.mrf.mxu2  ;;  %v1625_v26 = vpop.f32.mrf.mxu3 }
 0x12a   : > { %v1650_v19 = vpop.f32.mrf.mxu0  ;;  %v1675_v20 = vpop.f32.mrf.mxu1  ;;  %v1763_v27 = vadd.f32 %v5319_v23, %v1600_v25  ;;  %v1764_v28 = vadd.f32 %v5320_v24, %v1625_v26 }
 0x12b   : > { %v1765_v21 = vadd.f32 %v5317_v17, %v1650_v19  ;;  %v1766_v22 = vadd.f32 %v5318_v18, %v1675_v20 }
 0x12c   : > { %2146 = vmatpush.msra.mxu2 %v1763_v27  ;;  %2169 = vmatpush.msra.mxu3 %v1764_v28 }
 0x12d   : > { %2192 = vmatpush.msrb.mxu0 %v1765_v21  ;;  %2215 = vmatpush.msrb.mxu1 %v1766_v22 }
 0x131   : > { %v1700_v31 = vpop.f32.mrf.mxu2  ;;  %v1725_v32 = vpop.f32.mrf.mxu3 }
 0x132   : > { %v1767_v33 = vadd.f32 %v5321_v29, %v1700_v31  ;;  %v1768_v34 = vadd.f32 %v5322_v30, %v1725_v32 }
 0x134   : > { %2238 = vmatpush.msrb.mxu2 %v1767_v33  ;;  %2261 = vmatpush.msrb.mxu3 %v1768_v34 }
 0x195   : > { %v1793_v35 = vpop.f32.mrf.mxu0  ;;  %v1819_v36 = vpop.f32.mrf.mxu1 }
 0x196   : > { %v1978_v38 = vmul.f32 0.35355338, %v1793_v35  ;;  %v1979_v39 = vmul.f32 0.35355338, %v1819_v36 }
 0x198   : > { %v6197_v40 = vadd.f32 %v1979_v39, %v1043_v37  ;;  %v1986_v41 = vadd.f32 %v1978_v38, %v1043_v37 }
 0x19a   : > { %v1997_v42 = vsel %vm1769_vm2, %v6197_v40, -inf  ;;  %v1994_v43 = vsel %vm1769_vm2, %v1986_v41, -inf }
 0x19b   : > { %1998 = vmax.xlane.f32.xlu2 %v1997_v42  ;;  %1995 = vmax.xlane.f32.xlu1 %v1994_v43 }
 0x19d   : > { %v1897_v55 = vpop.f32.mrf.mxu0  ;;  %v1923_v56 = vpop.f32.mrf.mxu1 }
 0x19e   : > { %v1982_v59 = vmul.f32 0.35355338, %v1897_v55  ;;  %v1983_v63 = vmul.f32 0.35355338, %v1923_v56 }
 0x1a0   : > { %v1990_v0 = vadd.f32 %v1982_v59, %v1043_v37  ;;  %v1991_v1 = vadd.f32 %v1983_v63, %v1043_v37 }
 0x1a2   : > { %v1845_v44 = vpop.f32.mrf.mxu2  ;;  %v1871_v45 = vpop.f32.mrf.mxu3  ;;  %v2006_v2 = vsel %vm1769_vm2, %v1990_v0, -inf  ;;  %v2009_v3 = vsel %vm1769_vm2, %v1991_v1, -inf }
 0x1a3   : > { %v1980_v46 = vmul.f32 0.35355338, %v1845_v44  ;;  %v1981_v48 = vmul.f32 0.35355338, %v1871_v45 }
 0x1a5   : > { %v1988_v47 = vadd.f32 %v1980_v46, %v1043_v37  ;;  %v1989_v54 = vadd.f32 %v1981_v48, %v1043_v37 }
 0x1a7   : > { %v2000_v49 = vsel %vm1769_vm2, %v1988_v47, -inf  ;;  %v2003_v60 = vsel %vm1769_vm2, %v1989_v54, -inf }
 0x1a8   : > { %2001 = vmax.xlane.f32.xlu0 %v2000_v49 }
 0x1aa   : > { %v1949_v50 = vpop.f32.mrf.mxu2  ;;  %v1975_v51 = vpop.f32.mrf.mxu3 }
 0x1ab   : > { %v1984_v52 = vmul.f32 0.35355338, %v1949_v50  ;;  %v1985_v53 = vmul.f32 0.35355338, %v1975_v51 }
 0x1ad   : > { %v1993_v57 = vadd.f32 %v1985_v53, %v1043_v37  ;;  %v1992_v58 = vadd.f32 %v1984_v52, %v1043_v37 }
 0x1af   : > { %v2015_v61 = vsel %vm1769_vm2, %v1993_v57, -inf  ;;  %v2012_v62 = vsel %vm1769_vm2, %v1992_v58, -inf }
 0x1b0   : > { %2004 = vmax.xlane.f32.xlu0 %v2003_v60  ;;  %2016 = vmax.xlane.f32.xlu2 %v2015_v61 }
 0x1b1   : > { %2013 = vmax.xlane.f32.xlu1 %v2012_v62 }
 0x1b8   : > { %2007 = vmax.xlane.f32.xlu0 %v2006_v2 }
 0x1b9   : > { %2010 = vmax.xlane.f32.xlu1 %v2009_v3 }
 0x20e   : > { %v1996_v4 = vpop.xlane.xlu1 %1995  ;;  %v1999_v9 = vpop.xlane.xlu2 %1998 }
 0x20f   : > { %v2018_v5 = vsub.f32 %v1986_v41, %v1996_v4  ;;  %v2019_v21 = vsub.f32 %v6197_v40, %v1999_v9  ;;  %v2272_v9 = vld [vmem:[%s6008_s12 + $0x30] sm:$0xff] }
 0x211   : > { %v2026_v6 = vmul.f32 1.442695, %v2018_v5  ;;  %v2028_v26 = vmul.f32 1.442695, %v2019_v21  ;;  %v2266_v5 = vld [vmem:[%s6008_s12] sm:$0xff] }
 0x213   : > { %5356 = vpow2.f32 %v2026_v6  ;;  %v2268_v6 = vld [vmem:[%s6008_s12 + $0x10] sm:$0xff] }
 0x219   : > { %v5357_v8 = vpop.eup %5356 }
 0x21a   : > { %v2042_v11 = vsel %vm1769_vm2, %v5357_v8, 0.0 }
 0x21b   : > { %v2002_v10 = vpop.xlane.xlu0 %2001  ;;  %2043 = vadd.xlane.f32.xlu1 %v2042_v11  ;;  %v2270_v11 = vld [vmem:[%s6008_s12 + $0x20] sm:$0xff] }
 0x21c   : > { %v2020_v12 = vsub.f32 %v1988_v47, %v2002_v10  ;;  %v2267_v10 = vld [vmem:[%s6008_s12 + $0x8] sm:$0xff] }
 0x21e   : > { %v2030_v13 = vmul.f32 1.442695, %v2020_v12  ;;  %v2273_v12 = vld [vmem:[%s6008_s12 + $0x38] sm:$0xff] }
 0x220   : > { %5358 = vpow2.f32 %v2030_v13 }
 0x223   : > { %v2005_v14 = vpop.xlane.xlu0 %2004  ;;  %v2017_v15 = vpop.xlane.xlu2 %2016 }
 0x224   : > { %v2021_v16 = vsub.f32 %v1989_v54, %v2005_v14  ;;  %v2025_v17 = vsub.f32 %v1993_v57, %v2017_v15  ;;  %v2014_v18 = vpop.xlane.xlu1 %2013  ;;  %v2271_v14 = vld [vmem:[%s6008_s12 + $0x28] sm:$0xff] }
 0x225   : > { %v2024_v19 = vsub.f32 %v1992_v58, %v2014_v18 }
 0x226   : > { %v5359_v20 = vpop.eup %5358  ;;  %v2032_v22 = vmul.f32 1.442695, %v2021_v16  ;;  %v2040_v23 = vmul.f32 1.442695, %v2025_v17 }
 0x227   : > { %v2038_v24 = vmul.f32 1.442695, %v2024_v19  ;;  %v2048_v25 = vsel %vm1769_vm2, %v5359_v20, 0.0 }
 0x228   : > { %5360 = vpow2.f32 %v2032_v22  ;;  %2049 = vadd.xlane.f32.xlu2 %v2048_v25 }
 0x229   : > { %5362 = vpow2.f32 %v2040_v23 }
 0x22a   : > { %5364 = vpow2.f32 %v2038_v24 }
 0x22b   : > { %v2008_v27 = vpop.xlane.xlu0 %2007  ;;  %5366 = vpow2.f32 %v2028_v26 }
 0x22c   : > { %v2011_v28 = vpop.xlane.xlu1 %2010  ;;  %v2022_v29 = vsub.f32 %v1990_v0, %v2008_v27 }
 0x22d   : > { %v2023_v31 = vsub.f32 %v1991_v1, %v2011_v28 }
 0x22e   : > { %v5361_v30 = vpop.eup %5360  ;;  %v2034_v32 = vmul.f32 1.442695, %v2022_v29 }
 0x22f   : > { %v5363_v33 = vpop.eup %5362  ;;  %v2051_v34 = vsel %vm1769_vm2, %v5361_v30, 0.0  ;;  %v2036_v38 = vmul.f32 1.442695, %v2023_v31 }
 0x230   : > { %v5365_v35 = vpop.eup %5364  ;;  %5368 = vpow2.f32 %v2034_v32  ;;  %v2063_v36 = vsel %vm1769_vm2, %v5363_v33, 0.0  ;;  %2052 = vadd.xlane.f32.xlu0 %v2051_v34 }
 0x231   : > { %2064 = vadd.xlane.f32.xlu1 %v2063_v36  ;;  %v2060_v37 = vsel %vm1769_vm2, %v5365_v35, 0.0  ;;  %v5367_v39 = vpop.eup %5366  ;;  %5370 = vpow2.f32 %v2036_v38 }
 0x232   : > { %2061 = vadd.xlane.f32.xlu2 %v2060_v37  ;;  %v2045_v41 = vsel %vm1769_vm2, %v5367_v39, 0.0 }
 0x236   : > { %v5369_v40 = vpop.eup %5368 }
 0x237   : > { %v2054_v42 = vsel %vm1769_vm2, %v5369_v40, 0.0  ;;  %v5371_v43 = vpop.eup %5370 }
 0x238   : > { %2046 = vadd.xlane.f32.xlu0 %v2045_v41  ;;  %v2057_v44 = vsel %vm1769_vm2, %v5371_v43, 0.0 }
 0x23a   : > { %2055 = vadd.xlane.f32.xlu2 %v2054_v42 }
 0x240   : > { %2058 = vadd.xlane.f32.xlu0 %v2057_v44 }
 0x28e   : > { %v2044_v45 = vpop.xlane.xlu1 %2043 }
 0x28f   : > { %5372 = vrcp.f32 %v2044_v45 }
 0x295   : > { %v5373_v46 = vpop.eup %5372 }
 0x296   : > { %v2074_v47 = vmul.f32 %v5373_v46, %v5357_v8  ;;  %v2269_v8 = vld [vmem:[%s6008_s12 + $0x18] sm:$0xff] }
 0x298   : > { %5013 = vmatmul.msk.f32.vlgmr.msra.gmra.mxu0 %vm1769_vm2, %v2074_v47 }
 0x299   : > { %2292 = vmatpush.msra.mxu0 %v2266_v5 }
 0x29b   : > { %v2050_v48 = vpop.xlane.xlu2 %2049 }
 0x29c   : > { %5374 = vrcp.f32 %v2050_v48 }
 0x2a2   : > { %v5375_v49 = vpop.eup %5374 }
 0x2a3   : > { %v2076_v50 = vmul.f32 %v5375_v49, %v5359_v20  ;;  %v2053_v51 = vpop.xlane.xlu0 %2052  ;;  %v5689_v49 = vmov 64.0  }
 0x2a4   : > { %5376 = vrcp.f32 %v2053_v51  ;;  %v2065_v53 = vpop.xlane.xlu1 %2064 }
 0x2a5   : > { %v2062_v52 = vpop.xlane.xlu2 %2061  ;;  %5015 = vmatmul.msk.f32.vlgmr.msra.gmra.mxu2 %vm1769_vm2, %v2076_v50 }
 0x2a6   : > { %5378 = vrcp.f32 %v2062_v52  ;;  %2338 = vmatpush.msra.mxu2 %v2268_v6 }
 0x2a7   : > { %5380 = vrcp.f32 %v2065_v53 }
 0x2aa   : > { %v5377_v54 = vpop.eup %5376 }
 0x2ab   : > { %v2077_v55 = vmul.f32 %v5377_v54, %v5361_v30  ;;  %v2047_v56 = vpop.xlane.xlu0 %2046 }
 0x2ac   : > { %v5379_v57 = vpop.eup %5378  ;;  %5382 = vrcp.f32 %v2047_v56 }
 0x2ad   : > { %v2080_v58 = vmul.f32 %v5379_v57, %v5365_v35  ;;  %v2056_v59 = vpop.xlane.xlu2 %2055  ;;  %5016 = vmatmul.msk.f32.vlgmr.msra.gmra.mxu3 %vm1769_vm2, %v2077_v55  ;;  %v5381_v60 = vpop.eup %5380 }
 0x2ae   : > { %5384 = vrcp.f32 %v2056_v59  ;;  %v2081_v62 = vmul.f32 %v5381_v60, %v5363_v33  ;;  %2361 = vmatpush.msra.mxu3 %v2269_v8  ;;  %v2518_v60 = vld [vmem:[%s5955_s23] sm:$0xff] }
 0x2af   : > { %5019 = vmatmul.msk.f32.vlgmr.msrb.gmra.mxu2 %vm1769_vm2, %v2080_v58 }
 0x2b0   : > { %2430 = vmatpush.msrb.mxu2 %v2272_v9 }
 0x2b2   : > { %v5383_v61 = vpop.eup %5382 }
 0x2b3   : > { %v2075_v63 = vmul.f32 %v5383_v61, %v5367_v39  ;;  %v2059_v0 = vpop.xlane.xlu0 %2058  ;;  %v5031_v61 = vld [vmem:[%s5955_s23 + $0x8] sm:$0xff] }
 0x2b4   : > { %v5385_v1 = vpop.eup %5384  ;;  %5386 = vrcp.f32 %v2059_v0  ;;  %v5040_v0 = vld [vmem:[%s5955_s23 + $0x20] sm:$0xff] }
 0x2b5   : > { %v2078_v2 = vmul.f32 %v5385_v1, %v5369_v40  ;;  %5014 = vmatmul.msk.f32.vlgmr.msra.gmra.mxu1 %vm1769_vm2, %v2075_v63  ;;  %5020 = vmatmul.msk.f32.vlgmr.msrb.gmra.mxu3 %vm1769_vm2, %v2081_v62  ;;  %5388 = vrcp.f32 %v5689_v49  ;;  %v5034_v62 = vld [vmem:[%s5955_s23 + $0x10] sm:$0xff]  ;;  %v5037_v63 = vld [vmem:[%s5955_s23 + $0x18] sm:$0xff]  ;;  %v5043_v1 = vld [vmem:[%s5955_s23 + $0x28] sm:$0xff] }
 0x2b6   : > { %2315 = vmatpush.msra.mxu1 %v2267_v10  ;;  %2453 = vmatpush.msrb.mxu3 %v2273_v12 }
 0x2b7   : > { %5017 = vmatmul.msk.f32.vlgmr.msrb.gmra.mxu0 %vm1769_vm2, %v2078_v2  ;;  %v5046_v2 = vld [vmem:[%s5955_s23 + $0x30] sm:$0xff] }
 0x2b8   : > { %2384 = vmatpush.msrb.mxu0 %v2270_v11 }
 0x2ba   : > { %v5387_v3 = vpop.eup %5386 }
 0x2bb   : > { %v2079_v4 = vmul.f32 %v5387_v3, %v5371_v43  ;;  %v5323_v43 = vld [vmem:[%s6820_s15] ss:$0 sm:$0xff]  ;;  %v5389_v50 = vpop.eup %5388  ;;  %v5049_v3 = vld [vmem:[%s5955_s23 + $0x38] sm:$0xff] }
 0x2bc   : > { %v2485_v51 = vmul.f32 64.0, %v5389_v50  ;;  %vm2489_vm3 = vweird.f32 %v5389_v50 }
 0x2bd   : > { %5018 = vmatmul.msk.f32.vlgmr.msrb.gmra.mxu1 %vm1769_vm2, %v2079_v4 }
 0x2be   : > { %2407 = vmatpush.msrb.mxu1 %v2271_v14  ;;  %v2486_v52 = vsub.f32 1.0, %v2485_v51  ;;  %v5324_v14 = vld [vmem:[%s6038_s25] ss:$0 sm:$0xff] }
 0x2c0   : > { %v2487_v53 = vmul.f32 %v5389_v50, %v2486_v52 }
 0x2c2   : > { %v2488_v54 = vadd.f32 %v5389_v50, %v2487_v53 }
 0x2c4   : > { %v6256_v55 = vsel %vm2489_vm3, %v5389_v50, %v2488_v54 }
 0x315   : > { %v2102_v13 = vpop.f32.mrf.mxu0 }
 0x316   : > { %5021 = vmatmul.msk.f32.vlgmr.msra.gmra.mxu0 %vm1769_vm2, %v2102_v13 }
 0x317   : > { %5029 = vmatpush.xpose.msk.msra.mxu0 %vm1045_vm1, %v2518_v60  ;;  %v5329_v60 = vld [vmem:[%s6823_s1 + $0x3] ss:$0 sm:$0xff] }
 0x328   : > { %v2148_v15 = vpop.f32.mrf.mxu2 }
 0x329   : > { %5023 = vmatmul.msk.f32.vlgmr.msra.gmra.mxu2 %vm1769_vm2, %v2148_v15 }
 0x32a   : > { %5035 = vmatpush.xpose.msk.msra.mxu2 %vm1045_vm1, %v5034_v62 }
 0x330   : > { %v2171_v16 = vpop.f32.mrf.mxu3 }
 0x331   : > { %5024 = vmatmul.msk.f32.vlgmr.msra.gmra.mxu3 %vm1769_vm2, %v2171_v16  ;;  %v5325_v16 = vld [vmem:[%s6043_s24] ss:$0 sm:$0xff] }
 0x332   : > { %v2240_v17 = vpop.f32.mrf.mxu2  ;;  %v2125_v18 = vpop.f32.mrf.mxu1  ;;  %5038 = vmatpush.xpose.msk.msra.mxu3 %vm1045_vm1, %v5037_v63  ;;  %v5330_v63 = vld [vmem:[%s6823_s1 + $0x4] ss:$0 sm:$0xff] }
 0x333   : > { %5027 = vmatmul.msk.f32.vlgmr.msrb.gmra.mxu2 %vm1769_vm2, %v2240_v17  ;;  %5022 = vmatmul.msk.f32.vlgmr.msra.gmra.mxu1 %vm1769_vm2, %v2125_v18 }
 0x334   : > { %v2194_v19 = vpop.f32.mrf.mxu0  ;;  %5032 = vmatpush.xpose.msk.msra.mxu1 %vm1045_vm1, %v5031_v61  ;;  %5047 = vmatpush.xpose.msk.msrb.mxu2 %vm1045_vm1, %v5046_v2 }
 0x335   : > { %5025 = vmatmul.msk.f32.vlgmr.msrb.gmra.mxu0 %vm1769_vm2, %v2194_v19 }
 0x336   : > { %5041 = vmatpush.xpose.msk.msrb.mxu0 %vm1045_vm1, %v5040_v0  ;;  %v5331_v0 = vld [vmem:[%s6823_s1 + $0x5] ss:$0 sm:$0xff] }
 0x338   : > { %v2263_v20 = vpop.f32.mrf.mxu3 }
 0x339   : > { %5028 = vmatmul.msk.f32.vlgmr.msrb.gmra.mxu3 %vm1769_vm2, %v2263_v20  ;;  %v5052_v20 = vld [vmem:[%s5955_s23 + $0x40] sm:$0xff] }
 0x33a   : > { %v2217_v21 = vpop.f32.mrf.mxu1  ;;  %5050 = vmatpush.xpose.msk.msrb.mxu3 %vm1045_vm1, %v5049_v3 }
 0x33b   : > { %5026 = vmatmul.msk.f32.vlgmr.msrb.gmra.mxu1 %vm1769_vm2, %v2217_v21  ;;  %v5055_v21 = vld [vmem:[%s5955_s23 + $0x48] sm:$0xff] }
 0x33c   : > { %5044 = vmatpush.xpose.msk.msrb.mxu1 %vm1045_vm1, %v5043_v1 }
 0x393   : > { %v2294_v22 = vpop.f32.mrf.mxu0 }
 0x394   : > { %v2458_v25 = vsel %vm1045_vm1, %v2294_v22, 0.0  ;;  %v5058_v22 = vld [vmem:[%s5955_s23 + $0x50] sm:$0xff] }
 0x3ac   : > { %v2340_v23 = vpop.f32.mrf.mxu2 }
 0x3ad   : > { %v2461_v28 = vsel %vm1045_vm1, %v2340_v23, 0.0  ;;  %v5061_v23 = vld [vmem:[%s5955_s23 + $0x58] sm:$0xff] }
 0x3b0   : > { %v2317_v24 = vpop.f32.mrf.mxu1 }
 0x3b1   : > { %v2459_v26 = vsel %vm1045_vm1, %v2317_v24, 0.0  ;;  %v5064_v24 = vld [vmem:[%s5955_s23 + $0x60] sm:$0xff] }
 0x3b2   : > { %v2460_v27 = vadd.f32 %v2459_v26, %v2458_v25  ;;  %v2386_v29 = vpop.f32.mrf.mxu0  ;;  %v5067_v25 = vld [vmem:[%s5955_s23 + $0x68] sm:$0xff]  ;;  %v5070_v26 = vld [vmem:[%s5955_s23 + $0x70] sm:$0xff] }
 0x3b3   : > { %v2465_v34 = vsel %vm1045_vm1, %v2386_v29, 0.0  ;;  %v5084_v29 = vld [vmem:[%s5955_s23 + $0x80] sm:$0xff] }
 0x3b4   : > { %v2363_v30 = vpop.f32.mrf.mxu3  ;;  %v2462_v31 = vadd.f32 %v2461_v28, %v2460_v27  ;;  %v5073_v27 = vld [vmem:[%s5955_s23 + $0x78] sm:$0xff]  ;;  %v1042_v28 = vld [vmem:[%s6822_s21] sm:$0xff] }
 0x3b5   : > { %v2463_v32 = vsel %vm1045_vm1, %v2363_v30, 0.0  ;;  %v5087_v30 = vld [vmem:[%s5955_s23 + $0x88] sm:$0xff] }
 0x3b6   : > { %v2464_v33 = vadd.f32 %v2463_v32, %v2462_v31  ;;  %v2432_v35 = vpop.f32.mrf.mxu2  ;;  %v5090_v31 = vld [vmem:[%s5955_s23 + $0x90] sm:$0xff]  ;;  %v5093_v32 = vld [vmem:[%s5955_s23 + $0x98] sm:$0xff] }
 0x3b7   : > { %v2469_v40 = vsel %vm1045_vm1, %v2432_v35, 0.0  ;;  %v5102_v35 = vld [vmem:[%s5955_s23 + $0xb0] sm:$0xff] }
 0x3b8   : > { %v2409_v36 = vpop.f32.mrf.mxu1  ;;  %v2466_v37 = vadd.f32 %v2465_v34, %v2464_v33  ;;  %v5096_v33 = vld [vmem:[%s5955_s23 + $0xa0] sm:$0xff]  ;;  %v5099_v34 = vld [vmem:[%s5955_s23 + $0xa8] sm:$0xff] }
 0x3b9   : > { %v2467_v38 = vsel %vm1045_vm1, %v2409_v36, 0.0  ;;  %v5105_v36 = vld [vmem:[%s5955_s23 + $0xb8] sm:$0xff]  ;;  %s6824_s23 = sld [smem:[#allocation30_spill]] }
 0x3ba   : > { %v2468_v39 = vadd.f32 %v2467_v38, %v2466_v37 }
 0x3bc   : > { %v2455_v41 = vpop.f32.mrf.mxu3  ;;  %v2470_v42 = vadd.f32 %v2469_v40, %v2468_v39 }
 0x3bd   : > { %v2471_v44 = vsel %vm1045_vm1, %v2455_v41, 0.0 }
 0x3be   : > { %v2472_v45 = vadd.f32 %v2471_v44, %v2470_v42  ;;  %v5335_v44 = vld [vmem:[%s6823_s1 + $0x9] ss:$0 sm:$0xff] }
 0x3c0   : > { %v2477_v46 = vadd.f32 %v5323_v43, %v2472_v45  ;;  %v5334_v43 = vld [vmem:[%s6823_s1 + $0x8] ss:$0 sm:$0xff] }
 0x3c2   : > { %v2478_v47 = vadd.f32 %v2477_v46, %v6064_v7 }
 0x3c4   : > { %v2481_v48 = vsel %vm1045_vm1, %v2478_v47, 0.0 }
 0x3c5   : > { %2482 = vadd.xlane.f32.xlu1 %v2481_v48  ;;  %v5327_v48 = vld [vmem:[%s6823_s1 + $0x1] ss:$0 sm:$0xff] }
 0x438   : > { %v2483_v7 = vpop.xlane.xlu1 %2482 }
 0x439   : > { %v2491_v56 = vmul.f32 %v6256_v55, %v2483_v7  ;;  %v5336_v7 = vld [vmem:[%s6823_s1 + $0xa] ss:$0 sm:$0xff] }
 0x43b   : > { %v2492_v57 = vsub.f32 %v2478_v47, %v2491_v56  ;;  %v5326_v47 = vld [vmem:[%s6823_s1] ss:$0 sm:$0xff]  ;;  %v5337_v56 = vld [vmem:[%s6823_s1 + $0xb] ss:$0 sm:$0xff] }
 0x43d   : > { %v2493_v58 = vmul.f32 %v2492_v57, %v2492_v57 }
 0x43f   : > { %v2494_v59 = vsel %vm1045_vm1, %v2493_v58, 0.0  ;;  %v5339_v58 = vld [vmem:[%s6823_s1 + $0xd] ss:$0 sm:$0xff] }
 0x440   : > { %2495 = vadd.xlane.f32.xlu2 %v2494_v59  ;;  %v5328_v59 = vld [vmem:[%s6823_s1 + $0x2] ss:$0 sm:$0xff] }
 0x4b3   : > { %v2496_v4 = vpop.xlane.xlu2 %2495 }
 0x4b4   : > { %v2497_v5 = vmul.f32 %v2496_v4, %v6256_v55 }
 0x4b6   : > { %v2498_v6 = vadd.f32 1e-05, %v2497_v5 }
 0x4b8   : > { %5390 = vrsqrt.f32 %v2498_v6  ;;  %vm2505_vm5 = vweird.f32 %v2498_v6 }
 0x4be   : > { %v5391_v8 = vpop.eup %5390 }
 0x4bf   : > { %v2500_v9 = vmul.f32 %v5391_v8, %v2498_v6  ;;  %vm2506_vm4 = vweird.f32 %v5391_v8 }
 0x4c0   : > { %vm2507_vm6 = vmor %vm2505_vm5, %vm2506_vm4 }
 0x4c1   : > { %v2501_v10 = vmul.f32 %v5391_v8, %v2500_v9 }
 0x4c3   : > { %v2502_v11 = vmul.f32 0.5, %v2501_v10 }
 0x4c5   : > { %v2503_v12 = vsub.f32 1.5, %v2502_v11 }
 0x4c7   : > { %v2504_v13 = vmul.f32 %v5391_v8, %v2503_v12  ;;  %v5340_v12 = vld [vmem:[%s6823_s1 + $0xe] ss:$0 sm:$0xff] }
 0x4c9   : > { %v2508_v15 = vsel %vm2507_vm6, %v5391_v8, %v2504_v13  ;;  %v5341_v13 = vld [vmem:[%s6823_s1 + $0xf] ss:$0 sm:$0xff] }
 0x4ca   : > { %v2509_v17 = vmul.f32 %v2508_v15, %v2492_v57  ;;  %v5338_v57 = vld [vmem:[%s6823_s1 + $0xc] ss:$0 sm:$0xff]  ;;  %v5333_v15 = vld [vmem:[%s6823_s1 + $0x7] ss:$0 sm:$0xff] }
 0x4cc   : > { %v2513_v18 = vmul.f32 %v5324_v14, %v2509_v17  ;;  %v5332_v14 = vld [vmem:[%s6823_s1 + $0x6] ss:$0 sm:$0xff] }
 0x4ce   : > { %v6279_v19 = vadd.f32 %v5325_v16, %v2513_v18 }
 0x4d0   : > { %5030 = vmatmul.msk.f32.vlgmr.msra.gmra.mxu0 %vm1045_vm1, %v6279_v19  ;;  %5033 = vmatmul.msk.f32.vlgmr.msra.gmra.mxu1 %vm1045_vm1, %v6279_v19 }
 0x4d1   : > { %5036 = vmatmul.msk.f32.vlgmr.msra.gmra.mxu2 %vm1045_vm1, %v6279_v19  ;;  %5039 = vmatmul.msk.f32.vlgmr.msra.gmra.mxu3 %vm1045_vm1, %v6279_v19 }
 0x4d2   : > { %5053 = vmatpush.xpose.msk.msra.mxu0 %vm1045_vm1, %v5052_v20  ;;  %5056 = vmatpush.xpose.msk.msra.mxu1 %vm1045_vm1, %v5055_v21 }
 0x4d3   : > { %5059 = vmatpush.xpose.msk.msra.mxu2 %vm1045_vm1, %v5058_v22  ;;  %5062 = vmatpush.xpose.msk.msra.mxu3 %vm1045_vm1, %v5061_v23  ;;  %v5342_v23 = vld [vmem:[%s6823_s1 + $0x10] ss:$0 sm:$0xff] }
 0x4d8   : > { %5042 = vmatmul.msk.f32.vlgmr.msrb.gmra.mxu0 %vm1045_vm1, %v6279_v19  ;;  %5045 = vmatmul.msk.f32.vlgmr.msrb.gmra.mxu1 %vm1045_vm1, %v6279_v19 }
 0x4d9   : > { %5048 = vmatmul.msk.f32.vlgmr.msrb.gmra.mxu2 %vm1045_vm1, %v6279_v19  ;;  %5051 = vmatmul.msk.f32.vlgmr.msrb.gmra.mxu3 %vm1045_vm1, %v6279_v19 }
 0x4da   : > { %5065 = vmatpush.xpose.msk.msrb.mxu0 %vm1045_vm1, %v5064_v24  ;;  %5068 = vmatpush.xpose.msk.msrb.mxu1 %vm1045_vm1, %v5067_v25  ;;  %v5343_v24 = vld [vmem:[%s6823_s1 + $0x11] ss:$0 sm:$0xff] }
 0x4db   : > { %5071 = vmatpush.xpose.msk.msrb.mxu2 %vm1045_vm1, %v5070_v26  ;;  %5074 = vmatpush.xpose.msk.msrb.mxu3 %vm1045_vm1, %v5073_v27 }
 0x4e0   : > { %5054 = vmatmul.msk.f32.vlgmr.msra.gmra.mxu0 %vm1045_vm1, %v1042_v28  ;;  %5057 = vmatmul.msk.f32.vlgmr.msra.gmra.mxu1 %vm1045_vm1, %v1042_v28 }
 0x4e1   : > { %5060 = vmatmul.msk.f32.vlgmr.msra.gmra.mxu2 %vm1045_vm1, %v1042_v28  ;;  %5063 = vmatmul.msk.f32.vlgmr.msra.gmra.mxu3 %vm1045_vm1, %v1042_v28 }
 0x4e2   : > { %5085 = vmatpush.xpose.msk.msra.mxu0 %vm1045_vm1, %v5084_v29  ;;  %5088 = vmatpush.xpose.msk.msra.mxu1 %vm1045_vm1, %v5087_v30  ;;  %v5344_v29 = vld [vmem:[%s6823_s1 + $0x14] ss:$0 sm:$0xff]  ;;  %v5345_v30 = vld [vmem:[%s6823_s1 + $0x15] ss:$0 sm:$0xff] }
 0x4e3   : > { %5091 = vmatpush.xpose.msk.msra.mxu2 %vm1045_vm1, %v5090_v31  ;;  %5094 = vmatpush.xpose.msk.msra.mxu3 %vm1045_vm1, %v5093_v32 }
 0x4e8   : > { %5066 = vmatmul.msk.f32.vlgmr.msrb.gmra.mxu0 %vm1045_vm1, %v1042_v28  ;;  %5069 = vmatmul.msk.f32.vlgmr.msrb.gmra.mxu1 %vm1045_vm1, %v1042_v28 }
 0x4e9   : > { %5072 = vmatmul.msk.f32.vlgmr.msrb.gmra.mxu2 %vm1045_vm1, %v1042_v28  ;;  %5075 = vmatmul.msk.f32.vlgmr.msrb.gmra.mxu3 %vm1045_vm1, %v1042_v28 }
 0x4ea   : > { %5097 = vmatpush.xpose.msk.msrb.mxu0 %vm1045_vm1, %v5096_v33  ;;  %5100 = vmatpush.xpose.msk.msrb.mxu1 %vm1045_vm1, %v5099_v34 }
 0x4eb   : > { %5103 = vmatpush.xpose.msk.msrb.mxu2 %vm1045_vm1, %v5102_v35  ;;  %5106 = vmatpush.xpose.msk.msrb.mxu3 %vm1045_vm1, %v5105_v36  ;;  %v5346_v35 = vld [vmem:[%s6823_s1 + $0x12] ss:$0 sm:$0xff]  ;;  %v5347_v36 = vld [vmem:[%s6823_s1 + $0x13] ss:$0 sm:$0xff] }
 0x4f0   : > { %5086 = vmatmul.msk.f32.vlgmr.msra.gmra.mxu0 %vm1045_vm1, %v1042_v28  ;;  %5089 = vmatmul.msk.f32.vlgmr.msra.gmra.mxu1 %vm1045_vm1, %v1042_v28 }
 0x4f1   : > { %5092 = vmatmul.msk.f32.vlgmr.msra.gmra.mxu2 %vm1045_vm1, %v1042_v28  ;;  %5095 = vmatmul.msk.f32.vlgmr.msra.gmra.mxu3 %vm1045_vm1, %v1042_v28 }
 0x4f8   : > { %5098 = vmatmul.msk.f32.vlgmr.msrb.gmra.mxu0 %vm1045_vm1, %v1042_v28  ;;  %5101 = vmatmul.msk.f32.vlgmr.msrb.gmra.mxu1 %vm1045_vm1, %v1042_v28 }
 0x4f9   : > { %5104 = vmatmul.msk.f32.vlgmr.msrb.gmra.mxu2 %vm1045_vm1, %v1042_v28  ;;  %5107 = vmatmul.msk.f32.vlgmr.msrb.gmra.mxu3 %vm1045_vm1, %v1042_v28 }
 0x54d   : > { %v2542_v37 = vpop.f32.mrf.mxu0  ;;  %v2567_v38 = vpop.f32.mrf.mxu1 }
 0x54e   : > { %v2752_v53 = vadd.f32 %v5326_v47, %v2542_v37  ;;  %v2753_v54 = vadd.f32 %v5327_v48, %v2567_v38 }
 0x554   : > { %v2592_v39 = vpop.f32.mrf.mxu2  ;;  %v2617_v40 = vpop.f32.mrf.mxu3 }
 0x555   : > { %v2642_v41 = vpop.f32.mrf.mxu0  ;;  %v2667_v42 = vpop.f32.mrf.mxu1  ;;  %v2754_v8 = vadd.f32 %v5328_v59, %v2592_v39  ;;  %v2755_v9 = vadd.f32 %v5329_v60, %v2617_v40 }
 0x556   : > { %v2756_v10 = vadd.f32 %v5330_v63, %v2642_v41  ;;  %v2757_v11 = vadd.f32 %v5331_v0, %v2667_v42  ;;  %v5348_v41 = vld [vmem:[%s6823_s1 + $0x16] ss:$0 sm:$0xff]  ;;  %v5349_v42 = vld [vmem:[%s6823_s1 + $0x17] ss:$0 sm:$0xff] }
 0x55c   : > { %v2692_v45 = vpop.f32.mrf.mxu2  ;;  %v2717_v46 = vpop.f32.mrf.mxu3 }
 0x55d   : > { %v2785_v49 = vpop.f32.mrf.mxu0  ;;  %v2810_v50 = vpop.f32.mrf.mxu1  ;;  %v2758_v21 = vadd.f32 %v5332_v14, %v2692_v45  ;;  %v2759_v22 = vadd.f32 %v5333_v15, %v2717_v46 }
 0x55e   : > { %v2996_v51 = vadd.f32 %v5334_v43, %v2785_v49  ;;  %v2997_v52 = vadd.f32 %v5335_v44, %v2810_v50 }
 0x560   : > { %5116 = vmatpush.xpose.msk.msra.mxu0 %vm1769_vm2, %v2996_v51  ;;  %5118 = vmatpush.xpose.msk.msra.mxu1 %vm1769_vm2, %v2997_v52 }
 0x563   : > { %5117 = vmatmul.msk.f32.vlgmr.msra.gmra.mxu0 %vm1769_vm2, %v2752_v53  ;;  %5119 = vmatmul.msk.f32.vlgmr.msra.gmra.mxu1 %vm1769_vm2, %v2753_v54 }
 0x564   : > { %v2835_v61 = vpop.f32.mrf.mxu2  ;;  %v2860_v62 = vpop.f32.mrf.mxu3 }
 0x565   : > { %v2998_v1 = vadd.f32 %v5336_v7, %v2835_v61  ;;  %v2999_v2 = vadd.f32 %v5337_v56, %v2860_v62  ;;  %v2885_v3 = vpop.f32.mrf.mxu0  ;;  %v2910_v4 = vpop.f32.mrf.mxu1 }
 0x566   : > { %v3000_v5 = vadd.f32 %v5338_v57, %v2885_v3  ;;  %v3001_v6 = vadd.f32 %v5339_v58, %v2910_v4 }
 0x567   : > { %5120 = vmatpush.xpose.msk.msra.mxu2 %vm1769_vm2, %v2998_v1  ;;  %5122 = vmatpush.xpose.msk.msra.mxu3 %vm1769_vm2, %v2999_v2 }
 0x568   : > { %5124 = vmatpush.xpose.msk.msrb.mxu0 %vm1769_vm2, %v3000_v5  ;;  %5126 = vmatpush.xpose.msk.msrb.mxu1 %vm1769_vm2, %v3001_v6 }
 0x56a   : > { %5121 = vmatmul.msk.f32.vlgmr.msra.gmra.mxu2 %vm1769_vm2, %v2754_v8  ;;  %5123 = vmatmul.msk.f32.vlgmr.msra.gmra.mxu3 %vm1769_vm2, %v2755_v9 }
 0x56b   : > { %5125 = vmatmul.msk.f32.vlgmr.msrb.gmra.mxu0 %vm1769_vm2, %v2756_v10  ;;  %5127 = vmatmul.msk.f32.vlgmr.msrb.gmra.mxu1 %vm1769_vm2, %v2757_v11 }
 0x56c   : > { %v2935_v16 = vpop.f32.mrf.mxu2  ;;  %v2960_v17 = vpop.f32.mrf.mxu3 }
 0x56d   : > { %v3002_v18 = vadd.f32 %v5340_v12, %v2935_v16  ;;  %v3003_v20 = vadd.f32 %v5341_v13, %v2960_v17  ;;  %v3026_v25 = vpop.f32.mrf.mxu0  ;;  %v3051_v26 = vpop.f32.mrf.mxu1 }
 0x56e   : > { %v3237_v27 = vadd.f32 %v5342_v23, %v3026_v25  ;;  %v3238_v28 = vadd.f32 %v5343_v24, %v3051_v26 }
 0x56f   : > { %5128 = vmatpush.xpose.msk.msrb.mxu2 %vm1769_vm2, %v3002_v18  ;;  %5130 = vmatpush.xpose.msk.msrb.mxu3 %vm1769_vm2, %v3003_v20 }
 0x570   : > { %3567 = vmatpush.msra.mxu0 %v3237_v27  ;;  %3590 = vmatpush.msra.mxu1 %v3238_v28 }
 0x572   : > { %5129 = vmatmul.msk.f32.vlgmr.msrb.gmra.mxu2 %vm1769_vm2, %v2758_v21  ;;  %5131 = vmatmul.msk.f32.vlgmr.msrb.gmra.mxu3 %vm1769_vm2, %v2759_v22 }
 0x574   : > { %v3076_v37 = vpop.f32.mrf.mxu2  ;;  %v3101_v38 = vpop.f32.mrf.mxu3 }
 0x575   : > { %v3126_v31 = vpop.f32.mrf.mxu0  ;;  %v3151_v32 = vpop.f32.mrf.mxu1  ;;  %v3239_v39 = vadd.f32 %v5346_v35, %v3076_v37  ;;  %v3240_v40 = vadd.f32 %v5347_v36, %v3101_v38 }
 0x576   : > { %v3241_v33 = vadd.f32 %v5344_v29, %v3126_v31  ;;  %v3242_v34 = vadd.f32 %v5345_v30, %v3151_v32 }
 0x577   : > { %3613 = vmatpush.msra.mxu2 %v3239_v39  ;;  %3636 = vmatpush.msra.mxu3 %v3240_v40 }
 0x578   : > { %3659 = vmatpush.msrb.mxu0 %v3241_v33  ;;  %3682 = vmatpush.msrb.mxu1 %v3242_v34 }
 0x57c   : > { %v3176_v43 = vpop.f32.mrf.mxu2  ;;  %v3201_v44 = vpop.f32.mrf.mxu3 }
 0x57d   : > { %v3243_v45 = vadd.f32 %v5348_v41, %v3176_v43  ;;  %v3244_v46 = vadd.f32 %v5349_v42, %v3201_v44 }
 0x57f   : > { %3705 = vmatpush.msrb.mxu2 %v3243_v45  ;;  %3728 = vmatpush.msrb.mxu3 %v3244_v46 }
 0x5e0   : > { %v3268_v47 = vpop.f32.mrf.mxu0  ;;  %v3294_v54 = vpop.f32.mrf.mxu1 }
 0x5e1   : > { %v3453_v48 = vmul.f32 0.35355338, %v3268_v47  ;;  %v3454_v57 = vmul.f32 0.35355338, %v3294_v54 }
 0x5e3   : > { %v3461_v49 = vsel %vm1769_vm2, %v3453_v48, -inf  ;;  %v3464_v63 = vsel %vm1769_vm2, %v3454_v57, -inf }
 0x5e4   : > { %3462 = vmax.xlane.f32.xlu2 %v3461_v49 }
 0x5e8   : > { %v3372_v1 = vpop.f32.mrf.mxu0  ;;  %v3398_v2 = vpop.f32.mrf.mxu1 }
 0x5e9   : > { %v3457_v3 = vmul.f32 0.35355338, %v3372_v1  ;;  %v3458_v4 = vmul.f32 0.35355338, %v3398_v2 }
 0x5eb   : > { %v3476_v5 = vsel %vm1769_vm2, %v3458_v4, -inf  ;;  %v3473_v6 = vsel %vm1769_vm2, %v3457_v3, -inf }
 0x5ed   : > { %v3320_v50 = vpop.f32.mrf.mxu2  ;;  %v3346_v51 = vpop.f32.mrf.mxu3 }
 0x5ee   : > { %v3455_v52 = vmul.f32 0.35355338, %v3320_v50  ;;  %v3456_v53 = vmul.f32 0.35355338, %v3346_v51 }
 0x5f0   : > { %v3470_v7 = vsel %vm1769_vm2, %v3456_v53, -inf  ;;  %v3467_v56 = vsel %vm1769_vm2, %v3455_v52, -inf }
 0x5f1   : > { %3471 = vmax.xlane.f32.xlu1 %v3470_v7  ;;  %3468 = vmax.xlane.f32.xlu0 %v3467_v56 }
 0x5f5   : > { %v3424_v58 = vpop.f32.mrf.mxu2  ;;  %v3450_v59 = vpop.f32.mrf.mxu3 }
 0x5f6   : > { %v3459_v60 = vmul.f32 0.35355338, %v3424_v58  ;;  %v3460_v61 = vmul.f32 0.35355338, %v3450_v59 }
 0x5f8   : > { %v3479_v62 = vsel %vm1769_vm2, %v3459_v60, -inf  ;;  %v3482_v0 = vsel %vm1769_vm2, %v3460_v61, -inf }
 0x5f9   : > { %3480 = vmax.xlane.f32.xlu0 %v3479_v62  ;;  %3465 = vmax.xlane.f32.xlu1 %v3464_v63 }
 0x5fa   : > { %3483 = vmax.xlane.f32.xlu2 %v3482_v0 }
 0x601   : > { %3477 = vmax.xlane.f32.xlu1 %v3476_v5  ;;  %3474 = vmax.xlane.f32.xlu0 %v3473_v6 }
 0x657   : > { %v3463_v8 = vpop.xlane.xlu2 %3462 }
 0x658   : > { %v3485_v9 = vsub.f32 %v3453_v48, %v3463_v8 }
 0x65a   : > { %v3493_v10 = vmul.f32 1.442695, %v3485_v9 }
 0x65c   : > { %5392 = vpow2.f32 %v3493_v10  ;;  %v3733_v10 = vld [vmem:[%s6018_s2] sm:$0xff] }
 0x662   : > { %v5393_v11 = vpop.eup %5392 }
 0x663   : > { %v3509_v12 = vsel %vm1769_vm2, %v5393_v11, 0.0 }
 0x664   : > { %v3472_v13 = vpop.xlane.xlu1 %3471  ;;  %v3469_v14 = vpop.xlane.xlu0 %3468  ;;  %3510 = vadd.xlane.f32.xlu1 %v3509_v12  ;;  %v3736_v12 = vld [vmem:[%s6018_s2 + $0x18] sm:$0xff] }
 0x665   : > { %v3488_v15 = vsub.f32 %v3456_v53, %v3472_v13  ;;  %v3487_v16 = vsub.f32 %v3455_v52, %v3469_v14  ;;  %v3734_v13 = vld [vmem:[%s6018_s2 + $0x8] sm:$0xff]  ;;  %v3739_v14 = vld [vmem:[%s6018_s2 + $0x30] sm:$0xff] }
 0x667   : > { %v3499_v17 = vmul.f32 1.442695, %v3488_v15  ;;  %v3497_v18 = vmul.f32 1.442695, %v3487_v16  ;;  %v3737_v15 = vld [vmem:[%s6018_s2 + $0x20] sm:$0xff]  ;;  %v3740_v16 = vld [vmem:[%s6018_s2 + $0x38] sm:$0xff] }
 0x669   : > { %5394 = vpow2.f32 %v3499_v17  ;;  %v3738_v17 = vld [vmem:[%s6018_s2 + $0x28] sm:$0xff] }
 0x66a   : > { %5396 = vpow2.f32 %v3497_v18 }
 0x66c   : > { %v3481_v20 = vpop.xlane.xlu0 %3480  ;;  %v3466_v21 = vpop.xlane.xlu1 %3465 }
 0x66d   : > { %v3491_v22 = vsub.f32 %v3459_v60, %v3481_v20  ;;  %v3486_v23 = vsub.f32 %v3454_v57, %v3466_v21  ;;  %v3484_v24 = vpop.xlane.xlu2 %3483 }
 0x66e   : > { %v3492_v25 = vsub.f32 %v3460_v61, %v3484_v24 }
 0x66f   : > { %v5395_v26 = vpop.eup %5394  ;;  %v3505_v27 = vmul.f32 1.442695, %v3491_v22  ;;  %v3495_v28 = vmul.f32 1.442695, %v3486_v23 }
 0x670   : > { %v5397_v29 = vpop.eup %5396  ;;  %v3507_v30 = vmul.f32 1.442695, %v3492_v25  ;;  %v3518_v31 = vsel %vm1769_vm2, %v5395_v26, 0.0 }
 0x671   : > { %5398 = vpow2.f32 %v3505_v27  ;;  %v3515_v32 = vsel %vm1769_vm2, %v5397_v29, 0.0  ;;  %3519 = vadd.xlane.f32.xlu0 %v3518_v31 }
 0x672   : > { %5400 = vpow2.f32 %v3495_v28  ;;  %3516 = vadd.xlane.f32.xlu2 %v3515_v32 }
 0x673   : > { %5402 = vpow2.f32 %v3507_v30 }
 0x674   : > { %v3478_v33 = vpop.xlane.xlu1 %3477  ;;  %v3475_v34 = vpop.xlane.xlu0 %3474 }
 0x675   : > { %v3490_v35 = vsub.f32 %v3458_v4, %v3478_v33  ;;  %v3489_v36 = vsub.f32 %v3457_v3, %v3475_v34 }
 0x677   : > { %v5399_v37 = vpop.eup %5398  ;;  %v3503_v38 = vmul.f32 1.442695, %v3490_v35  ;;  %v3501_v39 = vmul.f32 1.442695, %v3489_v36 }
 0x678   : > { %v5401_v40 = vpop.eup %5400  ;;  %v3527_v41 = vsel %vm1769_vm2, %v5399_v37, 0.0 }
 0x679   : > { %v5403_v42 = vpop.eup %5402  ;;  %5404 = vpow2.f32 %v3503_v38  ;;  %v3512_v43 = vsel %vm1769_vm2, %v5401_v40, 0.0 }
 0x67a   : > { %5406 = vpow2.f32 %v3501_v39  ;;  %3528 = vadd.xlane.f32.xlu2 %v3527_v41  ;;  %v3530_v44 = vsel %vm1769_vm2, %v5403_v42, 0.0  ;;  %3513 = vadd.xlane.f32.xlu0 %v3512_v43 }
 0x67b   : > { %3531 = vadd.xlane.f32.xlu1 %v3530_v44 }
 0x67f   : > { %v5405_v45 = vpop.eup %5404 }
 0x680   : > { %v5407_v46 = vpop.eup %5406  ;;  %v3524_v47 = vsel %vm1769_vm2, %v5405_v45, 0.0 }
 0x681   : > { %v3521_v48 = vsel %vm1769_vm2, %v5407_v46, 0.0 }
 0x682   : > { %3525 = vadd.xlane.f32.xlu0 %v3524_v47  ;;  %3522 = vadd.xlane.f32.xlu2 %v3521_v48  ;;  %v5350_v48 = vld [vmem:[%s1014_s19] ss:$0 sm:$0xff]  ;;  %s6826_s19 = sld [smem:[#allocation31_spill]] }
 0x6d7   : > { %v3511_v49 = vpop.xlane.xlu1 %3510 }
 0x6d8   : > { %5408 = vrcp.f32 %v3511_v49 }
 0x6de   : > { %v5409_v50 = vpop.eup %5408 }
 0x6df   : > { %v3541_v51 = vmul.f32 %v5409_v50, %v5393_v11  ;;  %v3735_v11 = vld [vmem:[%s6018_s2 + $0x10] sm:$0xff]  ;;  %s6830_s2 = sld [smem:[#allocation50_spill]] (!%p5160_p10) }
 0x6e1   : > { %5132 = vmatmul.msk.f32.vlgmr.msra.gmra.mxu0 %vm1769_vm2, %v3541_v51 }
 0x6e2   : > { %3759 = vmatpush.msra.mxu0 %v3733_v10  ;;  %v4015_v10 = vld [vmem:[%s6824_s23 + $0x118] sm:$0xff] }
 0x6e4   : > { %v3520_v52 = vpop.xlane.xlu0 %3519 }
 0x6e5   : > { %v3517_v53 = vpop.xlane.xlu2 %3516  ;;  %5410 = vrcp.f32 %v3520_v52 }
 0x6e6   : > { %5412 = vrcp.f32 %v3517_v53 }
 0x6eb   : > { %v5411_v54 = vpop.eup %5410 }
 0x6ec   : > { %v5413_v7 = vpop.eup %5412  ;;  %v3544_v56 = vmul.f32 %v5411_v54, %v5395_v26 }
 0x6ed   : > { %v3543_v57 = vmul.f32 %v5413_v7, %v5397_v29  ;;  %v3529_v58 = vpop.xlane.xlu2 %3528  ;;  %v3514_v59 = vpop.xlane.xlu0 %3513 }
 0x6ee   : > { %v3532_v60 = vpop.xlane.xlu1 %3531  ;;  %5414 = vrcp.f32 %v3529_v58  ;;  %5135 = vmatmul.msk.f32.vlgmr.msra.gmra.mxu3 %vm1769_vm2, %v3544_v56 }
 0x6ef   : > { %5416 = vrcp.f32 %v3532_v60  ;;  %5134 = vmatmul.msk.f32.vlgmr.msra.gmra.mxu2 %vm1769_vm2, %v3543_v57  ;;  %3828 = vmatpush.msra.mxu3 %v3736_v12  ;;  %v4038_v60 = vld [vmem:[%s6824_s23 + $0x1d0] sm:$0xff]  ;;  %v4005_v12 = vld [vmem:[%s6824_s23 + $0xc8] sm:$0xff] }
 0x6f0   : > { %5418 = vrcp.f32 %v3514_v59  ;;  %3805 = vmatpush.msra.mxu2 %v3735_v11  ;;  %v4036_v59 = vld [vmem:[%s6824_s23 + $0x1c0] sm:$0xff] }
 0x6f1   : > { %v4004_v11 = vld [vmem:[%s6824_s23 + $0xc0] sm:$0xff] }
 0x6f4   : > { %v5415_v61 = vpop.eup %5414 }
 0x6f5   : > { %v5417_v62 = vpop.eup %5416  ;;  %v3547_v63 = vmul.f32 %v5415_v61, %v5399_v37  ;;  %v3523_v0 = vpop.xlane.xlu2 %3522  ;;  %v4039_v61 = vld [vmem:[%s6824_s23 + $0x1d8] sm:$0xff] }
 0x6f6   : > { %v3526_v1 = vpop.xlane.xlu0 %3525  ;;  %v5419_v2 = vpop.eup %5418  ;;  %v3548_v3 = vmul.f32 %v5417_v62, %v5403_v42  ;;  %5420 = vrcp.f32 %v3523_v0  ;;  %v4028_v62 = vld [vmem:[%s6824_s23 + $0x180] sm:$0xff]  ;;  %v4030_v0 = vld [vmem:[%s6824_s23 + $0x190] sm:$0xff] }
 0x6f7   : > { %v3542_v4 = vmul.f32 %v5419_v2, %v5401_v40  ;;  %5422 = vrcp.f32 %v3526_v1  ;;  %5138 = vmatmul.msk.f32.vlgmr.msrb.gmra.mxu2 %vm1769_vm2, %v3547_v63  ;;  %v4029_v63 = vld [vmem:[%s6824_s23 + $0x188] sm:$0xff]  ;;  %v4031_v1 = vld [vmem:[%s6824_s23 + $0x198] sm:$0xff]  ;;  %v4020_v2 = vld [vmem:[%s6824_s23 + $0x140] sm:$0xff] }
 0x6f8   : > { %5139 = vmatmul.msk.f32.vlgmr.msrb.gmra.mxu3 %vm1769_vm2, %v3548_v3  ;;  %3897 = vmatpush.msrb.mxu2 %v3739_v14  ;;  %v4021_v3 = vld [vmem:[%s6824_s23 + $0x148] sm:$0xff]  ;;  %v4007_v14 = vld [vmem:[%s6824_s23 + $0xd8] sm:$0xff] }
 0x6f9   : > { %5133 = vmatmul.msk.f32.vlgmr.msra.gmra.mxu1 %vm1769_vm2, %v3542_v4  ;;  %3920 = vmatpush.msrb.mxu3 %v3740_v16  ;;  %v4022_v4 = vld [vmem:[%s6824_s23 + $0x150] sm:$0xff]  ;;  %v3997_v16 = vld [vmem:[%s6824_s23 + $0x88] sm:$0xff] }
 0x6fa   : > { %3782 = vmatpush.msra.mxu1 %v3734_v13  ;;  %v4006_v13 = vld [vmem:[%s6824_s23 + $0xd0] sm:$0xff] }
 0x6fc   : > { %v5421_v5 = vpop.eup %5420 }
 0x6fd   : > { %v5423_v6 = vpop.eup %5422  ;;  %v3545_v8 = vmul.f32 %v5421_v5, %v5407_v46  ;;  %v4023_v5 = vld [vmem:[%s6824_s23 + $0x158] sm:$0xff] }
 0x6fe   : > { %v3546_v9 = vmul.f32 %v5423_v6, %v5405_v45  ;;  %v4012_v6 = vld [vmem:[%s6824_s23 + $0x100] sm:$0xff] }
 0x6ff   : > { %5136 = vmatmul.msk.f32.vlgmr.msrb.gmra.mxu0 %vm1769_vm2, %v3545_v8  ;;  %v4013_v8 = vld [vmem:[%s6824_s23 + $0x108] sm:$0xff] }
 0x700   : > { %3851 = vmatpush.msrb.mxu0 %v3737_v15  ;;  %v3996_v15 = vld [vmem:[%s6824_s23 + $0x80] sm:$0xff] }
 0x701   : > { %5137 = vmatmul.msk.f32.vlgmr.msrb.gmra.mxu1 %vm1769_vm2, %v3546_v9  ;;  %v4014_v9 = vld [vmem:[%s6824_s23 + $0x110] sm:$0xff] }
 0x702   : > { %3874 = vmatpush.msrb.mxu1 %v3738_v17  ;;  %v3998_v17 = vld [vmem:[%s6824_s23 + $0x90] sm:$0xff] }
 0x75e   : > { %v3569_v18 = vpop.f32.mrf.mxu0 }
 0x75f   : > { %5140 = vmatmul.msk.f32.vlgmr.msra.gmra.mxu0 %vm1769_vm2, %v3569_v18  ;;  %v3999_v18 = vld [vmem:[%s6824_s23 + $0x98] sm:$0xff] }
 0x760   : > { %4073 = vmatpush.msra.mxu0 %v4036_v59  ;;  %v3995_v59 = vld [vmem:[%s6824_s23 + $0x78] sm:$0xff] }
 0x762   : > { %4074 = vmatpush.msra.mxu0 %v4028_v62  ;;  %v3987_v62 = vld [vmem:[%s6824_s23 + $0x38] sm:$0xff] }
 0x764   : > { %4075 = vmatpush.msra.mxu0 %v4020_v2 }
 0x766   : > { %4076 = vmatpush.msra.mxu0 %v4012_v6 }
 0x768   : > { %4077 = vmatpush.msra.mxu0 %v4004_v11 }
 0x76a   : > { %4078 = vmatpush.msra.mxu0 %v3996_v15  ;;  %v4292_v15 = vld [vmem:[%s6826_s19 + $0x1d8] sm:$0xff] }
 0x771   : > { %v3638_v20 = vpop.f32.mrf.mxu3 }
 0x772   : > { %v3615_v21 = vpop.f32.mrf.mxu2  ;;  %5143 = vmatmul.msk.f32.vlgmr.msra.gmra.mxu3 %vm1769_vm2, %v3638_v20  ;;  %v3988_v20 = vld [vmem:[%s6824_s23 + $0x40] sm:$0xff] }
 0x773   : > { %5142 = vmatmul.msk.f32.vlgmr.msra.gmra.mxu2 %vm1769_vm2, %v3615_v21  ;;  %4133 = vmatpush.msra.mxu3 %v4039_v61  ;;  %v3989_v21 = vld [vmem:[%s6824_s23 + $0x48] sm:$0xff]  ;;  %v3986_v61 = vld [vmem:[%s6824_s23 + $0x30] sm:$0xff] }
 0x774   : > { %4113 = vmatpush.msra.mxu2 %v4038_v60  ;;  %4079 = vmatpush.msra.mxu0 %v3988_v20  ;;  %v3985_v60 = vld [vmem:[%s6824_s23 + $0x28] sm:$0xff]  ;;  %v4273_v20 = vld [vmem:[%s6826_s19 + $0x140] sm:$0xff] }
 0x775   : > { %4134 = vmatpush.msra.mxu3 %v4031_v1 }
 0x776   : > { %v3592_v22 = vpop.f32.mrf.mxu1  ;;  %4114 = vmatpush.msra.mxu2 %v4030_v0 }
 0x777   : > { %5141 = vmatmul.msk.f32.vlgmr.msra.gmra.mxu1 %vm1769_vm2, %v3592_v22  ;;  %4135 = vmatpush.msra.mxu3 %v4023_v5  ;;  %v3990_v22 = vld [vmem:[%s6824_s23 + $0x50] sm:$0xff]  ;;  %v5351_v5 = vld [vmem:[%s6038_s25 + $0x1] ss:$0 sm:$0xff] }
 0x778   : > { %4115 = vmatpush.msra.mxu2 %v4022_v4 }
 0x779   : > { %4136 = vmatpush.msra.mxu3 %v4015_v10 }
 0x77a   : > { %v3707_v23 = vpop.f32.mrf.mxu2  ;;  %4116 = vmatpush.msra.mxu2 %v4014_v9 }
 0x77b   : > { %v3730_v24 = vpop.f32.mrf.mxu3  ;;  %5146 = vmatmul.msk.f32.vlgmr.msrb.gmra.mxu2 %vm1769_vm2, %v3707_v23  ;;  %4137 = vmatpush.msra.mxu3 %v4007_v14  ;;  %v3991_v23 = vld [vmem:[%s6824_s23 + $0x58] sm:$0xff]  ;;  %v4291_v14 = vld [vmem:[%s6826_s19 + $0x1d0] sm:$0xff] }
 0x77c   : > { %5147 = vmatmul.msk.f32.vlgmr.msrb.gmra.mxu3 %vm1769_vm2, %v3730_v24  ;;  %v3661_v25 = vpop.f32.mrf.mxu0  ;;  %4117 = vmatpush.msra.mxu2 %v4006_v13  ;;  %v3980_v24 = vld [vmem:[%s6824_s23] sm:$0xff]  ;;  %v4290_v13 = vld [vmem:[%s6826_s19 + $0x1c8] sm:$0xff] }
 0x77d   : > { %5144 = vmatmul.msk.f32.vlgmr.msrb.gmra.mxu0 %vm1769_vm2, %v3661_v25  ;;  %4138 = vmatpush.msra.mxu3 %v3999_v18  ;;  %v3981_v25 = vld [vmem:[%s6824_s23 + $0x8] sm:$0xff]  ;;  %v4284_v18 = vld [vmem:[%s6826_s19 + $0x198] sm:$0xff] }
 0x77e   : > { %v3684_v26 = vpop.f32.mrf.mxu1  ;;  %4118 = vmatpush.msra.mxu2 %v3998_v17  ;;  %4080 = vmatpush.msra.mxu0 %v3980_v24  ;;  %v4283_v17 = vld [vmem:[%s6826_s19 + $0x190] sm:$0xff]  ;;  %v4265_v24 = vld [vmem:[%s6826_s19 + $0x100] sm:$0xff] }
 0x77f   : > { %5145 = vmatmul.msk.f32.vlgmr.msrb.gmra.mxu1 %vm1769_vm2, %v3684_v26  ;;  %4139 = vmatpush.msra.mxu3 %v3991_v23  ;;  %v3982_v26 = vld [vmem:[%s6824_s23 + $0x10] sm:$0xff]  ;;  %v4276_v23 = vld [vmem:[%s6826_s19 + $0x158] sm:$0xff] }
 0x780   : > { %4119 = vmatpush.msra.mxu2 %v3990_v22  ;;  %v4275_v22 = vld [vmem:[%s6826_s19 + $0x150] sm:$0xff] }
 0x782   : > { %4120 = vmatpush.msra.mxu2 %v3982_v26  ;;  %v4267_v26 = vld [vmem:[%s6826_s19 + $0x110] sm:$0xff] }
 0x7dc   : > { %v3761_v27 = vpop.f32.mrf.mxu0 }
 0x7dd   : > { %v3925_v29 = vsel %vm1045_vm1, %v3761_v27, 0.0  ;;  %v3983_v27 = vld [vmem:[%s6824_s23 + $0x18] sm:$0xff] }
 0x7de   : > { %4140 = vmatpush.msra.mxu3 %v3983_v27  ;;  %v4268_v27 = vld [vmem:[%s6826_s19 + $0x118] sm:$0xff] }
 0x7f4   : > { %v3784_v28 = vpop.f32.mrf.mxu1 }
 0x7f5   : > { %v3926_v30 = vsel %vm1045_vm1, %v3784_v28, 0.0  ;;  %v3830_v31 = vpop.f32.mrf.mxu3  ;;  %v4040_v28 = vld [vmem:[%s6824_s23 + $0x1e0] sm:$0xff] }
 0x7f6   : > { %v3927_v32 = vadd.f32 %v3926_v30, %v3925_v29  ;;  %v3807_v33 = vpop.f32.mrf.mxu2  ;;  %v3930_v36 = vsel %vm1045_vm1, %v3830_v31, 0.0  ;;  %v4041_v29 = vld [vmem:[%s6824_s23 + $0x1e8] sm:$0xff]  ;;  %v4042_v30 = vld [vmem:[%s6824_s23 + $0x1f0] sm:$0xff]  ;;  %v4043_v31 = vld [vmem:[%s6824_s23 + $0x1f8] sm:$0xff]  ;;  %4153 = vmatpush.msrb.mxu0 %v4040_v28 }
 0x7f7   : > { %v3928_v34 = vsel %vm1045_vm1, %v3807_v33, 0.0  ;;  %v4033_v33 = vld [vmem:[%s6824_s23 + $0x1a8] sm:$0xff]  ;;  %4193 = vmatpush.msrb.mxu2 %v4042_v30  ;;  %4213 = vmatpush.msrb.mxu3 %v4043_v31  ;;  %v4257_v28 = vld [vmem:[%s6826_s19 + $0xc0] sm:$0xff]  ;;  %v4259_v30 = vld [vmem:[%s6826_s19 + $0xd0] sm:$0xff] }
 0x7f8   : > { %v3929_v35 = vadd.f32 %v3928_v34, %v3927_v32  ;;  %v4032_v32 = vld [vmem:[%s6824_s23 + $0x1a0] sm:$0xff]  ;;  %v4034_v34 = vld [vmem:[%s6824_s23 + $0x1b0] sm:$0xff]  ;;  %v4260_v31 = vld [vmem:[%s6826_s19 + $0xd8] sm:$0xff] }
 0x7f9   : > { %4154 = vmatpush.msrb.mxu0 %v4032_v32  ;;  %4194 = vmatpush.msrb.mxu2 %v4034_v34  ;;  %v4249_v32 = vld [vmem:[%s6826_s19 + $0x80] sm:$0xff]  ;;  %v4251_v34 = vld [vmem:[%s6826_s19 + $0x90] sm:$0xff] }
 0x7fa   : > { %v3931_v37 = vadd.f32 %v3930_v36, %v3929_v35  ;;  %v3853_v38 = vpop.f32.mrf.mxu0  ;;  %v4035_v35 = vld [vmem:[%s6824_s23 + $0x1b8] sm:$0xff]  ;;  %v4024_v36 = vld [vmem:[%s6824_s23 + $0x160] sm:$0xff] }
 0x7fb   : > { %v3932_v39 = vsel %vm1045_vm1, %v3853_v38, 0.0  ;;  %v4026_v38 = vld [vmem:[%s6824_s23 + $0x170] sm:$0xff]  ;;  %4214 = vmatpush.msrb.mxu3 %v4035_v35  ;;  %4155 = vmatpush.msrb.mxu0 %v4024_v36  ;;  %v4252_v35 = vld [vmem:[%s6826_s19 + $0x98] sm:$0xff]  ;;  %v4241_v36 = vld [vmem:[%s6826_s19 + $0x40] sm:$0xff] }
 0x7fc   : > { %v3933_v40 = vadd.f32 %v3932_v39, %v3931_v37  ;;  %v3876_v41 = vpop.f32.mrf.mxu1  ;;  %v4025_v37 = vld [vmem:[%s6824_s23 + $0x168] sm:$0xff]  ;;  %v4027_v39 = vld [vmem:[%s6824_s23 + $0x178] sm:$0xff]  ;;  %4195 = vmatpush.msrb.mxu2 %v4026_v38  ;;  %v4243_v38 = vld [vmem:[%s6826_s19 + $0x50] sm:$0xff] }
 0x7fd   : > { %v3934_v42 = vsel %vm1045_vm1, %v3876_v41, 0.0  ;;  %v4017_v41 = vld [vmem:[%s6824_s23 + $0x128] sm:$0xff]  ;;  %4215 = vmatpush.msrb.mxu3 %v4027_v39  ;;  %v4244_v39 = vld [vmem:[%s6826_s19 + $0x58] sm:$0xff] }
 0x7fe   : > { %v3935_v43 = vadd.f32 %v3934_v42, %v3933_v40  ;;  %v3899_v44 = vpop.f32.mrf.mxu2  ;;  %v4016_v40 = vld [vmem:[%s6824_s23 + $0x120] sm:$0xff]  ;;  %v4018_v42 = vld [vmem:[%s6824_s23 + $0x130] sm:$0xff] }
 0x7ff   : > { %v3936_v45 = vsel %vm1045_vm1, %v3899_v44, 0.0  ;;  %v3922_v46 = vpop.f32.mrf.mxu3  ;;  %v4008_v44 = vld [vmem:[%s6824_s23 + $0xe0] sm:$0xff]  ;;  %4156 = vmatpush.msrb.mxu0 %v4016_v40  ;;  %4196 = vmatpush.msrb.mxu2 %v4018_v42 }
 0x800   : > { %v3937_v47 = vadd.f32 %v3936_v45, %v3935_v43  ;;  %v3938_v49 = vsel %vm1045_vm1, %v3922_v46, 0.0  ;;  %v4019_v43 = vld [vmem:[%s6824_s23 + $0x138] sm:$0xff]  ;;  %v4009_v45 = vld [vmem:[%s6824_s23 + $0xe8] sm:$0xff]  ;;  %v4010_v46 = vld [vmem:[%s6824_s23 + $0xf0] sm:$0xff] }
 0x801   : > { %4216 = vmatpush.msrb.mxu3 %v4019_v43  ;;  %4157 = vmatpush.msrb.mxu0 %v4008_v44  ;;  %v4233_v40 = vld [vmem:[%s6826_s19] sm:$0xff]  ;;  %v4294_v43 = vld [vmem:[%s6826_s19 + $0x1e8] sm:$0xff]  ;;  %v4235_v44 = vld [vmem:[%s6826_s19 + $0x10] sm:$0xff] }
 0x802   : > { %v3939_v50 = vadd.f32 %v3938_v49, %v3937_v47  ;;  %v4011_v47 = vld [vmem:[%s6824_s23 + $0xf8] sm:$0xff]  ;;  %v4000_v49 = vld [vmem:[%s6824_s23 + $0xa0] sm:$0xff]  ;;  %4197 = vmatpush.msrb.mxu2 %v4010_v46  ;;  %v4295_v46 = vld [vmem:[%s6826_s19 + $0x1f0] sm:$0xff] }
 0x803   : > { %4217 = vmatpush.msrb.mxu3 %v4011_v47  ;;  %4158 = vmatpush.msrb.mxu0 %v4000_v49  ;;  %v4293_v42 = vld [vmem:[%s6826_s19 + $0x1e0] sm:$0xff]  ;;  %v4296_v47 = vld [vmem:[%s6826_s19 + $0x1f8] sm:$0xff]  ;;  %v4286_v49 = vld [vmem:[%s6826_s19 + $0x1a8] sm:$0xff] }
 0x804   : > { %v3944_v51 = vadd.f32 %v5350_v48, %v3939_v50  ;;  %v4001_v50 = vld [vmem:[%s6824_s23 + $0xa8] sm:$0xff] }
 0x806   : > { %v3945_v52 = vadd.f32 %v3944_v51, %v6279_v19  ;;  %v4037_v19 = vld [vmem:[%s6824_s23 + $0x1c8] sm:$0xff] }
 0x807   : > { %4093 = vmatpush.msra.mxu1 %v4037_v19  ;;  %v3984_v19 = vld [vmem:[%s6824_s23 + $0x20] sm:$0xff] }
 0x808   : > { %v3950_v53 = vsel %vm1045_vm1, %v3945_v52, 0.0 }
 0x809   : > { %3951 = vadd.xlane.f32.xlu1 %v3950_v53  ;;  %4094 = vmatpush.msra.mxu1 %v4029_v63  ;;  %v4003_v53 = vld [vmem:[%s6824_s23 + $0xb8] sm:$0xff] }
 0x80a   : > { %4218 = vmatpush.msrb.mxu3 %v4003_v53  ;;  %v4278_v53 = vld [vmem:[%s6826_s19 + $0x168] sm:$0xff] }
 0x80b   : > { %4095 = vmatpush.msra.mxu1 %v4021_v3 }
 0x80c   : > { %4219 = vmatpush.msrb.mxu3 %v3995_v59  ;;  %v4261_v59 = vld [vmem:[%s6826_s19 + $0xe0] sm:$0xff] }
 0x80d   : > { %4096 = vmatpush.msra.mxu1 %v4013_v8  ;;  %v5352_v8 = vld [vmem:[%s6043_s24 + $0x1] ss:$0 sm:$0xff] }
 0x80e   : > { %4220 = vmatpush.msrb.mxu3 %v3987_v62  ;;  %v4253_v62 = vld [vmem:[%s6826_s19 + $0xa0] sm:$0xff] }
 0x80f   : > { %4097 = vmatpush.msra.mxu1 %v4005_v12  ;;  %v4289_v12 = vld [vmem:[%s6826_s19 + $0x1c0] sm:$0xff] }
 0x811   : > { %4098 = vmatpush.msra.mxu1 %v3997_v16  ;;  %v4282_v16 = vld [vmem:[%s6826_s19 + $0x188] sm:$0xff] }
 0x813   : > { %4099 = vmatpush.msra.mxu1 %v3989_v21  ;;  %v4274_v21 = vld [vmem:[%s6826_s19 + $0x148] sm:$0xff] }
 0x815   : > { %4100 = vmatpush.msra.mxu1 %v3981_v25  ;;  %v4266_v25 = vld [vmem:[%s6826_s19 + $0x108] sm:$0xff] }
 0x817   : > { %4173 = vmatpush.msrb.mxu1 %v4041_v29  ;;  %v4258_v29 = vld [vmem:[%s6826_s19 + $0xc8] sm:$0xff] }
 0x819   : > { %4174 = vmatpush.msrb.mxu1 %v4033_v33  ;;  %v4250_v33 = vld [vmem:[%s6826_s19 + $0x88] sm:$0xff] }
 0x81b   : > { %4175 = vmatpush.msrb.mxu1 %v4025_v37  ;;  %v4242_v37 = vld [vmem:[%s6826_s19 + $0x48] sm:$0xff] }
 0x81d   : > { %4176 = vmatpush.msrb.mxu1 %v4017_v41  ;;  %v4234_v41 = vld [vmem:[%s6826_s19 + $0x8] sm:$0xff] }
 0x81f   : > { %4177 = vmatpush.msrb.mxu1 %v4009_v45  ;;  %v4236_v45 = vld [vmem:[%s6826_s19 + $0x18] sm:$0xff] }
 0x821   : > { %4178 = vmatpush.msrb.mxu1 %v4001_v50  ;;  %v4287_v50 = vld [vmem:[%s6826_s19 + $0x1b0] sm:$0xff] }
 0x87c   : > { %v3952_v54 = vpop.xlane.xlu1 %3951 }
 0x87d   : > { %v3953_v7 = vmul.f32 %v3952_v54, %v6256_v55  ;;  %v3992_v54 = vld [vmem:[%s6824_s23 + $0x60] sm:$0xff] }
 0x87e   : > { %4159 = vmatpush.msrb.mxu0 %v3992_v54  ;;  %v4279_v54 = vld [vmem:[%s6826_s19 + $0x170] sm:$0xff] }
 0x87f   : > { %v6446_v56 = vsub.f32 %v3945_v52, %v3953_v7  ;;  %v4002_v52 = vld [vmem:[%s6824_s23 + $0xb0] sm:$0xff]  ;;  %v3993_v7 = vld [vmem:[%s6824_s23 + $0x68] sm:$0xff] }
 0x880   : > { %4198 = vmatpush.msrb.mxu2 %v4002_v52  ;;  %4179 = vmatpush.msrb.mxu1 %v3993_v7  ;;  %v4277_v52 = vld [vmem:[%s6826_s19 + $0x160] sm:$0xff]  ;;  %v4280_v7 = vld [vmem:[%s6826_s19 + $0x178] sm:$0xff] }
 0x881   : > { %v3955_v57 = vmul.f32 %v6446_v56, %v6446_v56  ;;  %4160 = vmatpush.msrb.mxu0 %v3984_v19  ;;  %v4262_v19 = vld [vmem:[%s6826_s19 + $0xe8] sm:$0xff] }
 0x882   : > { %4180 = vmatpush.msrb.mxu1 %v3985_v60  ;;  %v4271_v60 = vld [vmem:[%s6826_s19 + $0x130] sm:$0xff] }
 0x883   : > { %v3956_v58 = vsel %vm1045_vm1, %v3955_v57, 0.0 }
 0x884   : > { %3957 = vadd.xlane.f32.xlu2 %v3956_v58  ;;  %v3994_v58 = vld [vmem:[%s6824_s23 + $0x70] sm:$0xff] }
 0x885   : > { %4199 = vmatpush.msrb.mxu2 %v3994_v58  ;;  %v4270_v58 = vld [vmem:[%s6826_s19 + $0x128] sm:$0xff] }
 0x887   : > { %4200 = vmatpush.msrb.mxu2 %v3986_v61  ;;  %v4272_v61 = vld [vmem:[%s6826_s19 + $0x138] sm:$0xff] }
 0x8f7   : > { %v3958_v48 = vpop.xlane.xlu2 %3957 }
 0x8f8   : > { %v3959_v51 = vmul.f32 %v3958_v48, %v6256_v55  ;;  %v4285_v48 = vld [vmem:[%s6826_s19 + $0x1a0] sm:$0xff] }
 0x8fa   : > { %v3960_v57 = vadd.f32 1e-05, %v3959_v51  ;;  %v4288_v51 = vld [vmem:[%s6826_s19 + $0x1b8] sm:$0xff] }
 0x8fc   : > { %5424 = vrsqrt.f32 %v3960_v57  ;;  %vm3967_vm8 = vweird.f32 %v3960_v57 }
 0x902   : > { %v5425_v63 = vpop.eup %5424 }
 0x903   : > { %v3962_v0 = vmul.f32 %v5425_v63, %v3960_v57  ;;  %vm3968_vm7 = vweird.f32 %v5425_v63  ;;  %v4269_v57 = vld [vmem:[%s6826_s19 + $0x120] sm:$0xff] }
 0x904   : > { %vm3969_vm9 = vmor %vm3967_vm8, %vm3968_vm7 }
 0x905   : > { %v3963_v1 = vmul.f32 %v5425_v63, %v3962_v0  ;;  %v4263_v0 = vld [vmem:[%s6826_s19 + $0xf0] sm:$0xff] }
 0x907   : > { %v3964_v2 = vmul.f32 0.5, %v3963_v1  ;;  %v4264_v1 = vld [vmem:[%s6826_s19 + $0xf8] sm:$0xff] }
 0x909   : > { %v3965_v3 = vsub.f32 1.5, %v3964_v2  ;;  %v4245_v2 = vld [vmem:[%s6826_s19 + $0x60] sm:$0xff] }
 0x90b   : > { %v3966_v4 = vmul.f32 %v5425_v63, %v3965_v3  ;;  %v4246_v3 = vld [vmem:[%s6826_s19 + $0x68] sm:$0xff] }
 0x90d   : > { %v3970_v6 = vsel %vm3969_vm9, %v5425_v63, %v3966_v4  ;;  %v4254_v63 = vld [vmem:[%s6826_s19 + $0xa8] sm:$0xff]  ;;  %v4255_v4 = vld [vmem:[%s6826_s19 + $0xb0] sm:$0xff] }
 0x90e   : > { %v3971_v9 = vmul.f32 %v3970_v6, %v6446_v56  ;;  %v4281_v56 = vld [vmem:[%s6826_s19 + $0x180] sm:$0xff] }
 0x90f   : > { %v4237_v6 = vld [vmem:[%s6826_s19 + $0x20] sm:$0xff] }
 0x910   : > { %v3975_v10 = vmul.f32 %v5351_v5, %v3971_v9  ;;  %v4256_v5 = vld [vmem:[%s6826_s19 + $0xb8] sm:$0xff]  ;;  %v4247_v9 = vld [vmem:[%s6826_s19 + $0x70] sm:$0xff] }
 0x912   : > { %v6519_v11 = vadd.f32 %v5352_v8, %v3975_v10  ;;  %v4238_v8 = vld [vmem:[%s6826_s19 + $0x28] sm:$0xff]  ;;  %v4248_v10 = vld [vmem:[%s6826_s19 + $0x78] sm:$0xff] }
 0x914   : > { %5150 = vmatmul.msk.f32.vlgmr.msra.gmra.mxu0 %vm1045_vm1, %v6519_v11  ;;  %5151 = vmatmul.msk.f32.vlgmr.msra.gmra.mxu1 %vm1045_vm1, %v6519_v11 }
 0x915   : > { %5152 = vmatmul.msk.f32.vlgmr.msra.gmra.mxu2 %vm1045_vm1, %v6519_v11  ;;  %5153 = vmatmul.msk.f32.vlgmr.msra.gmra.mxu3 %vm1045_vm1, %v6519_v11 }
 0x916   : > { %4309 = vmatpush.xpose.msra.mxu0 %v4289_v12  ;;  %4329 = vmatpush.xpose.msra.mxu1 %v4290_v13  ;;  %v4239_v12 = vld [vmem:[%s6826_s19 + $0x30] sm:$0xff]  ;;  %v4240_v13 = vld [vmem:[%s6826_s19 + $0x38] sm:$0xff]  ;;  %s6831_s19 = sld [smem:[#allocation51_spill]] (!%p5160_p10) }
 0x917   : > { %4349 = vmatpush.xpose.msra.mxu2 %v4291_v14  ;;  %4369 = vmatpush.xpose.msra.mxu3 %v4292_v15  ;;  %v4044_v14 = vld [vmem:[%s6028_s28] sm:$0xff] }
 0x918   : > { %v4046_v15 = vperm.slane %v4044_v14, 0 }
 0x91a   : > { %4310 = vmatpush.xpose.msra.mxu0 %v4281_v56  ;;  %4330 = vmatpush.xpose.msra.mxu1 %v4282_v16  ;;  %v4047_v56 = vperm.slane %v4044_v14, 1 }
 0x91b   : > { %4350 = vmatpush.xpose.msra.mxu2 %v4283_v17  ;;  %4370 = vmatpush.xpose.msra.mxu3 %v4284_v18 }
 0x91c   : > { %5154 = vmatmul.msk.f32.vlgmr.msrb.gmra.mxu0 %vm1045_vm1, %v6519_v11  ;;  %5155 = vmatmul.msk.f32.vlgmr.msrb.gmra.mxu1 %vm1045_vm1, %v6519_v11 }
 0x91d   : > { %5156 = vmatmul.msk.f32.vlgmr.msrb.gmra.mxu2 %vm1045_vm1, %v6519_v11  ;;  %5157 = vmatmul.msk.f32.vlgmr.msrb.gmra.mxu3 %vm1045_vm1, %v6519_v11 }
 0x91e   : > { %4311 = vmatpush.xpose.msra.mxu0 %v4273_v20  ;;  %4331 = vmatpush.xpose.msra.mxu1 %v4274_v21 }
 0x91f   : > { %4351 = vmatpush.xpose.msra.mxu2 %v4275_v22  ;;  %4371 = vmatpush.xpose.msra.mxu3 %v4276_v23  ;;  %v4048_v23 = vperm.slane %v4044_v14, 2 }
 0x922   : > { %4312 = vmatpush.xpose.msra.mxu0 %v4265_v24  ;;  %4332 = vmatpush.xpose.msra.mxu1 %v4266_v25  ;;  %v4049_v24 = vperm.slane %v4044_v14, 3  ;;  %v4050_v25 = vperm.slane %v4044_v14, 4 }
 0x923   : > { %4352 = vmatpush.xpose.msra.mxu2 %v4267_v26  ;;  %4372 = vmatpush.xpose.msra.mxu3 %v4268_v27  ;;  %v4051_v26 = vperm.slane %v4044_v14, 5 }
 0x926   : > { %4313 = vmatpush.xpose.msra.mxu0 %v4257_v28  ;;  %4333 = vmatpush.xpose.msra.mxu1 %v4258_v29 }
 0x927   : > { %4353 = vmatpush.xpose.msra.mxu2 %v4259_v30  ;;  %4373 = vmatpush.xpose.msra.mxu3 %v4260_v31 }
 0x92a   : > { %4314 = vmatpush.xpose.msra.mxu0 %v4249_v32  ;;  %4334 = vmatpush.xpose.msra.mxu1 %v4250_v33 }
 0x92b   : > { %4354 = vmatpush.xpose.msra.mxu2 %v4251_v34  ;;  %4374 = vmatpush.xpose.msra.mxu3 %v4252_v35 }
 0x92e   : > { %4315 = vmatpush.xpose.msra.mxu0 %v4241_v36  ;;  %4335 = vmatpush.xpose.msra.mxu1 %v4242_v37 }
 0x92f   : > { %4355 = vmatpush.xpose.msra.mxu2 %v4243_v38  ;;  %4375 = vmatpush.xpose.msra.mxu3 %v4244_v39  ;;  %v4052_v39 = vperm.slane %v4044_v14, 6 }
 0x932   : > { %4316 = vmatpush.xpose.msra.mxu0 %v4233_v40  ;;  %4336 = vmatpush.xpose.msra.mxu1 %v4234_v41  ;;  %v4053_v40 = vperm.slane %v4044_v14, 7 }
 0x933   : > { %4356 = vmatpush.xpose.msra.mxu2 %v4235_v44  ;;  %4376 = vmatpush.xpose.msra.mxu3 %v4236_v45 }
 0x936   : > { %4389 = vmatpush.xpose.msrb.mxu0 %v4293_v42  ;;  %4409 = vmatpush.xpose.msrb.mxu1 %v4294_v43 }
 0x937   : > { %4429 = vmatpush.xpose.msrb.mxu2 %v4295_v46  ;;  %4449 = vmatpush.xpose.msrb.mxu3 %v4296_v47  ;;  %v5353_v47 = vld [vmem:[%s1021_s16] ss:$0 sm:$0xff] }
 0x93a   : > { %4390 = vmatpush.xpose.msrb.mxu0 %v4285_v48  ;;  %4410 = vmatpush.xpose.msrb.mxu1 %v4286_v49 }
 0x93b   : > { %4430 = vmatpush.xpose.msrb.mxu2 %v4287_v50  ;;  %4450 = vmatpush.xpose.msrb.mxu3 %v4288_v51 }
 0x93e   : > { %4391 = vmatpush.xpose.msrb.mxu0 %v4277_v52  ;;  %4411 = vmatpush.xpose.msrb.mxu1 %v4278_v53 }
 0x93f   : > { %4431 = vmatpush.xpose.msrb.mxu2 %v4279_v54  ;;  %4451 = vmatpush.xpose.msrb.mxu3 %v4280_v7 }
 0x942   : > { %4392 = vmatpush.xpose.msrb.mxu0 %v4269_v57  ;;  %4412 = vmatpush.xpose.msrb.mxu1 %v4270_v58 }
 0x943   : > { %4432 = vmatpush.xpose.msrb.mxu2 %v4271_v60  ;;  %4452 = vmatpush.xpose.msrb.mxu3 %v4272_v61 }
 0x946   : > { %4393 = vmatpush.xpose.msrb.mxu0 %v4261_v59  ;;  %4413 = vmatpush.xpose.msrb.mxu1 %v4262_v19 }
 0x947   : > { %4433 = vmatpush.xpose.msrb.mxu2 %v4263_v0  ;;  %4453 = vmatpush.xpose.msrb.mxu3 %v4264_v1 }
 0x94a   : > { %4394 = vmatpush.xpose.msrb.mxu0 %v4253_v62  ;;  %4414 = vmatpush.xpose.msrb.mxu1 %v4254_v63 }
 0x94b   : > { %4434 = vmatpush.xpose.msrb.mxu2 %v4255_v4  ;;  %4454 = vmatpush.xpose.msrb.mxu3 %v4256_v5 }
 0x94e   : > { %4395 = vmatpush.xpose.msrb.mxu0 %v4245_v2  ;;  %4415 = vmatpush.xpose.msrb.mxu1 %v4246_v3 }
 0x94f   : > { %4435 = vmatpush.xpose.msrb.mxu2 %v4247_v9  ;;  %4455 = vmatpush.xpose.msrb.mxu3 %v4248_v10 }
 0x952   : > { %4396 = vmatpush.xpose.msrb.mxu0 %v4237_v6  ;;  %4416 = vmatpush.xpose.msrb.mxu1 %v4238_v8 }
 0x953   : > { %4436 = vmatpush.xpose.msrb.mxu2 %v4239_v12  ;;  %4456 = vmatpush.xpose.msrb.mxu3 %v4240_v13 }
 0x991   : > { %v4082_v16 = vpop.f32.mrf.mxu0  ;;  %v4102_v17 = vpop.f32.mrf.mxu1 }
 0x992   : > { %v4083_v18 = vadd.f32 %v4082_v16, %v4046_v15  ;;  %v4103_v20 = vadd.f32 %v4102_v17, %v4047_v56  ;;  %v5354_v16 = vld [vmem:[%s6038_s25 + $0x2] ss:$0 sm:$0xff]  ;;  %s6828_s25 = sld [smem:[#allocation52_spill]] (!%p5160_p10) }
 0x994   : > { %v4225_v21 = vmax.f32 %v4083_v18, 0.0  ;;  %v4226_v22 = vmax.f32 %v4103_v20, 0.0  ;;  %v5355_v18 = vld [vmem:[%s6043_s24 + $0x2] ss:$0 sm:$0xff] }
 0x996   : > { %4317 = vmatmul.f32.vlgmr.msra.gmra.mxu0 %v4225_v21  ;;  %4337 = vmatmul.f32.vlgmr.msra.gmra.mxu1 %v4226_v22 }
 0x998   : > { %v4122_v27 = vpop.f32.mrf.mxu2  ;;  %v4142_v28 = vpop.f32.mrf.mxu3  ;;  %s6829_s24 = smov (!%p5160_p10), %s6828_s25 }
 0x999   : > { %v4123_v29 = vadd.f32 %v4122_v27, %v4048_v23  ;;  %v4143_v30 = vadd.f32 %v4142_v28, %v4049_v24  ;;  %v4162_v31 = vpop.f32.mrf.mxu0  ;;  %v4182_v32 = vpop.f32.mrf.mxu1 }
 0x99a   : > { %v4163_v33 = vadd.f32 %v4162_v31, %v4050_v25  ;;  %v4183_v34 = vadd.f32 %v4182_v32, %v4051_v26 }
 0x99b   : > { %v4227_v35 = vmax.f32 %v4123_v29, 0.0  ;;  %v4228_v36 = vmax.f32 %v4143_v30, 0.0 }
 0x99c   : > { %v4229_v37 = vmax.f32 %v4163_v33, 0.0  ;;  %v4230_v38 = vmax.f32 %v4183_v34, 0.0 }
 0x99d   : > { %4357 = vmatmul.f32.vlgmr.msra.gmra.mxu2 %v4227_v35  ;;  %4377 = vmatmul.f32.vlgmr.msra.gmra.mxu3 %v4228_v36 }
 0x99e   : > { %4397 = vmatmul.f32.vlgmr.msrb.gmra.mxu0 %v4229_v37  ;;  %4417 = vmatmul.f32.vlgmr.msrb.gmra.mxu1 %v4230_v38 }
 0x9a0   : > { %v4202_v41 = vpop.f32.mrf.mxu2  ;;  %v4222_v42 = vpop.f32.mrf.mxu3 }
 0x9a1   : > { %v4203_v43 = vadd.f32 %v4202_v41, %v4052_v39  ;;  %v4223_v44 = vadd.f32 %v4222_v42, %v4053_v40 }
 0x9a3   : > { %v4231_v45 = vmax.f32 %v4203_v43, 0.0  ;;  %v4232_v46 = vmax.f32 %v4223_v44, 0.0 }
 0x9a5   : > { %4437 = vmatmul.f32.vlgmr.msrb.gmra.mxu2 %v4231_v45  ;;  %4457 = vmatmul.f32.vlgmr.msrb.gmra.mxu3 %v4232_v46 }
 0xa13   : > { %v4318_v48 = vpop.f32.mrf.mxu0  ;;  %v4338_v50 = vpop.f32.mrf.mxu1 }
 0xa14   : > { %v4319_v49 = vadd.f32 %v5353_v47, %v4318_v48 }
 0xa16   : > { %v4339_v51 = vadd.f32 %v4338_v50, %v4319_v49 }
 0xa1b   : > { %v4398_v57 = vpop.f32.mrf.mxu0  ;;  %v4418_v59 = vpop.f32.mrf.mxu1 }
 0xa20   : > { %v4358_v52 = vpop.f32.mrf.mxu2  ;;  %v4378_v53 = vpop.f32.mrf.mxu3 }
 0xa21   : > { %v4359_v54 = vadd.f32 %v4358_v52, %v4339_v51 }
 0xa23   : > { %v4379_v7 = vadd.f32 %v4378_v53, %v4359_v54 }
 0xa25   : > { %v4399_v58 = vadd.f32 %v4398_v57, %v4379_v7 }
 0xa27   : > { %v4419_v19 = vadd.f32 %v4418_v59, %v4399_v58 }
 0xa28   : > { %v4438_v60 = vpop.f32.mrf.mxu2  ;;  %v4458_v62 = vpop.f32.mrf.mxu3 }
 0xa29   : > { %v4439_v61 = vadd.f32 %v4438_v60, %v4419_v19 }
 0xa2b   : > { %v4459_v63 = vadd.f32 %v4458_v62, %v4439_v61 }
 0xa2d   : > { %v4461_v0 = vadd.f32 %v4459_v63, %v6519_v11 }
 0xa2f   : > { %v4466_v1 = vsel %vm1045_vm1, %v4461_v0, 0.0 }
 0xa30   : > { %4467 = vadd.xlane.f32.xlu0 %v4466_v1 }
 0xaa3   : > { %v4468_v2 = vpop.xlane.xlu0 %4467 }
 0xaa4   : > { %v4469_v3 = vmul.f32 %v4468_v2, %v6256_v55 }
 0xaa6   : > { %v4470_v4 = vsub.f32 %v4461_v0, %v4469_v3 }
 0xaa8   : > { %v4471_v5 = vmul.f32 %v4470_v4, %v4470_v4 }
 0xaaa   : > { %v4472_v6 = vsel %vm1045_vm1, %v4471_v5, 0.0 }
 0xaab   : > { %4473 = vadd.xlane.f32.xlu1 %v4472_v6 }
 0xb1e   : > { %v4474_v8 = vpop.xlane.xlu1 %4473 }
 0xb1f   : > { %v4475_v9 = vmul.f32 %v4474_v8, %v6256_v55 }
 0xb21   : > { %v4476_v10 = vadd.f32 1e-05, %v4475_v9 }
 0xb23   : > { %5426 = vrsqrt.f32 %v4476_v10  ;;  %vm4483_vm11 = vweird.f32 %v4476_v10 }
 0xb29   : > { %v5427_v11 = vpop.eup %5426 }
 0xb2a   : > { %v4478_v12 = vmul.f32 %v5427_v11, %v4476_v10  ;;  %vm4484_vm10 = vweird.f32 %v5427_v11 }
 0xb2b   : > { %vm4485_vm12 = vmor %vm4483_vm11, %vm4484_vm10 }
 0xb2c   : > { %v4479_v13 = vmul.f32 %v5427_v11, %v4478_v12 }
 0xb2e   : > { %v4480_v14 = vmul.f32 0.5, %v4479_v13 }
 0xb30   : > { %v4481_v15 = vsub.f32 1.5, %v4480_v14 }
 0xb32   : > { %v4482_v56 = vmul.f32 %v5427_v11, %v4481_v15 }
 0xb34   : > { %v4486_v17 = vsel %vm4485_vm12, %v5427_v11, %v4482_v56 }
 0xb35   : > { %v4487_v20 = vmul.f32 %v4486_v17, %v4470_v4 }
 0xb37   : > { %v4491_v21 = vmul.f32 %v5354_v16, %v4487_v20  ;;  %4500 = sbr.rel (%p5160_p10) target bundleno = 3273 (0xcc9), region = 128 }
 0xb39   : > { %v4495_v22 = vadd.f32 %v5355_v18, %v4491_v21 }
 0xb3b   : > { %4496 = vst.msk [vmem:[%s6061_s9] sm:$0xff] %vm1045_vm1, %v4495_v22 }
 0xb3c   : > { %v4503_v23 = vsel %vm1045_vm1, %v4495_v22, 0.0  ;;  %v4540_v29 = vld [vmem:[%s6828_s25 + $0x38] sm:$0xff]  ;;  %v4539_v30 = vld [vmem:[%s6829_s24 + $0x30] sm:$0xff]  ;;  %v4538_v31 = vld [vmem:[%s6829_s24 + $0x28] sm:$0xff] }
 0xb3d   : > { %4504 = vadd.xlane.f32.xlu0 %v4503_v23  ;;  %4556 = vmatpush.msra.mxu0 %v4540_v29  ;;  %v4537_v32 = vld [vmem:[%s6829_s24 + $0x20] sm:$0xff]  ;;  %v4536_v33 = vld [vmem:[%s6829_s24 + $0x18] sm:$0xff]  ;;  %v4535_v34 = vld [vmem:[%s6829_s24 + $0x10] sm:$0xff] }
 0xb3e   : > { %v4534_v35 = vld [vmem:[%s6829_s24 + $0x8] sm:$0xff]  ;;  %v4533_v36 = vld [vmem:[%s6829_s24] sm:$0xff] }
 0xb3f   : > { %4557 = vmatpush.msra.mxu0 %v4539_v30  ;;  %v5428_v46 = vld [vmem:[%s6830_s2] ss:$0 sm:$0xff] }
 0xb40   : > { %v5430_v51 = vld [vmem:[%s6832_s30] ss:$0 sm:$0xff] }
 0xb41   : > { %4558 = vmatpush.msra.mxu0 %v4538_v31 }
 0xb43   : > { %4559 = vmatpush.msra.mxu0 %v4537_v32 }
 0xb45   : > { %4560 = vmatpush.msra.mxu0 %v4536_v33 }
 0xb47   : > { %4561 = vmatpush.msra.mxu0 %v4535_v34 }
 0xb49   : > { %4562 = vmatpush.msra.mxu0 %v4534_v35 }
 0xb4b   : > { %4563 = vmatpush.msra.mxu0 %v4533_v36 }
 0xbb0   : > { %v4505_v24 = vpop.xlane.xlu0 %4504 }
 0xbb1   : > { %v4506_v25 = vmul.f32 %v4505_v24, %v6256_v55 }
 0xbb3   : > { %v4507_v26 = vsub.f32 %v4495_v22, %v4506_v25 }
 0xbb5   : > { %v4508_v27 = vmul.f32 %v4507_v26, %v4507_v26 }
 0xbb7   : > { %v4509_v28 = vsel %vm1045_vm1, %v4508_v27, 0.0 }
 0xbb8   : > { %4510 = vadd.xlane.f32.xlu0 %v4509_v28 }
 0xc2b   : > { %v4511_v37 = vpop.xlane.xlu0 %4510 }
 0xc2c   : > { %v4512_v38 = vmul.f32 %v4511_v37, %v6256_v55  ;;  %v5429_v55 = vld [vmem:[%s6831_s19] ss:$0 sm:$0xff] }
 0xc2e   : > { %v4513_v39 = vadd.f32 1e-05, %v4512_v38 }
 0xc30   : > { %5431 = vrsqrt.f32 %v4513_v39  ;;  %vm4520_vm14 = vweird.f32 %v4513_v39 }
 0xc36   : > { %v5432_v40 = vpop.eup %5431 }
 0xc37   : > { %v4515_v41 = vmul.f32 %v5432_v40, %v4513_v39  ;;  %vm4521_vm13 = vweird.f32 %v5432_v40 }
 0xc38   : > { %vm4522_vm15 = vmor %vm4520_vm14, %vm4521_vm13 }
 0xc39   : > { %v4516_v42 = vmul.f32 %v5432_v40, %v4515_v41 }
 0xc3b   : > { %v4517_v43 = vmul.f32 0.5, %v4516_v42 }
 0xc3d   : > { %v4518_v44 = vsub.f32 1.5, %v4517_v43 }
 0xc3f   : > { %v4519_v45 = vmul.f32 %v5432_v40, %v4518_v44 }
 0xc41   : > { %v4523_v47 = vsel %vm4522_vm15, %v5432_v40, %v4519_v45 }
 0xc42   : > { %v4524_v48 = vmul.f32 %v4523_v47, %v4507_v26 }
 0xc44   : > { %v4528_v49 = vmul.f32 %v5428_v46, %v4524_v48 }
 0xc46   : > { %v4532_v50 = vadd.f32 %v5429_v55, %v4528_v49 }
 0xc48   : > { %5161 = vmatmul.msk.f32.vlgmr.msra.gmra.mxu0 %vm1045_vm1, %v4532_v50 }
 0xcc5   : > { %v4565_v52 = vpop.f32.mrf.mxu0 }
 0xcc6   : > { %v4566_v53 = vadd.f32 %v5430_v51, %v4565_v52 }
 0xcc8   : > { %4568 = vst [vmem:[%s978_s13] sm:$0xff] %v4566_v53 }
 0xcc9 PF: > { %s6833_s25 = sld [smem:[#allocation54_spill]]  ;;  %s4582_s26 = sshll.u32 %s978_s13, 4  ;;  %s4583_s26 = int_to_ptr.vmem [resolvable:$true] %s4582_s26 }
 0xcca   : > { %s6835_s18 = sld [smem:[#allocation17_spill]] }
 0xccf   : > { %s6834_s9 = smov %s6833_s25  ;;  %s4580_s5 = scalar_lea.hbm %s6833_s25, %s4909_s27 }
 0xcd0   : > { %s4584_s3 = sshll.u32 %s4580_s5, 4  ;;  %s6837_s4 = sand.u32 1, %s6835_s18   ;;  %s4585_s3 = int_to_ptr.hbm [resolvable:$true] %s4584_s3 }
 0xcd1   : > { %s4570_s12 = scalar_lea.sflag [#allocation5], %s6837_s4  ;;  %s5567_s10 = sshra.s32 %s4585_s3, 4  ;;  %s5568_s10 = int_to_ptr.hbm [resolvable:$true] %s5567_s10 }
 0xcd2   : > { %s5569_s15 = scalar_lea.hbm %s5568_s10, 8  ;;  %s5573_s8 = scalar_lea.hbm %s6834_s9, 16 }
 0xcd3   : > { %p5570_p11 = scmp.ne.s32.totalorder %s5568_s10, %s5569_s15  ;;  %p5574_p1 = scmp.lt.s32.totalorder %s5568_s10, %s6834_s9 }
 0xcd4   : > { %p5575_p4 = scmp.lt.s32.totalorder %s5573_s8, %s5569_s15 }
 0xcd5   : > { %p5571_p13 = pnand %p5570_p11, %p5892_p12 }
 0xcd6   : > { %p5576_p5 = por %p5575_p4, %p5574_p1 }
 0xcd7   : > { %p5572_p0 = pneg %p5571_p13 }
 0xcd9   : > { %p5577_p3 = pnand %p5576_p5, %p5572_p0 }
 0xcdb   : > { %5580 = shalt.err (!%p5577_p3)
}
 0xcdc   : > { %5185 = dma.vmem_to_hbm [thread:$0]  (%p5892_p12), %s4583_s26, 128, %s4585_s3, %s4570_s12  }
 0xcdd PF: > { %s6838_s20 = sld [smem:[#allocation23_spill]] }
 0xcde   : > { %s6839_s13 = sld [smem:[#allocation16_spill]] }
 0xce3   : > { %p5205_p6 = scmp.ge.s32.totalorder %s6838_s20, 2 }
 0xce4   : > { %s4596_s1 = sand.u32 1, %s6839_s13  }
 0xce5   : > { %p5201_p7 = pnand %p5205_p6, %p5902_p2  ;;  %s4597_s23 = scalar_lea.sflag [#allocation5], %s4596_s1 }
 0xce7   : > { %p5202_p9 = pneg %p5201_p7 }
 0xce9   : > { %5638 = dma.done.wait (%p5202_p9), %s4597_s23, 128  }
 0xcea   : > { %5640 = vsyncadd (%p5202_p9), %s4597_s23, 4294967168  ;;  %s43_s5 = sadd.s32 1, %s6838_s20   ;;  %s6841_s2 = sld [smem:[#allocation17_spill]] }
 0xceb   : > { %p40_p8 = scmp.ge.s32.totalorder %s43_s5, 6   ;;  %s6842_s25 = sld [smem:[#allocation18_spill]] }
 0xcec   : > { %s6843_s26 = sld [smem:[#allocation27_spill]] }
 0xced   : > { %s6844_s27 = sld [smem:[#allocation19_spill]] }
 0xcee   : > { %s6845_s3 = sld [smem:[#allocation20_spill]] }
 0xcef   : > { %s6846_s28 = sld [smem:[#allocation26_spill]]  ;;  %42 = sbr.rel (!%p40_p8) target bundleno = 36 (0x24), region = 289 }
 0xcf0   : > { %s6847_s29 = sld [smem:[#allocation21_spill]] }
 0xcf1   : > { %s6848_s0 = sld [smem:[#allocation22_spill]] }
 0xcf2   : > { %s6849_s4 = sld [smem:[#allocation24_spill]] }
 0xcf3   : > { %s6850_s30 = sld [smem:[#allocation25_spill]] }
 0xcf4   :  { %4603 = vsyncpa [#allocation4], 1 }
 0xcf5   :  { %4605 = vsyncpa [#allocation4 + $0x1], 1 }
 0xcf6   :  { %4606 = vsyncpa [#allocation7], 1 }
 0xcf7   :  { %4608 = vsyncpa [#allocation7 + $0x1], 1 }
 0xcf8   :  { %4609 = vsyncpa [#allocation10], 1 }
 0xcf9   :  { %4611 = vsyncpa [#allocation10 + $0x1], 1 }
 0xcfa   :  { %4612 = vsyncpa [#allocation5], 1 }
 0xcfb   :  { %4614 = vsyncpa [#allocation5 + $0x1], 1 }

</bundles_post_ra>
